<compile_context>
chip_gen: v5e
topology: v5e:2x2
jax: 0.10.0
libtpu: 0.0.40
codegen_flags: <defaults>
</compile_context>

<pallas_src>
import math

import jax
import jax.numpy as jnp
from jax import lax
from jax.experimental import pallas as pl
from jax.experimental.pallas import tpu as pltpu

# ------------------------- hyper-params (FastHparam, simplified) -------------
N_FEATS = 8        # hp.num_mels
HIDDEN = 32        # text-encoder hidden channels
VOCAB = 40         # phoneme vocab
N_TONES = 8
N_SPKS = 1         # hp.n_speakers == 1 -> no speaker embedding branch
PRIOR_LOSS = True
SIGMA_MIN = 1e-4   # CFM sigma_min
LOG_2PI = math.log(2.0 * math.pi)

B, T_X, T_Y = 2, 16, 32     # batch, max text len, max mel len
NEG = -1e9
LOSS_LANES = 128            # lane-dense packed loss output


# ------------------------------ fused kernel ---------------------------------
def _fused_fast_tts_kernel(
        # scalar prefetch (SMEM)
        tl_ref, ml_ref,
        # VMEM inputs
        h_ref, mel_ref, z_ref, t_ref,
        wmu_ref, bmu_ref, ww_ref, bw_ref, wv_ref, bv_ref,
        # output
        out_ref,
        # VMEM scratch
        v_scr, attn_scr):
    b = pl.program_id(0)
    tl = tl_ref[b]            # text length of this batch element
    ml = ml_ref[b]            # mel  length of this batch element

    h = h_ref[0]              # (H, Tx)
    mel = mel_ref[0]          # (F, Ty)
    z = z_ref[0]              # (F, Ty)
    tt = t_ref[0]             # (1, 1)

    f = wmu_ref.shape[0]
    tx = h.shape[1]
    ty = mel.shape[1]

    # Masks built in-kernel from SMEM lengths (no mask DMA).
    xm = (lax.broadcasted_iota(jnp.int32, (1, tx), 1) < tl).astype(jnp.float32)
    ym = (lax.broadcasted_iota(jnp.int32, (1, ty), 1) < ml).astype(jnp.float32)

    # ---- text-encoder projections (MXU) ----
    mu_x = (jnp.dot(wmu_ref[...], h, preferred_element_type=jnp.float32)
            + bmu_ref[...]) * xm                                        # (F, Tx)
    logw = (jnp.dot(ww_ref[...], h, preferred_element_type=jnp.float32)
            + bw_ref[...]) * xm                                         # (1, Tx)

    # ---- log prior, computed directly in transposed (Ty, Tx) orientation ----
    # log_prior[y, x] = sum_f mel*mu_x - 0.5*sum_f mel^2 - 0.5*sum_f mu_x^2 + c
    # first two terms in ONE augmented MXU pass.
    a_cat = jnp.concatenate([mel, mel * mel], axis=0)                   # (2F, Ty)
    b_cat = jnp.concatenate(
        [mu_x, jnp.full((f, tx), -0.5, jnp.float32)], axis=0)           # (2F, Tx)
    log_prior_t = lax.dot_general(a_cat, b_cat, (((0,), (0,)), ((), ())),
                                  preferred_element_type=jnp.float32)   # (Ty, Tx)
    mu_sq = -0.5 * jnp.sum(mu_x * mu_x, axis=0, keepdims=True)          # (1, Tx)
    log_prior_t = log_prior_t + mu_sq + (-0.5 * LOG_2PI * f)

    # mask like monotonic_align.maximum_path (value = value * mask)
    row_y = lax.broadcasted_iota(jnp.int32, (ty, tx), 0)
    col_x = lax.broadcasted_iota(jnp.int32, (ty, tx), 1)
    attn_mask_t = ((row_y < ml) & (col_x < tl)).astype(jnp.float32)
    v_scr[...] = log_prior_t * attn_mask_t

    lane = lax.broadcasted_iota(jnp.int32, (1, tx), 1)

    # ---- monotonic alignment search: forward DP over mel frames (in VMEM) ----
    def fwd_body(y, prev):
        lead = jnp.where(y == 0, 0.0, NEG)
        shifted = pltpu.roll(prev, shift=1, axis=1)          # prev[x-1] at lane x
        prev_shift = jnp.where(lane == 0, lead, shifted)
        cur = jnp.maximum(prev, prev_shift) + v_scr[pl.ds(y, 1), :]
        v_scr[pl.ds(y, 1), :] = cur
        return cur

    lax.fori_loop(0, ty, fwd_body, jnp.full((1, tx), NEG, jnp.float32),
                  unroll=True)

    # ---- backtrace: build one-hot alignment rows attn^T (Ty, Tx) in VMEM ----
    # One XLU roll + one cross-lane reduce per step (vs two reduces).
    def bwd_body(i, index):
        y = ty - 1 - i
        active = y < ml
        onehot = ((lane == index) & active).astype(jnp.float32)
        attn_scr[pl.ds(y, 1), :] = onehot
        ym1 = jnp.maximum(y - 1, 0)
        vrow = v_scr[pl.ds(ym1, 1), :]                        # value[y-1, :]
        vdec = pltpu.roll(vrow, shift=1, axis=1)              # value[y-1, x-1]
        go_left = jnp.where(vrow < vdec, 1.0, 0.0)            # (1, tx)
        go_left_idx = jnp.sum(jnp.where(lane == index, go_left, 0.0)) > 0.5
        dec = (index != 0) & ((index == y) | go_left_idx)
        return jnp.where(active & dec, index - 1, index)

    lax.fori_loop(0, ty, bwd_body, tl - 1, unroll=True)

    attn_t = attn_scr[...]                                   # (Ty, Tx)

    # ---- duration loss numerator (reuses attn tile already in VMEM) ----
    dur = jnp.sum(attn_t, axis=0, keepdims=True)             # (1, Tx)
    logw_tgt = jnp.log(1e-8 + dur) * xm
    dur_sq = jnp.sum((logw - logw_tgt) ** 2)

    # ---- mu_y = mu_x @ attn  (contract the Tx axis of both operands) ----
    mu_y = lax.dot_general(mu_x, attn_t, (((1,), (1,)), ((), ())),
                           preferred_element_type=jnp.float32)          # (F, Ty)

    # ---- prior loss numerator ----
    d = mel - mu_y
    prior_sq = jnp.sum(0.5 * (d * d + LOG_2PI) * ym)

    # ---- CFM flow-matching loss numerator (single concatenated estimator) ---
    # TODO(synk): the CFM U-Net estimator is not defined in the source; a
    # linear (1x1-conv) estimator over [y_t; mu_y] stands in for it.
    yt = (1.0 - (1.0 - SIGMA_MIN) * tt) * z + tt * mel
    u = mel - (1.0 - SIGMA_MIN) * z
    est_in = jnp.concatenate([yt, mu_y], axis=0)                        # (2F, Ty)
    v_est = (jnp.dot(wv_ref[...], est_in, preferred_element_type=jnp.float32)
             + bv_ref[...])                                             # (F, Ty)
    diff_sq = jnp.sum(((v_est - u) ** 2) * ym)

    # ---- pack per-batch loss numerators into a lane-dense 128-wide row ----
    out_lane = lax.broadcasted_iota(jnp.int32, (1, LOSS_LANES), 1)
    packed = jnp.where(out_lane == 0, dur_sq,
             jnp.where(out_lane == 1, prior_sq,
             jnp.where(out_lane == 2, diff_sq, 0.0)))
    out_ref[0] = packed


# -------------------------------- model forward ------------------------------
def fast_tts_forward(params, rng, texts, tones, speakers, text_lens, mels, mel_lens):
    del speakers  # n_spks == 1 -> speaker embedding branch disabled
    Bn, Tx = texts.shape
    F_, Ty = mels.shape[1], mels.shape[2]

    # TODO(synk): the real TextEncoder (conv/transformer stack + duration
    # predictor) is not defined in the source; replaced by embedding lookup
    # (gather, plain JAX) + linear projections (fused into the Pallas kernel).
    emb = params["phone_emb"][texts] + params["tone_emb"][tones]        # (B, Tx, H)
    h = jnp.transpose(emb, (0, 2, 1)).astype(jnp.float32)               # (B, H, Tx)

    # CFM randomness drawn outside the kernel.
    kt, kz = jax.random.split(rng)
    t_rand = jax.random.uniform(kt, (Bn, 1, 1), jnp.float32)
    z = jax.random.normal(kz, mels.shape, jnp.float32)

    text_lens = text_lens.astype(jnp.int32)
    mel_lens = mel_lens.astype(jnp.int32)

    loss_num = pl.pallas_call(
        _fused_fast_tts_kernel,
        out_shape=jax.ShapeDtypeStruct((Bn, 1, LOSS_LANES), jnp.float32),
        grid_spec=pltpu.PrefetchScalarGridSpec(
            num_scalar_prefetch=2,
            grid=(Bn,),
            in_specs=[
                pl.BlockSpec((1, HIDDEN, Tx), lambda b, tl, ml: (b, 0, 0)),   # h
                pl.BlockSpec((1, F_, Ty), lambda b, tl, ml: (b, 0, 0)),       # mels
                pl.BlockSpec((1, F_, Ty), lambda b, tl, ml: (b, 0, 0)),       # z
                pl.BlockSpec((1, 1, 1), lambda b, tl, ml: (b, 0, 0)),         # t
                pl.BlockSpec((F_, HIDDEN), lambda b, tl, ml: (0, 0)),         # w_mu
                pl.BlockSpec((F_, 1), lambda b, tl, ml: (0, 0)),              # b_mu
                pl.BlockSpec((1, HIDDEN), lambda b, tl, ml: (0, 0)),          # w_w
                pl.BlockSpec((1, 1), lambda b, tl, ml: (0, 0)),               # b_w
                pl.BlockSpec((F_, 2 * F_), lambda b, tl, ml: (0, 0)),         # w_v
                pl.BlockSpec((F_, 1), lambda b, tl, ml: (0, 0)),              # b_v
            ],
            out_specs=pl.BlockSpec((1, 1, LOSS_LANES),
                                   lambda b, tl, ml: (b, 0, 0)),
            scratch_shapes=[
                pltpu.VMEM((Ty, Tx), jnp.float32),   # MAS cumulative scores
                pltpu.VMEM((Ty, Tx), jnp.float32),   # one-hot alignment (attn^T)
            ],
        ),
        compiler_params=pltpu.CompilerParams(
            dimension_semantics=("parallel",)),      # megacore-shard batch on v7x
    )(text_lens, mel_lens,
      h, mels, z, t_rand,
      params["w_mu"], params["b_mu"], params["w_w"], params["b_w"],
      params["w_v"], params["b_v"])

    n_text = jnp.sum(text_lens).astype(jnp.float32)
    n_mel = jnp.sum(mel_lens).astype(jnp.float32)     # == sum(y_mask)

    dur_loss = jnp.sum(loss_num[:, 0, 0]) / n_text
    diff_loss = jnp.sum(loss_num[:, 0, 2]) / (n_mel * F_)
    if PRIOR_LOSS:
        prior_loss = jnp.sum(loss_num[:, 0, 1]) / (n_mel * F_)
    else:
        prior_loss = jnp.float32(0.0)
    return dur_loss, prior_loss, diff_loss


# ------------------------------- param init ----------------------------------
def init_params(key):
    keys = jax.random.split(key, 6)
    w_vy = jax.random.normal(keys[4], (N_FEATS, N_FEATS), jnp.float32) / math.sqrt(N_FEATS)
    w_vm = jax.random.normal(keys[5], (N_FEATS, N_FEATS), jnp.float32) / math.sqrt(N_FEATS)
    return {
        "phone_emb": 0.1 * jax.random.normal(keys[0], (VOCAB, HIDDEN), jnp.float32),
        "tone_emb": 0.1 * jax.random.normal(keys[1], (N_TONES, HIDDEN), jnp.float32),
        "w_mu": jax.random.normal(keys[2], (N_FEATS, HIDDEN), jnp.float32) / math.sqrt(HIDDEN),
        "b_mu": jnp.zeros((N_FEATS, 1), jnp.float32),
        "w_w": jax.random.normal(keys[3], (1, HIDDEN), jnp.float32) / math.sqrt(HIDDEN),
        "b_w": jnp.zeros((1, 1), jnp.float32),
        "w_v": jnp.concatenate([w_vy, w_vm], axis=1),   # (F, 2F) fused estimator
        "b_v": jnp.zeros((N_FEATS, 1), jnp.float32),
    }


# --------------------------------- main ---------------------------------------
if __name__ == "__main__":
    root = jax.random.PRNGKey(0)
    kp, k0, k1, k2, k3 = jax.random.split(root, 5)

    params = init_params(kp)
    texts = jax.random.randint(k0, (B, T_X), 0, VOCAB)
    tones = jax.random.randint(k1, (B, T_X), 0, N_TONES)
    speakers = jnp.zeros((B,), jnp.int32)
    text_lens = jnp.array([T_X, T_X - 4], jnp.int32)
    mels = jax.random.normal(k2, (B, N_FEATS, T_Y), jnp.float32)
    mel_lens = jnp.array([T_Y, T_Y - 8], jnp.int32)
    rng = k3

    fwd = jax.jit(fast_tts_forward)
    dur_loss, prior_loss, diff_loss = fwd(
        params, rng, texts, tones, speakers, text_lens, mels, mel_lens)
    jax.block_until_ready((dur_loss, prior_loss, diff_loss))
    print("KERNEL_OK")
</pallas_src>

<mosaic_0001>
module attributes {stable_mosaic.version = 11 : i64} {
  func.func @_fused_fast_tts_kernel(%arg0: i32, %arg1: memref<2xi32, #tpu.memory_space<smem>>, %arg2: memref<2xi32, #tpu.memory_space<smem>>, %arg3: memref<1x32x16xf32, #tpu.memory_space<vmem>>, %arg4: memref<1x8x32xf32, #tpu.memory_space<vmem>>, %arg5: memref<1x8x32xf32, #tpu.memory_space<vmem>>, %arg6: memref<1x1x1xf32, #tpu.memory_space<vmem>>, %arg7: memref<8x32xf32, #tpu.memory_space<vmem>>, %arg8: memref<8x1xf32, #tpu.memory_space<vmem>>, %arg9: memref<1x32xf32, #tpu.memory_space<vmem>>, %arg10: memref<1x1xf32, #tpu.memory_space<vmem>>, %arg11: memref<8x16xf32, #tpu.memory_space<vmem>>, %arg12: memref<8x1xf32, #tpu.memory_space<vmem>>, %arg13: memref<1x1x128xf32, #tpu.memory_space<vmem>>, %arg14: memref<32x16xf32, #tpu.memory_space<vmem>>, %arg15: memref<32x16xf32, #tpu.memory_space<vmem>>) attributes {dimension_semantics = [#tpu.dimension_semantics<parallel>], iteration_bounds = array<i64: 2>, scalar_prefetch = 2 : i64, scratch_operands = 2 : i64, tpu.core_type = #tpu.core_type<tc>, window_params = [{transform_indices = @transform_0, window_bounds = array<i64: 1, 32, 16>}, {transform_indices = @transform_1, window_bounds = array<i64: 1, 8, 32>}, {transform_indices = @transform_2, window_bounds = array<i64: 1, 8, 32>}, {transform_indices = @transform_3, window_bounds = array<i64: 1, 1, 1>}, {pipeline_mode = #tpu.pipeline_mode<synchronous>, transform_indices = @transform_4, window_bounds = array<i64: 8, 32>}, {pipeline_mode = #tpu.pipeline_mode<synchronous>, transform_indices = @transform_5, window_bounds = array<i64: 8, 1>}, {pipeline_mode = #tpu.pipeline_mode<synchronous>, transform_indices = @transform_6, window_bounds = array<i64: 1, 32>}, {pipeline_mode = #tpu.pipeline_mode<synchronous>, transform_indices = @transform_7, window_bounds = array<i64: 1, 1>}, {pipeline_mode = #tpu.pipeline_mode<synchronous>, transform_indices = @transform_8, window_bounds = array<i64: 8, 16>}, {pipeline_mode = #tpu.pipeline_mode<synchronous>, transform_indices = @transform_9, window_bounds = array<i64: 8, 1>}, {transform_indices = @transform_10, window_bounds = array<i64: 1, 1, 128>}]} {
    %0 = arith.index_cast %arg0 : i32 to index
    %1 = memref.load %arg1[%0] : memref<2xi32, #tpu.memory_space<smem>>
    %2 = arith.index_cast %arg0 : i32 to index
    %3 = memref.load %arg2[%2] : memref<2xi32, #tpu.memory_space<smem>>
    %c0 = arith.constant 0 : index
    %c0_0 = arith.constant 0 : index
    %c0_1 = arith.constant 0 : index
    %4 = vector.load %arg3[%c0, %c0_0, %c0_1] : memref<1x32x16xf32, #tpu.memory_space<vmem>>, vector<1x32x16xf32>
    %5 = vector.shape_cast %4 : vector<1x32x16xf32> to vector<32x16xf32>
    %c0_2 = arith.constant 0 : index
    %c0_3 = arith.constant 0 : index
    %c0_4 = arith.constant 0 : index
    %6 = vector.load %arg4[%c0_2, %c0_3, %c0_4] : memref<1x8x32xf32, #tpu.memory_space<vmem>>, vector<1x8x32xf32>
    %7 = vector.shape_cast %6 : vector<1x8x32xf32> to vector<8x32xf32>
    %c0_5 = arith.constant 0 : index
    %c0_6 = arith.constant 0 : index
    %c0_7 = arith.constant 0 : index
    %8 = vector.load %arg5[%c0_5, %c0_6, %c0_7] : memref<1x8x32xf32, #tpu.memory_space<vmem>>, vector<1x8x32xf32>
    %9 = vector.shape_cast %8 : vector<1x8x32xf32> to vector<8x32xf32>
    %c0_8 = arith.constant 0 : index
    %c0_9 = arith.constant 0 : index
    %c0_10 = arith.constant 0 : index
    %10 = vector.load %arg6[%c0_8, %c0_9, %c0_10] : memref<1x1x1xf32, #tpu.memory_space<vmem>>, vector<1x1x1xf32>
    %11 = vector.shape_cast %10 : vector<1x1x1xf32> to vector<1x1xf32>
    %12 = tpu.iota {dimensions = array<i32: 1>} : vector<1x16xi32>
    %13 = vector.broadcast %1 : i32 to vector<1x16xi32>
    %14 = arith.cmpi slt, %12, %13 : vector<1x16xi32>
    %15 = arith.extui %14 : vector<1x16xi1> to vector<1x16xi32>
    %16 = arith.sitofp %15 : vector<1x16xi32> to vector<1x16xf32>
    %17 = tpu.iota {dimensions = array<i32: 1>} : vector<1x32xi32>
    %18 = vector.broadcast %3 : i32 to vector<1x32xi32>
    %19 = arith.cmpi slt, %17, %18 : vector<1x32xi32>
    %20 = arith.extui %19 : vector<1x32xi1> to vector<1x32xi32>
    %21 = arith.sitofp %20 : vector<1x32xi32> to vector<1x32xf32>
    %c0_11 = arith.constant 0 : index
    %c0_12 = arith.constant 0 : index
    %22 = vector.load %arg7[%c0_11, %c0_12] : memref<8x32xf32, #tpu.memory_space<vmem>>, vector<8x32xf32>
    %cst = arith.constant dense<0.000000e+00> : vector<8x16xf32>
    %23 = tpu.matmul %22, %5, %cst {dimension_numbers = #tpu.dot_dimension_numbers<[1], [0], [0], [1], [0, 0, 1, 1], [], []>} : vector<8x32xf32>, vector<32x16xf32>, vector<8x16xf32> -> vector<8x16xf32>
    %c0_13 = arith.constant 0 : index
    %c0_14 = arith.constant 0 : index
    %24 = vector.load %arg8[%c0_13, %c0_14] : memref<8x1xf32, #tpu.memory_space<vmem>>, vector<8x1xf32>
    %25 = vector.broadcast %24 : vector<8x1xf32> to vector<8x16xf32>
    %26 = arith.addf %23, %25 : vector<8x16xf32>
    %27 = vector.broadcast %16 : vector<1x16xf32> to vector<8x16xf32>
    %28 = arith.mulf %26, %27 : vector<8x16xf32>
    %c0_15 = arith.constant 0 : index
    %c0_16 = arith.constant 0 : index
    %29 = vector.load %arg9[%c0_15, %c0_16] : memref<1x32xf32, #tpu.memory_space<vmem>>, vector<1x32xf32>
    %cst_17 = arith.constant dense<0.000000e+00> : vector<1x16xf32>
    %30 = tpu.matmul %29, %5, %cst_17 {dimension_numbers = #tpu.dot_dimension_numbers<[1], [0], [0], [1], [0, 0, 1, 1], [], []>} : vector<1x32xf32>, vector<32x16xf32>, vector<1x16xf32> -> vector<1x16xf32>
    %c0_18 = arith.constant 0 : index
    %c0_19 = arith.constant 0 : index
    %31 = vector.load %arg10[%c0_18, %c0_19] : memref<1x1xf32, #tpu.memory_space<vmem>>, vector<1x1xf32>
    %32 = vector.broadcast %31 : vector<1x1xf32> to vector<1x16xf32>
    %33 = arith.addf %30, %32 : vector<1x16xf32>
    %34 = arith.mulf %33, %16 : vector<1x16xf32>
    %35 = arith.mulf %7, %7 : vector<8x32xf32>
    %36 = tpu.concatenate %7, %35 in 0 : vector<8x32xf32>, vector<8x32xf32> -> vector<16x32xf32>
    %cst_20 = arith.constant -5.000000e-01 : f32
    %37 = vector.broadcast %cst_20 : f32 to vector<8x16xf32>
    %38 = tpu.concatenate %28, %37 in 0 : vector<8x16xf32>, vector<8x16xf32> -> vector<16x16xf32>
    %cst_21 = arith.constant dense<0.000000e+00> : vector<32x16xf32>
    %39 = tpu.matmul %36, %38, %cst_21 {dimension_numbers = #tpu.dot_dimension_numbers<[0], [0], [1], [1], [0, 1, 1, 1], [], []>} : vector<16x32xf32>, vector<16x16xf32>, vector<32x16xf32> -> vector<32x16xf32>
    %40 = arith.mulf %28, %28 : vector<8x16xf32>
    %cst_22 = arith.constant dense<0.000000e+00> : vector<16xf32>
    %41 = vector.multi_reduction <add>, %40, %cst_22 [0] : vector<8x16xf32> to vector<16xf32>
    %42 = vector.shape_cast %41 : vector<16xf32> to vector<1x16xf32>
    %cst_23 = arith.constant -5.000000e-01 : f32
    %43 = vector.broadcast %cst_23 : f32 to vector<1x16xf32>
    %44 = arith.mulf %43, %42 : vector<1x16xf32>
    %45 = vector.broadcast %44 : vector<1x16xf32> to vector<32x16xf32>
    %46 = arith.addf %39, %45 : vector<32x16xf32>
    %cst_24 = arith.constant -7.35150814 : f32
    %47 = vector.broadcast %cst_24 : f32 to vector<32x16xf32>
    %48 = arith.addf %46, %47 : vector<32x16xf32>
    %49 = tpu.iota {dimensions = array<i32: 0>} : vector<32x16xi32>
    %50 = tpu.iota {dimensions = array<i32: 1>} : vector<32x16xi32>
    %51 = vector.broadcast %3 : i32 to vector<32x16xi32>
    %52 = arith.cmpi slt, %49, %51 : vector<32x16xi32>
    %53 = vector.broadcast %1 : i32 to vector<32x16xi32>
    %54 = arith.cmpi slt, %50, %53 : vector<32x16xi32>
    %55 = arith.andi %52, %54 : vector<32x16xi1>
    %56 = arith.extui %55 : vector<32x16xi1> to vector<32x16xi32>
    %57 = arith.sitofp %56 : vector<32x16xi32> to vector<32x16xf32>
    %58 = arith.mulf %48, %57 : vector<32x16xf32>
    %c0_25 = arith.constant 0 : index
    %c0_26 = arith.constant 0 : index
    %59 = vector.load %arg14[%c0_25, %c0_26] : memref<32x16xf32, #tpu.memory_space<vmem>>, vector<32x16xf32>
    tpu.vector_store %arg14[%c0_25, %c0_26], %58 {strides = array<i32>} : memref<32x16xf32, #tpu.memory_space<vmem>>, vector<32x16xf32>,
    %60 = tpu.iota {dimensions = array<i32: 1>} : vector<1x16xi32>
    %cst_27 = arith.constant -1.000000e+09 : f32
    %61 = vector.broadcast %cst_27 : f32 to vector<1x16xf32>
    %c0_i32 = arith.constant 0 : i32
    %c0_i32_28 = arith.constant 0 : i32
    %62 = arith.cmpi eq, %c0_i32, %c0_i32_28 : i32
    %cst_29 = arith.constant 0.000000e+00 : f32
    %cst_30 = arith.constant -1.000000e+09 : f32
    %63 = arith.select %62, %cst_29, %cst_30 : f32
    %c1_i32 = arith.constant 1 : i32
    %64 = tpu.dynamic_rotate %61 by %c1_i32 dim 1 : vector<1x16xf32>, i32 -> vector<1x16xf32>
    %c0_i32_31 = arith.constant 0 : i32
    %65 = vector.broadcast %c0_i32_31 : i32 to vector<1x16xi32>
    %66 = arith.cmpi eq, %60, %65 : vector<1x16xi32>
    %67 = vector.broadcast %63 : f32 to vector<1x16xf32>
    %68 = arith.select %66, %67, %64 : vector<1x16xi1>, vector<1x16xf32>
    %69 = arith.maximumf %61, %68 : vector<1x16xf32>
    %70 = arith.index_cast %c0_i32 : i32 to index
    %c0_32 = arith.constant 0 : index
    %71 = vector.load %arg14[%70, %c0_32] : memref<32x16xf32, #tpu.memory_space<vmem>>, vector<1x16xf32>
    %72 = arith.addf %69, %71 : vector<1x16xf32>
    %73 = arith.index_cast %c0_i32 : i32 to index
    %c0_33 = arith.constant 0 : index
    %74 = vector.load %arg14[%73, %c0_33] : memref<32x16xf32, #tpu.memory_space<vmem>>, vector<1x16xf32>
    tpu.vector_store %arg14[%73, %c0_33], %72 {strides = array<i32>} : memref<32x16xf32, #tpu.memory_space<vmem>>, vector<1x16xf32>,
    %c1_i32_34 = arith.constant 1 : i32
    %c0_i32_35 = arith.constant 0 : i32
    %75 = arith.cmpi eq, %c1_i32_34, %c0_i32_35 : i32
    %cst_36 = arith.constant 0.000000e+00 : f32
    %cst_37 = arith.constant -1.000000e+09 : f32
    %76 = arith.select %75, %cst_36, %cst_37 : f32
    %c1_i32_38 = arith.constant 1 : i32
    %77 = tpu.dynamic_rotate %72 by %c1_i32_38 dim 1 : vector<1x16xf32>, i32 -> vector<1x16xf32>
    %c0_i32_39 = arith.constant 0 : i32
    %78 = vector.broadcast %c0_i32_39 : i32 to vector<1x16xi32>
    %79 = arith.cmpi eq, %60, %78 : vector<1x16xi32>
    %80 = vector.broadcast %76 : f32 to vector<1x16xf32>
    %81 = arith.select %79, %80, %77 : vector<1x16xi1>, vector<1x16xf32>
    %82 = arith.maximumf %72, %81 : vector<1x16xf32>
    %83 = arith.index_cast %c1_i32_34 : i32 to index
    %c0_40 = arith.constant 0 : index
    %84 = vector.load %arg14[%83, %c0_40] : memref<32x16xf32, #tpu.memory_space<vmem>>, vector<1x16xf32>
    %85 = arith.addf %82, %84 : vector<1x16xf32>
    %86 = arith.index_cast %c1_i32_34 : i32 to index
    %c0_41 = arith.constant 0 : index
    %87 = vector.load %arg14[%86, %c0_41] : memref<32x16xf32, #tpu.memory_space<vmem>>, vector<1x16xf32>
    tpu.vector_store %arg14[%86, %c0_41], %85 {strides = array<i32>} : memref<32x16xf32, #tpu.memory_space<vmem>>, vector<1x16xf32>,
    %c2_i32 = arith.constant 2 : i32
    %c0_i32_42 = arith.constant 0 : i32
    %88 = arith.cmpi eq, %c2_i32, %c0_i32_42 : i32
    %cst_43 = arith.constant 0.000000e+00 : f32
    %cst_44 = arith.constant -1.000000e+09 : f32
    %89 = arith.select %88, %cst_43, %cst_44 : f32
    %c1_i32_45 = arith.constant 1 : i32
    %90 = tpu.dynamic_rotate %85 by %c1_i32_45 dim 1 : vector<1x16xf32>, i32 -> vector<1x16xf32>
    %c0_i32_46 = arith.constant 0 : i32
    %91 = vector.broadcast %c0_i32_46 : i32 to vector<1x16xi32>
    %92 = arith.cmpi eq, %60, %91 : vector<1x16xi32>
    %93 = vector.broadcast %89 : f32 to vector<1x16xf32>
    %94 = arith.select %92, %93, %90 : vector<1x16xi1>, vector<1x16xf32>
    %95 = arith.maximumf %85, %94 : vector<1x16xf32>
    %96 = arith.index_cast %c2_i32 : i32 to index
    %c0_47 = arith.constant 0 : index
    %97 = vector.load %arg14[%96, %c0_47] : memref<32x16xf32, #tpu.memory_space<vmem>>, vector<1x16xf32>
    %98 = arith.addf %95, %97 : vector<1x16xf32>
    %99 = arith.index_cast %c2_i32 : i32 to index
    %c0_48 = arith.constant 0 : index
    %100 = vector.load %arg14[%99, %c0_48] : memref<32x16xf32, #tpu.memory_space<vmem>>, vector<1x16xf32>
    tpu.vector_store %arg14[%99, %c0_48], %98 {strides = array<i32>} : memref<32x16xf32, #tpu.memory_space<vmem>>, vector<1x16xf32>,
    %c3_i32 = arith.constant 3 : i32
    %c0_i32_49 = arith.constant 0 : i32
    %101 = arith.cmpi eq, %c3_i32, %c0_i32_49 : i32
    %cst_50 = arith.constant 0.000000e+00 : f32
    %cst_51 = arith.constant -1.000000e+09 : f32
    %102 = arith.select %101, %cst_50, %cst_51 : f32
    %c1_i32_52 = arith.constant 1 : i32
    %103 = tpu.dynamic_rotate %98 by %c1_i32_52 dim 1 : vector<1x16xf32>, i32 -> vector<1x16xf32>
    %c0_i32_53 = arith.constant 0 : i32
    %104 = vector.broadcast %c0_i32_53 : i32 to vector<1x16xi32>
    %105 = arith.cmpi eq, %60, %104 : vector<1x16xi32>
    %106 = vector.broadcast %102 : f32 to vector<1x16xf32>
    %107 = arith.select %105, %106, %103 : vector<1x16xi1>, vector<1x16xf32>
    %108 = arith.maximumf %98, %107 : vector<1x16xf32>
    %109 = arith.index_cast %c3_i32 : i32 to index
    %c0_54 = arith.constant 0 : index
    %110 = vector.load %arg14[%109, %c0_54] : memref<32x16xf32, #tpu.memory_space<vmem>>, vector<1x16xf32>
    %111 = arith.addf %108, %110 : vector<1x16xf32>
    %112 = arith.index_cast %c3_i32 : i32 to index
    %c0_55 = arith.constant 0 : index
    %113 = vector.load %arg14[%112, %c0_55] : memref<32x16xf32, #tpu.memory_space<vmem>>, vector<1x16xf32>
    tpu.vector_store %arg14[%112, %c0_55], %111 {strides = array<i32>} : memref<32x16xf32, #tpu.memory_space<vmem>>, vector<1x16xf32>,
    %c4_i32 = arith.constant 4 : i32
    %c0_i32_56 = arith.constant 0 : i32
    %114 = arith.cmpi eq, %c4_i32, %c0_i32_56 : i32
    %cst_57 = arith.constant 0.000000e+00 : f32
    %cst_58 = arith.constant -1.000000e+09 : f32
    %115 = arith.select %114, %cst_57, %cst_58 : f32
    %c1_i32_59 = arith.constant 1 : i32
    %116 = tpu.dynamic_rotate %111 by %c1_i32_59 dim 1 : vector<1x16xf32>, i32 -> vector<1x16xf32>
    %c0_i32_60 = arith.constant 0 : i32
    %117 = vector.broadcast %c0_i32_60 : i32 to vector<1x16xi32>
    %118 = arith.cmpi eq, %60, %117 : vector<1x16xi32>
    %119 = vector.broadcast %115 : f32 to vector<1x16xf32>
    %120 = arith.select %118, %119, %116 : vector<1x16xi1>, vector<1x16xf32>
    %121 = arith.maximumf %111, %120 : vector<1x16xf32>
    %122 = arith.index_cast %c4_i32 : i32 to index
    %c0_61 = arith.constant 0 : index
    %123 = vector.load %arg14[%122, %c0_61] : memref<32x16xf32, #tpu.memory_space<vmem>>, vector<1x16xf32>
    %124 = arith.addf %121, %123 : vector<1x16xf32>
    %125 = arith.index_cast %c4_i32 : i32 to index
    %c0_62 = arith.constant 0 : index
    %126 = vector.load %arg14[%125, %c0_62] : memref<32x16xf32, #tpu.memory_space<vmem>>, vector<1x16xf32>
    tpu.vector_store %arg14[%125, %c0_62], %124 {strides = array<i32>} : memref<32x16xf32, #tpu.memory_space<vmem>>, vector<1x16xf32>,
    %c5_i32 = arith.constant 5 : i32
    %c0_i32_63 = arith.constant 0 : i32
    %127 = arith.cmpi eq, %c5_i32, %c0_i32_63 : i32
    %cst_64 = arith.constant 0.000000e+00 : f32
    %cst_65 = arith.constant -1.000000e+09 : f32
    %128 = arith.select %127, %cst_64, %cst_65 : f32
    %c1_i32_66 = arith.constant 1 : i32
    %129 = tpu.dynamic_rotate %124 by %c1_i32_66 dim 1 : vector<1x16xf32>, i32 -> vector<1x16xf32>
    %c0_i32_67 = arith.constant 0 : i32
    %130 = vector.broadcast %c0_i32_67 : i32 to vector<1x16xi32>
    %131 = arith.cmpi eq, %60, %130 : vector<1x16xi32>
    %132 = vector.broadcast %128 : f32 to vector<1x16xf32>
    %133 = arith.select %131, %132, %129 : vector<1x16xi1>, vector<1x16xf32>
    %134 = arith.maximumf %124, %133 : vector<1x16xf32>
    %135 = arith.index_cast %c5_i32 : i32 to index
    %c0_68 = arith.constant 0 : index
    %136 = vector.load %arg14[%135, %c0_68] : memref<32x16xf32, #tpu.memory_space<vmem>>, vector<1x16xf32>
    %137 = arith.addf %134, %136 : vector<1x16xf32>
    %138 = arith.index_cast %c5_i32 : i32 to index
    %c0_69 = arith.constant 0 : index
    %139 = vector.load %arg14[%138, %c0_69] : memref<32x16xf32, #tpu.memory_space<vmem>>, vector<1x16xf32>
    tpu.vector_store %arg14[%138, %c0_69], %137 {strides = array<i32>} : memref<32x16xf32, #tpu.memory_space<vmem>>, vector<1x16xf32>,
    %c6_i32 = arith.constant 6 : i32
    %c0_i32_70 = arith.constant 0 : i32
    %140 = arith.cmpi eq, %c6_i32, %c0_i32_70 : i32
    %cst_71 = arith.constant 0.000000e+00 : f32
    %cst_72 = arith.constant -1.000000e+09 : f32
    %141 = arith.select %140, %cst_71, %cst_72 : f32
    %c1_i32_73 = arith.constant 1 : i32
    %142 = tpu.dynamic_rotate %137 by %c1_i32_73 dim 1 : vector<1x16xf32>, i32 -> vector<1x16xf32>
    %c0_i32_74 = arith.constant 0 : i32
    %143 = vector.broadcast %c0_i32_74 : i32 to vector<1x16xi32>
    %144 = arith.cmpi eq, %60, %143 : vector<1x16xi32>
    %145 = vector.broadcast %141 : f32 to vector<1x16xf32>
    %146 = arith.select %144, %145, %142 : vector<1x16xi1>, vector<1x16xf32>
    %147 = arith.maximumf %137, %146 : vector<1x16xf32>
    %148 = arith.index_cast %c6_i32 : i32 to index
    %c0_75 = arith.constant 0 : index
    %149 = vector.load %arg14[%148, %c0_75] : memref<32x16xf32, #tpu.memory_space<vmem>>, vector<1x16xf32>
    %150 = arith.addf %147, %149 : vector<1x16xf32>
    %151 = arith.index_cast %c6_i32 : i32 to index
    %c0_76 = arith.constant 0 : index
    %152 = vector.load %arg14[%151, %c0_76] : memref<32x16xf32, #tpu.memory_space<vmem>>, vector<1x16xf32>
    tpu.vector_store %arg14[%151, %c0_76], %150 {strides = array<i32>} : memref<32x16xf32, #tpu.memory_space<vmem>>, vector<1x16xf32>,
    %c7_i32 = arith.constant 7 : i32
    %c0_i32_77 = arith.constant 0 : i32
    %153 = arith.cmpi eq, %c7_i32, %c0_i32_77 : i32
    %cst_78 = arith.constant 0.000000e+00 : f32
    %cst_79 = arith.constant -1.000000e+09 : f32
    %154 = arith.select %153, %cst_78, %cst_79 : f32
    %c1_i32_80 = arith.constant 1 : i32
    %155 = tpu.dynamic_rotate %150 by %c1_i32_80 dim 1 : vector<1x16xf32>, i32 -> vector<1x16xf32>
    %c0_i32_81 = arith.constant 0 : i32
    %156 = vector.broadcast %c0_i32_81 : i32 to vector<1x16xi32>
    %157 = arith.cmpi eq, %60, %156 : vector<1x16xi32>
    %158 = vector.broadcast %154 : f32 to vector<1x16xf32>
    %159 = arith.select %157, %158, %155 : vector<1x16xi1>, vector<1x16xf32>
    %160 = arith.maximumf %150, %159 : vector<1x16xf32>
    %161 = arith.index_cast %c7_i32 : i32 to index
    %c0_82 = arith.constant 0 : index
    %162 = vector.load %arg14[%161, %c0_82] : memref<32x16xf32, #tpu.memory_space<vmem>>, vector<1x16xf32>
    %163 = arith.addf %160, %162 : vector<1x16xf32>
    %164 = arith.index_cast %c7_i32 : i32 to index
    %c0_83 = arith.constant 0 : index
    %165 = vector.load %arg14[%164, %c0_83] : memref<32x16xf32, #tpu.memory_space<vmem>>, vector<1x16xf32>
    tpu.vector_store %arg14[%164, %c0_83], %163 {strides = array<i32>} : memref<32x16xf32, #tpu.memory_space<vmem>>, vector<1x16xf32>,
    %c8_i32 = arith.constant 8 : i32
    %c0_i32_84 = arith.constant 0 : i32
    %166 = arith.cmpi eq, %c8_i32, %c0_i32_84 : i32
    %cst_85 = arith.constant 0.000000e+00 : f32
    %cst_86 = arith.constant -1.000000e+09 : f32
    %167 = arith.select %166, %cst_85, %cst_86 : f32
    %c1_i32_87 = arith.constant 1 : i32
    %168 = tpu.dynamic_rotate %163 by %c1_i32_87 dim 1 : vector<1x16xf32>, i32 -> vector<1x16xf32>
    %c0_i32_88 = arith.constant 0 : i32
    %169 = vector.broadcast %c0_i32_88 : i32 to vector<1x16xi32>
    %170 = arith.cmpi eq, %60, %169 : vector<1x16xi32>
    %171 = vector.broadcast %167 : f32 to vector<1x16xf32>
    %172 = arith.select %170, %171, %168 : vector<1x16xi1>, vector<1x16xf32>
    %173 = arith.maximumf %163, %172 : vector<1x16xf32>
    %174 = arith.index_cast %c8_i32 : i32 to index
    %c0_89 = arith.constant 0 : index
    %175 = vector.load %arg14[%174, %c0_89] : memref<32x16xf32, #tpu.memory_space<vmem>>, vector<1x16xf32>
    %176 = arith.addf %173, %175 : vector<1x16xf32>
    %177 = arith.index_cast %c8_i32 : i32 to index
    %c0_90 = arith.constant 0 : index
    %178 = vector.load %arg14[%177, %c0_90] : memref<32x16xf32, #tpu.memory_space<vmem>>, vector<1x16xf32>
    tpu.vector_store %arg14[%177, %c0_90], %176 {strides = array<i32>} : memref<32x16xf32, #tpu.memory_space<vmem>>, vector<1x16xf32>,
    %c9_i32 = arith.constant 9 : i32
    %c0_i32_91 = arith.constant 0 : i32
    %179 = arith.cmpi eq, %c9_i32, %c0_i32_91 : i32
    %cst_92 = arith.constant 0.000000e+00 : f32
    %cst_93 = arith.constant -1.000000e+09 : f32
    %180 = arith.select %179, %cst_92, %cst_93 : f32
    %c1_i32_94 = arith.constant 1 : i32
    %181 = tpu.dynamic_rotate %176 by %c1_i32_94 dim 1 : vector<1x16xf32>, i32 -> vector<1x16xf32>
    %c0_i32_95 = arith.constant 0 : i32
    %182 = vector.broadcast %c0_i32_95 : i32 to vector<1x16xi32>
    %183 = arith.cmpi eq, %60, %182 : vector<1x16xi32>
    %184 = vector.broadcast %180 : f32 to vector<1x16xf32>
    %185 = arith.select %183, %184, %181 : vector<1x16xi1>, vector<1x16xf32>
    %186 = arith.maximumf %176, %185 : vector<1x16xf32>
    %187 = arith.index_cast %c9_i32 : i32 to index
    %c0_96 = arith.constant 0 : index
    %188 = vector.load %arg14[%187, %c0_96] : memref<32x16xf32, #tpu.memory_space<vmem>>, vector<1x16xf32>
    %189 = arith.addf %186, %188 : vector<1x16xf32>
    %190 = arith.index_cast %c9_i32 : i32 to index
    %c0_97 = arith.constant 0 : index
    %191 = vector.load %arg14[%190, %c0_97] : memref<32x16xf32, #tpu.memory_space<vmem>>, vector<1x16xf32>
    tpu.vector_store %arg14[%190, %c0_97], %189 {strides = array<i32>} : memref<32x16xf32, #tpu.memory_space<vmem>>, vector<1x16xf32>,
    %c10_i32 = arith.constant 10 : i32
    %c0_i32_98 = arith.constant 0 : i32
    %192 = arith.cmpi eq, %c10_i32, %c0_i32_98 : i32
    %cst_99 = arith.constant 0.000000e+00 : f32
    %cst_100 = arith.constant -1.000000e+09 : f32
    %193 = arith.select %192, %cst_99, %cst_100 : f32
    %c1_i32_101 = arith.constant 1 : i32
    %194 = tpu.dynamic_rotate %189 by %c1_i32_101 dim 1 : vector<1x16xf32>, i32 -> vector<1x16xf32>
    %c0_i32_102 = arith.constant 0 : i32
    %195 = vector.broadcast %c0_i32_102 : i32 to vector<1x16xi32>
    %196 = arith.cmpi eq, %60, %195 : vector<1x16xi32>
    %197 = vector.broadcast %193 : f32 to vector<1x16xf32>
    %198 = arith.select %196, %197, %194 : vector<1x16xi1>, vector<1x16xf32>
    %199 = arith.maximumf %189, %198 : vector<1x16xf32>
    %200 = arith.index_cast %c10_i32 : i32 to index
    %c0_103 = arith.constant 0 : index
    %201 = vector.load %arg14[%200, %c0_103] : memref<32x16xf32, #tpu.memory_space<vmem>>, vector<1x16xf32>
    %202 = arith.addf %199, %201 : vector<1x16xf32>
    %203 = arith.index_cast %c10_i32 : i32 to index
    %c0_104 = arith.constant 0 : index
    %204 = vector.load %arg14[%203, %c0_104] : memref<32x16xf32, #tpu.memory_space<vmem>>, vector<1x16xf32>
    tpu.vector_store %arg14[%203, %c0_104], %202 {strides = array<i32>} : memref<32x16xf32, #tpu.memory_space<vmem>>, vector<1x16xf32>,
    %c11_i32 = arith.constant 11 : i32
    %c0_i32_105 = arith.constant 0 : i32
    %205 = arith.cmpi eq, %c11_i32, %c0_i32_105 : i32
    %cst_106 = arith.constant 0.000000e+00 : f32
    %cst_107 = arith.constant -1.000000e+09 : f32
    %206 = arith.select %205, %cst_106, %cst_107 : f32
    %c1_i32_108 = arith.constant 1 : i32
    %207 = tpu.dynamic_rotate %202 by %c1_i32_108 dim 1 : vector<1x16xf32>, i32 -> vector<1x16xf32>
    %c0_i32_109 = arith.constant 0 : i32
    %208 = vector.broadcast %c0_i32_109 : i32 to vector<1x16xi32>
    %209 = arith.cmpi eq, %60, %208 : vector<1x16xi32>
    %210 = vector.broadcast %206 : f32 to vector<1x16xf32>
    %211 = arith.select %209, %210, %207 : vector<1x16xi1>, vector<1x16xf32>
    %212 = arith.maximumf %202, %211 : vector<1x16xf32>
    %213 = arith.index_cast %c11_i32 : i32 to index
    %c0_110 = arith.constant 0 : index
    %214 = vector.load %arg14[%213, %c0_110] : memref<32x16xf32, #tpu.memory_space<vmem>>, vector<1x16xf32>
    %215 = arith.addf %212, %214 : vector<1x16xf32>
    %216 = arith.index_cast %c11_i32 : i32 to index
    %c0_111 = arith.constant 0 : index
    %217 = vector.load %arg14[%216, %c0_111] : memref<32x16xf32, #tpu.memory_space<vmem>>, vector<1x16xf32>
    tpu.vector_store %arg14[%216, %c0_111], %215 {strides = array<i32>} : memref<32x16xf32, #tpu.memory_space<vmem>>, vector<1x16xf32>,
    %c12_i32 = arith.constant 12 : i32
    %c0_i32_112 = arith.constant 0 : i32
    %218 = arith.cmpi eq, %c12_i32, %c0_i32_112 : i32
    %cst_113 = arith.constant 0.000000e+00 : f32
    %cst_114 = arith.constant -1.000000e+09 : f32
    %219 = arith.select %218, %cst_113, %cst_114 : f32
    %c1_i32_115 = arith.constant 1 : i32
    %220 = tpu.dynamic_rotate %215 by %c1_i32_115 dim 1 : vector<1x16xf32>, i32 -> vector<1x16xf32>
    %c0_i32_116 = arith.constant 0 : i32
    %221 = vector.broadcast %c0_i32_116 : i32 to vector<1x16xi32>
    %222 = arith.cmpi eq, %60, %221 : vector<1x16xi32>
    %223 = vector.broadcast %219 : f32 to vector<1x16xf32>
    %224 = arith.select %222, %223, %220 : vector<1x16xi1>, vector<1x16xf32>
    %225 = arith.maximumf %215, %224 : vector<1x16xf32>
    %226 = arith.index_cast %c12_i32 : i32 to index
    %c0_117 = arith.constant 0 : index
    %227 = vector.load %arg14[%226, %c0_117] : memref<32x16xf32, #tpu.memory_space<vmem>>, vector<1x16xf32>
    %228 = arith.addf %225, %227 : vector<1x16xf32>
    %229 = arith.index_cast %c12_i32 : i32 to index
    %c0_118 = arith.constant 0 : index
    %230 = vector.load %arg14[%229, %c0_118] : memref<32x16xf32, #tpu.memory_space<vmem>>, vector<1x16xf32>
    tpu.vector_store %arg14[%229, %c0_118], %228 {strides = array<i32>} : memref<32x16xf32, #tpu.memory_space<vmem>>, vector<1x16xf32>,
    %c13_i32 = arith.constant 13 : i32
    %c0_i32_119 = arith.constant 0 : i32
    %231 = arith.cmpi eq, %c13_i32, %c0_i32_119 : i32
    %cst_120 = arith.constant 0.000000e+00 : f32
    %cst_121 = arith.constant -1.000000e+09 : f32
    %232 = arith.select %231, %cst_120, %cst_121 : f32
    %c1_i32_122 = arith.constant 1 : i32
    %233 = tpu.dynamic_rotate %228 by %c1_i32_122 dim 1 : vector<1x16xf32>, i32 -> vector<1x16xf32>
    %c0_i32_123 = arith.constant 0 : i32
    %234 = vector.broadcast %c0_i32_123 : i32 to vector<1x16xi32>
    %235 = arith.cmpi eq, %60, %234 : vector<1x16xi32>
    %236 = vector.broadcast %232 : f32 to vector<1x16xf32>
    %237 = arith.select %235, %236, %233 : vector<1x16xi1>, vector<1x16xf32>
    %238 = arith.maximumf %228, %237 : vector<1x16xf32>
    %239 = arith.index_cast %c13_i32 : i32 to index
    %c0_124 = arith.constant 0 : index
    %240 = vector.load %arg14[%239, %c0_124] : memref<32x16xf32, #tpu.memory_space<vmem>>, vector<1x16xf32>
    %241 = arith.addf %238, %240 : vector<1x16xf32>
    %242 = arith.index_cast %c13_i32 : i32 to index
    %c0_125 = arith.constant 0 : index
    %243 = vector.load %arg14[%242, %c0_125] : memref<32x16xf32, #tpu.memory_space<vmem>>, vector<1x16xf32>
    tpu.vector_store %arg14[%242, %c0_125], %241 {strides = array<i32>} : memref<32x16xf32, #tpu.memory_space<vmem>>, vector<1x16xf32>,
    %c14_i32 = arith.constant 14 : i32
    %c0_i32_126 = arith.constant 0 : i32
    %244 = arith.cmpi eq, %c14_i32, %c0_i32_126 : i32
    %cst_127 = arith.constant 0.000000e+00 : f32
    %cst_128 = arith.constant -1.000000e+09 : f32
    %245 = arith.select %244, %cst_127, %cst_128 : f32
    %c1_i32_129 = arith.constant 1 : i32
    %246 = tpu.dynamic_rotate %241 by %c1_i32_129 dim 1 : vector<1x16xf32>, i32 -> vector<1x16xf32>
    %c0_i32_130 = arith.constant 0 : i32
    %247 = vector.broadcast %c0_i32_130 : i32 to vector<1x16xi32>
    %248 = arith.cmpi eq, %60, %247 : vector<1x16xi32>
    %249 = vector.broadcast %245 : f32 to vector<1x16xf32>
    %250 = arith.select %248, %249, %246 : vector<1x16xi1>, vector<1x16xf32>
    %251 = arith.maximumf %241, %250 : vector<1x16xf32>
    %252 = arith.index_cast %c14_i32 : i32 to index
    %c0_131 = arith.constant 0 : index
    %253 = vector.load %arg14[%252, %c0_131] : memref<32x16xf32, #tpu.memory_space<vmem>>, vector<1x16xf32>
    %254 = arith.addf %251, %253 : vector<1x16xf32>
    %255 = arith.index_cast %c14_i32 : i32 to index
    %c0_132 = arith.constant 0 : index
    %256 = vector.load %arg14[%255, %c0_132] : memref<32x16xf32, #tpu.memory_space<vmem>>, vector<1x16xf32>
    tpu.vector_store %arg14[%255, %c0_132], %254 {strides = array<i32>} : memref<32x16xf32, #tpu.memory_space<vmem>>, vector<1x16xf32>,
    %c15_i32 = arith.constant 15 : i32
    %c0_i32_133 = arith.constant 0 : i32
    %257 = arith.cmpi eq, %c15_i32, %c0_i32_133 : i32
    %cst_134 = arith.constant 0.000000e+00 : f32
    %cst_135 = arith.constant -1.000000e+09 : f32
    %258 = arith.select %257, %cst_134, %cst_135 : f32
    %c1_i32_136 = arith.constant 1 : i32
    %259 = tpu.dynamic_rotate %254 by %c1_i32_136 dim 1 : vector<1x16xf32>, i32 -> vector<1x16xf32>
    %c0_i32_137 = arith.constant 0 : i32
    %260 = vector.broadcast %c0_i32_137 : i32 to vector<1x16xi32>
    %261 = arith.cmpi eq, %60, %260 : vector<1x16xi32>
    %262 = vector.broadcast %258 : f32 to vector<1x16xf32>
    %263 = arith.select %261, %262, %259 : vector<1x16xi1>, vector<1x16xf32>
    %264 = arith.maximumf %254, %263 : vector<1x16xf32>
    %265 = arith.index_cast %c15_i32 : i32 to index
    %c0_138 = arith.constant 0 : index
    %266 = vector.load %arg14[%265, %c0_138] : memref<32x16xf32, #tpu.memory_space<vmem>>, vector<1x16xf32>
    %267 = arith.addf %264, %266 : vector<1x16xf32>
    %268 = arith.index_cast %c15_i32 : i32 to index
    %c0_139 = arith.constant 0 : index
    %269 = vector.load %arg14[%268, %c0_139] : memref<32x16xf32, #tpu.memory_space<vmem>>, vector<1x16xf32>
    tpu.vector_store %arg14[%268, %c0_139], %267 {strides = array<i32>} : memref<32x16xf32, #tpu.memory_space<vmem>>, vector<1x16xf32>,
    %c16_i32 = arith.constant 16 : i32
    %c0_i32_140 = arith.constant 0 : i32
    %270 = arith.cmpi eq, %c16_i32, %c0_i32_140 : i32
    %cst_141 = arith.constant 0.000000e+00 : f32
    %cst_142 = arith.constant -1.000000e+09 : f32
    %271 = arith.select %270, %cst_141, %cst_142 : f32
    %c1_i32_143 = arith.constant 1 : i32
    %272 = tpu.dynamic_rotate %267 by %c1_i32_143 dim 1 : vector<1x16xf32>, i32 -> vector<1x16xf32>
    %c0_i32_144 = arith.constant 0 : i32
    %273 = vector.broadcast %c0_i32_144 : i32 to vector<1x16xi32>
    %274 = arith.cmpi eq, %60, %273 : vector<1x16xi32>
    %275 = vector.broadcast %271 : f32 to vector<1x16xf32>
    %276 = arith.select %274, %275, %272 : vector<1x16xi1>, vector<1x16xf32>
    %277 = arith.maximumf %267, %276 : vector<1x16xf32>
    %278 = arith.index_cast %c16_i32 : i32 to index
    %c0_145 = arith.constant 0 : index
    %279 = vector.load %arg14[%278, %c0_145] : memref<32x16xf32, #tpu.memory_space<vmem>>, vector<1x16xf32>
    %280 = arith.addf %277, %279 : vector<1x16xf32>
    %281 = arith.index_cast %c16_i32 : i32 to index
    %c0_146 = arith.constant 0 : index
    %282 = vector.load %arg14[%281, %c0_146] : memref<32x16xf32, #tpu.memory_space<vmem>>, vector<1x16xf32>
    tpu.vector_store %arg14[%281, %c0_146], %280 {strides = array<i32>} : memref<32x16xf32, #tpu.memory_space<vmem>>, vector<1x16xf32>,
    %c17_i32 = arith.constant 17 : i32
    %c0_i32_147 = arith.constant 0 : i32
    %283 = arith.cmpi eq, %c17_i32, %c0_i32_147 : i32
    %cst_148 = arith.constant 0.000000e+00 : f32
    %cst_149 = arith.constant -1.000000e+09 : f32
    %284 = arith.select %283, %cst_148, %cst_149 : f32
    %c1_i32_150 = arith.constant 1 : i32
    %285 = tpu.dynamic_rotate %280 by %c1_i32_150 dim 1 : vector<1x16xf32>, i32 -> vector<1x16xf32>
    %c0_i32_151 = arith.constant 0 : i32
    %286 = vector.broadcast %c0_i32_151 : i32 to vector<1x16xi32>
    %287 = arith.cmpi eq, %60, %286 : vector<1x16xi32>
    %288 = vector.broadcast %284 : f32 to vector<1x16xf32>
    %289 = arith.select %287, %288, %285 : vector<1x16xi1>, vector<1x16xf32>
    %290 = arith.maximumf %280, %289 : vector<1x16xf32>
    %291 = arith.index_cast %c17_i32 : i32 to index
    %c0_152 = arith.constant 0 : index
    %292 = vector.load %arg14[%291, %c0_152] : memref<32x16xf32, #tpu.memory_space<vmem>>, vector<1x16xf32>
    %293 = arith.addf %290, %292 : vector<1x16xf32>
    %294 = arith.index_cast %c17_i32 : i32 to index
    %c0_153 = arith.constant 0 : index
    %295 = vector.load %arg14[%294, %c0_153] : memref<32x16xf32, #tpu.memory_space<vmem>>, vector<1x16xf32>
    tpu.vector_store %arg14[%294, %c0_153], %293 {strides = array<i32>} : memref<32x16xf32, #tpu.memory_space<vmem>>, vector<1x16xf32>,
    %c18_i32 = arith.constant 18 : i32
    %c0_i32_154 = arith.constant 0 : i32
    %296 = arith.cmpi eq, %c18_i32, %c0_i32_154 : i32
    %cst_155 = arith.constant 0.000000e+00 : f32
    %cst_156 = arith.constant -1.000000e+09 : f32
    %297 = arith.select %296, %cst_155, %cst_156 : f32
    %c1_i32_157 = arith.constant 1 : i32
    %298 = tpu.dynamic_rotate %293 by %c1_i32_157 dim 1 : vector<1x16xf32>, i32 -> vector<1x16xf32>
    %c0_i32_158 = arith.constant 0 : i32
    %299 = vector.broadcast %c0_i32_158 : i32 to vector<1x16xi32>
    %300 = arith.cmpi eq, %60, %299 : vector<1x16xi32>
    %301 = vector.broadcast %297 : f32 to vector<1x16xf32>
    %302 = arith.select %300, %301, %298 : vector<1x16xi1>, vector<1x16xf32>
    %303 = arith.maximumf %293, %302 : vector<1x16xf32>
    %304 = arith.index_cast %c18_i32 : i32 to index
    %c0_159 = arith.constant 0 : index
    %305 = vector.load %arg14[%304, %c0_159] : memref<32x16xf32, #tpu.memory_space<vmem>>, vector<1x16xf32>
    %306 = arith.addf %303, %305 : vector<1x16xf32>
    %307 = arith.index_cast %c18_i32 : i32 to index
    %c0_160 = arith.constant 0 : index
    %308 = vector.load %arg14[%307, %c0_160] : memref<32x16xf32, #tpu.memory_space<vmem>>, vector<1x16xf32>
    tpu.vector_store %arg14[%307, %c0_160], %306 {strides = array<i32>} : memref<32x16xf32, #tpu.memory_space<vmem>>, vector<1x16xf32>,
    %c19_i32 = arith.constant 19 : i32
    %c0_i32_161 = arith.constant 0 : i32
    %309 = arith.cmpi eq, %c19_i32, %c0_i32_161 : i32
    %cst_162 = arith.constant 0.000000e+00 : f32
    %cst_163 = arith.constant -1.000000e+09 : f32
    %310 = arith.select %309, %cst_162, %cst_163 : f32
    %c1_i32_164 = arith.constant 1 : i32
    %311 = tpu.dynamic_rotate %306 by %c1_i32_164 dim 1 : vector<1x16xf32>, i32 -> vector<1x16xf32>
    %c0_i32_165 = arith.constant 0 : i32
    %312 = vector.broadcast %c0_i32_165 : i32 to vector<1x16xi32>
    %313 = arith.cmpi eq, %60, %312 : vector<1x16xi32>
    %314 = vector.broadcast %310 : f32 to vector<1x16xf32>
    %315 = arith.select %313, %314, %311 : vector<1x16xi1>, vector<1x16xf32>
    %316 = arith.maximumf %306, %315 : vector<1x16xf32>
    %317 = arith.index_cast %c19_i32 : i32 to index
    %c0_166 = arith.constant 0 : index
    %318 = vector.load %arg14[%317, %c0_166] : memref<32x16xf32, #tpu.memory_space<vmem>>, vector<1x16xf32>
    %319 = arith.addf %316, %318 : vector<1x16xf32>
    %320 = arith.index_cast %c19_i32 : i32 to index
    %c0_167 = arith.constant 0 : index
    %321 = vector.load %arg14[%320, %c0_167] : memref<32x16xf32, #tpu.memory_space<vmem>>, vector<1x16xf32>
    tpu.vector_store %arg14[%320, %c0_167], %319 {strides = array<i32>} : memref<32x16xf32, #tpu.memory_space<vmem>>, vector<1x16xf32>,
    %c20_i32 = arith.constant 20 : i32
    %c0_i32_168 = arith.constant 0 : i32
    %322 = arith.cmpi eq, %c20_i32, %c0_i32_168 : i32
    %cst_169 = arith.constant 0.000000e+00 : f32
    %cst_170 = arith.constant -1.000000e+09 : f32
    %323 = arith.select %322, %cst_169, %cst_170 : f32
    %c1_i32_171 = arith.constant 1 : i32
    %324 = tpu.dynamic_rotate %319 by %c1_i32_171 dim 1 : vector<1x16xf32>, i32 -> vector<1x16xf32>
    %c0_i32_172 = arith.constant 0 : i32
    %325 = vector.broadcast %c0_i32_172 : i32 to vector<1x16xi32>
    %326 = arith.cmpi eq, %60, %325 : vector<1x16xi32>
    %327 = vector.broadcast %323 : f32 to vector<1x16xf32>
    %328 = arith.select %326, %327, %324 : vector<1x16xi1>, vector<1x16xf32>
    %329 = arith.maximumf %319, %328 : vector<1x16xf32>
    %330 = arith.index_cast %c20_i32 : i32 to index
    %c0_173 = arith.constant 0 : index
    %331 = vector.load %arg14[%330, %c0_173] : memref<32x16xf32, #tpu.memory_space<vmem>>, vector<1x16xf32>
    %332 = arith.addf %329, %331 : vector<1x16xf32>
    %333 = arith.index_cast %c20_i32 : i32 to index
    %c0_174 = arith.constant 0 : index
    %334 = vector.load %arg14[%333, %c0_174] : memref<32x16xf32, #tpu.memory_space<vmem>>, vector<1x16xf32>
    tpu.vector_store %arg14[%333, %c0_174], %332 {strides = array<i32>} : memref<32x16xf32, #tpu.memory_space<vmem>>, vector<1x16xf32>,
    %c21_i32 = arith.constant 21 : i32
    %c0_i32_175 = arith.constant 0 : i32
    %335 = arith.cmpi eq, %c21_i32, %c0_i32_175 : i32
    %cst_176 = arith.constant 0.000000e+00 : f32
    %cst_177 = arith.constant -1.000000e+09 : f32
    %336 = arith.select %335, %cst_176, %cst_177 : f32
    %c1_i32_178 = arith.constant 1 : i32
    %337 = tpu.dynamic_rotate %332 by %c1_i32_178 dim 1 : vector<1x16xf32>, i32 -> vector<1x16xf32>
    %c0_i32_179 = arith.constant 0 : i32
    %338 = vector.broadcast %c0_i32_179 : i32 to vector<1x16xi32>
    %339 = arith.cmpi eq, %60, %338 : vector<1x16xi32>
    %340 = vector.broadcast %336 : f32 to vector<1x16xf32>
    %341 = arith.select %339, %340, %337 : vector<1x16xi1>, vector<1x16xf32>
    %342 = arith.maximumf %332, %341 : vector<1x16xf32>
    %343 = arith.index_cast %c21_i32 : i32 to index
    %c0_180 = arith.constant 0 : index
    %344 = vector.load %arg14[%343, %c0_180] : memref<32x16xf32, #tpu.memory_space<vmem>>, vector<1x16xf32>
    %345 = arith.addf %342, %344 : vector<1x16xf32>
    %346 = arith.index_cast %c21_i32 : i32 to index
    %c0_181 = arith.constant 0 : index
    %347 = vector.load %arg14[%346, %c0_181] : memref<32x16xf32, #tpu.memory_space<vmem>>, vector<1x16xf32>
    tpu.vector_store %arg14[%346, %c0_181], %345 {strides = array<i32>} : memref<32x16xf32, #tpu.memory_space<vmem>>, vector<1x16xf32>,
    %c22_i32 = arith.constant 22 : i32
    %c0_i32_182 = arith.constant 0 : i32
    %348 = arith.cmpi eq, %c22_i32, %c0_i32_182 : i32
    %cst_183 = arith.constant 0.000000e+00 : f32
    %cst_184 = arith.constant -1.000000e+09 : f32
    %349 = arith.select %348, %cst_183, %cst_184 : f32
    %c1_i32_185 = arith.constant 1 : i32
    %350 = tpu.dynamic_rotate %345 by %c1_i32_185 dim 1 : vector<1x16xf32>, i32 -> vector<1x16xf32>
    %c0_i32_186 = arith.constant 0 : i32
    %351 = vector.broadcast %c0_i32_186 : i32 to vector<1x16xi32>
    %352 = arith.cmpi eq, %60, %351 : vector<1x16xi32>
    %353 = vector.broadcast %349 : f32 to vector<1x16xf32>
    %354 = arith.select %352, %353, %350 : vector<1x16xi1>, vector<1x16xf32>
    %355 = arith.maximumf %345, %354 : vector<1x16xf32>
    %356 = arith.index_cast %c22_i32 : i32 to index
    %c0_187 = arith.constant 0 : index
    %357 = vector.load %arg14[%356, %c0_187] : memref<32x16xf32, #tpu.memory_space<vmem>>, vector<1x16xf32>
    %358 = arith.addf %355, %357 : vector<1x16xf32>
    %359 = arith.index_cast %c22_i32 : i32 to index
    %c0_188 = arith.constant 0 : index
    %360 = vector.load %arg14[%359, %c0_188] : memref<32x16xf32, #tpu.memory_space<vmem>>, vector<1x16xf32>
    tpu.vector_store %arg14[%359, %c0_188], %358 {strides = array<i32>} : memref<32x16xf32, #tpu.memory_space<vmem>>, vector<1x16xf32>,
    %c23_i32 = arith.constant 23 : i32
    %c0_i32_189 = arith.constant 0 : i32
    %361 = arith.cmpi eq, %c23_i32, %c0_i32_189 : i32
    %cst_190 = arith.constant 0.000000e+00 : f32
    %cst_191 = arith.constant -1.000000e+09 : f32
    %362 = arith.select %361, %cst_190, %cst_191 : f32
    %c1_i32_192 = arith.constant 1 : i32
    %363 = tpu.dynamic_rotate %358 by %c1_i32_192 dim 1 : vector<1x16xf32>, i32 -> vector<1x16xf32>
    %c0_i32_193 = arith.constant 0 : i32
    %364 = vector.broadcast %c0_i32_193 : i32 to vector<1x16xi32>
    %365 = arith.cmpi eq, %60, %364 : vector<1x16xi32>
    %366 = vector.broadcast %362 : f32 to vector<1x16xf32>
    %367 = arith.select %365, %366, %363 : vector<1x16xi1>, vector<1x16xf32>
    %368 = arith.maximumf %358, %367 : vector<1x16xf32>
    %369 = arith.index_cast %c23_i32 : i32 to index
    %c0_194 = arith.constant 0 : index
    %370 = vector.load %arg14[%369, %c0_194] : memref<32x16xf32, #tpu.memory_space<vmem>>, vector<1x16xf32>
    %371 = arith.addf %368, %370 : vector<1x16xf32>
    %372 = arith.index_cast %c23_i32 : i32 to index
    %c0_195 = arith.constant 0 : index
    %373 = vector.load %arg14[%372, %c0_195] : memref<32x16xf32, #tpu.memory_space<vmem>>, vector<1x16xf32>
    tpu.vector_store %arg14[%372, %c0_195], %371 {strides = array<i32>} : memref<32x16xf32, #tpu.memory_space<vmem>>, vector<1x16xf32>,
    %c24_i32 = arith.constant 24 : i32
    %c0_i32_196 = arith.constant 0 : i32
    %374 = arith.cmpi eq, %c24_i32, %c0_i32_196 : i32
    %cst_197 = arith.constant 0.000000e+00 : f32
    %cst_198 = arith.constant -1.000000e+09 : f32
    %375 = arith.select %374, %cst_197, %cst_198 : f32
    %c1_i32_199 = arith.constant 1 : i32
    %376 = tpu.dynamic_rotate %371 by %c1_i32_199 dim 1 : vector<1x16xf32>, i32 -> vector<1x16xf32>
    %c0_i32_200 = arith.constant 0 : i32
    %377 = vector.broadcast %c0_i32_200 : i32 to vector<1x16xi32>
    %378 = arith.cmpi eq, %60, %377 : vector<1x16xi32>
    %379 = vector.broadcast %375 : f32 to vector<1x16xf32>
    %380 = arith.select %378, %379, %376 : vector<1x16xi1>, vector<1x16xf32>
    %381 = arith.maximumf %371, %380 : vector<1x16xf32>
    %382 = arith.index_cast %c24_i32 : i32 to index
    %c0_201 = arith.constant 0 : index
    %383 = vector.load %arg14[%382, %c0_201] : memref<32x16xf32, #tpu.memory_space<vmem>>, vector<1x16xf32>
    %384 = arith.addf %381, %383 : vector<1x16xf32>
    %385 = arith.index_cast %c24_i32 : i32 to index
    %c0_202 = arith.constant 0 : index
    %386 = vector.load %arg14[%385, %c0_202] : memref<32x16xf32, #tpu.memory_space<vmem>>, vector<1x16xf32>
    tpu.vector_store %arg14[%385, %c0_202], %384 {strides = array<i32>} : memref<32x16xf32, #tpu.memory_space<vmem>>, vector<1x16xf32>,
    %c25_i32 = arith.constant 25 : i32
    %c0_i32_203 = arith.constant 0 : i32
    %387 = arith.cmpi eq, %c25_i32, %c0_i32_203 : i32
    %cst_204 = arith.constant 0.000000e+00 : f32
    %cst_205 = arith.constant -1.000000e+09 : f32
    %388 = arith.select %387, %cst_204, %cst_205 : f32
    %c1_i32_206 = arith.constant 1 : i32
    %389 = tpu.dynamic_rotate %384 by %c1_i32_206 dim 1 : vector<1x16xf32>, i32 -> vector<1x16xf32>
    %c0_i32_207 = arith.constant 0 : i32
    %390 = vector.broadcast %c0_i32_207 : i32 to vector<1x16xi32>
    %391 = arith.cmpi eq, %60, %390 : vector<1x16xi32>
    %392 = vector.broadcast %388 : f32 to vector<1x16xf32>
    %393 = arith.select %391, %392, %389 : vector<1x16xi1>, vector<1x16xf32>
    %394 = arith.maximumf %384, %393 : vector<1x16xf32>
    %395 = arith.index_cast %c25_i32 : i32 to index
    %c0_208 = arith.constant 0 : index
    %396 = vector.load %arg14[%395, %c0_208] : memref<32x16xf32, #tpu.memory_space<vmem>>, vector<1x16xf32>
    %397 = arith.addf %394, %396 : vector<1x16xf32>
    %398 = arith.index_cast %c25_i32 : i32 to index
    %c0_209 = arith.constant 0 : index
    %399 = vector.load %arg14[%398, %c0_209] : memref<32x16xf32, #tpu.memory_space<vmem>>, vector<1x16xf32>
    tpu.vector_store %arg14[%398, %c0_209], %397 {strides = array<i32>} : memref<32x16xf32, #tpu.memory_space<vmem>>, vector<1x16xf32>,
    %c26_i32 = arith.constant 26 : i32
    %c0_i32_210 = arith.constant 0 : i32
    %400 = arith.cmpi eq, %c26_i32, %c0_i32_210 : i32
    %cst_211 = arith.constant 0.000000e+00 : f32
    %cst_212 = arith.constant -1.000000e+09 : f32
    %401 = arith.select %400, %cst_211, %cst_212 : f32
    %c1_i32_213 = arith.constant 1 : i32
    %402 = tpu.dynamic_rotate %397 by %c1_i32_213 dim 1 : vector<1x16xf32>, i32 -> vector<1x16xf32>
    %c0_i32_214 = arith.constant 0 : i32
    %403 = vector.broadcast %c0_i32_214 : i32 to vector<1x16xi32>
    %404 = arith.cmpi eq, %60, %403 : vector<1x16xi32>
    %405 = vector.broadcast %401 : f32 to vector<1x16xf32>
    %406 = arith.select %404, %405, %402 : vector<1x16xi1>, vector<1x16xf32>
    %407 = arith.maximumf %397, %406 : vector<1x16xf32>
    %408 = arith.index_cast %c26_i32 : i32 to index
    %c0_215 = arith.constant 0 : index
    %409 = vector.load %arg14[%408, %c0_215] : memref<32x16xf32, #tpu.memory_space<vmem>>, vector<1x16xf32>
    %410 = arith.addf %407, %409 : vector<1x16xf32>
    %411 = arith.index_cast %c26_i32 : i32 to index
    %c0_216 = arith.constant 0 : index
    %412 = vector.load %arg14[%411, %c0_216] : memref<32x16xf32, #tpu.memory_space<vmem>>, vector<1x16xf32>
    tpu.vector_store %arg14[%411, %c0_216], %410 {strides = array<i32>} : memref<32x16xf32, #tpu.memory_space<vmem>>, vector<1x16xf32>,
    %c27_i32 = arith.constant 27 : i32
    %c0_i32_217 = arith.constant 0 : i32
    %413 = arith.cmpi eq, %c27_i32, %c0_i32_217 : i32
    %cst_218 = arith.constant 0.000000e+00 : f32
    %cst_219 = arith.constant -1.000000e+09 : f32
    %414 = arith.select %413, %cst_218, %cst_219 : f32
    %c1_i32_220 = arith.constant 1 : i32
    %415 = tpu.dynamic_rotate %410 by %c1_i32_220 dim 1 : vector<1x16xf32>, i32 -> vector<1x16xf32>
    %c0_i32_221 = arith.constant 0 : i32
    %416 = vector.broadcast %c0_i32_221 : i32 to vector<1x16xi32>
    %417 = arith.cmpi eq, %60, %416 : vector<1x16xi32>
    %418 = vector.broadcast %414 : f32 to vector<1x16xf32>
    %419 = arith.select %417, %418, %415 : vector<1x16xi1>, vector<1x16xf32>
    %420 = arith.maximumf %410, %419 : vector<1x16xf32>
    %421 = arith.index_cast %c27_i32 : i32 to index
    %c0_222 = arith.constant 0 : index
    %422 = vector.load %arg14[%421, %c0_222] : memref<32x16xf32, #tpu.memory_space<vmem>>, vector<1x16xf32>
    %423 = arith.addf %420, %422 : vector<1x16xf32>
    %424 = arith.index_cast %c27_i32 : i32 to index
    %c0_223 = arith.constant 0 : index
    %425 = vector.load %arg14[%424, %c0_223] : memref<32x16xf32, #tpu.memory_space<vmem>>, vector<1x16xf32>
    tpu.vector_store %arg14[%424, %c0_223], %423 {strides = array<i32>} : memref<32x16xf32, #tpu.memory_space<vmem>>, vector<1x16xf32>,
    %c28_i32 = arith.constant 28 : i32
    %c0_i32_224 = arith.constant 0 : i32
    %426 = arith.cmpi eq, %c28_i32, %c0_i32_224 : i32
    %cst_225 = arith.constant 0.000000e+00 : f32
    %cst_226 = arith.constant -1.000000e+09 : f32
    %427 = arith.select %426, %cst_225, %cst_226 : f32
    %c1_i32_227 = arith.constant 1 : i32
    %428 = tpu.dynamic_rotate %423 by %c1_i32_227 dim 1 : vector<1x16xf32>, i32 -> vector<1x16xf32>
    %c0_i32_228 = arith.constant 0 : i32
    %429 = vector.broadcast %c0_i32_228 : i32 to vector<1x16xi32>
    %430 = arith.cmpi eq, %60, %429 : vector<1x16xi32>
    %431 = vector.broadcast %427 : f32 to vector<1x16xf32>
    %432 = arith.select %430, %431, %428 : vector<1x16xi1>, vector<1x16xf32>
    %433 = arith.maximumf %423, %432 : vector<1x16xf32>
    %434 = arith.index_cast %c28_i32 : i32 to index
    %c0_229 = arith.constant 0 : index
    %435 = vector.load %arg14[%434, %c0_229] : memref<32x16xf32, #tpu.memory_space<vmem>>, vector<1x16xf32>
    %436 = arith.addf %433, %435 : vector<1x16xf32>
    %437 = arith.index_cast %c28_i32 : i32 to index
    %c0_230 = arith.constant 0 : index
    %438 = vector.load %arg14[%437, %c0_230] : memref<32x16xf32, #tpu.memory_space<vmem>>, vector<1x16xf32>
    tpu.vector_store %arg14[%437, %c0_230], %436 {strides = array<i32>} : memref<32x16xf32, #tpu.memory_space<vmem>>, vector<1x16xf32>,
    %c29_i32 = arith.constant 29 : i32
    %c0_i32_231 = arith.constant 0 : i32
    %439 = arith.cmpi eq, %c29_i32, %c0_i32_231 : i32
    %cst_232 = arith.constant 0.000000e+00 : f32
    %cst_233 = arith.constant -1.000000e+09 : f32
    %440 = arith.select %439, %cst_232, %cst_233 : f32
    %c1_i32_234 = arith.constant 1 : i32
    %441 = tpu.dynamic_rotate %436 by %c1_i32_234 dim 1 : vector<1x16xf32>, i32 -> vector<1x16xf32>
    %c0_i32_235 = arith.constant 0 : i32
    %442 = vector.broadcast %c0_i32_235 : i32 to vector<1x16xi32>
    %443 = arith.cmpi eq, %60, %442 : vector<1x16xi32>
    %444 = vector.broadcast %440 : f32 to vector<1x16xf32>
    %445 = arith.select %443, %444, %441 : vector<1x16xi1>, vector<1x16xf32>
    %446 = arith.maximumf %436, %445 : vector<1x16xf32>
    %447 = arith.index_cast %c29_i32 : i32 to index
    %c0_236 = arith.constant 0 : index
    %448 = vector.load %arg14[%447, %c0_236] : memref<32x16xf32, #tpu.memory_space<vmem>>, vector<1x16xf32>
    %449 = arith.addf %446, %448 : vector<1x16xf32>
    %450 = arith.index_cast %c29_i32 : i32 to index
    %c0_237 = arith.constant 0 : index
    %451 = vector.load %arg14[%450, %c0_237] : memref<32x16xf32, #tpu.memory_space<vmem>>, vector<1x16xf32>
    tpu.vector_store %arg14[%450, %c0_237], %449 {strides = array<i32>} : memref<32x16xf32, #tpu.memory_space<vmem>>, vector<1x16xf32>,
    %c30_i32 = arith.constant 30 : i32
    %c0_i32_238 = arith.constant 0 : i32
    %452 = arith.cmpi eq, %c30_i32, %c0_i32_238 : i32
    %cst_239 = arith.constant 0.000000e+00 : f32
    %cst_240 = arith.constant -1.000000e+09 : f32
    %453 = arith.select %452, %cst_239, %cst_240 : f32
    %c1_i32_241 = arith.constant 1 : i32
    %454 = tpu.dynamic_rotate %449 by %c1_i32_241 dim 1 : vector<1x16xf32>, i32 -> vector<1x16xf32>
    %c0_i32_242 = arith.constant 0 : i32
    %455 = vector.broadcast %c0_i32_242 : i32 to vector<1x16xi32>
    %456 = arith.cmpi eq, %60, %455 : vector<1x16xi32>
    %457 = vector.broadcast %453 : f32 to vector<1x16xf32>
    %458 = arith.select %456, %457, %454 : vector<1x16xi1>, vector<1x16xf32>
    %459 = arith.maximumf %449, %458 : vector<1x16xf32>
    %460 = arith.index_cast %c30_i32 : i32 to index
    %c0_243 = arith.constant 0 : index
    %461 = vector.load %arg14[%460, %c0_243] : memref<32x16xf32, #tpu.memory_space<vmem>>, vector<1x16xf32>
    %462 = arith.addf %459, %461 : vector<1x16xf32>
    %463 = arith.index_cast %c30_i32 : i32 to index
    %c0_244 = arith.constant 0 : index
    %464 = vector.load %arg14[%463, %c0_244] : memref<32x16xf32, #tpu.memory_space<vmem>>, vector<1x16xf32>
    tpu.vector_store %arg14[%463, %c0_244], %462 {strides = array<i32>} : memref<32x16xf32, #tpu.memory_space<vmem>>, vector<1x16xf32>,
    %c31_i32 = arith.constant 31 : i32
    %c0_i32_245 = arith.constant 0 : i32
    %465 = arith.cmpi eq, %c31_i32, %c0_i32_245 : i32
    %cst_246 = arith.constant 0.000000e+00 : f32
    %cst_247 = arith.constant -1.000000e+09 : f32
    %466 = arith.select %465, %cst_246, %cst_247 : f32
    %c1_i32_248 = arith.constant 1 : i32
    %467 = tpu.dynamic_rotate %462 by %c1_i32_248 dim 1 : vector<1x16xf32>, i32 -> vector<1x16xf32>
    %c0_i32_249 = arith.constant 0 : i32
    %468 = vector.broadcast %c0_i32_249 : i32 to vector<1x16xi32>
    %469 = arith.cmpi eq, %60, %468 : vector<1x16xi32>
    %470 = vector.broadcast %466 : f32 to vector<1x16xf32>
    %471 = arith.select %469, %470, %467 : vector<1x16xi1>, vector<1x16xf32>
    %472 = arith.maximumf %462, %471 : vector<1x16xf32>
    %473 = arith.index_cast %c31_i32 : i32 to index
    %c0_250 = arith.constant 0 : index
    %474 = vector.load %arg14[%473, %c0_250] : memref<32x16xf32, #tpu.memory_space<vmem>>, vector<1x16xf32>
    %475 = arith.addf %472, %474 : vector<1x16xf32>
    %476 = arith.index_cast %c31_i32 : i32 to index
    %c0_251 = arith.constant 0 : index
    %477 = vector.load %arg14[%476, %c0_251] : memref<32x16xf32, #tpu.memory_space<vmem>>, vector<1x16xf32>
    tpu.vector_store %arg14[%476, %c0_251], %475 {strides = array<i32>} : memref<32x16xf32, #tpu.memory_space<vmem>>, vector<1x16xf32>,
    %c32_i32 = arith.constant 32 : i32
    %c1_i32_252 = arith.constant 1 : i32
    %478 = arith.subi %1, %c1_i32_252 : i32
    %c0_i32_253 = arith.constant 0 : i32
    %c31_i32_254 = arith.constant 31 : i32
    %479 = arith.subi %c31_i32_254, %c0_i32_253 : i32
    %480 = arith.cmpi slt, %479, %3 : i32
    %481 = vector.broadcast %478 : i32 to vector<1x16xi32>
    %482 = arith.cmpi eq, %60, %481 : vector<1x16xi32>
    %483 = vector.broadcast %480 : i1 to vector<1x16xi1>
    %484 = arith.andi %482, %483 : vector<1x16xi1>
    %485 = arith.extui %484 : vector<1x16xi1> to vector<1x16xi32>
    %486 = arith.sitofp %485 : vector<1x16xi32> to vector<1x16xf32>
    %487 = arith.index_cast %479 : i32 to index
    %c0_255 = arith.constant 0 : index
    %488 = vector.load %arg15[%487, %c0_255] : memref<32x16xf32, #tpu.memory_space<vmem>>, vector<1x16xf32>
    tpu.vector_store %arg15[%487, %c0_255], %486 {strides = array<i32>} : memref<32x16xf32, #tpu.memory_space<vmem>>, vector<1x16xf32>,
    %c1_i32_256 = arith.constant 1 : i32
    %489 = arith.subi %479, %c1_i32_256 : i32
    %c0_i32_257 = arith.constant 0 : i32
    %490 = arith.maxsi %489, %c0_i32_257 : i32
    %491 = arith.index_cast %490 : i32 to index
    %c0_258 = arith.constant 0 : index
    %492 = vector.load %arg14[%491, %c0_258] : memref<32x16xf32, #tpu.memory_space<vmem>>, vector<1x16xf32>
    %c1_i32_259 = arith.constant 1 : i32
    %493 = tpu.dynamic_rotate %492 by %c1_i32_259 dim 1 : vector<1x16xf32>, i32 -> vector<1x16xf32>
    %494 = arith.cmpf olt, %492, %493 : vector<1x16xf32>
    %cst_260 = arith.constant 1.000000e+00 : f32
    %cst_261 = arith.constant 0.000000e+00 : f32
    %495 = vector.broadcast %cst_260 : f32 to vector<1x16xf32>
    %496 = vector.broadcast %cst_261 : f32 to vector<1x16xf32>
    %497 = arith.select %494, %495, %496 : vector<1x16xi1>, vector<1x16xf32>
    %498 = vector.broadcast %478 : i32 to vector<1x16xi32>
    %499 = arith.cmpi eq, %60, %498 : vector<1x16xi32>
    %cst_262 = arith.constant 0.000000e+00 : f32
    %500 = vector.broadcast %cst_262 : f32 to vector<1x16xf32>
    %501 = arith.select %499, %497, %500 : vector<1x16xi1>, vector<1x16xf32>
    %502 = vector.shape_cast %501 : vector<1x16xf32> to vector<1x1x16xf32>
    %cst_263 = arith.constant dense<0.000000e+00> : vector<1xf32>
    %503 = vector.multi_reduction <add>, %502, %cst_263 [1, 2] : vector<1x1x16xf32> to vector<1xf32>
    %504 = vector.shape_cast %503 : vector<1xf32> to vector<1x1x1xf32>
    %505 = vector.extract %504[0, 0, 0] : f32 from vector<1x1x1xf32>
    %cst_264 = arith.constant 5.000000e-01 : f32
    %506 = arith.cmpf ogt, %505, %cst_264 : f32
    %c0_i32_265 = arith.constant 0 : i32
    %507 = arith.cmpi ne, %478, %c0_i32_265 : i32
    %508 = arith.cmpi eq, %478, %479 : i32
    %509 = arith.ori %508, %506 : i1
    %510 = arith.andi %507, %509 : i1
    %511 = arith.andi %480, %510 : i1
    %c1_i32_266 = arith.constant 1 : i32
    %512 = arith.subi %478, %c1_i32_266 : i32
    %513 = arith.select %511, %512, %478 : i32
    %c1_i32_267 = arith.constant 1 : i32
    %c31_i32_268 = arith.constant 31 : i32
    %514 = arith.subi %c31_i32_268, %c1_i32_267 : i32
    %515 = arith.cmpi slt, %514, %3 : i32
    %516 = vector.broadcast %513 : i32 to vector<1x16xi32>
    %517 = arith.cmpi eq, %60, %516 : vector<1x16xi32>
    %518 = vector.broadcast %515 : i1 to vector<1x16xi1>
    %519 = arith.andi %517, %518 : vector<1x16xi1>
    %520 = arith.extui %519 : vector<1x16xi1> to vector<1x16xi32>
    %521 = arith.sitofp %520 : vector<1x16xi32> to vector<1x16xf32>
    %522 = arith.index_cast %514 : i32 to index
    %c0_269 = arith.constant 0 : index
    %523 = vector.load %arg15[%522, %c0_269] : memref<32x16xf32, #tpu.memory_space<vmem>>, vector<1x16xf32>
    tpu.vector_store %arg15[%522, %c0_269], %521 {strides = array<i32>} : memref<32x16xf32, #tpu.memory_space<vmem>>, vector<1x16xf32>,
    %c1_i32_270 = arith.constant 1 : i32
    %524 = arith.subi %514, %c1_i32_270 : i32
    %c0_i32_271 = arith.constant 0 : i32
    %525 = arith.maxsi %524, %c0_i32_271 : i32
    %526 = arith.index_cast %525 : i32 to index
    %c0_272 = arith.constant 0 : index
    %527 = vector.load %arg14[%526, %c0_272] : memref<32x16xf32, #tpu.memory_space<vmem>>, vector<1x16xf32>
    %c1_i32_273 = arith.constant 1 : i32
    %528 = tpu.dynamic_rotate %527 by %c1_i32_273 dim 1 : vector<1x16xf32>, i32 -> vector<1x16xf32>
    %529 = arith.cmpf olt, %527, %528 : vector<1x16xf32>
    %cst_274 = arith.constant 1.000000e+00 : f32
    %cst_275 = arith.constant 0.000000e+00 : f32
    %530 = vector.broadcast %cst_274 : f32 to vector<1x16xf32>
    %531 = vector.broadcast %cst_275 : f32 to vector<1x16xf32>
    %532 = arith.select %529, %530, %531 : vector<1x16xi1>, vector<1x16xf32>
    %533 = vector.broadcast %513 : i32 to vector<1x16xi32>
    %534 = arith.cmpi eq, %60, %533 : vector<1x16xi32>
    %cst_276 = arith.constant 0.000000e+00 : f32
    %535 = vector.broadcast %cst_276 : f32 to vector<1x16xf32>
    %536 = arith.select %534, %532, %535 : vector<1x16xi1>, vector<1x16xf32>
    %537 = vector.shape_cast %536 : vector<1x16xf32> to vector<1x1x16xf32>
    %cst_277 = arith.constant dense<0.000000e+00> : vector<1xf32>
    %538 = vector.multi_reduction <add>, %537, %cst_277 [1, 2] : vector<1x1x16xf32> to vector<1xf32>
    %539 = vector.shape_cast %538 : vector<1xf32> to vector<1x1x1xf32>
    %540 = vector.extract %539[0, 0, 0] : f32 from vector<1x1x1xf32>
    %cst_278 = arith.constant 5.000000e-01 : f32
    %541 = arith.cmpf ogt, %540, %cst_278 : f32
    %c0_i32_279 = arith.constant 0 : i32
    %542 = arith.cmpi ne, %513, %c0_i32_279 : i32
    %543 = arith.cmpi eq, %513, %514 : i32
    %544 = arith.ori %543, %541 : i1
    %545 = arith.andi %542, %544 : i1
    %546 = arith.andi %515, %545 : i1
    %c1_i32_280 = arith.constant 1 : i32
    %547 = arith.subi %513, %c1_i32_280 : i32
    %548 = arith.select %546, %547, %513 : i32
    %c2_i32_281 = arith.constant 2 : i32
    %c31_i32_282 = arith.constant 31 : i32
    %549 = arith.subi %c31_i32_282, %c2_i32_281 : i32
    %550 = arith.cmpi slt, %549, %3 : i32
    %551 = vector.broadcast %548 : i32 to vector<1x16xi32>
    %552 = arith.cmpi eq, %60, %551 : vector<1x16xi32>
    %553 = vector.broadcast %550 : i1 to vector<1x16xi1>
    %554 = arith.andi %552, %553 : vector<1x16xi1>
    %555 = arith.extui %554 : vector<1x16xi1> to vector<1x16xi32>
    %556 = arith.sitofp %555 : vector<1x16xi32> to vector<1x16xf32>
    %557 = arith.index_cast %549 : i32 to index
    %c0_283 = arith.constant 0 : index
    %558 = vector.load %arg15[%557, %c0_283] : memref<32x16xf32, #tpu.memory_space<vmem>>, vector<1x16xf32>
    tpu.vector_store %arg15[%557, %c0_283], %556 {strides = array<i32>} : memref<32x16xf32, #tpu.memory_space<vmem>>, vector<1x16xf32>,
    %c1_i32_284 = arith.constant 1 : i32
    %559 = arith.subi %549, %c1_i32_284 : i32
    %c0_i32_285 = arith.constant 0 : i32
    %560 = arith.maxsi %559, %c0_i32_285 : i32
    %561 = arith.index_cast %560 : i32 to index
    %c0_286 = arith.constant 0 : index
    %562 = vector.load %arg14[%561, %c0_286] : memref<32x16xf32, #tpu.memory_space<vmem>>, vector<1x16xf32>
    %c1_i32_287 = arith.constant 1 : i32
    %563 = tpu.dynamic_rotate %562 by %c1_i32_287 dim 1 : vector<1x16xf32>, i32 -> vector<1x16xf32>
    %564 = arith.cmpf olt, %562, %563 : vector<1x16xf32>
    %cst_288 = arith.constant 1.000000e+00 : f32
    %cst_289 = arith.constant 0.000000e+00 : f32
    %565 = vector.broadcast %cst_288 : f32 to vector<1x16xf32>
    %566 = vector.broadcast %cst_289 : f32 to vector<1x16xf32>
    %567 = arith.select %564, %565, %566 : vector<1x16xi1>, vector<1x16xf32>
    %568 = vector.broadcast %548 : i32 to vector<1x16xi32>
    %569 = arith.cmpi eq, %60, %568 : vector<1x16xi32>
    %cst_290 = arith.constant 0.000000e+00 : f32
    %570 = vector.broadcast %cst_290 : f32 to vector<1x16xf32>
    %571 = arith.select %569, %567, %570 : vector<1x16xi1>, vector<1x16xf32>
    %572 = vector.shape_cast %571 : vector<1x16xf32> to vector<1x1x16xf32>
    %cst_291 = arith.constant dense<0.000000e+00> : vector<1xf32>
    %573 = vector.multi_reduction <add>, %572, %cst_291 [1, 2] : vector<1x1x16xf32> to vector<1xf32>
    %574 = vector.shape_cast %573 : vector<1xf32> to vector<1x1x1xf32>
    %575 = vector.extract %574[0, 0, 0] : f32 from vector<1x1x1xf32>
    %cst_292 = arith.constant 5.000000e-01 : f32
    %576 = arith.cmpf ogt, %575, %cst_292 : f32
    %c0_i32_293 = arith.constant 0 : i32
    %577 = arith.cmpi ne, %548, %c0_i32_293 : i32
    %578 = arith.cmpi eq, %548, %549 : i32
    %579 = arith.ori %578, %576 : i1
    %580 = arith.andi %577, %579 : i1
    %581 = arith.andi %550, %580 : i1
    %c1_i32_294 = arith.constant 1 : i32
    %582 = arith.subi %548, %c1_i32_294 : i32
    %583 = arith.select %581, %582, %548 : i32
    %c3_i32_295 = arith.constant 3 : i32
    %c31_i32_296 = arith.constant 31 : i32
    %584 = arith.subi %c31_i32_296, %c3_i32_295 : i32
    %585 = arith.cmpi slt, %584, %3 : i32
    %586 = vector.broadcast %583 : i32 to vector<1x16xi32>
    %587 = arith.cmpi eq, %60, %586 : vector<1x16xi32>
    %588 = vector.broadcast %585 : i1 to vector<1x16xi1>
    %589 = arith.andi %587, %588 : vector<1x16xi1>
    %590 = arith.extui %589 : vector<1x16xi1> to vector<1x16xi32>
    %591 = arith.sitofp %590 : vector<1x16xi32> to vector<1x16xf32>
    %592 = arith.index_cast %584 : i32 to index
    %c0_297 = arith.constant 0 : index
    %593 = vector.load %arg15[%592, %c0_297] : memref<32x16xf32, #tpu.memory_space<vmem>>, vector<1x16xf32>
    tpu.vector_store %arg15[%592, %c0_297], %591 {strides = array<i32>} : memref<32x16xf32, #tpu.memory_space<vmem>>, vector<1x16xf32>,
    %c1_i32_298 = arith.constant 1 : i32
    %594 = arith.subi %584, %c1_i32_298 : i32
    %c0_i32_299 = arith.constant 0 : i32
    %595 = arith.maxsi %594, %c0_i32_299 : i32
    %596 = arith.index_cast %595 : i32 to index
    %c0_300 = arith.constant 0 : index
    %597 = vector.load %arg14[%596, %c0_300] : memref<32x16xf32, #tpu.memory_space<vmem>>, vector<1x16xf32>
    %c1_i32_301 = arith.constant 1 : i32
    %598 = tpu.dynamic_rotate %597 by %c1_i32_301 dim 1 : vector<1x16xf32>, i32 -> vector<1x16xf32>
    %599 = arith.cmpf olt, %597, %598 : vector<1x16xf32>
    %cst_302 = arith.constant 1.000000e+00 : f32
    %cst_303 = arith.constant 0.000000e+00 : f32
    %600 = vector.broadcast %cst_302 : f32 to vector<1x16xf32>
    %601 = vector.broadcast %cst_303 : f32 to vector<1x16xf32>
    %602 = arith.select %599, %600, %601 : vector<1x16xi1>, vector<1x16xf32>
    %603 = vector.broadcast %583 : i32 to vector<1x16xi32>
    %604 = arith.cmpi eq, %60, %603 : vector<1x16xi32>
    %cst_304 = arith.constant 0.000000e+00 : f32
    %605 = vector.broadcast %cst_304 : f32 to vector<1x16xf32>
    %606 = arith.select %604, %602, %605 : vector<1x16xi1>, vector<1x16xf32>
    %607 = vector.shape_cast %606 : vector<1x16xf32> to vector<1x1x16xf32>
    %cst_305 = arith.constant dense<0.000000e+00> : vector<1xf32>
    %608 = vector.multi_reduction <add>, %607, %cst_305 [1, 2] : vector<1x1x16xf32> to vector<1xf32>
    %609 = vector.shape_cast %608 : vector<1xf32> to vector<1x1x1xf32>
    %610 = vector.extract %609[0, 0, 0] : f32 from vector<1x1x1xf32>
    %cst_306 = arith.constant 5.000000e-01 : f32
    %611 = arith.cmpf ogt, %610, %cst_306 : f32
    %c0_i32_307 = arith.constant 0 : i32
    %612 = arith.cmpi ne, %583, %c0_i32_307 : i32
    %613 = arith.cmpi eq, %583, %584 : i32
    %614 = arith.ori %613, %611 : i1
    %615 = arith.andi %612, %614 : i1
    %616 = arith.andi %585, %615 : i1
    %c1_i32_308 = arith.constant 1 : i32
    %617 = arith.subi %583, %c1_i32_308 : i32
    %618 = arith.select %616, %617, %583 : i32
    %c4_i32_309 = arith.constant 4 : i32
    %c31_i32_310 = arith.constant 31 : i32
    %619 = arith.subi %c31_i32_310, %c4_i32_309 : i32
    %620 = arith.cmpi slt, %619, %3 : i32
    %621 = vector.broadcast %618 : i32 to vector<1x16xi32>
    %622 = arith.cmpi eq, %60, %621 : vector<1x16xi32>
    %623 = vector.broadcast %620 : i1 to vector<1x16xi1>
    %624 = arith.andi %622, %623 : vector<1x16xi1>
    %625 = arith.extui %624 : vector<1x16xi1> to vector<1x16xi32>
    %626 = arith.sitofp %625 : vector<1x16xi32> to vector<1x16xf32>
    %627 = arith.index_cast %619 : i32 to index
    %c0_311 = arith.constant 0 : index
    %628 = vector.load %arg15[%627, %c0_311] : memref<32x16xf32, #tpu.memory_space<vmem>>, vector<1x16xf32>
    tpu.vector_store %arg15[%627, %c0_311], %626 {strides = array<i32>} : memref<32x16xf32, #tpu.memory_space<vmem>>, vector<1x16xf32>,
    %c1_i32_312 = arith.constant 1 : i32
    %629 = arith.subi %619, %c1_i32_312 : i32
    %c0_i32_313 = arith.constant 0 : i32
    %630 = arith.maxsi %629, %c0_i32_313 : i32
    %631 = arith.index_cast %630 : i32 to index
    %c0_314 = arith.constant 0 : index
    %632 = vector.load %arg14[%631, %c0_314] : memref<32x16xf32, #tpu.memory_space<vmem>>, vector<1x16xf32>
    %c1_i32_315 = arith.constant 1 : i32
    %633 = tpu.dynamic_rotate %632 by %c1_i32_315 dim 1 : vector<1x16xf32>, i32 -> vector<1x16xf32>
    %634 = arith.cmpf olt, %632, %633 : vector<1x16xf32>
    %cst_316 = arith.constant 1.000000e+00 : f32
    %cst_317 = arith.constant 0.000000e+00 : f32
    %635 = vector.broadcast %cst_316 : f32 to vector<1x16xf32>
    %636 = vector.broadcast %cst_317 : f32 to vector<1x16xf32>
    %637 = arith.select %634, %635, %636 : vector<1x16xi1>, vector<1x16xf32>
    %638 = vector.broadcast %618 : i32 to vector<1x16xi32>
    %639 = arith.cmpi eq, %60, %638 : vector<1x16xi32>
    %cst_318 = arith.constant 0.000000e+00 : f32
    %640 = vector.broadcast %cst_318 : f32 to vector<1x16xf32>
    %641 = arith.select %639, %637, %640 : vector<1x16xi1>, vector<1x16xf32>
    %642 = vector.shape_cast %641 : vector<1x16xf32> to vector<1x1x16xf32>
    %cst_319 = arith.constant dense<0.000000e+00> : vector<1xf32>
    %643 = vector.multi_reduction <add>, %642, %cst_319 [1, 2] : vector<1x1x16xf32> to vector<1xf32>
    %644 = vector.shape_cast %643 : vector<1xf32> to vector<1x1x1xf32>
    %645 = vector.extract %644[0, 0, 0] : f32 from vector<1x1x1xf32>
    %cst_320 = arith.constant 5.000000e-01 : f32
    %646 = arith.cmpf ogt, %645, %cst_320 : f32
    %c0_i32_321 = arith.constant 0 : i32
    %647 = arith.cmpi ne, %618, %c0_i32_321 : i32
    %648 = arith.cmpi eq, %618, %619 : i32
    %649 = arith.ori %648, %646 : i1
    %650 = arith.andi %647, %649 : i1
    %651 = arith.andi %620, %650 : i1
    %c1_i32_322 = arith.constant 1 : i32
    %652 = arith.subi %618, %c1_i32_322 : i32
    %653 = arith.select %651, %652, %618 : i32
    %c5_i32_323 = arith.constant 5 : i32
    %c31_i32_324 = arith.constant 31 : i32
    %654 = arith.subi %c31_i32_324, %c5_i32_323 : i32
    %655 = arith.cmpi slt, %654, %3 : i32
    %656 = vector.broadcast %653 : i32 to vector<1x16xi32>
    %657 = arith.cmpi eq, %60, %656 : vector<1x16xi32>
    %658 = vector.broadcast %655 : i1 to vector<1x16xi1>
    %659 = arith.andi %657, %658 : vector<1x16xi1>
    %660 = arith.extui %659 : vector<1x16xi1> to vector<1x16xi32>
    %661 = arith.sitofp %660 : vector<1x16xi32> to vector<1x16xf32>
    %662 = arith.index_cast %654 : i32 to index
    %c0_325 = arith.constant 0 : index
    %663 = vector.load %arg15[%662, %c0_325] : memref<32x16xf32, #tpu.memory_space<vmem>>, vector<1x16xf32>
    tpu.vector_store %arg15[%662, %c0_325], %661 {strides = array<i32>} : memref<32x16xf32, #tpu.memory_space<vmem>>, vector<1x16xf32>,
    %c1_i32_326 = arith.constant 1 : i32
    %664 = arith.subi %654, %c1_i32_326 : i32
    %c0_i32_327 = arith.constant 0 : i32
    %665 = arith.maxsi %664, %c0_i32_327 : i32
    %666 = arith.index_cast %665 : i32 to index
    %c0_328 = arith.constant 0 : index
    %667 = vector.load %arg14[%666, %c0_328] : memref<32x16xf32, #tpu.memory_space<vmem>>, vector<1x16xf32>
    %c1_i32_329 = arith.constant 1 : i32
    %668 = tpu.dynamic_rotate %667 by %c1_i32_329 dim 1 : vector<1x16xf32>, i32 -> vector<1x16xf32>
    %669 = arith.cmpf olt, %667, %668 : vector<1x16xf32>
    %cst_330 = arith.constant 1.000000e+00 : f32
    %cst_331 = arith.constant 0.000000e+00 : f32
    %670 = vector.broadcast %cst_330 : f32 to vector<1x16xf32>
    %671 = vector.broadcast %cst_331 : f32 to vector<1x16xf32>
    %672 = arith.select %669, %670, %671 : vector<1x16xi1>, vector<1x16xf32>
    %673 = vector.broadcast %653 : i32 to vector<1x16xi32>
    %674 = arith.cmpi eq, %60, %673 : vector<1x16xi32>
    %cst_332 = arith.constant 0.000000e+00 : f32
    %675 = vector.broadcast %cst_332 : f32 to vector<1x16xf32>
    %676 = arith.select %674, %672, %675 : vector<1x16xi1>, vector<1x16xf32>
    %677 = vector.shape_cast %676 : vector<1x16xf32> to vector<1x1x16xf32>
    %cst_333 = arith.constant dense<0.000000e+00> : vector<1xf32>
    %678 = vector.multi_reduction <add>, %677, %cst_333 [1, 2] : vector<1x1x16xf32> to vector<1xf32>
    %679 = vector.shape_cast %678 : vector<1xf32> to vector<1x1x1xf32>
    %680 = vector.extract %679[0, 0, 0] : f32 from vector<1x1x1xf32>
    %cst_334 = arith.constant 5.000000e-01 : f32
    %681 = arith.cmpf ogt, %680, %cst_334 : f32
    %c0_i32_335 = arith.constant 0 : i32
    %682 = arith.cmpi ne, %653, %c0_i32_335 : i32
    %683 = arith.cmpi eq, %653, %654 : i32
    %684 = arith.ori %683, %681 : i1
    %685 = arith.andi %682, %684 : i1
    %686 = arith.andi %655, %685 : i1
    %c1_i32_336 = arith.constant 1 : i32
    %687 = arith.subi %653, %c1_i32_336 : i32
    %688 = arith.select %686, %687, %653 : i32
    %c6_i32_337 = arith.constant 6 : i32
    %c31_i32_338 = arith.constant 31 : i32
    %689 = arith.subi %c31_i32_338, %c6_i32_337 : i32
    %690 = arith.cmpi slt, %689, %3 : i32
    %691 = vector.broadcast %688 : i32 to vector<1x16xi32>
    %692 = arith.cmpi eq, %60, %691 : vector<1x16xi32>
    %693 = vector.broadcast %690 : i1 to vector<1x16xi1>
    %694 = arith.andi %692, %693 : vector<1x16xi1>
    %695 = arith.extui %694 : vector<1x16xi1> to vector<1x16xi32>
    %696 = arith.sitofp %695 : vector<1x16xi32> to vector<1x16xf32>
    %697 = arith.index_cast %689 : i32 to index
    %c0_339 = arith.constant 0 : index
    %698 = vector.load %arg15[%697, %c0_339] : memref<32x16xf32, #tpu.memory_space<vmem>>, vector<1x16xf32>
    tpu.vector_store %arg15[%697, %c0_339], %696 {strides = array<i32>} : memref<32x16xf32, #tpu.memory_space<vmem>>, vector<1x16xf32>,
    %c1_i32_340 = arith.constant 1 : i32
    %699 = arith.subi %689, %c1_i32_340 : i32
    %c0_i32_341 = arith.constant 0 : i32
    %700 = arith.maxsi %699, %c0_i32_341 : i32
    %701 = arith.index_cast %700 : i32 to index
    %c0_342 = arith.constant 0 : index
    %702 = vector.load %arg14[%701, %c0_342] : memref<32x16xf32, #tpu.memory_space<vmem>>, vector<1x16xf32>
    %c1_i32_343 = arith.constant 1 : i32
    %703 = tpu.dynamic_rotate %702 by %c1_i32_343 dim 1 : vector<1x16xf32>, i32 -> vector<1x16xf32>
    %704 = arith.cmpf olt, %702, %703 : vector<1x16xf32>
    %cst_344 = arith.constant 1.000000e+00 : f32
    %cst_345 = arith.constant 0.000000e+00 : f32
    %705 = vector.broadcast %cst_344 : f32 to vector<1x16xf32>
    %706 = vector.broadcast %cst_345 : f32 to vector<1x16xf32>
    %707 = arith.select %704, %705, %706 : vector<1x16xi1>, vector<1x16xf32>
    %708 = vector.broadcast %688 : i32 to vector<1x16xi32>
    %709 = arith.cmpi eq, %60, %708 : vector<1x16xi32>
    %cst_346 = arith.constant 0.000000e+00 : f32
    %710 = vector.broadcast %cst_346 : f32 to vector<1x16xf32>
    %711 = arith.select %709, %707, %710 : vector<1x16xi1>, vector<1x16xf32>
    %712 = vector.shape_cast %711 : vector<1x16xf32> to vector<1x1x16xf32>
    %cst_347 = arith.constant dense<0.000000e+00> : vector<1xf32>
    %713 = vector.multi_reduction <add>, %712, %cst_347 [1, 2] : vector<1x1x16xf32> to vector<1xf32>
    %714 = vector.shape_cast %713 : vector<1xf32> to vector<1x1x1xf32>
    %715 = vector.extract %714[0, 0, 0] : f32 from vector<1x1x1xf32>
    %cst_348 = arith.constant 5.000000e-01 : f32
    %716 = arith.cmpf ogt, %715, %cst_348 : f32
    %c0_i32_349 = arith.constant 0 : i32
    %717 = arith.cmpi ne, %688, %c0_i32_349 : i32
    %718 = arith.cmpi eq, %688, %689 : i32
    %719 = arith.ori %718, %716 : i1
    %720 = arith.andi %717, %719 : i1
    %721 = arith.andi %690, %720 : i1
    %c1_i32_350 = arith.constant 1 : i32
    %722 = arith.subi %688, %c1_i32_350 : i32
    %723 = arith.select %721, %722, %688 : i32
    %c7_i32_351 = arith.constant 7 : i32
    %c31_i32_352 = arith.constant 31 : i32
    %724 = arith.subi %c31_i32_352, %c7_i32_351 : i32
    %725 = arith.cmpi slt, %724, %3 : i32
    %726 = vector.broadcast %723 : i32 to vector<1x16xi32>
    %727 = arith.cmpi eq, %60, %726 : vector<1x16xi32>
    %728 = vector.broadcast %725 : i1 to vector<1x16xi1>
    %729 = arith.andi %727, %728 : vector<1x16xi1>
    %730 = arith.extui %729 : vector<1x16xi1> to vector<1x16xi32>
    %731 = arith.sitofp %730 : vector<1x16xi32> to vector<1x16xf32>
    %732 = arith.index_cast %724 : i32 to index
    %c0_353 = arith.constant 0 : index
    %733 = vector.load %arg15[%732, %c0_353] : memref<32x16xf32, #tpu.memory_space<vmem>>, vector<1x16xf32>
    tpu.vector_store %arg15[%732, %c0_353], %731 {strides = array<i32>} : memref<32x16xf32, #tpu.memory_space<vmem>>, vector<1x16xf32>,
    %c1_i32_354 = arith.constant 1 : i32
    %734 = arith.subi %724, %c1_i32_354 : i32
    %c0_i32_355 = arith.constant 0 : i32
    %735 = arith.maxsi %734, %c0_i32_355 : i32
    %736 = arith.index_cast %735 : i32 to index
    %c0_356 = arith.constant 0 : index
    %737 = vector.load %arg14[%736, %c0_356] : memref<32x16xf32, #tpu.memory_space<vmem>>, vector<1x16xf32>
    %c1_i32_357 = arith.constant 1 : i32
    %738 = tpu.dynamic_rotate %737 by %c1_i32_357 dim 1 : vector<1x16xf32>, i32 -> vector<1x16xf32>
    %739 = arith.cmpf olt, %737, %738 : vector<1x16xf32>
    %cst_358 = arith.constant 1.000000e+00 : f32
    %cst_359 = arith.constant 0.000000e+00 : f32
    %740 = vector.broadcast %cst_358 : f32 to vector<1x16xf32>
    %741 = vector.broadcast %cst_359 : f32 to vector<1x16xf32>
    %742 = arith.select %739, %740, %741 : vector<1x16xi1>, vector<1x16xf32>
    %743 = vector.broadcast %723 : i32 to vector<1x16xi32>
    %744 = arith.cmpi eq, %60, %743 : vector<1x16xi32>
    %cst_360 = arith.constant 0.000000e+00 : f32
    %745 = vector.broadcast %cst_360 : f32 to vector<1x16xf32>
    %746 = arith.select %744, %742, %745 : vector<1x16xi1>, vector<1x16xf32>
    %747 = vector.shape_cast %746 : vector<1x16xf32> to vector<1x1x16xf32>
    %cst_361 = arith.constant dense<0.000000e+00> : vector<1xf32>
    %748 = vector.multi_reduction <add>, %747, %cst_361 [1, 2] : vector<1x1x16xf32> to vector<1xf32>
    %749 = vector.shape_cast %748 : vector<1xf32> to vector<1x1x1xf32>
    %750 = vector.extract %749[0, 0, 0] : f32 from vector<1x1x1xf32>
    %cst_362 = arith.constant 5.000000e-01 : f32
    %751 = arith.cmpf ogt, %750, %cst_362 : f32
    %c0_i32_363 = arith.constant 0 : i32
    %752 = arith.cmpi ne, %723, %c0_i32_363 : i32
    %753 = arith.cmpi eq, %723, %724 : i32
    %754 = arith.ori %753, %751 : i1
    %755 = arith.andi %752, %754 : i1
    %756 = arith.andi %725, %755 : i1
    %c1_i32_364 = arith.constant 1 : i32
    %757 = arith.subi %723, %c1_i32_364 : i32
    %758 = arith.select %756, %757, %723 : i32
    %c8_i32_365 = arith.constant 8 : i32
    %c31_i32_366 = arith.constant 31 : i32
    %759 = arith.subi %c31_i32_366, %c8_i32_365 : i32
    %760 = arith.cmpi slt, %759, %3 : i32
    %761 = vector.broadcast %758 : i32 to vector<1x16xi32>
    %762 = arith.cmpi eq, %60, %761 : vector<1x16xi32>
    %763 = vector.broadcast %760 : i1 to vector<1x16xi1>
    %764 = arith.andi %762, %763 : vector<1x16xi1>
    %765 = arith.extui %764 : vector<1x16xi1> to vector<1x16xi32>
    %766 = arith.sitofp %765 : vector<1x16xi32> to vector<1x16xf32>
    %767 = arith.index_cast %759 : i32 to index
    %c0_367 = arith.constant 0 : index
    %768 = vector.load %arg15[%767, %c0_367] : memref<32x16xf32, #tpu.memory_space<vmem>>, vector<1x16xf32>
    tpu.vector_store %arg15[%767, %c0_367], %766 {strides = array<i32>} : memref<32x16xf32, #tpu.memory_space<vmem>>, vector<1x16xf32>,
    %c1_i32_368 = arith.constant 1 : i32
    %769 = arith.subi %759, %c1_i32_368 : i32
    %c0_i32_369 = arith.constant 0 : i32
    %770 = arith.maxsi %769, %c0_i32_369 : i32
    %771 = arith.index_cast %770 : i32 to index
    %c0_370 = arith.constant 0 : index
    %772 = vector.load %arg14[%771, %c0_370] : memref<32x16xf32, #tpu.memory_space<vmem>>, vector<1x16xf32>
    %c1_i32_371 = arith.constant 1 : i32
    %773 = tpu.dynamic_rotate %772 by %c1_i32_371 dim 1 : vector<1x16xf32>, i32 -> vector<1x16xf32>
    %774 = arith.cmpf olt, %772, %773 : vector<1x16xf32>
    %cst_372 = arith.constant 1.000000e+00 : f32
    %cst_373 = arith.constant 0.000000e+00 : f32
    %775 = vector.broadcast %cst_372 : f32 to vector<1x16xf32>
    %776 = vector.broadcast %cst_373 : f32 to vector<1x16xf32>
    %777 = arith.select %774, %775, %776 : vector<1x16xi1>, vector<1x16xf32>
    %778 = vector.broadcast %758 : i32 to vector<1x16xi32>
    %779 = arith.cmpi eq, %60, %778 : vector<1x16xi32>
    %cst_374 = arith.constant 0.000000e+00 : f32
    %780 = vector.broadcast %cst_374 : f32 to vector<1x16xf32>
    %781 = arith.select %779, %777, %780 : vector<1x16xi1>, vector<1x16xf32>
    %782 = vector.shape_cast %781 : vector<1x16xf32> to vector<1x1x16xf32>
    %cst_375 = arith.constant dense<0.000000e+00> : vector<1xf32>
    %783 = vector.multi_reduction <add>, %782, %cst_375 [1, 2] : vector<1x1x16xf32> to vector<1xf32>
    %784 = vector.shape_cast %783 : vector<1xf32> to vector<1x1x1xf32>
    %785 = vector.extract %784[0, 0, 0] : f32 from vector<1x1x1xf32>
    %cst_376 = arith.constant 5.000000e-01 : f32
    %786 = arith.cmpf ogt, %785, %cst_376 : f32
    %c0_i32_377 = arith.constant 0 : i32
    %787 = arith.cmpi ne, %758, %c0_i32_377 : i32
    %788 = arith.cmpi eq, %758, %759 : i32
    %789 = arith.ori %788, %786 : i1
    %790 = arith.andi %787, %789 : i1
    %791 = arith.andi %760, %790 : i1
    %c1_i32_378 = arith.constant 1 : i32
    %792 = arith.subi %758, %c1_i32_378 : i32
    %793 = arith.select %791, %792, %758 : i32
    %c9_i32_379 = arith.constant 9 : i32
    %c31_i32_380 = arith.constant 31 : i32
    %794 = arith.subi %c31_i32_380, %c9_i32_379 : i32
    %795 = arith.cmpi slt, %794, %3 : i32
    %796 = vector.broadcast %793 : i32 to vector<1x16xi32>
    %797 = arith.cmpi eq, %60, %796 : vector<1x16xi32>
    %798 = vector.broadcast %795 : i1 to vector<1x16xi1>
    %799 = arith.andi %797, %798 : vector<1x16xi1>
    %800 = arith.extui %799 : vector<1x16xi1> to vector<1x16xi32>
    %801 = arith.sitofp %800 : vector<1x16xi32> to vector<1x16xf32>
    %802 = arith.index_cast %794 : i32 to index
    %c0_381 = arith.constant 0 : index
    %803 = vector.load %arg15[%802, %c0_381] : memref<32x16xf32, #tpu.memory_space<vmem>>, vector<1x16xf32>
    tpu.vector_store %arg15[%802, %c0_381], %801 {strides = array<i32>} : memref<32x16xf32, #tpu.memory_space<vmem>>, vector<1x16xf32>,
    %c1_i32_382 = arith.constant 1 : i32
    %804 = arith.subi %794, %c1_i32_382 : i32
    %c0_i32_383 = arith.constant 0 : i32
    %805 = arith.maxsi %804, %c0_i32_383 : i32
    %806 = arith.index_cast %805 : i32 to index
    %c0_384 = arith.constant 0 : index
    %807 = vector.load %arg14[%806, %c0_384] : memref<32x16xf32, #tpu.memory_space<vmem>>, vector<1x16xf32>
    %c1_i32_385 = arith.constant 1 : i32
    %808 = tpu.dynamic_rotate %807 by %c1_i32_385 dim 1 : vector<1x16xf32>, i32 -> vector<1x16xf32>
    %809 = arith.cmpf olt, %807, %808 : vector<1x16xf32>
    %cst_386 = arith.constant 1.000000e+00 : f32
    %cst_387 = arith.constant 0.000000e+00 : f32
    %810 = vector.broadcast %cst_386 : f32 to vector<1x16xf32>
    %811 = vector.broadcast %cst_387 : f32 to vector<1x16xf32>
    %812 = arith.select %809, %810, %811 : vector<1x16xi1>, vector<1x16xf32>
    %813 = vector.broadcast %793 : i32 to vector<1x16xi32>
    %814 = arith.cmpi eq, %60, %813 : vector<1x16xi32>
    %cst_388 = arith.constant 0.000000e+00 : f32
    %815 = vector.broadcast %cst_388 : f32 to vector<1x16xf32>
    %816 = arith.select %814, %812, %815 : vector<1x16xi1>, vector<1x16xf32>
    %817 = vector.shape_cast %816 : vector<1x16xf32> to vector<1x1x16xf32>
    %cst_389 = arith.constant dense<0.000000e+00> : vector<1xf32>
    %818 = vector.multi_reduction <add>, %817, %cst_389 [1, 2] : vector<1x1x16xf32> to vector<1xf32>
    %819 = vector.shape_cast %818 : vector<1xf32> to vector<1x1x1xf32>
    %820 = vector.extract %819[0, 0, 0] : f32 from vector<1x1x1xf32>
    %cst_390 = arith.constant 5.000000e-01 : f32
    %821 = arith.cmpf ogt, %820, %cst_390 : f32
    %c0_i32_391 = arith.constant 0 : i32
    %822 = arith.cmpi ne, %793, %c0_i32_391 : i32
    %823 = arith.cmpi eq, %793, %794 : i32
    %824 = arith.ori %823, %821 : i1
    %825 = arith.andi %822, %824 : i1
    %826 = arith.andi %795, %825 : i1
    %c1_i32_392 = arith.constant 1 : i32
    %827 = arith.subi %793, %c1_i32_392 : i32
    %828 = arith.select %826, %827, %793 : i32
    %c10_i32_393 = arith.constant 10 : i32
    %c31_i32_394 = arith.constant 31 : i32
    %829 = arith.subi %c31_i32_394, %c10_i32_393 : i32
    %830 = arith.cmpi slt, %829, %3 : i32
    %831 = vector.broadcast %828 : i32 to vector<1x16xi32>
    %832 = arith.cmpi eq, %60, %831 : vector<1x16xi32>
    %833 = vector.broadcast %830 : i1 to vector<1x16xi1>
    %834 = arith.andi %832, %833 : vector<1x16xi1>
    %835 = arith.extui %834 : vector<1x16xi1> to vector<1x16xi32>
    %836 = arith.sitofp %835 : vector<1x16xi32> to vector<1x16xf32>
    %837 = arith.index_cast %829 : i32 to index
    %c0_395 = arith.constant 0 : index
    %838 = vector.load %arg15[%837, %c0_395] : memref<32x16xf32, #tpu.memory_space<vmem>>, vector<1x16xf32>
    tpu.vector_store %arg15[%837, %c0_395], %836 {strides = array<i32>} : memref<32x16xf32, #tpu.memory_space<vmem>>, vector<1x16xf32>,
    %c1_i32_396 = arith.constant 1 : i32
    %839 = arith.subi %829, %c1_i32_396 : i32
    %c0_i32_397 = arith.constant 0 : i32
    %840 = arith.maxsi %839, %c0_i32_397 : i32
    %841 = arith.index_cast %840 : i32 to index
    %c0_398 = arith.constant 0 : index
    %842 = vector.load %arg14[%841, %c0_398] : memref<32x16xf32, #tpu.memory_space<vmem>>, vector<1x16xf32>
    %c1_i32_399 = arith.constant 1 : i32
    %843 = tpu.dynamic_rotate %842 by %c1_i32_399 dim 1 : vector<1x16xf32>, i32 -> vector<1x16xf32>
    %844 = arith.cmpf olt, %842, %843 : vector<1x16xf32>
    %cst_400 = arith.constant 1.000000e+00 : f32
    %cst_401 = arith.constant 0.000000e+00 : f32
    %845 = vector.broadcast %cst_400 : f32 to vector<1x16xf32>
    %846 = vector.broadcast %cst_401 : f32 to vector<1x16xf32>
    %847 = arith.select %844, %845, %846 : vector<1x16xi1>, vector<1x16xf32>
    %848 = vector.broadcast %828 : i32 to vector<1x16xi32>
    %849 = arith.cmpi eq, %60, %848 : vector<1x16xi32>
    %cst_402 = arith.constant 0.000000e+00 : f32
    %850 = vector.broadcast %cst_402 : f32 to vector<1x16xf32>
    %851 = arith.select %849, %847, %850 : vector<1x16xi1>, vector<1x16xf32>
    %852 = vector.shape_cast %851 : vector<1x16xf32> to vector<1x1x16xf32>
    %cst_403 = arith.constant dense<0.000000e+00> : vector<1xf32>
    %853 = vector.multi_reduction <add>, %852, %cst_403 [1, 2] : vector<1x1x16xf32> to vector<1xf32>
    %854 = vector.shape_cast %853 : vector<1xf32> to vector<1x1x1xf32>
    %855 = vector.extract %854[0, 0, 0] : f32 from vector<1x1x1xf32>
    %cst_404 = arith.constant 5.000000e-01 : f32
    %856 = arith.cmpf ogt, %855, %cst_404 : f32
    %c0_i32_405 = arith.constant 0 : i32
    %857 = arith.cmpi ne, %828, %c0_i32_405 : i32
    %858 = arith.cmpi eq, %828, %829 : i32
    %859 = arith.ori %858, %856 : i1
    %860 = arith.andi %857, %859 : i1
    %861 = arith.andi %830, %860 : i1
    %c1_i32_406 = arith.constant 1 : i32
    %862 = arith.subi %828, %c1_i32_406 : i32
    %863 = arith.select %861, %862, %828 : i32
    %c11_i32_407 = arith.constant 11 : i32
    %c31_i32_408 = arith.constant 31 : i32
    %864 = arith.subi %c31_i32_408, %c11_i32_407 : i32
    %865 = arith.cmpi slt, %864, %3 : i32
    %866 = vector.broadcast %863 : i32 to vector<1x16xi32>
    %867 = arith.cmpi eq, %60, %866 : vector<1x16xi32>
    %868 = vector.broadcast %865 : i1 to vector<1x16xi1>
    %869 = arith.andi %867, %868 : vector<1x16xi1>
    %870 = arith.extui %869 : vector<1x16xi1> to vector<1x16xi32>
    %871 = arith.sitofp %870 : vector<1x16xi32> to vector<1x16xf32>
    %872 = arith.index_cast %864 : i32 to index
    %c0_409 = arith.constant 0 : index
    %873 = vector.load %arg15[%872, %c0_409] : memref<32x16xf32, #tpu.memory_space<vmem>>, vector<1x16xf32>
    tpu.vector_store %arg15[%872, %c0_409], %871 {strides = array<i32>} : memref<32x16xf32, #tpu.memory_space<vmem>>, vector<1x16xf32>,
    %c1_i32_410 = arith.constant 1 : i32
    %874 = arith.subi %864, %c1_i32_410 : i32
    %c0_i32_411 = arith.constant 0 : i32
    %875 = arith.maxsi %874, %c0_i32_411 : i32
    %876 = arith.index_cast %875 : i32 to index
    %c0_412 = arith.constant 0 : index
    %877 = vector.load %arg14[%876, %c0_412] : memref<32x16xf32, #tpu.memory_space<vmem>>, vector<1x16xf32>
    %c1_i32_413 = arith.constant 1 : i32
    %878 = tpu.dynamic_rotate %877 by %c1_i32_413 dim 1 : vector<1x16xf32>, i32 -> vector<1x16xf32>
    %879 = arith.cmpf olt, %877, %878 : vector<1x16xf32>
    %cst_414 = arith.constant 1.000000e+00 : f32
    %cst_415 = arith.constant 0.000000e+00 : f32
    %880 = vector.broadcast %cst_414 : f32 to vector<1x16xf32>
    %881 = vector.broadcast %cst_415 : f32 to vector<1x16xf32>
    %882 = arith.select %879, %880, %881 : vector<1x16xi1>, vector<1x16xf32>
    %883 = vector.broadcast %863 : i32 to vector<1x16xi32>
    %884 = arith.cmpi eq, %60, %883 : vector<1x16xi32>
    %cst_416 = arith.constant 0.000000e+00 : f32
    %885 = vector.broadcast %cst_416 : f32 to vector<1x16xf32>
    %886 = arith.select %884, %882, %885 : vector<1x16xi1>, vector<1x16xf32>
    %887 = vector.shape_cast %886 : vector<1x16xf32> to vector<1x1x16xf32>
    %cst_417 = arith.constant dense<0.000000e+00> : vector<1xf32>
    %888 = vector.multi_reduction <add>, %887, %cst_417 [1, 2] : vector<1x1x16xf32> to vector<1xf32>
    %889 = vector.shape_cast %888 : vector<1xf32> to vector<1x1x1xf32>
    %890 = vector.extract %889[0, 0, 0] : f32 from vector<1x1x1xf32>
    %cst_418 = arith.constant 5.000000e-01 : f32
    %891 = arith.cmpf ogt, %890, %cst_418 : f32
    %c0_i32_419 = arith.constant 0 : i32
    %892 = arith.cmpi ne, %863, %c0_i32_419 : i32
    %893 = arith.cmpi eq, %863, %864 : i32
    %894 = arith.ori %893, %891 : i1
    %895 = arith.andi %892, %894 : i1
    %896 = arith.andi %865, %895 : i1
    %c1_i32_420 = arith.constant 1 : i32
    %897 = arith.subi %863, %c1_i32_420 : i32
    %898 = arith.select %896, %897, %863 : i32
    %c12_i32_421 = arith.constant 12 : i32
    %c31_i32_422 = arith.constant 31 : i32
    %899 = arith.subi %c31_i32_422, %c12_i32_421 : i32
    %900 = arith.cmpi slt, %899, %3 : i32
    %901 = vector.broadcast %898 : i32 to vector<1x16xi32>
    %902 = arith.cmpi eq, %60, %901 : vector<1x16xi32>
    %903 = vector.broadcast %900 : i1 to vector<1x16xi1>
    %904 = arith.andi %902, %903 : vector<1x16xi1>
    %905 = arith.extui %904 : vector<1x16xi1> to vector<1x16xi32>
    %906 = arith.sitofp %905 : vector<1x16xi32> to vector<1x16xf32>
    %907 = arith.index_cast %899 : i32 to index
    %c0_423 = arith.constant 0 : index
    %908 = vector.load %arg15[%907, %c0_423] : memref<32x16xf32, #tpu.memory_space<vmem>>, vector<1x16xf32>
    tpu.vector_store %arg15[%907, %c0_423], %906 {strides = array<i32>} : memref<32x16xf32, #tpu.memory_space<vmem>>, vector<1x16xf32>,
    %c1_i32_424 = arith.constant 1 : i32
    %909 = arith.subi %899, %c1_i32_424 : i32
    %c0_i32_425 = arith.constant 0 : i32
    %910 = arith.maxsi %909, %c0_i32_425 : i32
    %911 = arith.index_cast %910 : i32 to index
    %c0_426 = arith.constant 0 : index
    %912 = vector.load %arg14[%911, %c0_426] : memref<32x16xf32, #tpu.memory_space<vmem>>, vector<1x16xf32>
    %c1_i32_427 = arith.constant 1 : i32
    %913 = tpu.dynamic_rotate %912 by %c1_i32_427 dim 1 : vector<1x16xf32>, i32 -> vector<1x16xf32>
    %914 = arith.cmpf olt, %912, %913 : vector<1x16xf32>
    %cst_428 = arith.constant 1.000000e+00 : f32
    %cst_429 = arith.constant 0.000000e+00 : f32
    %915 = vector.broadcast %cst_428 : f32 to vector<1x16xf32>
    %916 = vector.broadcast %cst_429 : f32 to vector<1x16xf32>
    %917 = arith.select %914, %915, %916 : vector<1x16xi1>, vector<1x16xf32>
    %918 = vector.broadcast %898 : i32 to vector<1x16xi32>
    %919 = arith.cmpi eq, %60, %918 : vector<1x16xi32>
    %cst_430 = arith.constant 0.000000e+00 : f32
    %920 = vector.broadcast %cst_430 : f32 to vector<1x16xf32>
    %921 = arith.select %919, %917, %920 : vector<1x16xi1>, vector<1x16xf32>
    %922 = vector.shape_cast %921 : vector<1x16xf32> to vector<1x1x16xf32>
    %cst_431 = arith.constant dense<0.000000e+00> : vector<1xf32>
    %923 = vector.multi_reduction <add>, %922, %cst_431 [1, 2] : vector<1x1x16xf32> to vector<1xf32>
    %924 = vector.shape_cast %923 : vector<1xf32> to vector<1x1x1xf32>
    %925 = vector.extract %924[0, 0, 0] : f32 from vector<1x1x1xf32>
    %cst_432 = arith.constant 5.000000e-01 : f32
    %926 = arith.cmpf ogt, %925, %cst_432 : f32
    %c0_i32_433 = arith.constant 0 : i32
    %927 = arith.cmpi ne, %898, %c0_i32_433 : i32
    %928 = arith.cmpi eq, %898, %899 : i32
    %929 = arith.ori %928, %926 : i1
    %930 = arith.andi %927, %929 : i1
    %931 = arith.andi %900, %930 : i1
    %c1_i32_434 = arith.constant 1 : i32
    %932 = arith.subi %898, %c1_i32_434 : i32
    %933 = arith.select %931, %932, %898 : i32
    %c13_i32_435 = arith.constant 13 : i32
    %c31_i32_436 = arith.constant 31 : i32
    %934 = arith.subi %c31_i32_436, %c13_i32_435 : i32
    %935 = arith.cmpi slt, %934, %3 : i32
    %936 = vector.broadcast %933 : i32 to vector<1x16xi32>
    %937 = arith.cmpi eq, %60, %936 : vector<1x16xi32>
    %938 = vector.broadcast %935 : i1 to vector<1x16xi1>
    %939 = arith.andi %937, %938 : vector<1x16xi1>
    %940 = arith.extui %939 : vector<1x16xi1> to vector<1x16xi32>
    %941 = arith.sitofp %940 : vector<1x16xi32> to vector<1x16xf32>
    %942 = arith.index_cast %934 : i32 to index
    %c0_437 = arith.constant 0 : index
    %943 = vector.load %arg15[%942, %c0_437] : memref<32x16xf32, #tpu.memory_space<vmem>>, vector<1x16xf32>
    tpu.vector_store %arg15[%942, %c0_437], %941 {strides = array<i32>} : memref<32x16xf32, #tpu.memory_space<vmem>>, vector<1x16xf32>,
    %c1_i32_438 = arith.constant 1 : i32
    %944 = arith.subi %934, %c1_i32_438 : i32
    %c0_i32_439 = arith.constant 0 : i32
    %945 = arith.maxsi %944, %c0_i32_439 : i32
    %946 = arith.index_cast %945 : i32 to index
    %c0_440 = arith.constant 0 : index
    %947 = vector.load %arg14[%946, %c0_440] : memref<32x16xf32, #tpu.memory_space<vmem>>, vector<1x16xf32>
    %c1_i32_441 = arith.constant 1 : i32
    %948 = tpu.dynamic_rotate %947 by %c1_i32_441 dim 1 : vector<1x16xf32>, i32 -> vector<1x16xf32>
    %949 = arith.cmpf olt, %947, %948 : vector<1x16xf32>
    %cst_442 = arith.constant 1.000000e+00 : f32
    %cst_443 = arith.constant 0.000000e+00 : f32
    %950 = vector.broadcast %cst_442 : f32 to vector<1x16xf32>
    %951 = vector.broadcast %cst_443 : f32 to vector<1x16xf32>
    %952 = arith.select %949, %950, %951 : vector<1x16xi1>, vector<1x16xf32>
    %953 = vector.broadcast %933 : i32 to vector<1x16xi32>
    %954 = arith.cmpi eq, %60, %953 : vector<1x16xi32>
    %cst_444 = arith.constant 0.000000e+00 : f32
    %955 = vector.broadcast %cst_444 : f32 to vector<1x16xf32>
    %956 = arith.select %954, %952, %955 : vector<1x16xi1>, vector<1x16xf32>
    %957 = vector.shape_cast %956 : vector<1x16xf32> to vector<1x1x16xf32>
    %cst_445 = arith.constant dense<0.000000e+00> : vector<1xf32>
    %958 = vector.multi_reduction <add>, %957, %cst_445 [1, 2] : vector<1x1x16xf32> to vector<1xf32>
    %959 = vector.shape_cast %958 : vector<1xf32> to vector<1x1x1xf32>
    %960 = vector.extract %959[0, 0, 0] : f32 from vector<1x1x1xf32>
    %cst_446 = arith.constant 5.000000e-01 : f32
    %961 = arith.cmpf ogt, %960, %cst_446 : f32
    %c0_i32_447 = arith.constant 0 : i32
    %962 = arith.cmpi ne, %933, %c0_i32_447 : i32
    %963 = arith.cmpi eq, %933, %934 : i32
    %964 = arith.ori %963, %961 : i1
    %965 = arith.andi %962, %964 : i1
    %966 = arith.andi %935, %965 : i1
    %c1_i32_448 = arith.constant 1 : i32
    %967 = arith.subi %933, %c1_i32_448 : i32
    %968 = arith.select %966, %967, %933 : i32
    %c14_i32_449 = arith.constant 14 : i32
    %c31_i32_450 = arith.constant 31 : i32
    %969 = arith.subi %c31_i32_450, %c14_i32_449 : i32
    %970 = arith.cmpi slt, %969, %3 : i32
    %971 = vector.broadcast %968 : i32 to vector<1x16xi32>
    %972 = arith.cmpi eq, %60, %971 : vector<1x16xi32>
    %973 = vector.broadcast %970 : i1 to vector<1x16xi1>
    %974 = arith.andi %972, %973 : vector<1x16xi1>
    %975 = arith.extui %974 : vector<1x16xi1> to vector<1x16xi32>
    %976 = arith.sitofp %975 : vector<1x16xi32> to vector<1x16xf32>
    %977 = arith.index_cast %969 : i32 to index
    %c0_451 = arith.constant 0 : index
    %978 = vector.load %arg15[%977, %c0_451] : memref<32x16xf32, #tpu.memory_space<vmem>>, vector<1x16xf32>
    tpu.vector_store %arg15[%977, %c0_451], %976 {strides = array<i32>} : memref<32x16xf32, #tpu.memory_space<vmem>>, vector<1x16xf32>,
    %c1_i32_452 = arith.constant 1 : i32
    %979 = arith.subi %969, %c1_i32_452 : i32
    %c0_i32_453 = arith.constant 0 : i32
    %980 = arith.maxsi %979, %c0_i32_453 : i32
    %981 = arith.index_cast %980 : i32 to index
    %c0_454 = arith.constant 0 : index
    %982 = vector.load %arg14[%981, %c0_454] : memref<32x16xf32, #tpu.memory_space<vmem>>, vector<1x16xf32>
    %c1_i32_455 = arith.constant 1 : i32
    %983 = tpu.dynamic_rotate %982 by %c1_i32_455 dim 1 : vector<1x16xf32>, i32 -> vector<1x16xf32>
    %984 = arith.cmpf olt, %982, %983 : vector<1x16xf32>
    %cst_456 = arith.constant 1.000000e+00 : f32
    %cst_457 = arith.constant 0.000000e+00 : f32
    %985 = vector.broadcast %cst_456 : f32 to vector<1x16xf32>
    %986 = vector.broadcast %cst_457 : f32 to vector<1x16xf32>
    %987 = arith.select %984, %985, %986 : vector<1x16xi1>, vector<1x16xf32>
    %988 = vector.broadcast %968 : i32 to vector<1x16xi32>
    %989 = arith.cmpi eq, %60, %988 : vector<1x16xi32>
    %cst_458 = arith.constant 0.000000e+00 : f32
    %990 = vector.broadcast %cst_458 : f32 to vector<1x16xf32>
    %991 = arith.select %989, %987, %990 : vector<1x16xi1>, vector<1x16xf32>
    %992 = vector.shape_cast %991 : vector<1x16xf32> to vector<1x1x16xf32>
    %cst_459 = arith.constant dense<0.000000e+00> : vector<1xf32>
    %993 = vector.multi_reduction <add>, %992, %cst_459 [1, 2] : vector<1x1x16xf32> to vector<1xf32>
    %994 = vector.shape_cast %993 : vector<1xf32> to vector<1x1x1xf32>
    %995 = vector.extract %994[0, 0, 0] : f32 from vector<1x1x1xf32>
    %cst_460 = arith.constant 5.000000e-01 : f32
    %996 = arith.cmpf ogt, %995, %cst_460 : f32
    %c0_i32_461 = arith.constant 0 : i32
    %997 = arith.cmpi ne, %968, %c0_i32_461 : i32
    %998 = arith.cmpi eq, %968, %969 : i32
    %999 = arith.ori %998, %996 : i1
    %1000 = arith.andi %997, %999 : i1
    %1001 = arith.andi %970, %1000 : i1
    %c1_i32_462 = arith.constant 1 : i32
    %1002 = arith.subi %968, %c1_i32_462 : i32
    %1003 = arith.select %1001, %1002, %968 : i32
    %c15_i32_463 = arith.constant 15 : i32
    %c31_i32_464 = arith.constant 31 : i32
    %1004 = arith.subi %c31_i32_464, %c15_i32_463 : i32
    %1005 = arith.cmpi slt, %1004, %3 : i32
    %1006 = vector.broadcast %1003 : i32 to vector<1x16xi32>
    %1007 = arith.cmpi eq, %60, %1006 : vector<1x16xi32>
    %1008 = vector.broadcast %1005 : i1 to vector<1x16xi1>
    %1009 = arith.andi %1007, %1008 : vector<1x16xi1>
    %1010 = arith.extui %1009 : vector<1x16xi1> to vector<1x16xi32>
    %1011 = arith.sitofp %1010 : vector<1x16xi32> to vector<1x16xf32>
    %1012 = arith.index_cast %1004 : i32 to index
    %c0_465 = arith.constant 0 : index
    %1013 = vector.load %arg15[%1012, %c0_465] : memref<32x16xf32, #tpu.memory_space<vmem>>, vector<1x16xf32>
    tpu.vector_store %arg15[%1012, %c0_465], %1011 {strides = array<i32>} : memref<32x16xf32, #tpu.memory_space<vmem>>, vector<1x16xf32>,
    %c1_i32_466 = arith.constant 1 : i32
    %1014 = arith.subi %1004, %c1_i32_466 : i32
    %c0_i32_467 = arith.constant 0 : i32
    %1015 = arith.maxsi %1014, %c0_i32_467 : i32
    %1016 = arith.index_cast %1015 : i32 to index
    %c0_468 = arith.constant 0 : index
    %1017 = vector.load %arg14[%1016, %c0_468] : memref<32x16xf32, #tpu.memory_space<vmem>>, vector<1x16xf32>
    %c1_i32_469 = arith.constant 1 : i32
    %1018 = tpu.dynamic_rotate %1017 by %c1_i32_469 dim 1 : vector<1x16xf32>, i32 -> vector<1x16xf32>
    %1019 = arith.cmpf olt, %1017, %1018 : vector<1x16xf32>
    %cst_470 = arith.constant 1.000000e+00 : f32
    %cst_471 = arith.constant 0.000000e+00 : f32
    %1020 = vector.broadcast %cst_470 : f32 to vector<1x16xf32>
    %1021 = vector.broadcast %cst_471 : f32 to vector<1x16xf32>
    %1022 = arith.select %1019, %1020, %1021 : vector<1x16xi1>, vector<1x16xf32>
    %1023 = vector.broadcast %1003 : i32 to vector<1x16xi32>
    %1024 = arith.cmpi eq, %60, %1023 : vector<1x16xi32>
    %cst_472 = arith.constant 0.000000e+00 : f32
    %1025 = vector.broadcast %cst_472 : f32 to vector<1x16xf32>
    %1026 = arith.select %1024, %1022, %1025 : vector<1x16xi1>, vector<1x16xf32>
    %1027 = vector.shape_cast %1026 : vector<1x16xf32> to vector<1x1x16xf32>
    %cst_473 = arith.constant dense<0.000000e+00> : vector<1xf32>
    %1028 = vector.multi_reduction <add>, %1027, %cst_473 [1, 2] : vector<1x1x16xf32> to vector<1xf32>
    %1029 = vector.shape_cast %1028 : vector<1xf32> to vector<1x1x1xf32>
    %1030 = vector.extract %1029[0, 0, 0] : f32 from vector<1x1x1xf32>
    %cst_474 = arith.constant 5.000000e-01 : f32
    %1031 = arith.cmpf ogt, %1030, %cst_474 : f32
    %c0_i32_475 = arith.constant 0 : i32
    %1032 = arith.cmpi ne, %1003, %c0_i32_475 : i32
    %1033 = arith.cmpi eq, %1003, %1004 : i32
    %1034 = arith.ori %1033, %1031 : i1
    %1035 = arith.andi %1032, %1034 : i1
    %1036 = arith.andi %1005, %1035 : i1
    %c1_i32_476 = arith.constant 1 : i32
    %1037 = arith.subi %1003, %c1_i32_476 : i32
    %1038 = arith.select %1036, %1037, %1003 : i32
    %c16_i32_477 = arith.constant 16 : i32
    %c31_i32_478 = arith.constant 31 : i32
    %1039 = arith.subi %c31_i32_478, %c16_i32_477 : i32
    %1040 = arith.cmpi slt, %1039, %3 : i32
    %1041 = vector.broadcast %1038 : i32 to vector<1x16xi32>
    %1042 = arith.cmpi eq, %60, %1041 : vector<1x16xi32>
    %1043 = vector.broadcast %1040 : i1 to vector<1x16xi1>
    %1044 = arith.andi %1042, %1043 : vector<1x16xi1>
    %1045 = arith.extui %1044 : vector<1x16xi1> to vector<1x16xi32>
    %1046 = arith.sitofp %1045 : vector<1x16xi32> to vector<1x16xf32>
    %1047 = arith.index_cast %1039 : i32 to index
    %c0_479 = arith.constant 0 : index
    %1048 = vector.load %arg15[%1047, %c0_479] : memref<32x16xf32, #tpu.memory_space<vmem>>, vector<1x16xf32>
    tpu.vector_store %arg15[%1047, %c0_479], %1046 {strides = array<i32>} : memref<32x16xf32, #tpu.memory_space<vmem>>, vector<1x16xf32>,
    %c1_i32_480 = arith.constant 1 : i32
    %1049 = arith.subi %1039, %c1_i32_480 : i32
    %c0_i32_481 = arith.constant 0 : i32
    %1050 = arith.maxsi %1049, %c0_i32_481 : i32
    %1051 = arith.index_cast %1050 : i32 to index
    %c0_482 = arith.constant 0 : index
    %1052 = vector.load %arg14[%1051, %c0_482] : memref<32x16xf32, #tpu.memory_space<vmem>>, vector<1x16xf32>
    %c1_i32_483 = arith.constant 1 : i32
    %1053 = tpu.dynamic_rotate %1052 by %c1_i32_483 dim 1 : vector<1x16xf32>, i32 -> vector<1x16xf32>
    %1054 = arith.cmpf olt, %1052, %1053 : vector<1x16xf32>
    %cst_484 = arith.constant 1.000000e+00 : f32
    %cst_485 = arith.constant 0.000000e+00 : f32
    %1055 = vector.broadcast %cst_484 : f32 to vector<1x16xf32>
    %1056 = vector.broadcast %cst_485 : f32 to vector<1x16xf32>
    %1057 = arith.select %1054, %1055, %1056 : vector<1x16xi1>, vector<1x16xf32>
    %1058 = vector.broadcast %1038 : i32 to vector<1x16xi32>
    %1059 = arith.cmpi eq, %60, %1058 : vector<1x16xi32>
    %cst_486 = arith.constant 0.000000e+00 : f32
    %1060 = vector.broadcast %cst_486 : f32 to vector<1x16xf32>
    %1061 = arith.select %1059, %1057, %1060 : vector<1x16xi1>, vector<1x16xf32>
    %1062 = vector.shape_cast %1061 : vector<1x16xf32> to vector<1x1x16xf32>
    %cst_487 = arith.constant dense<0.000000e+00> : vector<1xf32>
    %1063 = vector.multi_reduction <add>, %1062, %cst_487 [1, 2] : vector<1x1x16xf32> to vector<1xf32>
    %1064 = vector.shape_cast %1063 : vector<1xf32> to vector<1x1x1xf32>
    %1065 = vector.extract %1064[0, 0, 0] : f32 from vector<1x1x1xf32>
    %cst_488 = arith.constant 5.000000e-01 : f32
    %1066 = arith.cmpf ogt, %1065, %cst_488 : f32
    %c0_i32_489 = arith.constant 0 : i32
    %1067 = arith.cmpi ne, %1038, %c0_i32_489 : i32
    %1068 = arith.cmpi eq, %1038, %1039 : i32
    %1069 = arith.ori %1068, %1066 : i1
    %1070 = arith.andi %1067, %1069 : i1
    %1071 = arith.andi %1040, %1070 : i1
    %c1_i32_490 = arith.constant 1 : i32
    %1072 = arith.subi %1038, %c1_i32_490 : i32
    %1073 = arith.select %1071, %1072, %1038 : i32
    %c17_i32_491 = arith.constant 17 : i32
    %c31_i32_492 = arith.constant 31 : i32
    %1074 = arith.subi %c31_i32_492, %c17_i32_491 : i32
    %1075 = arith.cmpi slt, %1074, %3 : i32
    %1076 = vector.broadcast %1073 : i32 to vector<1x16xi32>
    %1077 = arith.cmpi eq, %60, %1076 : vector<1x16xi32>
    %1078 = vector.broadcast %1075 : i1 to vector<1x16xi1>
    %1079 = arith.andi %1077, %1078 : vector<1x16xi1>
    %1080 = arith.extui %1079 : vector<1x16xi1> to vector<1x16xi32>
    %1081 = arith.sitofp %1080 : vector<1x16xi32> to vector<1x16xf32>
    %1082 = arith.index_cast %1074 : i32 to index
    %c0_493 = arith.constant 0 : index
    %1083 = vector.load %arg15[%1082, %c0_493] : memref<32x16xf32, #tpu.memory_space<vmem>>, vector<1x16xf32>
    tpu.vector_store %arg15[%1082, %c0_493], %1081 {strides = array<i32>} : memref<32x16xf32, #tpu.memory_space<vmem>>, vector<1x16xf32>,
    %c1_i32_494 = arith.constant 1 : i32
    %1084 = arith.subi %1074, %c1_i32_494 : i32
    %c0_i32_495 = arith.constant 0 : i32
    %1085 = arith.maxsi %1084, %c0_i32_495 : i32
    %1086 = arith.index_cast %1085 : i32 to index
    %c0_496 = arith.constant 0 : index
    %1087 = vector.load %arg14[%1086, %c0_496] : memref<32x16xf32, #tpu.memory_space<vmem>>, vector<1x16xf32>
    %c1_i32_497 = arith.constant 1 : i32
    %1088 = tpu.dynamic_rotate %1087 by %c1_i32_497 dim 1 : vector<1x16xf32>, i32 -> vector<1x16xf32>
    %1089 = arith.cmpf olt, %1087, %1088 : vector<1x16xf32>
    %cst_498 = arith.constant 1.000000e+00 : f32
    %cst_499 = arith.constant 0.000000e+00 : f32
    %1090 = vector.broadcast %cst_498 : f32 to vector<1x16xf32>
    %1091 = vector.broadcast %cst_499 : f32 to vector<1x16xf32>
    %1092 = arith.select %1089, %1090, %1091 : vector<1x16xi1>, vector<1x16xf32>
    %1093 = vector.broadcast %1073 : i32 to vector<1x16xi32>
    %1094 = arith.cmpi eq, %60, %1093 : vector<1x16xi32>
    %cst_500 = arith.constant 0.000000e+00 : f32
    %1095 = vector.broadcast %cst_500 : f32 to vector<1x16xf32>
    %1096 = arith.select %1094, %1092, %1095 : vector<1x16xi1>, vector<1x16xf32>
    %1097 = vector.shape_cast %1096 : vector<1x16xf32> to vector<1x1x16xf32>
    %cst_501 = arith.constant dense<0.000000e+00> : vector<1xf32>
    %1098 = vector.multi_reduction <add>, %1097, %cst_501 [1, 2] : vector<1x1x16xf32> to vector<1xf32>
    %1099 = vector.shape_cast %1098 : vector<1xf32> to vector<1x1x1xf32>
    %1100 = vector.extract %1099[0, 0, 0] : f32 from vector<1x1x1xf32>
    %cst_502 = arith.constant 5.000000e-01 : f32
    %1101 = arith.cmpf ogt, %1100, %cst_502 : f32
    %c0_i32_503 = arith.constant 0 : i32
    %1102 = arith.cmpi ne, %1073, %c0_i32_503 : i32
    %1103 = arith.cmpi eq, %1073, %1074 : i32
    %1104 = arith.ori %1103, %1101 : i1
    %1105 = arith.andi %1102, %1104 : i1
    %1106 = arith.andi %1075, %1105 : i1
    %c1_i32_504 = arith.constant 1 : i32
    %1107 = arith.subi %1073, %c1_i32_504 : i32
    %1108 = arith.select %1106, %1107, %1073 : i32
    %c18_i32_505 = arith.constant 18 : i32
    %c31_i32_506 = arith.constant 31 : i32
    %1109 = arith.subi %c31_i32_506, %c18_i32_505 : i32
    %1110 = arith.cmpi slt, %1109, %3 : i32
    %1111 = vector.broadcast %1108 : i32 to vector<1x16xi32>
    %1112 = arith.cmpi eq, %60, %1111 : vector<1x16xi32>
    %1113 = vector.broadcast %1110 : i1 to vector<1x16xi1>
    %1114 = arith.andi %1112, %1113 : vector<1x16xi1>
    %1115 = arith.extui %1114 : vector<1x16xi1> to vector<1x16xi32>
    %1116 = arith.sitofp %1115 : vector<1x16xi32> to vector<1x16xf32>
    %1117 = arith.index_cast %1109 : i32 to index
    %c0_507 = arith.constant 0 : index
    %1118 = vector.load %arg15[%1117, %c0_507] : memref<32x16xf32, #tpu.memory_space<vmem>>, vector<1x16xf32>
    tpu.vector_store %arg15[%1117, %c0_507], %1116 {strides = array<i32>} : memref<32x16xf32, #tpu.memory_space<vmem>>, vector<1x16xf32>,
    %c1_i32_508 = arith.constant 1 : i32
    %1119 = arith.subi %1109, %c1_i32_508 : i32
    %c0_i32_509 = arith.constant 0 : i32
    %1120 = arith.maxsi %1119, %c0_i32_509 : i32
    %1121 = arith.index_cast %1120 : i32 to index
    %c0_510 = arith.constant 0 : index
    %1122 = vector.load %arg14[%1121, %c0_510] : memref<32x16xf32, #tpu.memory_space<vmem>>, vector<1x16xf32>
    %c1_i32_511 = arith.constant 1 : i32
    %1123 = tpu.dynamic_rotate %1122 by %c1_i32_511 dim 1 : vector<1x16xf32>, i32 -> vector<1x16xf32>
    %1124 = arith.cmpf olt, %1122, %1123 : vector<1x16xf32>
    %cst_512 = arith.constant 1.000000e+00 : f32
    %cst_513 = arith.constant 0.000000e+00 : f32
    %1125 = vector.broadcast %cst_512 : f32 to vector<1x16xf32>
    %1126 = vector.broadcast %cst_513 : f32 to vector<1x16xf32>
    %1127 = arith.select %1124, %1125, %1126 : vector<1x16xi1>, vector<1x16xf32>
    %1128 = vector.broadcast %1108 : i32 to vector<1x16xi32>
    %1129 = arith.cmpi eq, %60, %1128 : vector<1x16xi32>
    %cst_514 = arith.constant 0.000000e+00 : f32
    %1130 = vector.broadcast %cst_514 : f32 to vector<1x16xf32>
    %1131 = arith.select %1129, %1127, %1130 : vector<1x16xi1>, vector<1x16xf32>
    %1132 = vector.shape_cast %1131 : vector<1x16xf32> to vector<1x1x16xf32>
    %cst_515 = arith.constant dense<0.000000e+00> : vector<1xf32>
    %1133 = vector.multi_reduction <add>, %1132, %cst_515 [1, 2] : vector<1x1x16xf32> to vector<1xf32>
    %1134 = vector.shape_cast %1133 : vector<1xf32> to vector<1x1x1xf32>
    %1135 = vector.extract %1134[0, 0, 0] : f32 from vector<1x1x1xf32>
    %cst_516 = arith.constant 5.000000e-01 : f32
    %1136 = arith.cmpf ogt, %1135, %cst_516 : f32
    %c0_i32_517 = arith.constant 0 : i32
    %1137 = arith.cmpi ne, %1108, %c0_i32_517 : i32
    %1138 = arith.cmpi eq, %1108, %1109 : i32
    %1139 = arith.ori %1138, %1136 : i1
    %1140 = arith.andi %1137, %1139 : i1
    %1141 = arith.andi %1110, %1140 : i1
    %c1_i32_518 = arith.constant 1 : i32
    %1142 = arith.subi %1108, %c1_i32_518 : i32
    %1143 = arith.select %1141, %1142, %1108 : i32
    %c19_i32_519 = arith.constant 19 : i32
    %c31_i32_520 = arith.constant 31 : i32
    %1144 = arith.subi %c31_i32_520, %c19_i32_519 : i32
    %1145 = arith.cmpi slt, %1144, %3 : i32
    %1146 = vector.broadcast %1143 : i32 to vector<1x16xi32>
    %1147 = arith.cmpi eq, %60, %1146 : vector<1x16xi32>
    %1148 = vector.broadcast %1145 : i1 to vector<1x16xi1>
    %1149 = arith.andi %1147, %1148 : vector<1x16xi1>
    %1150 = arith.extui %1149 : vector<1x16xi1> to vector<1x16xi32>
    %1151 = arith.sitofp %1150 : vector<1x16xi32> to vector<1x16xf32>
    %1152 = arith.index_cast %1144 : i32 to index
    %c0_521 = arith.constant 0 : index
    %1153 = vector.load %arg15[%1152, %c0_521] : memref<32x16xf32, #tpu.memory_space<vmem>>, vector<1x16xf32>
    tpu.vector_store %arg15[%1152, %c0_521], %1151 {strides = array<i32>} : memref<32x16xf32, #tpu.memory_space<vmem>>, vector<1x16xf32>,
    %c1_i32_522 = arith.constant 1 : i32
    %1154 = arith.subi %1144, %c1_i32_522 : i32
    %c0_i32_523 = arith.constant 0 : i32
    %1155 = arith.maxsi %1154, %c0_i32_523 : i32
    %1156 = arith.index_cast %1155 : i32 to index
    %c0_524 = arith.constant 0 : index
    %1157 = vector.load %arg14[%1156, %c0_524] : memref<32x16xf32, #tpu.memory_space<vmem>>, vector<1x16xf32>
    %c1_i32_525 = arith.constant 1 : i32
    %1158 = tpu.dynamic_rotate %1157 by %c1_i32_525 dim 1 : vector<1x16xf32>, i32 -> vector<1x16xf32>
    %1159 = arith.cmpf olt, %1157, %1158 : vector<1x16xf32>
    %cst_526 = arith.constant 1.000000e+00 : f32
    %cst_527 = arith.constant 0.000000e+00 : f32
    %1160 = vector.broadcast %cst_526 : f32 to vector<1x16xf32>
    %1161 = vector.broadcast %cst_527 : f32 to vector<1x16xf32>
    %1162 = arith.select %1159, %1160, %1161 : vector<1x16xi1>, vector<1x16xf32>
    %1163 = vector.broadcast %1143 : i32 to vector<1x16xi32>
    %1164 = arith.cmpi eq, %60, %1163 : vector<1x16xi32>
    %cst_528 = arith.constant 0.000000e+00 : f32
    %1165 = vector.broadcast %cst_528 : f32 to vector<1x16xf32>
    %1166 = arith.select %1164, %1162, %1165 : vector<1x16xi1>, vector<1x16xf32>
    %1167 = vector.shape_cast %1166 : vector<1x16xf32> to vector<1x1x16xf32>
    %cst_529 = arith.constant dense<0.000000e+00> : vector<1xf32>
    %1168 = vector.multi_reduction <add>, %1167, %cst_529 [1, 2] : vector<1x1x16xf32> to vector<1xf32>
    %1169 = vector.shape_cast %1168 : vector<1xf32> to vector<1x1x1xf32>
    %1170 = vector.extract %1169[0, 0, 0] : f32 from vector<1x1x1xf32>
    %cst_530 = arith.constant 5.000000e-01 : f32
    %1171 = arith.cmpf ogt, %1170, %cst_530 : f32
    %c0_i32_531 = arith.constant 0 : i32
    %1172 = arith.cmpi ne, %1143, %c0_i32_531 : i32
    %1173 = arith.cmpi eq, %1143, %1144 : i32
    %1174 = arith.ori %1173, %1171 : i1
    %1175 = arith.andi %1172, %1174 : i1
    %1176 = arith.andi %1145, %1175 : i1
    %c1_i32_532 = arith.constant 1 : i32
    %1177 = arith.subi %1143, %c1_i32_532 : i32
    %1178 = arith.select %1176, %1177, %1143 : i32
    %c20_i32_533 = arith.constant 20 : i32
    %c31_i32_534 = arith.constant 31 : i32
    %1179 = arith.subi %c31_i32_534, %c20_i32_533 : i32
    %1180 = arith.cmpi slt, %1179, %3 : i32
    %1181 = vector.broadcast %1178 : i32 to vector<1x16xi32>
    %1182 = arith.cmpi eq, %60, %1181 : vector<1x16xi32>
    %1183 = vector.broadcast %1180 : i1 to vector<1x16xi1>
    %1184 = arith.andi %1182, %1183 : vector<1x16xi1>
    %1185 = arith.extui %1184 : vector<1x16xi1> to vector<1x16xi32>
    %1186 = arith.sitofp %1185 : vector<1x16xi32> to vector<1x16xf32>
    %1187 = arith.index_cast %1179 : i32 to index
    %c0_535 = arith.constant 0 : index
    %1188 = vector.load %arg15[%1187, %c0_535] : memref<32x16xf32, #tpu.memory_space<vmem>>, vector<1x16xf32>
    tpu.vector_store %arg15[%1187, %c0_535], %1186 {strides = array<i32>} : memref<32x16xf32, #tpu.memory_space<vmem>>, vector<1x16xf32>,
    %c1_i32_536 = arith.constant 1 : i32
    %1189 = arith.subi %1179, %c1_i32_536 : i32
    %c0_i32_537 = arith.constant 0 : i32
    %1190 = arith.maxsi %1189, %c0_i32_537 : i32
    %1191 = arith.index_cast %1190 : i32 to index
    %c0_538 = arith.constant 0 : index
    %1192 = vector.load %arg14[%1191, %c0_538] : memref<32x16xf32, #tpu.memory_space<vmem>>, vector<1x16xf32>
    %c1_i32_539 = arith.constant 1 : i32
    %1193 = tpu.dynamic_rotate %1192 by %c1_i32_539 dim 1 : vector<1x16xf32>, i32 -> vector<1x16xf32>
    %1194 = arith.cmpf olt, %1192, %1193 : vector<1x16xf32>
    %cst_540 = arith.constant 1.000000e+00 : f32
    %cst_541 = arith.constant 0.000000e+00 : f32
    %1195 = vector.broadcast %cst_540 : f32 to vector<1x16xf32>
    %1196 = vector.broadcast %cst_541 : f32 to vector<1x16xf32>
    %1197 = arith.select %1194, %1195, %1196 : vector<1x16xi1>, vector<1x16xf32>
    %1198 = vector.broadcast %1178 : i32 to vector<1x16xi32>
    %1199 = arith.cmpi eq, %60, %1198 : vector<1x16xi32>
    %cst_542 = arith.constant 0.000000e+00 : f32
    %1200 = vector.broadcast %cst_542 : f32 to vector<1x16xf32>
    %1201 = arith.select %1199, %1197, %1200 : vector<1x16xi1>, vector<1x16xf32>
    %1202 = vector.shape_cast %1201 : vector<1x16xf32> to vector<1x1x16xf32>
    %cst_543 = arith.constant dense<0.000000e+00> : vector<1xf32>
    %1203 = vector.multi_reduction <add>, %1202, %cst_543 [1, 2] : vector<1x1x16xf32> to vector<1xf32>
    %1204 = vector.shape_cast %1203 : vector<1xf32> to vector<1x1x1xf32>
    %1205 = vector.extract %1204[0, 0, 0] : f32 from vector<1x1x1xf32>
    %cst_544 = arith.constant 5.000000e-01 : f32
    %1206 = arith.cmpf ogt, %1205, %cst_544 : f32
    %c0_i32_545 = arith.constant 0 : i32
    %1207 = arith.cmpi ne, %1178, %c0_i32_545 : i32
    %1208 = arith.cmpi eq, %1178, %1179 : i32
    %1209 = arith.ori %1208, %1206 : i1
    %1210 = arith.andi %1207, %1209 : i1
    %1211 = arith.andi %1180, %1210 : i1
    %c1_i32_546 = arith.constant 1 : i32
    %1212 = arith.subi %1178, %c1_i32_546 : i32
    %1213 = arith.select %1211, %1212, %1178 : i32
    %c21_i32_547 = arith.constant 21 : i32
    %c31_i32_548 = arith.constant 31 : i32
    %1214 = arith.subi %c31_i32_548, %c21_i32_547 : i32
    %1215 = arith.cmpi slt, %1214, %3 : i32
    %1216 = vector.broadcast %1213 : i32 to vector<1x16xi32>
    %1217 = arith.cmpi eq, %60, %1216 : vector<1x16xi32>
    %1218 = vector.broadcast %1215 : i1 to vector<1x16xi1>
    %1219 = arith.andi %1217, %1218 : vector<1x16xi1>
    %1220 = arith.extui %1219 : vector<1x16xi1> to vector<1x16xi32>
    %1221 = arith.sitofp %1220 : vector<1x16xi32> to vector<1x16xf32>
    %1222 = arith.index_cast %1214 : i32 to index
    %c0_549 = arith.constant 0 : index
    %1223 = vector.load %arg15[%1222, %c0_549] : memref<32x16xf32, #tpu.memory_space<vmem>>, vector<1x16xf32>
    tpu.vector_store %arg15[%1222, %c0_549], %1221 {strides = array<i32>} : memref<32x16xf32, #tpu.memory_space<vmem>>, vector<1x16xf32>,
    %c1_i32_550 = arith.constant 1 : i32
    %1224 = arith.subi %1214, %c1_i32_550 : i32
    %c0_i32_551 = arith.constant 0 : i32
    %1225 = arith.maxsi %1224, %c0_i32_551 : i32
    %1226 = arith.index_cast %1225 : i32 to index
    %c0_552 = arith.constant 0 : index
    %1227 = vector.load %arg14[%1226, %c0_552] : memref<32x16xf32, #tpu.memory_space<vmem>>, vector<1x16xf32>
    %c1_i32_553 = arith.constant 1 : i32
    %1228 = tpu.dynamic_rotate %1227 by %c1_i32_553 dim 1 : vector<1x16xf32>, i32 -> vector<1x16xf32>
    %1229 = arith.cmpf olt, %1227, %1228 : vector<1x16xf32>
    %cst_554 = arith.constant 1.000000e+00 : f32
    %cst_555 = arith.constant 0.000000e+00 : f32
    %1230 = vector.broadcast %cst_554 : f32 to vector<1x16xf32>
    %1231 = vector.broadcast %cst_555 : f32 to vector<1x16xf32>
    %1232 = arith.select %1229, %1230, %1231 : vector<1x16xi1>, vector<1x16xf32>
    %1233 = vector.broadcast %1213 : i32 to vector<1x16xi32>
    %1234 = arith.cmpi eq, %60, %1233 : vector<1x16xi32>
    %cst_556 = arith.constant 0.000000e+00 : f32
    %1235 = vector.broadcast %cst_556 : f32 to vector<1x16xf32>
    %1236 = arith.select %1234, %1232, %1235 : vector<1x16xi1>, vector<1x16xf32>
    %1237 = vector.shape_cast %1236 : vector<1x16xf32> to vector<1x1x16xf32>
    %cst_557 = arith.constant dense<0.000000e+00> : vector<1xf32>
    %1238 = vector.multi_reduction <add>, %1237, %cst_557 [1, 2] : vector<1x1x16xf32> to vector<1xf32>
    %1239 = vector.shape_cast %1238 : vector<1xf32> to vector<1x1x1xf32>
    %1240 = vector.extract %1239[0, 0, 0] : f32 from vector<1x1x1xf32>
    %cst_558 = arith.constant 5.000000e-01 : f32
    %1241 = arith.cmpf ogt, %1240, %cst_558 : f32
    %c0_i32_559 = arith.constant 0 : i32
    %1242 = arith.cmpi ne, %1213, %c0_i32_559 : i32
    %1243 = arith.cmpi eq, %1213, %1214 : i32
    %1244 = arith.ori %1243, %1241 : i1
    %1245 = arith.andi %1242, %1244 : i1
    %1246 = arith.andi %1215, %1245 : i1
    %c1_i32_560 = arith.constant 1 : i32
    %1247 = arith.subi %1213, %c1_i32_560 : i32
    %1248 = arith.select %1246, %1247, %1213 : i32
    %c22_i32_561 = arith.constant 22 : i32
    %c31_i32_562 = arith.constant 31 : i32
    %1249 = arith.subi %c31_i32_562, %c22_i32_561 : i32
    %1250 = arith.cmpi slt, %1249, %3 : i32
    %1251 = vector.broadcast %1248 : i32 to vector<1x16xi32>
    %1252 = arith.cmpi eq, %60, %1251 : vector<1x16xi32>
    %1253 = vector.broadcast %1250 : i1 to vector<1x16xi1>
    %1254 = arith.andi %1252, %1253 : vector<1x16xi1>
    %1255 = arith.extui %1254 : vector<1x16xi1> to vector<1x16xi32>
    %1256 = arith.sitofp %1255 : vector<1x16xi32> to vector<1x16xf32>
    %1257 = arith.index_cast %1249 : i32 to index
    %c0_563 = arith.constant 0 : index
    %1258 = vector.load %arg15[%1257, %c0_563] : memref<32x16xf32, #tpu.memory_space<vmem>>, vector<1x16xf32>
    tpu.vector_store %arg15[%1257, %c0_563], %1256 {strides = array<i32>} : memref<32x16xf32, #tpu.memory_space<vmem>>, vector<1x16xf32>,
    %c1_i32_564 = arith.constant 1 : i32
    %1259 = arith.subi %1249, %c1_i32_564 : i32
    %c0_i32_565 = arith.constant 0 : i32
    %1260 = arith.maxsi %1259, %c0_i32_565 : i32
    %1261 = arith.index_cast %1260 : i32 to index
    %c0_566 = arith.constant 0 : index
    %1262 = vector.load %arg14[%1261, %c0_566] : memref<32x16xf32, #tpu.memory_space<vmem>>, vector<1x16xf32>
    %c1_i32_567 = arith.constant 1 : i32
    %1263 = tpu.dynamic_rotate %1262 by %c1_i32_567 dim 1 : vector<1x16xf32>, i32 -> vector<1x16xf32>
    %1264 = arith.cmpf olt, %1262, %1263 : vector<1x16xf32>
    %cst_568 = arith.constant 1.000000e+00 : f32
    %cst_569 = arith.constant 0.000000e+00 : f32
    %1265 = vector.broadcast %cst_568 : f32 to vector<1x16xf32>
    %1266 = vector.broadcast %cst_569 : f32 to vector<1x16xf32>
    %1267 = arith.select %1264, %1265, %1266 : vector<1x16xi1>, vector<1x16xf32>
    %1268 = vector.broadcast %1248 : i32 to vector<1x16xi32>
    %1269 = arith.cmpi eq, %60, %1268 : vector<1x16xi32>
    %cst_570 = arith.constant 0.000000e+00 : f32
    %1270 = vector.broadcast %cst_570 : f32 to vector<1x16xf32>
    %1271 = arith.select %1269, %1267, %1270 : vector<1x16xi1>, vector<1x16xf32>
    %1272 = vector.shape_cast %1271 : vector<1x16xf32> to vector<1x1x16xf32>
    %cst_571 = arith.constant dense<0.000000e+00> : vector<1xf32>
    %1273 = vector.multi_reduction <add>, %1272, %cst_571 [1, 2] : vector<1x1x16xf32> to vector<1xf32>
    %1274 = vector.shape_cast %1273 : vector<1xf32> to vector<1x1x1xf32>
    %1275 = vector.extract %1274[0, 0, 0] : f32 from vector<1x1x1xf32>
    %cst_572 = arith.constant 5.000000e-01 : f32
    %1276 = arith.cmpf ogt, %1275, %cst_572 : f32
    %c0_i32_573 = arith.constant 0 : i32
    %1277 = arith.cmpi ne, %1248, %c0_i32_573 : i32
    %1278 = arith.cmpi eq, %1248, %1249 : i32
    %1279 = arith.ori %1278, %1276 : i1
    %1280 = arith.andi %1277, %1279 : i1
    %1281 = arith.andi %1250, %1280 : i1
    %c1_i32_574 = arith.constant 1 : i32
    %1282 = arith.subi %1248, %c1_i32_574 : i32
    %1283 = arith.select %1281, %1282, %1248 : i32
    %c23_i32_575 = arith.constant 23 : i32
    %c31_i32_576 = arith.constant 31 : i32
    %1284 = arith.subi %c31_i32_576, %c23_i32_575 : i32
    %1285 = arith.cmpi slt, %1284, %3 : i32
    %1286 = vector.broadcast %1283 : i32 to vector<1x16xi32>
    %1287 = arith.cmpi eq, %60, %1286 : vector<1x16xi32>
    %1288 = vector.broadcast %1285 : i1 to vector<1x16xi1>
    %1289 = arith.andi %1287, %1288 : vector<1x16xi1>
    %1290 = arith.extui %1289 : vector<1x16xi1> to vector<1x16xi32>
    %1291 = arith.sitofp %1290 : vector<1x16xi32> to vector<1x16xf32>
    %1292 = arith.index_cast %1284 : i32 to index
    %c0_577 = arith.constant 0 : index
    %1293 = vector.load %arg15[%1292, %c0_577] : memref<32x16xf32, #tpu.memory_space<vmem>>, vector<1x16xf32>
    tpu.vector_store %arg15[%1292, %c0_577], %1291 {strides = array<i32>} : memref<32x16xf32, #tpu.memory_space<vmem>>, vector<1x16xf32>,
    %c1_i32_578 = arith.constant 1 : i32
    %1294 = arith.subi %1284, %c1_i32_578 : i32
    %c0_i32_579 = arith.constant 0 : i32
    %1295 = arith.maxsi %1294, %c0_i32_579 : i32
    %1296 = arith.index_cast %1295 : i32 to index
    %c0_580 = arith.constant 0 : index
    %1297 = vector.load %arg14[%1296, %c0_580] : memref<32x16xf32, #tpu.memory_space<vmem>>, vector<1x16xf32>
    %c1_i32_581 = arith.constant 1 : i32
    %1298 = tpu.dynamic_rotate %1297 by %c1_i32_581 dim 1 : vector<1x16xf32>, i32 -> vector<1x16xf32>
    %1299 = arith.cmpf olt, %1297, %1298 : vector<1x16xf32>
    %cst_582 = arith.constant 1.000000e+00 : f32
    %cst_583 = arith.constant 0.000000e+00 : f32
    %1300 = vector.broadcast %cst_582 : f32 to vector<1x16xf32>
    %1301 = vector.broadcast %cst_583 : f32 to vector<1x16xf32>
    %1302 = arith.select %1299, %1300, %1301 : vector<1x16xi1>, vector<1x16xf32>
    %1303 = vector.broadcast %1283 : i32 to vector<1x16xi32>
    %1304 = arith.cmpi eq, %60, %1303 : vector<1x16xi32>
    %cst_584 = arith.constant 0.000000e+00 : f32
    %1305 = vector.broadcast %cst_584 : f32 to vector<1x16xf32>
    %1306 = arith.select %1304, %1302, %1305 : vector<1x16xi1>, vector<1x16xf32>
    %1307 = vector.shape_cast %1306 : vector<1x16xf32> to vector<1x1x16xf32>
    %cst_585 = arith.constant dense<0.000000e+00> : vector<1xf32>
    %1308 = vector.multi_reduction <add>, %1307, %cst_585 [1, 2] : vector<1x1x16xf32> to vector<1xf32>
    %1309 = vector.shape_cast %1308 : vector<1xf32> to vector<1x1x1xf32>
    %1310 = vector.extract %1309[0, 0, 0] : f32 from vector<1x1x1xf32>
    %cst_586 = arith.constant 5.000000e-01 : f32
    %1311 = arith.cmpf ogt, %1310, %cst_586 : f32
    %c0_i32_587 = arith.constant 0 : i32
    %1312 = arith.cmpi ne, %1283, %c0_i32_587 : i32
    %1313 = arith.cmpi eq, %1283, %1284 : i32
    %1314 = arith.ori %1313, %1311 : i1
    %1315 = arith.andi %1312, %1314 : i1
    %1316 = arith.andi %1285, %1315 : i1
    %c1_i32_588 = arith.constant 1 : i32
    %1317 = arith.subi %1283, %c1_i32_588 : i32
    %1318 = arith.select %1316, %1317, %1283 : i32
    %c24_i32_589 = arith.constant 24 : i32
    %c31_i32_590 = arith.constant 31 : i32
    %1319 = arith.subi %c31_i32_590, %c24_i32_589 : i32
    %1320 = arith.cmpi slt, %1319, %3 : i32
    %1321 = vector.broadcast %1318 : i32 to vector<1x16xi32>
    %1322 = arith.cmpi eq, %60, %1321 : vector<1x16xi32>
    %1323 = vector.broadcast %1320 : i1 to vector<1x16xi1>
    %1324 = arith.andi %1322, %1323 : vector<1x16xi1>
    %1325 = arith.extui %1324 : vector<1x16xi1> to vector<1x16xi32>
    %1326 = arith.sitofp %1325 : vector<1x16xi32> to vector<1x16xf32>
    %1327 = arith.index_cast %1319 : i32 to index
    %c0_591 = arith.constant 0 : index
    %1328 = vector.load %arg15[%1327, %c0_591] : memref<32x16xf32, #tpu.memory_space<vmem>>, vector<1x16xf32>
    tpu.vector_store %arg15[%1327, %c0_591], %1326 {strides = array<i32>} : memref<32x16xf32, #tpu.memory_space<vmem>>, vector<1x16xf32>,
    %c1_i32_592 = arith.constant 1 : i32
    %1329 = arith.subi %1319, %c1_i32_592 : i32
    %c0_i32_593 = arith.constant 0 : i32
    %1330 = arith.maxsi %1329, %c0_i32_593 : i32
    %1331 = arith.index_cast %1330 : i32 to index
    %c0_594 = arith.constant 0 : index
    %1332 = vector.load %arg14[%1331, %c0_594] : memref<32x16xf32, #tpu.memory_space<vmem>>, vector<1x16xf32>
    %c1_i32_595 = arith.constant 1 : i32
    %1333 = tpu.dynamic_rotate %1332 by %c1_i32_595 dim 1 : vector<1x16xf32>, i32 -> vector<1x16xf32>
    %1334 = arith.cmpf olt, %1332, %1333 : vector<1x16xf32>
    %cst_596 = arith.constant 1.000000e+00 : f32
    %cst_597 = arith.constant 0.000000e+00 : f32
    %1335 = vector.broadcast %cst_596 : f32 to vector<1x16xf32>
    %1336 = vector.broadcast %cst_597 : f32 to vector<1x16xf32>
    %1337 = arith.select %1334, %1335, %1336 : vector<1x16xi1>, vector<1x16xf32>
    %1338 = vector.broadcast %1318 : i32 to vector<1x16xi32>
    %1339 = arith.cmpi eq, %60, %1338 : vector<1x16xi32>
    %cst_598 = arith.constant 0.000000e+00 : f32
    %1340 = vector.broadcast %cst_598 : f32 to vector<1x16xf32>
    %1341 = arith.select %1339, %1337, %1340 : vector<1x16xi1>, vector<1x16xf32>
    %1342 = vector.shape_cast %1341 : vector<1x16xf32> to vector<1x1x16xf32>
    %cst_599 = arith.constant dense<0.000000e+00> : vector<1xf32>
    %1343 = vector.multi_reduction <add>, %1342, %cst_599 [1, 2] : vector<1x1x16xf32> to vector<1xf32>
    %1344 = vector.shape_cast %1343 : vector<1xf32> to vector<1x1x1xf32>
    %1345 = vector.extract %1344[0, 0, 0] : f32 from vector<1x1x1xf32>
    %cst_600 = arith.constant 5.000000e-01 : f32
    %1346 = arith.cmpf ogt, %1345, %cst_600 : f32
    %c0_i32_601 = arith.constant 0 : i32
    %1347 = arith.cmpi ne, %1318, %c0_i32_601 : i32
    %1348 = arith.cmpi eq, %1318, %1319 : i32
    %1349 = arith.ori %1348, %1346 : i1
    %1350 = arith.andi %1347, %1349 : i1
    %1351 = arith.andi %1320, %1350 : i1
    %c1_i32_602 = arith.constant 1 : i32
    %1352 = arith.subi %1318, %c1_i32_602 : i32
    %1353 = arith.select %1351, %1352, %1318 : i32
    %c25_i32_603 = arith.constant 25 : i32
    %c31_i32_604 = arith.constant 31 : i32
    %1354 = arith.subi %c31_i32_604, %c25_i32_603 : i32
    %1355 = arith.cmpi slt, %1354, %3 : i32
    %1356 = vector.broadcast %1353 : i32 to vector<1x16xi32>
    %1357 = arith.cmpi eq, %60, %1356 : vector<1x16xi32>
    %1358 = vector.broadcast %1355 : i1 to vector<1x16xi1>
    %1359 = arith.andi %1357, %1358 : vector<1x16xi1>
    %1360 = arith.extui %1359 : vector<1x16xi1> to vector<1x16xi32>
    %1361 = arith.sitofp %1360 : vector<1x16xi32> to vector<1x16xf32>
    %1362 = arith.index_cast %1354 : i32 to index
    %c0_605 = arith.constant 0 : index
    %1363 = vector.load %arg15[%1362, %c0_605] : memref<32x16xf32, #tpu.memory_space<vmem>>, vector<1x16xf32>
    tpu.vector_store %arg15[%1362, %c0_605], %1361 {strides = array<i32>} : memref<32x16xf32, #tpu.memory_space<vmem>>, vector<1x16xf32>,
    %c1_i32_606 = arith.constant 1 : i32
    %1364 = arith.subi %1354, %c1_i32_606 : i32
    %c0_i32_607 = arith.constant 0 : i32
    %1365 = arith.maxsi %1364, %c0_i32_607 : i32
    %1366 = arith.index_cast %1365 : i32 to index
    %c0_608 = arith.constant 0 : index
    %1367 = vector.load %arg14[%1366, %c0_608] : memref<32x16xf32, #tpu.memory_space<vmem>>, vector<1x16xf32>
    %c1_i32_609 = arith.constant 1 : i32
    %1368 = tpu.dynamic_rotate %1367 by %c1_i32_609 dim 1 : vector<1x16xf32>, i32 -> vector<1x16xf32>
    %1369 = arith.cmpf olt, %1367, %1368 : vector<1x16xf32>
    %cst_610 = arith.constant 1.000000e+00 : f32
    %cst_611 = arith.constant 0.000000e+00 : f32
    %1370 = vector.broadcast %cst_610 : f32 to vector<1x16xf32>
    %1371 = vector.broadcast %cst_611 : f32 to vector<1x16xf32>
    %1372 = arith.select %1369, %1370, %1371 : vector<1x16xi1>, vector<1x16xf32>
    %1373 = vector.broadcast %1353 : i32 to vector<1x16xi32>
    %1374 = arith.cmpi eq, %60, %1373 : vector<1x16xi32>
    %cst_612 = arith.constant 0.000000e+00 : f32
    %1375 = vector.broadcast %cst_612 : f32 to vector<1x16xf32>
    %1376 = arith.select %1374, %1372, %1375 : vector<1x16xi1>, vector<1x16xf32>
    %1377 = vector.shape_cast %1376 : vector<1x16xf32> to vector<1x1x16xf32>
    %cst_613 = arith.constant dense<0.000000e+00> : vector<1xf32>
    %1378 = vector.multi_reduction <add>, %1377, %cst_613 [1, 2] : vector<1x1x16xf32> to vector<1xf32>
    %1379 = vector.shape_cast %1378 : vector<1xf32> to vector<1x1x1xf32>
    %1380 = vector.extract %1379[0, 0, 0] : f32 from vector<1x1x1xf32>
    %cst_614 = arith.constant 5.000000e-01 : f32
    %1381 = arith.cmpf ogt, %1380, %cst_614 : f32
    %c0_i32_615 = arith.constant 0 : i32
    %1382 = arith.cmpi ne, %1353, %c0_i32_615 : i32
    %1383 = arith.cmpi eq, %1353, %1354 : i32
    %1384 = arith.ori %1383, %1381 : i1
    %1385 = arith.andi %1382, %1384 : i1
    %1386 = arith.andi %1355, %1385 : i1
    %c1_i32_616 = arith.constant 1 : i32
    %1387 = arith.subi %1353, %c1_i32_616 : i32
    %1388 = arith.select %1386, %1387, %1353 : i32
    %c26_i32_617 = arith.constant 26 : i32
    %c31_i32_618 = arith.constant 31 : i32
    %1389 = arith.subi %c31_i32_618, %c26_i32_617 : i32
    %1390 = arith.cmpi slt, %1389, %3 : i32
    %1391 = vector.broadcast %1388 : i32 to vector<1x16xi32>
    %1392 = arith.cmpi eq, %60, %1391 : vector<1x16xi32>
    %1393 = vector.broadcast %1390 : i1 to vector<1x16xi1>
    %1394 = arith.andi %1392, %1393 : vector<1x16xi1>
    %1395 = arith.extui %1394 : vector<1x16xi1> to vector<1x16xi32>
    %1396 = arith.sitofp %1395 : vector<1x16xi32> to vector<1x16xf32>
    %1397 = arith.index_cast %1389 : i32 to index
    %c0_619 = arith.constant 0 : index
    %1398 = vector.load %arg15[%1397, %c0_619] : memref<32x16xf32, #tpu.memory_space<vmem>>, vector<1x16xf32>
    tpu.vector_store %arg15[%1397, %c0_619], %1396 {strides = array<i32>} : memref<32x16xf32, #tpu.memory_space<vmem>>, vector<1x16xf32>,
    %c1_i32_620 = arith.constant 1 : i32
    %1399 = arith.subi %1389, %c1_i32_620 : i32
    %c0_i32_621 = arith.constant 0 : i32
    %1400 = arith.maxsi %1399, %c0_i32_621 : i32
    %1401 = arith.index_cast %1400 : i32 to index
    %c0_622 = arith.constant 0 : index
    %1402 = vector.load %arg14[%1401, %c0_622] : memref<32x16xf32, #tpu.memory_space<vmem>>, vector<1x16xf32>
    %c1_i32_623 = arith.constant 1 : i32
    %1403 = tpu.dynamic_rotate %1402 by %c1_i32_623 dim 1 : vector<1x16xf32>, i32 -> vector<1x16xf32>
    %1404 = arith.cmpf olt, %1402, %1403 : vector<1x16xf32>
    %cst_624 = arith.constant 1.000000e+00 : f32
    %cst_625 = arith.constant 0.000000e+00 : f32
    %1405 = vector.broadcast %cst_624 : f32 to vector<1x16xf32>
    %1406 = vector.broadcast %cst_625 : f32 to vector<1x16xf32>
    %1407 = arith.select %1404, %1405, %1406 : vector<1x16xi1>, vector<1x16xf32>
    %1408 = vector.broadcast %1388 : i32 to vector<1x16xi32>
    %1409 = arith.cmpi eq, %60, %1408 : vector<1x16xi32>
    %cst_626 = arith.constant 0.000000e+00 : f32
    %1410 = vector.broadcast %cst_626 : f32 to vector<1x16xf32>
    %1411 = arith.select %1409, %1407, %1410 : vector<1x16xi1>, vector<1x16xf32>
    %1412 = vector.shape_cast %1411 : vector<1x16xf32> to vector<1x1x16xf32>
    %cst_627 = arith.constant dense<0.000000e+00> : vector<1xf32>
    %1413 = vector.multi_reduction <add>, %1412, %cst_627 [1, 2] : vector<1x1x16xf32> to vector<1xf32>
    %1414 = vector.shape_cast %1413 : vector<1xf32> to vector<1x1x1xf32>
    %1415 = vector.extract %1414[0, 0, 0] : f32 from vector<1x1x1xf32>
    %cst_628 = arith.constant 5.000000e-01 : f32
    %1416 = arith.cmpf ogt, %1415, %cst_628 : f32
    %c0_i32_629 = arith.constant 0 : i32
    %1417 = arith.cmpi ne, %1388, %c0_i32_629 : i32
    %1418 = arith.cmpi eq, %1388, %1389 : i32
    %1419 = arith.ori %1418, %1416 : i1
    %1420 = arith.andi %1417, %1419 : i1
    %1421 = arith.andi %1390, %1420 : i1
    %c1_i32_630 = arith.constant 1 : i32
    %1422 = arith.subi %1388, %c1_i32_630 : i32
    %1423 = arith.select %1421, %1422, %1388 : i32
    %c27_i32_631 = arith.constant 27 : i32
    %c31_i32_632 = arith.constant 31 : i32
    %1424 = arith.subi %c31_i32_632, %c27_i32_631 : i32
    %1425 = arith.cmpi slt, %1424, %3 : i32
    %1426 = vector.broadcast %1423 : i32 to vector<1x16xi32>
    %1427 = arith.cmpi eq, %60, %1426 : vector<1x16xi32>
    %1428 = vector.broadcast %1425 : i1 to vector<1x16xi1>
    %1429 = arith.andi %1427, %1428 : vector<1x16xi1>
    %1430 = arith.extui %1429 : vector<1x16xi1> to vector<1x16xi32>
    %1431 = arith.sitofp %1430 : vector<1x16xi32> to vector<1x16xf32>
    %1432 = arith.index_cast %1424 : i32 to index
    %c0_633 = arith.constant 0 : index
    %1433 = vector.load %arg15[%1432, %c0_633] : memref<32x16xf32, #tpu.memory_space<vmem>>, vector<1x16xf32>
    tpu.vector_store %arg15[%1432, %c0_633], %1431 {strides = array<i32>} : memref<32x16xf32, #tpu.memory_space<vmem>>, vector<1x16xf32>,
    %c1_i32_634 = arith.constant 1 : i32
    %1434 = arith.subi %1424, %c1_i32_634 : i32
    %c0_i32_635 = arith.constant 0 : i32
    %1435 = arith.maxsi %1434, %c0_i32_635 : i32
    %1436 = arith.index_cast %1435 : i32 to index
    %c0_636 = arith.constant 0 : index
    %1437 = vector.load %arg14[%1436, %c0_636] : memref<32x16xf32, #tpu.memory_space<vmem>>, vector<1x16xf32>
    %c1_i32_637 = arith.constant 1 : i32
    %1438 = tpu.dynamic_rotate %1437 by %c1_i32_637 dim 1 : vector<1x16xf32>, i32 -> vector<1x16xf32>
    %1439 = arith.cmpf olt, %1437, %1438 : vector<1x16xf32>
    %cst_638 = arith.constant 1.000000e+00 : f32
    %cst_639 = arith.constant 0.000000e+00 : f32
    %1440 = vector.broadcast %cst_638 : f32 to vector<1x16xf32>
    %1441 = vector.broadcast %cst_639 : f32 to vector<1x16xf32>
    %1442 = arith.select %1439, %1440, %1441 : vector<1x16xi1>, vector<1x16xf32>
    %1443 = vector.broadcast %1423 : i32 to vector<1x16xi32>
    %1444 = arith.cmpi eq, %60, %1443 : vector<1x16xi32>
    %cst_640 = arith.constant 0.000000e+00 : f32
    %1445 = vector.broadcast %cst_640 : f32 to vector<1x16xf32>
    %1446 = arith.select %1444, %1442, %1445 : vector<1x16xi1>, vector<1x16xf32>
    %1447 = vector.shape_cast %1446 : vector<1x16xf32> to vector<1x1x16xf32>
    %cst_641 = arith.constant dense<0.000000e+00> : vector<1xf32>
    %1448 = vector.multi_reduction <add>, %1447, %cst_641 [1, 2] : vector<1x1x16xf32> to vector<1xf32>
    %1449 = vector.shape_cast %1448 : vector<1xf32> to vector<1x1x1xf32>
    %1450 = vector.extract %1449[0, 0, 0] : f32 from vector<1x1x1xf32>
    %cst_642 = arith.constant 5.000000e-01 : f32
    %1451 = arith.cmpf ogt, %1450, %cst_642 : f32
    %c0_i32_643 = arith.constant 0 : i32
    %1452 = arith.cmpi ne, %1423, %c0_i32_643 : i32
    %1453 = arith.cmpi eq, %1423, %1424 : i32
    %1454 = arith.ori %1453, %1451 : i1
    %1455 = arith.andi %1452, %1454 : i1
    %1456 = arith.andi %1425, %1455 : i1
    %c1_i32_644 = arith.constant 1 : i32
    %1457 = arith.subi %1423, %c1_i32_644 : i32
    %1458 = arith.select %1456, %1457, %1423 : i32
    %c28_i32_645 = arith.constant 28 : i32
    %c31_i32_646 = arith.constant 31 : i32
    %1459 = arith.subi %c31_i32_646, %c28_i32_645 : i32
    %1460 = arith.cmpi slt, %1459, %3 : i32
    %1461 = vector.broadcast %1458 : i32 to vector<1x16xi32>
    %1462 = arith.cmpi eq, %60, %1461 : vector<1x16xi32>
    %1463 = vector.broadcast %1460 : i1 to vector<1x16xi1>
    %1464 = arith.andi %1462, %1463 : vector<1x16xi1>
    %1465 = arith.extui %1464 : vector<1x16xi1> to vector<1x16xi32>
    %1466 = arith.sitofp %1465 : vector<1x16xi32> to vector<1x16xf32>
    %1467 = arith.index_cast %1459 : i32 to index
    %c0_647 = arith.constant 0 : index
    %1468 = vector.load %arg15[%1467, %c0_647] : memref<32x16xf32, #tpu.memory_space<vmem>>, vector<1x16xf32>
    tpu.vector_store %arg15[%1467, %c0_647], %1466 {strides = array<i32>} : memref<32x16xf32, #tpu.memory_space<vmem>>, vector<1x16xf32>,
    %c1_i32_648 = arith.constant 1 : i32
    %1469 = arith.subi %1459, %c1_i32_648 : i32
    %c0_i32_649 = arith.constant 0 : i32
    %1470 = arith.maxsi %1469, %c0_i32_649 : i32
    %1471 = arith.index_cast %1470 : i32 to index
    %c0_650 = arith.constant 0 : index
    %1472 = vector.load %arg14[%1471, %c0_650] : memref<32x16xf32, #tpu.memory_space<vmem>>, vector<1x16xf32>
    %c1_i32_651 = arith.constant 1 : i32
    %1473 = tpu.dynamic_rotate %1472 by %c1_i32_651 dim 1 : vector<1x16xf32>, i32 -> vector<1x16xf32>
    %1474 = arith.cmpf olt, %1472, %1473 : vector<1x16xf32>
    %cst_652 = arith.constant 1.000000e+00 : f32
    %cst_653 = arith.constant 0.000000e+00 : f32
    %1475 = vector.broadcast %cst_652 : f32 to vector<1x16xf32>
    %1476 = vector.broadcast %cst_653 : f32 to vector<1x16xf32>
    %1477 = arith.select %1474, %1475, %1476 : vector<1x16xi1>, vector<1x16xf32>
    %1478 = vector.broadcast %1458 : i32 to vector<1x16xi32>
    %1479 = arith.cmpi eq, %60, %1478 : vector<1x16xi32>
    %cst_654 = arith.constant 0.000000e+00 : f32
    %1480 = vector.broadcast %cst_654 : f32 to vector<1x16xf32>
    %1481 = arith.select %1479, %1477, %1480 : vector<1x16xi1>, vector<1x16xf32>
    %1482 = vector.shape_cast %1481 : vector<1x16xf32> to vector<1x1x16xf32>
    %cst_655 = arith.constant dense<0.000000e+00> : vector<1xf32>
    %1483 = vector.multi_reduction <add>, %1482, %cst_655 [1, 2] : vector<1x1x16xf32> to vector<1xf32>
    %1484 = vector.shape_cast %1483 : vector<1xf32> to vector<1x1x1xf32>
    %1485 = vector.extract %1484[0, 0, 0] : f32 from vector<1x1x1xf32>
    %cst_656 = arith.constant 5.000000e-01 : f32
    %1486 = arith.cmpf ogt, %1485, %cst_656 : f32
    %c0_i32_657 = arith.constant 0 : i32
    %1487 = arith.cmpi ne, %1458, %c0_i32_657 : i32
    %1488 = arith.cmpi eq, %1458, %1459 : i32
    %1489 = arith.ori %1488, %1486 : i1
    %1490 = arith.andi %1487, %1489 : i1
    %1491 = arith.andi %1460, %1490 : i1
    %c1_i32_658 = arith.constant 1 : i32
    %1492 = arith.subi %1458, %c1_i32_658 : i32
    %1493 = arith.select %1491, %1492, %1458 : i32
    %c29_i32_659 = arith.constant 29 : i32
    %c31_i32_660 = arith.constant 31 : i32
    %1494 = arith.subi %c31_i32_660, %c29_i32_659 : i32
    %1495 = arith.cmpi slt, %1494, %3 : i32
    %1496 = vector.broadcast %1493 : i32 to vector<1x16xi32>
    %1497 = arith.cmpi eq, %60, %1496 : vector<1x16xi32>
    %1498 = vector.broadcast %1495 : i1 to vector<1x16xi1>
    %1499 = arith.andi %1497, %1498 : vector<1x16xi1>
    %1500 = arith.extui %1499 : vector<1x16xi1> to vector<1x16xi32>
    %1501 = arith.sitofp %1500 : vector<1x16xi32> to vector<1x16xf32>
    %1502 = arith.index_cast %1494 : i32 to index
    %c0_661 = arith.constant 0 : index
    %1503 = vector.load %arg15[%1502, %c0_661] : memref<32x16xf32, #tpu.memory_space<vmem>>, vector<1x16xf32>
    tpu.vector_store %arg15[%1502, %c0_661], %1501 {strides = array<i32>} : memref<32x16xf32, #tpu.memory_space<vmem>>, vector<1x16xf32>,
    %c1_i32_662 = arith.constant 1 : i32
    %1504 = arith.subi %1494, %c1_i32_662 : i32
    %c0_i32_663 = arith.constant 0 : i32
    %1505 = arith.maxsi %1504, %c0_i32_663 : i32
    %1506 = arith.index_cast %1505 : i32 to index
    %c0_664 = arith.constant 0 : index
    %1507 = vector.load %arg14[%1506, %c0_664] : memref<32x16xf32, #tpu.memory_space<vmem>>, vector<1x16xf32>
    %c1_i32_665 = arith.constant 1 : i32
    %1508 = tpu.dynamic_rotate %1507 by %c1_i32_665 dim 1 : vector<1x16xf32>, i32 -> vector<1x16xf32>
    %1509 = arith.cmpf olt, %1507, %1508 : vector<1x16xf32>
    %cst_666 = arith.constant 1.000000e+00 : f32
    %cst_667 = arith.constant 0.000000e+00 : f32
    %1510 = vector.broadcast %cst_666 : f32 to vector<1x16xf32>
    %1511 = vector.broadcast %cst_667 : f32 to vector<1x16xf32>
    %1512 = arith.select %1509, %1510, %1511 : vector<1x16xi1>, vector<1x16xf32>
    %1513 = vector.broadcast %1493 : i32 to vector<1x16xi32>
    %1514 = arith.cmpi eq, %60, %1513 : vector<1x16xi32>
    %cst_668 = arith.constant 0.000000e+00 : f32
    %1515 = vector.broadcast %cst_668 : f32 to vector<1x16xf32>
    %1516 = arith.select %1514, %1512, %1515 : vector<1x16xi1>, vector<1x16xf32>
    %1517 = vector.shape_cast %1516 : vector<1x16xf32> to vector<1x1x16xf32>
    %cst_669 = arith.constant dense<0.000000e+00> : vector<1xf32>
    %1518 = vector.multi_reduction <add>, %1517, %cst_669 [1, 2] : vector<1x1x16xf32> to vector<1xf32>
    %1519 = vector.shape_cast %1518 : vector<1xf32> to vector<1x1x1xf32>
    %1520 = vector.extract %1519[0, 0, 0] : f32 from vector<1x1x1xf32>
    %cst_670 = arith.constant 5.000000e-01 : f32
    %1521 = arith.cmpf ogt, %1520, %cst_670 : f32
    %c0_i32_671 = arith.constant 0 : i32
    %1522 = arith.cmpi ne, %1493, %c0_i32_671 : i32
    %1523 = arith.cmpi eq, %1493, %1494 : i32
    %1524 = arith.ori %1523, %1521 : i1
    %1525 = arith.andi %1522, %1524 : i1
    %1526 = arith.andi %1495, %1525 : i1
    %c1_i32_672 = arith.constant 1 : i32
    %1527 = arith.subi %1493, %c1_i32_672 : i32
    %1528 = arith.select %1526, %1527, %1493 : i32
    %c30_i32_673 = arith.constant 30 : i32
    %c31_i32_674 = arith.constant 31 : i32
    %1529 = arith.subi %c31_i32_674, %c30_i32_673 : i32
    %1530 = arith.cmpi slt, %1529, %3 : i32
    %1531 = vector.broadcast %1528 : i32 to vector<1x16xi32>
    %1532 = arith.cmpi eq, %60, %1531 : vector<1x16xi32>
    %1533 = vector.broadcast %1530 : i1 to vector<1x16xi1>
    %1534 = arith.andi %1532, %1533 : vector<1x16xi1>
    %1535 = arith.extui %1534 : vector<1x16xi1> to vector<1x16xi32>
    %1536 = arith.sitofp %1535 : vector<1x16xi32> to vector<1x16xf32>
    %1537 = arith.index_cast %1529 : i32 to index
    %c0_675 = arith.constant 0 : index
    %1538 = vector.load %arg15[%1537, %c0_675] : memref<32x16xf32, #tpu.memory_space<vmem>>, vector<1x16xf32>
    tpu.vector_store %arg15[%1537, %c0_675], %1536 {strides = array<i32>} : memref<32x16xf32, #tpu.memory_space<vmem>>, vector<1x16xf32>,
    %c1_i32_676 = arith.constant 1 : i32
    %1539 = arith.subi %1529, %c1_i32_676 : i32
    %c0_i32_677 = arith.constant 0 : i32
    %1540 = arith.maxsi %1539, %c0_i32_677 : i32
    %1541 = arith.index_cast %1540 : i32 to index
    %c0_678 = arith.constant 0 : index
    %1542 = vector.load %arg14[%1541, %c0_678] : memref<32x16xf32, #tpu.memory_space<vmem>>, vector<1x16xf32>
    %c1_i32_679 = arith.constant 1 : i32
    %1543 = tpu.dynamic_rotate %1542 by %c1_i32_679 dim 1 : vector<1x16xf32>, i32 -> vector<1x16xf32>
    %1544 = arith.cmpf olt, %1542, %1543 : vector<1x16xf32>
    %cst_680 = arith.constant 1.000000e+00 : f32
    %cst_681 = arith.constant 0.000000e+00 : f32
    %1545 = vector.broadcast %cst_680 : f32 to vector<1x16xf32>
    %1546 = vector.broadcast %cst_681 : f32 to vector<1x16xf32>
    %1547 = arith.select %1544, %1545, %1546 : vector<1x16xi1>, vector<1x16xf32>
    %1548 = vector.broadcast %1528 : i32 to vector<1x16xi32>
    %1549 = arith.cmpi eq, %60, %1548 : vector<1x16xi32>
    %cst_682 = arith.constant 0.000000e+00 : f32
    %1550 = vector.broadcast %cst_682 : f32 to vector<1x16xf32>
    %1551 = arith.select %1549, %1547, %1550 : vector<1x16xi1>, vector<1x16xf32>
    %1552 = vector.shape_cast %1551 : vector<1x16xf32> to vector<1x1x16xf32>
    %cst_683 = arith.constant dense<0.000000e+00> : vector<1xf32>
    %1553 = vector.multi_reduction <add>, %1552, %cst_683 [1, 2] : vector<1x1x16xf32> to vector<1xf32>
    %1554 = vector.shape_cast %1553 : vector<1xf32> to vector<1x1x1xf32>
    %1555 = vector.extract %1554[0, 0, 0] : f32 from vector<1x1x1xf32>
    %cst_684 = arith.constant 5.000000e-01 : f32
    %1556 = arith.cmpf ogt, %1555, %cst_684 : f32
    %c0_i32_685 = arith.constant 0 : i32
    %1557 = arith.cmpi ne, %1528, %c0_i32_685 : i32
    %1558 = arith.cmpi eq, %1528, %1529 : i32
    %1559 = arith.ori %1558, %1556 : i1
    %1560 = arith.andi %1557, %1559 : i1
    %1561 = arith.andi %1530, %1560 : i1
    %c1_i32_686 = arith.constant 1 : i32
    %1562 = arith.subi %1528, %c1_i32_686 : i32
    %1563 = arith.select %1561, %1562, %1528 : i32
    %c31_i32_687 = arith.constant 31 : i32
    %c31_i32_688 = arith.constant 31 : i32
    %1564 = arith.subi %c31_i32_688, %c31_i32_687 : i32
    %1565 = arith.cmpi slt, %1564, %3 : i32
    %1566 = vector.broadcast %1563 : i32 to vector<1x16xi32>
    %1567 = arith.cmpi eq, %60, %1566 : vector<1x16xi32>
    %1568 = vector.broadcast %1565 : i1 to vector<1x16xi1>
    %1569 = arith.andi %1567, %1568 : vector<1x16xi1>
    %1570 = arith.extui %1569 : vector<1x16xi1> to vector<1x16xi32>
    %1571 = arith.sitofp %1570 : vector<1x16xi32> to vector<1x16xf32>
    %1572 = arith.index_cast %1564 : i32 to index
    %c0_689 = arith.constant 0 : index
    %1573 = vector.load %arg15[%1572, %c0_689] : memref<32x16xf32, #tpu.memory_space<vmem>>, vector<1x16xf32>
    tpu.vector_store %arg15[%1572, %c0_689], %1571 {strides = array<i32>} : memref<32x16xf32, #tpu.memory_space<vmem>>, vector<1x16xf32>,
    %c1_i32_690 = arith.constant 1 : i32
    %1574 = arith.subi %1564, %c1_i32_690 : i32
    %c0_i32_691 = arith.constant 0 : i32
    %1575 = arith.maxsi %1574, %c0_i32_691 : i32
    %1576 = arith.index_cast %1575 : i32 to index
    %c0_692 = arith.constant 0 : index
    %1577 = vector.load %arg14[%1576, %c0_692] : memref<32x16xf32, #tpu.memory_space<vmem>>, vector<1x16xf32>
    %c1_i32_693 = arith.constant 1 : i32
    %1578 = tpu.dynamic_rotate %1577 by %c1_i32_693 dim 1 : vector<1x16xf32>, i32 -> vector<1x16xf32>
    %1579 = arith.cmpf olt, %1577, %1578 : vector<1x16xf32>
    %cst_694 = arith.constant 1.000000e+00 : f32
    %cst_695 = arith.constant 0.000000e+00 : f32
    %1580 = vector.broadcast %cst_694 : f32 to vector<1x16xf32>
    %1581 = vector.broadcast %cst_695 : f32 to vector<1x16xf32>
    %1582 = arith.select %1579, %1580, %1581 : vector<1x16xi1>, vector<1x16xf32>
    %1583 = vector.broadcast %1563 : i32 to vector<1x16xi32>
    %1584 = arith.cmpi eq, %60, %1583 : vector<1x16xi32>
    %cst_696 = arith.constant 0.000000e+00 : f32
    %1585 = vector.broadcast %cst_696 : f32 to vector<1x16xf32>
    %1586 = arith.select %1584, %1582, %1585 : vector<1x16xi1>, vector<1x16xf32>
    %1587 = vector.shape_cast %1586 : vector<1x16xf32> to vector<1x1x16xf32>
    %cst_697 = arith.constant dense<0.000000e+00> : vector<1xf32>
    %1588 = vector.multi_reduction <add>, %1587, %cst_697 [1, 2] : vector<1x1x16xf32> to vector<1xf32>
    %1589 = vector.shape_cast %1588 : vector<1xf32> to vector<1x1x1xf32>
    %1590 = vector.extract %1589[0, 0, 0] : f32 from vector<1x1x1xf32>
    %cst_698 = arith.constant 5.000000e-01 : f32
    %1591 = arith.cmpf ogt, %1590, %cst_698 : f32
    %c0_i32_699 = arith.constant 0 : i32
    %1592 = arith.cmpi ne, %1563, %c0_i32_699 : i32
    %1593 = arith.cmpi eq, %1563, %1564 : i32
    %1594 = arith.ori %1593, %1591 : i1
    %1595 = arith.andi %1592, %1594 : i1
    %1596 = arith.andi %1565, %1595 : i1
    %c1_i32_700 = arith.constant 1 : i32
    %1597 = arith.subi %1563, %c1_i32_700 : i32
    %1598 = arith.select %1596, %1597, %1563 : i32
    %c32_i32_701 = arith.constant 32 : i32
    %c0_702 = arith.constant 0 : index
    %c0_703 = arith.constant 0 : index
    %1599 = vector.load %arg15[%c0_702, %c0_703] : memref<32x16xf32, #tpu.memory_space<vmem>>, vector<32x16xf32>
    %cst_704 = arith.constant dense<0.000000e+00> : vector<16xf32>
    %1600 = vector.multi_reduction <add>, %1599, %cst_704 [0] : vector<32x16xf32> to vector<16xf32>
    %1601 = vector.shape_cast %1600 : vector<16xf32> to vector<1x16xf32>
    %cst_705 = arith.constant 9.99999993E-9 : f32
    %1602 = vector.broadcast %cst_705 : f32 to vector<1x16xf32>
    %1603 = arith.addf %1602, %1601 : vector<1x16xf32>
    %1604 = math.log %1603 : vector<1x16xf32>
    %1605 = arith.mulf %1604, %16 : vector<1x16xf32>
    %1606 = arith.subf %34, %1605 : vector<1x16xf32>
    %1607 = arith.mulf %1606, %1606 : vector<1x16xf32>
    %1608 = vector.shape_cast %1607 : vector<1x16xf32> to vector<1x1x16xf32>
    %cst_706 = arith.constant dense<0.000000e+00> : vector<1xf32>
    %1609 = vector.multi_reduction <add>, %1608, %cst_706 [1, 2] : vector<1x1x16xf32> to vector<1xf32>
    %1610 = vector.shape_cast %1609 : vector<1xf32> to vector<1x1x1xf32>
    %1611 = vector.extract %1610[0, 0, 0] : f32 from vector<1x1x1xf32>
    %cst_707 = arith.constant dense<0.000000e+00> : vector<8x32xf32>
    %1612 = tpu.matmul %28, %1599, %cst_707 {dimension_numbers = #tpu.dot_dimension_numbers<[1], [1], [0], [0], [0, 0, 1, 0], [], []>} : vector<8x16xf32>, vector<32x16xf32>, vector<8x32xf32> -> vector<8x32xf32>
    %1613 = arith.subf %7, %1612 : vector<8x32xf32>
    %1614 = arith.mulf %1613, %1613 : vector<8x32xf32>
    %cst_708 = arith.constant 1.83787704 : f32
    %1615 = vector.broadcast %cst_708 : f32 to vector<8x32xf32>
    %1616 = arith.addf %1614, %1615 : vector<8x32xf32>
    %cst_709 = arith.constant 5.000000e-01 : f32
    %1617 = vector.broadcast %cst_709 : f32 to vector<8x32xf32>
    %1618 = arith.mulf %1617, %1616 : vector<8x32xf32>
    %1619 = vector.broadcast %21 : vector<1x32xf32> to vector<8x32xf32>
    %1620 = arith.mulf %1618, %1619 : vector<8x32xf32>
    %1621 = vector.shape_cast %1620 : vector<8x32xf32> to vector<1x8x32xf32>
    %cst_710 = arith.constant dense<0.000000e+00> : vector<1xf32>
    %1622 = vector.multi_reduction <add>, %1621, %cst_710 [1, 2] : vector<1x8x32xf32> to vector<1xf32>
    %1623 = vector.shape_cast %1622 : vector<1xf32> to vector<1x1x1xf32>
    %1624 = vector.extract %1623[0, 0, 0] : f32 from vector<1x1x1xf32>
    %cst_711 = arith.constant 0.999899983 : f32
    %1625 = vector.broadcast %cst_711 : f32 to vector<1x1xf32>
    %1626 = arith.mulf %1625, %11 : vector<1x1xf32>
    %cst_712 = arith.constant 1.000000e+00 : f32
    %1627 = vector.broadcast %cst_712 : f32 to vector<1x1xf32>
    %1628 = arith.subf %1627, %1626 : vector<1x1xf32>
    %1629 = vector.broadcast %1628 : vector<1x1xf32> to vector<8x32xf32>
    %1630 = arith.mulf %1629, %9 : vector<8x32xf32>
    %1631 = vector.broadcast %11 : vector<1x1xf32> to vector<8x32xf32>
    %1632 = arith.mulf %1631, %7 : vector<8x32xf32>
    %1633 = arith.addf %1630, %1632 : vector<8x32xf32>
    %cst_713 = arith.constant 0.999899983 : f32
    %1634 = vector.broadcast %cst_713 : f32 to vector<8x32xf32>
    %1635 = arith.mulf %1634, %9 : vector<8x32xf32>
    %1636 = arith.subf %7, %1635 : vector<8x32xf32>
    %1637 = tpu.concatenate %1633, %1612 in 0 : vector<8x32xf32>, vector<8x32xf32> -> vector<16x32xf32>
    %c0_714 = arith.constant 0 : index
    %c0_715 = arith.constant 0 : index
    %1638 = vector.load %arg11[%c0_714, %c0_715] : memref<8x16xf32, #tpu.memory_space<vmem>>, vector<8x16xf32>
    %cst_716 = arith.constant dense<0.000000e+00> : vector<8x32xf32>
    %1639 = tpu.matmul %1638, %1637, %cst_716 {dimension_numbers = #tpu.dot_dimension_numbers<[1], [0], [0], [1], [0, 0, 1, 1], [], []>} : vector<8x16xf32>, vector<16x32xf32>, vector<8x32xf32> -> vector<8x32xf32>
    %c0_717 = arith.constant 0 : index
    %c0_718 = arith.constant 0 : index
    %1640 = vector.load %arg12[%c0_717, %c0_718] : memref<8x1xf32, #tpu.memory_space<vmem>>, vector<8x1xf32>
    %1641 = vector.broadcast %1640 : vector<8x1xf32> to vector<8x32xf32>
    %1642 = arith.addf %1639, %1641 : vector<8x32xf32>
    %1643 = arith.subf %1642, %1636 : vector<8x32xf32>
    %1644 = arith.mulf %1643, %1643 : vector<8x32xf32>
    %1645 = vector.broadcast %21 : vector<1x32xf32> to vector<8x32xf32>
    %1646 = arith.mulf %1644, %1645 : vector<8x32xf32>
    %1647 = vector.shape_cast %1646 : vector<8x32xf32> to vector<1x8x32xf32>
    %cst_719 = arith.constant dense<0.000000e+00> : vector<1xf32>
    %1648 = vector.multi_reduction <add>, %1647, %cst_719 [1, 2] : vector<1x8x32xf32> to vector<1xf32>
    %1649 = vector.shape_cast %1648 : vector<1xf32> to vector<1x1x1xf32>
    %1650 = vector.extract %1649[0, 0, 0] : f32 from vector<1x1x1xf32>
    %1651 = tpu.iota {dimensions = array<i32: 1>} : vector<1x128xi32>
    %c0_i32_720 = arith.constant 0 : i32
    %1652 = vector.broadcast %c0_i32_720 : i32 to vector<1x128xi32>
    %1653 = arith.cmpi eq, %1651, %1652 : vector<1x128xi32>
    %c1_i32_721 = arith.constant 1 : i32
    %1654 = vector.broadcast %c1_i32_721 : i32 to vector<1x128xi32>
    %1655 = arith.cmpi eq, %1651, %1654 : vector<1x128xi32>
    %c2_i32_722 = arith.constant 2 : i32
    %1656 = vector.broadcast %c2_i32_722 : i32 to vector<1x128xi32>
    %1657 = arith.cmpi eq, %1651, %1656 : vector<1x128xi32>
    %cst_723 = arith.constant 0.000000e+00 : f32
    %1658 = vector.broadcast %1650 : f32 to vector<1x128xf32>
    %1659 = vector.broadcast %cst_723 : f32 to vector<1x128xf32>
    %1660 = arith.select %1657, %1658, %1659 : vector<1x128xi1>, vector<1x128xf32>
    %1661 = vector.broadcast %1624 : f32 to vector<1x128xf32>
    %1662 = arith.select %1655, %1661, %1660 : vector<1x128xi1>, vector<1x128xf32>
    %1663 = vector.broadcast %1611 : f32 to vector<1x128xf32>
    %1664 = arith.select %1653, %1663, %1662 : vector<1x128xi1>, vector<1x128xf32>
    %c0_724 = arith.constant 0 : index
    %c0_725 = arith.constant 0 : index
    %c0_726 = arith.constant 0 : index
    %1665 = vector.load %arg13[%c0_724, %c0_725, %c0_726] : memref<1x1x128xf32, #tpu.memory_space<vmem>>, vector<1x1x128xf32>
    %1666 = vector.shape_cast %1665 : vector<1x1x128xf32> to vector<1x128xf32>
    %1667 = vector.shape_cast %1664 : vector<1x128xf32> to vector<1x1x128xf32>
    tpu.vector_store %arg13[%c0_724, %c0_725, %c0_726], %1667 {strides = array<i32>} : memref<1x1x128xf32, #tpu.memory_space<vmem>>, vector<1x1x128xf32>,
    return
  }
  func.func @transform_0(%arg0: i32, %arg1: memref<2xi32, #tpu.memory_space<smem>>, %arg2: memref<2xi32, #tpu.memory_space<smem>>) -> (i32, i32, i32) {
    %c0_i32 = arith.constant 0 : i32
    %c0_i32_0 = arith.constant 0 : i32
    %c0_i32_1 = arith.constant 0 : i32
    return %arg0, %c0_i32, %c0_i32_0 : i32, i32, i32
  }
  func.func @transform_1(%arg0: i32, %arg1: memref<2xi32, #tpu.memory_space<smem>>, %arg2: memref<2xi32, #tpu.memory_space<smem>>) -> (i32, i32, i32) {
    %c0_i32 = arith.constant 0 : i32
    %c0_i32_0 = arith.constant 0 : i32
    %c0_i32_1 = arith.constant 0 : i32
    return %arg0, %c0_i32, %c0_i32_0 : i32, i32, i32
  }
  func.func @transform_2(%arg0: i32, %arg1: memref<2xi32, #tpu.memory_space<smem>>, %arg2: memref<2xi32, #tpu.memory_space<smem>>) -> (i32, i32, i32) {
    %c0_i32 = arith.constant 0 : i32
    %c0_i32_0 = arith.constant 0 : i32
    %c0_i32_1 = arith.constant 0 : i32
    return %arg0, %c0_i32, %c0_i32_0 : i32, i32, i32
  }
  func.func @transform_3(%arg0: i32, %arg1: memref<2xi32, #tpu.memory_space<smem>>, %arg2: memref<2xi32, #tpu.memory_space<smem>>) -> (i32, i32, i32) {
    %c0_i32 = arith.constant 0 : i32
    %c0_i32_0 = arith.constant 0 : i32
    %c0_i32_1 = arith.constant 0 : i32
    return %arg0, %c0_i32, %c0_i32_0 : i32, i32, i32
  }
  func.func @transform_4(%arg0: i32, %arg1: memref<2xi32, #tpu.memory_space<smem>>, %arg2: memref<2xi32, #tpu.memory_space<smem>>) -> (i32, i32) {
    %c0_i32 = arith.constant 0 : i32
    %c0_i32_0 = arith.constant 0 : i32
    %c0_i32_1 = arith.constant 0 : i32
    return %c0_i32, %c0_i32_0 : i32, i32
  }
  func.func @transform_5(%arg0: i32, %arg1: memref<2xi32, #tpu.memory_space<smem>>, %arg2: memref<2xi32, #tpu.memory_space<smem>>) -> (i32, i32) {
    %c0_i32 = arith.constant 0 : i32
    %c0_i32_0 = arith.constant 0 : i32
    %c0_i32_1 = arith.constant 0 : i32
    return %c0_i32, %c0_i32_0 : i32, i32
  }
  func.func @transform_6(%arg0: i32, %arg1: memref<2xi32, #tpu.memory_space<smem>>, %arg2: memref<2xi32, #tpu.memory_space<smem>>) -> (i32, i32) {
    %c0_i32 = arith.constant 0 : i32
    %c0_i32_0 = arith.constant 0 : i32
    %c0_i32_1 = arith.constant 0 : i32
    return %c0_i32, %c0_i32_0 : i32, i32
  }
  func.func @transform_7(%arg0: i32, %arg1: memref<2xi32, #tpu.memory_space<smem>>, %arg2: memref<2xi32, #tpu.memory_space<smem>>) -> (i32, i32) {
    %c0_i32 = arith.constant 0 : i32
    %c0_i32_0 = arith.constant 0 : i32
    %c0_i32_1 = arith.constant 0 : i32
    return %c0_i32, %c0_i32_0 : i32, i32
  }
  func.func @transform_8(%arg0: i32, %arg1: memref<2xi32, #tpu.memory_space<smem>>, %arg2: memref<2xi32, #tpu.memory_space<smem>>) -> (i32, i32) {
    %c0_i32 = arith.constant 0 : i32
    %c0_i32_0 = arith.constant 0 : i32
    %c0_i32_1 = arith.constant 0 : i32
    return %c0_i32, %c0_i32_0 : i32, i32
  }
  func.func @transform_9(%arg0: i32, %arg1: memref<2xi32, #tpu.memory_space<smem>>, %arg2: memref<2xi32, #tpu.memory_space<smem>>) -> (i32, i32) {
    %c0_i32 = arith.constant 0 : i32
    %c0_i32_0 = arith.constant 0 : i32
    %c0_i32_1 = arith.constant 0 : i32
    return %c0_i32, %c0_i32_0 : i32, i32
  }
  func.func @transform_10(%arg0: i32, %arg1: memref<2xi32, #tpu.memory_space<smem>>, %arg2: memref<2xi32, #tpu.memory_space<smem>>) -> (i32, i32, i32) {
    %c0_i32 = arith.constant 0 : i32
    %c0_i32_0 = arith.constant 0 : i32
    %c0_i32_1 = arith.constant 0 : i32
    return %arg0, %c0_i32, %c0_i32_0 : i32, i32, i32
  }
}

</mosaic_0001>

<bundles_post_ra>
// kernel: fast_tts_forward.1
= control target key start
LH: loop header
LB: loop body
LE: loop exit
PB: predicated region body
PF: predicated region fallthrough
CT: control target
= control target key end

     0   :  { %s2967_s29 = smov [#allocation5]   ;;  %s2968_s30 = smov [#allocation6]   ;;  %s4328_s0 = inlined_call_operand.vmem [shape: s32[2], index: 0, kind: input, shape index: {}]   ;;  %s4329_s2 = inlined_call_operand.vmem [shape: f32[2,32,16], index: 2, kind: input, shape index: {}]   ;;  %s4330_s3 = inlined_call_operand.vmem [shape: f32[2,8,32], index: 3, kind: input, shape index: {}]   ;;  %s4331_s4 = inlined_call_operand.vmem [shape: f32[2,8,32], index: 4, kind: input, shape index: {}]   ;;  %s4332_s5 = inlined_call_operand.vmem [shape: f32[2,1,1], index: 5, kind: input, shape index: {}]   ;;  %s4333_s6 = inlined_call_operand.vmem [shape: f32[8,32], index: 6, kind: input, shape index: {}]   ;;  %s4334_s7 = inlined_call_operand.vmem [shape: f32[8,1], index: 7, kind: input, shape index: {}]   ;;  %s4335_s8 = inlined_call_operand.vmem [shape: f32[1,32], index: 8, kind: input, shape index: {}]   ;;  %s4336_s10 = inlined_call_operand.vmem [shape: f32[8,16], index: 10, kind: input, shape index: {}]   ;;  %s4337_s11 = inlined_call_operand.vmem [shape: f32[8,1], index: 11, kind: input, shape index: {}]   ;;  %s4338_s12 = inlined_call_operand.vmem [shape: f32[2,1,128], index: 12, kind: output, shape index: {}]   ;;  %s4339_s1 = inlined_call_operand.vmem [shape: s32[2], index: 1, kind: input, shape index: {}]   ;;  %s4340_s9 = inlined_call_operand.<no memory space> [shape: f32[1,1], index: 9, kind: input, shape index: {}]  }
   0x1   :  { %s18_s23 = sshll.u32 %s4328_s0, 4  ;;  %s23_s26 = sshll.u32 %s4339_s1, 4  ;;  %v27_v0 = vstv %s4340_s9  ;;  %s19_s23 = int_to_ptr.vmem [resolvable:$true] %s18_s23  ;;  %s24_s26 = int_to_ptr.vmem [resolvable:$true] %s23_s26 }
   0x2   :  { %28 = vst [vmem:[#allocation7] sm:$0x1] %v27_v0  ;;  %21 = dma.vmem_to_smem %s19_s23, 16, %s2967_s29, [#allocation4] }
   0x3   :  { %26 = dma.vmem_to_smem %s24_s26, 16, %s2968_s30, [#allocation4] }
   0x4   :  { %2961 = dma.done.wait [#allocation4], 32 }
   0x5   :  { %2962 = vsyncadd [#allocation4], 4294967264 }
   0x6   :  { %31 = sfence }
   0x7   :  { %s3049_s13 = smov 0  }
   0x8 LB: > { %s3055_s0 = sadd.s32 4294967295, %s2965_s13   ;;  %p2717_p0 = scmp.ge.s32.totalorder %s2965_s13, 1  ;;  %s2965_s13 = sphi %s3049_s13, %s37_s13  }
   0x9   : > { %p355_p1 = scmp.lt.s32.totalorder %s2965_s13, 3 }
   0xb   : > { %p356_p2 = pnand %p2717_p0, %p355_p1 }
   0xc   : > { %p402_p3 = scmp.lt.s32.totalorder (!%p356_p2), %s3055_s0, 1  ;;  %s2971_s15 = smov (!%p356_p2), 16  }
   0xd   : > { %359 = sbr.rel (%p356_p2) target bundleno = 16889 (0x41f9), region = 60  ;;  %s3091_s28 = sld [smem:[#allocation5 + %s3055_s0]] (!%p356_p2) }
   0xe   : > { %s2974_s29 = smov (!%p356_p2), 113   ;;  %s3121_s30 = sld [smem:[#allocation6 + %s3055_s0]] (!%p356_p2) }
  0x12   : > { %v441_v1 = vld [vmem:[%s4334_s7] sm:$0xff]  ;;  %v2969_v2 = vmov 0   ;;  %s3064_s14 = scalar_select %p402_p3, %s3055_s0, 1  ;;  %v2970_v3 = vmov -1e+09   ;;  %vm447_vm0 = vcmask 261120   ;;  %v430_v15 = vlaneseq }
  0x13   : > { %2924 = vset.pattern.permute.xlu0 %v2969_v2  ;;  %2925 = vset.pattern.permute.xlu2 %v2969_v2  ;;  %v440_v8 = vld [vmem:[%s4333_s6] sm:$0xff]  ;;  %v2972_v11 = vmov -0.5   ;;  %vm621_vm1 = vcmask 1047680   ;;  %v432_v17 = vstv %s3091_s28  ;;  %v2973_v20 = vmov 0.0   ;;  %s3415_s1 = sadd.s32 4294967295, %s3091_s28  ;;  %s2736_s17 = sadd.s32 4294967294, %s3091_s28 }
  0x14   : > { %444 = vperm.xlu0 %2924, %v441_v1   ;;  %622 = vrot.lane.b32.xlu1 %v2970_v3, %s2971_s15  ;;  %s2837_s16 = sshll.u32 %s3064_s14, 5  ;;  %s2720_s22 = sshll.u32 %s3064_s14, 3  ;;  %v472_v12 = vld [vmem:[%s4335_s8] sm:$0x1]  ;;  %v3093_v16 = vand.u32 127, %v430_v15  ;;  %vm506_vm3 = vcmask 130048   ;;  %v3126_v40 = vstv %s3121_s30 }
  0x15   : > { %2926 = vset.pattern.permute.xlu1 %v2969_v2  ;;  %s406_s19 = scalar_lea.vmem %s4329_s2, %s2837_s16  ;;  %s3081_s25 = scalar_lea.vmem %s4330_s3, %s2720_s22  ;;  %2838 = vmatpush.msra.mxu2 %v2972_v11  ;;  %v593_v39 = vshrl.u32 %v430_v15, 7  ;;  %vm637_vm9 = vcmask 122880  }
  0x16   : > { %v426_v4 = vld [vmem:[%s406_s19 + $0x18] sm:$0xff]  ;;  %v425_v5 = vld [vmem:[%s406_s19 + $0x10] sm:$0xff]  ;;  %v424_v6 = vld [vmem:[%s406_s19 + $0x8] sm:$0xff]  ;;  %vm3097_vm2 = vcmp.lt.s32.totalorder %v3093_v16, %v432_v17  ;;  %vm628_vm6 = vcmp.eq.s32.totalorder %v3093_v16, 0  ;;  %p1105_p4 = scmp.gt.s32.totalorder %s3121_s30, 31  ;;  %p1141_p5 = scmp.eq.s32.totalorder %s3415_s1, 31 }
  0x17   : > { %463 = vmatpush.msra.mxu0 %v426_v4  ;;  %495 = vmatpush.msra.mxu1 %v426_v4  ;;  %v423_v7 = vld [vmem:[%s406_s19] sm:$0xff]  ;;  %v3104_v21 = vsel %vm3097_vm2, 1.0, %v2973_v20  ;;  %vm597_vm4 = vcmp.lt.s32.totalorder %v593_v39, %v3126_v40  ;;  %v594_v49 = vadd.s32 8, %v593_v39  ;;  %v595_v54 = vadd.s32 16, %v593_v39  ;;  %p1149_p6 = scmp.gt.s32.totalorder %s3121_s30, 30  ;;  %p1140_p8 = scmp.ne.s32.totalorder %s3415_s1, 0 }
  0x18   : > { %v427_v9 = vld [vmem:[%s3081_s25] sm:$0xff]  ;;  %vm601_vm5 = vmand %vm597_vm4, %vm3097_vm2  ;;  %v596_v61 = vadd.s32 24, %v593_v39  ;;  %s1108_s0 = scalar_select %p1105_p4, 1, 0 }
  0x19   : > { %464 = vmatpush.msra.mxu0 %v425_v5  ;;  %496 = vmatpush.msra.mxu1 %v425_v5  ;;  %v504_v10 = vmul.f32 %v427_v9, %v427_v9  ;;  %v2730_v45 = vsel %vm601_vm5, 1.0, %v2973_v20  ;;  %vm598_vm7 = vcmp.lt.s32.totalorder %v594_v49, %v3126_v40  ;;  %vm599_vm10 = vcmp.lt.s32.totalorder %v595_v54, %v3126_v40  ;;  %s1152_s16 = scalar_select %p1149_p6, 1, 0 }
  0x1a   : > { %vm602_vm8 = vmand %vm598_vm7, %vm3097_vm2  ;;  %vm600_vm12 = vcmp.lt.s32.totalorder %v596_v61, %v3126_v40  ;;  %p1193_p13 = scmp.gt.s32.totalorder %s3121_s30, 29 }
  0x1b   : > { %465 = vmatpush.msra.mxu0 %v424_v6  ;;  %497 = vmatpush.msra.mxu1 %v424_v6  ;;  %v2731_v57 = vsel %vm602_vm8, 1.0, %v2973_v20  ;;  %vm603_vm11 = vmand %vm599_vm10, %vm3097_vm2 }
  0x1c   : > { %v2732_v63 = vsel %vm603_vm11, 1.0, %v2973_v20  ;;  %vm604_vm13 = vmand %vm600_vm12, %vm3097_vm2  ;;  %s1196_s19 = scalar_select %p1193_p13, 1, 0 }
  0x1d   : > { %466 = vmatpush.msra.mxu0 %v423_v7  ;;  %498 = vmatpush.msra.mxu1 %v423_v7  ;;  %v2733_v4 = vsel %vm604_vm13, 1.0, %v2973_v20 }
  0x1e   : > { %2724 = vmatmul.msk.f32.vlgmr.msra.gmra.mxu0 %vm447_vm0, %v440_v8  ;;  %2725 = vmatmul.msk.f32.vlgmr.msra.gmra.mxu1 %vm447_vm0, %v472_v12 }
  0x1f   : > { %573 = vmatpush.msrb.mxu1 %v2972_v11 }
  0x36   : > { %515 = vxpose.xlu0.b32.start [1/2] (short) (narrow) %v427_v9, 32 }
  0x3e   : > { %516 = vxpose.xlu0.b32.end [2/2] (short) (narrow) %v504_v10, 32 }
  0x86   : > { %v623_v13 = vpop.permute.xlu1 %622  ;;  %v445_v19 = vpop.permute.xlu0 %444 }
  0x87   : > { %v624_v14 = vsel %vm621_vm1, %v623_v13, -1e+09 }
  0x88   : > { %625 = vrot.lane.b32.xlu1 %v624_v14, %s2971_s15 }
  0x9b   : > { %v468_v22 = vpop.f32.mrf.mxu0  ;;  %v3123_v37 = vpop.f32.mrf.mxu1 }
  0x9c   : > { %v469_v23 = vadd.f32 %v468_v22, %v445_v19 }
  0x9e   : > { %v3107_v24 = vmul.f32 %v3104_v21, %v469_v23 }
  0xa0   : > { %574 = vmatpush.msrb.mxu1 %v3107_v24  ;;  %2839 = vmatpush.msra.mxu2 %v3107_v24  ;;  %v505_v31 = vmul.f32 %v3107_v24, %v3107_v24 }
  0xa2   : > { %v507_v32 = vsel %vm506_vm3, %v505_v31, 0.0 }
  0xa3   : > { %v508_v33 = vrot.slane %v507_v32, 4 }
  0xa5   : > { %v509_v34 = vadd.f32 %v508_v33, %v507_v32 }
  0xa7   : > { %v510_v35 = vrot.slane %v509_v34, 2 }
  0xa9   : > { %v511_v36 = vadd.f32 %v510_v35, %v509_v34 }
  0xab   : > { %v512_v38 = vrot.slane %v511_v36, 1 }
  0xad   : > { %v513_v41 = vadd.f32 %v512_v38, %v511_v36 }
  0xaf   : > { %v514_v42 = vmul.f32 -0.5, %v513_v41 }
  0xda   : > { %v531_v25 = vpop.trf.xlu0 }
  0xdb   : > { %2726 = vmatmul.msk.f32.vlgmr.msrb.gmra.mxu1 %vm506_vm3, %v531_v25 }
  0xe2   : > { %v532_v26 = vpop.trf.xlu0 }
  0xe3   : > { %2727 = vmatmul.msk.f32.vlgmr.msra.gmra.mxu2 %vm506_vm3, %v532_v26 }
  0xea   : > { %v533_v27 = vpop.trf.xlu0 }
  0xeb   : > { %2728 = vmatmul.msk.f32.gmra.mxu2 %vm506_vm3, %v533_v27 }
  0xf2   : > { %v534_v28 = vpop.trf.xlu0 }
  0xf3   : > { %2729 = vmatmul.msk.f32.gmra.mxu2 %vm506_vm3, %v534_v28 }
  0xfa   : > { %v626_v29 = vpop.permute.xlu1 %625 }
  0xfb   : > { %v627_v30 = vsel %vm621_vm1, %v626_v29, -1e+09 }
  0xfc   : > { %630 = vrot.lane.b32.xlu2 %v627_v30, %s2974_s29 }
 0x156   : > { %v631_v48 = vpop.permute.xlu2 %630 }
 0x157   : > { %v633_v50 = vsel %vm628_vm6, 0.0, %v631_v48 }
 0x158   : > { %v576_v43 = vpop.f32.mrf.mxu1  ;;  %v634_v51 = vmax.f32 %v633_v50, -1e+09 }
 0x159   : > { %v577_v44 = vadd.f32 %v576_v43, %v514_v42 }
 0x15b   : > { %v588_v46 = vadd.f32 -7.351508, %v577_v44 }
 0x15d   : > { %v613_v47 = vmul.f32 %v2730_v45, %v588_v46 }
 0x15f   : > { %617 = vst.msk [vmem:[#allocation2] sm:$0xff] %vm506_vm3, %v613_v47 }
 0x166   : > { %v635_v52 = vld [vmem:[#allocation2] sm:$0x1]  ;;  %v579_v53 = vpop.f32.mrf.mxu2  ;;  %v651_v14 = vld [vmem:[#allocation2 + $0x1] sm:$0x1]  ;;  %v666_v27 = vld [vmem:[#allocation2 + $0x2] sm:$0x1] }
 0x167   : > { %v636_v55 = vadd.f32 %v635_v52, %v634_v51  ;;  %v580_v56 = vadd.f32 %v579_v53, %v514_v42  ;;  %v681_v36 = vld [vmem:[#allocation2 + $0x3] sm:$0x1]  ;;  %v696_v47 = vld [vmem:[#allocation2 + $0x4] sm:$0x1] }
 0x169   : > { %638 = vst.msk [vmem:[#allocation2] sm:$0x1] %vm637_vm9, %v636_v55  ;;  %v589_v58 = vadd.f32 -7.351508, %v580_v56  ;;  %639 = vrot.lane.b32.xlu2 %v636_v55, %s2971_s15  ;;  %v711_v56 = vld [vmem:[#allocation2 + $0x5] sm:$0x1] }
 0x16b   : > { %v614_v59 = vmul.f32 %v2731_v57, %v589_v58 }
 0x16d   : > { %618 = vst.msk [vmem:[#allocation2 + $0x8] sm:$0xff] %vm506_vm3, %v614_v59 }
 0x16e   : > { %v582_v60 = vpop.f32.mrf.mxu2 }
 0x16f   : > { %v583_v62 = vadd.f32 %v582_v60, %v514_v42 }
 0x171   : > { %v590_v0 = vadd.f32 -7.351508, %v583_v62 }
 0x173   : > { %v615_v1 = vmul.f32 %v2732_v63, %v590_v0 }
 0x175   : > { %619 = vst.msk [vmem:[#allocation2 + $0x10] sm:$0xff] %vm506_vm3, %v615_v1  ;;  %v726_v1 = vld [vmem:[#allocation2 + $0x6] sm:$0x1] }
 0x176   : > { %v585_v2 = vpop.f32.mrf.mxu2 }
 0x177   : > { %v586_v3 = vadd.f32 %v585_v2, %v514_v42 }
 0x179   : > { %v591_v5 = vadd.f32 -7.351508, %v586_v3 }
 0x17b   : > { %v616_v6 = vmul.f32 %v2733_v4, %v591_v5 }
 0x17d   : > { %620 = vst.msk [vmem:[#allocation2 + $0x18] sm:$0xff] %vm506_vm3, %v616_v6 }
 0x1c3   : > { %v640_v7 = vpop.permute.xlu2 %639 }
 0x1c4   : > { %v641_v8 = vsel %vm621_vm1, %v640_v7, %v636_v55 }
 0x1c5   : > { %642 = vrot.lane.b32.xlu1 %v641_v8, %s2971_s15 }
 0x237   : > { %v643_v9 = vpop.permute.xlu1 %642 }
 0x238   : > { %v644_v10 = vsel %vm621_vm1, %v643_v9, %v636_v55 }
 0x239   : > { %646 = vrot.lane.b32.xlu2 %v644_v10, %s2974_s29  ;;  %v741_v10 = vld [vmem:[#allocation2 + $0x7] sm:$0x1] }
 0x293   : > { %v647_v11 = vpop.permute.xlu2 %646 }
 0x294   : > { %v649_v12 = vsel %vm628_vm6, -1e+09, %v647_v11 }
 0x295   : > { %v650_v13 = vmax.f32 %v636_v55, %v649_v12 }
 0x297   : > { %v652_v15 = vadd.f32 %v651_v14, %v650_v13 }
 0x299   : > { %653 = vst.msk [vmem:[#allocation2 + $0x1] sm:$0x1] %vm637_vm9, %v652_v15  ;;  %654 = vrot.lane.b32.xlu1 %v652_v15, %s2971_s15 }
 0x30b   : > { %v655_v17 = vpop.permute.xlu1 %654 }
 0x30c   : > { %v656_v18 = vsel %vm621_vm1, %v655_v17, %v652_v15 }
 0x30d   : > { %657 = vrot.lane.b32.xlu2 %v656_v18, %s2971_s15 }
 0x367   : > { %v658_v19 = vpop.permute.xlu2 %657 }
 0x368   : > { %v659_v22 = vsel %vm621_vm1, %v658_v19, %v652_v15 }
 0x369   : > { %661 = vrot.lane.b32.xlu1 %v659_v22, %s2974_s29  ;;  %v756_v22 = vld [vmem:[#allocation2 + $0x8] sm:$0x1] }
 0x3db   : > { %v662_v23 = vpop.permute.xlu1 %661 }
 0x3dc   : > { %v664_v25 = vsel %vm628_vm6, -1e+09, %v662_v23 }
 0x3dd   : > { %v665_v26 = vmax.f32 %v652_v15, %v664_v25 }
 0x3df   : > { %v667_v28 = vadd.f32 %v666_v27, %v665_v26 }
 0x3e1   : > { %668 = vst.msk [vmem:[#allocation2 + $0x2] sm:$0x1] %vm637_vm9, %v667_v28  ;;  %669 = vrot.lane.b32.xlu2 %v667_v28, %s2971_s15 }
 0x43b   : > { %v670_v29 = vpop.permute.xlu2 %669 }
 0x43c   : > { %v671_v30 = vsel %vm621_vm1, %v670_v29, %v667_v28 }
 0x43d   : > { %672 = vrot.lane.b32.xlu1 %v671_v30, %s2971_s15 }
 0x4af   : > { %v673_v31 = vpop.permute.xlu1 %672 }
 0x4b0   : > { %v674_v32 = vsel %vm621_vm1, %v673_v31, %v667_v28 }
 0x4b1   : > { %676 = vrot.lane.b32.xlu2 %v674_v32, %s2974_s29  ;;  %v771_v32 = vld [vmem:[#allocation2 + $0x9] sm:$0x1] }
 0x50b   : > { %v677_v33 = vpop.permute.xlu2 %676 }
 0x50c   : > { %v679_v34 = vsel %vm628_vm6, -1e+09, %v677_v33 }
 0x50d   : > { %v680_v35 = vmax.f32 %v667_v28, %v679_v34 }
 0x50f   : > { %v682_v38 = vadd.f32 %v681_v36, %v680_v35 }
 0x511   : > { %683 = vst.msk [vmem:[#allocation2 + $0x3] sm:$0x1] %vm637_vm9, %v682_v38  ;;  %684 = vrot.lane.b32.xlu1 %v682_v38, %s2971_s15 }
 0x583   : > { %v685_v39 = vpop.permute.xlu1 %684 }
 0x584   : > { %v686_v41 = vsel %vm621_vm1, %v685_v39, %v682_v38 }
 0x585   : > { %687 = vrot.lane.b32.xlu2 %v686_v41, %s2971_s15 }
 0x5df   : > { %v688_v42 = vpop.permute.xlu2 %687 }
 0x5e0   : > { %v689_v43 = vsel %vm621_vm1, %v688_v42, %v682_v38 }
 0x5e1   : > { %691 = vrot.lane.b32.xlu0 %v689_v43, %s2974_s29  ;;  %v786_v43 = vld [vmem:[#allocation2 + $0xa] sm:$0x1] }
 0x653   : > { %v692_v44 = vpop.permute.xlu0 %691 }
 0x654   : > { %v694_v45 = vsel %vm628_vm6, -1e+09, %v692_v44 }
 0x655   : > { %v695_v46 = vmax.f32 %v682_v38, %v694_v45 }
 0x657   : > { %v697_v48 = vadd.f32 %v696_v47, %v695_v46 }
 0x659   : > { %698 = vst.msk [vmem:[#allocation2 + $0x4] sm:$0x1] %vm637_vm9, %v697_v48  ;;  %699 = vrot.lane.b32.xlu1 %v697_v48, %s2971_s15 }
 0x6cb   : > { %v700_v49 = vpop.permute.xlu1 %699 }
 0x6cc   : > { %v701_v50 = vsel %vm621_vm1, %v700_v49, %v697_v48 }
 0x6cd   : > { %702 = vrot.lane.b32.xlu2 %v701_v50, %s2971_s15 }
 0x727   : > { %v703_v51 = vpop.permute.xlu2 %702 }
 0x728   : > { %v704_v52 = vsel %vm621_vm1, %v703_v51, %v697_v48 }
 0x729   : > { %706 = vrot.lane.b32.xlu1 %v704_v52, %s2974_s29  ;;  %v801_v52 = vld [vmem:[#allocation2 + $0xb] sm:$0x1] }
 0x79b   : > { %v707_v53 = vpop.permute.xlu1 %706 }
 0x79c   : > { %v709_v54 = vsel %vm628_vm6, -1e+09, %v707_v53 }
 0x79d   : > { %v710_v55 = vmax.f32 %v697_v48, %v709_v54 }
 0x79f   : > { %v712_v57 = vadd.f32 %v711_v56, %v710_v55 }
 0x7a1   : > { %713 = vst.msk [vmem:[#allocation2 + $0x5] sm:$0x1] %vm637_vm9, %v712_v57  ;;  %714 = vrot.lane.b32.xlu2 %v712_v57, %s2971_s15 }
 0x7fb   : > { %v715_v58 = vpop.permute.xlu2 %714 }
 0x7fc   : > { %v716_v59 = vsel %vm621_vm1, %v715_v58, %v712_v57 }
 0x7fd   : > { %717 = vrot.lane.b32.xlu1 %v716_v59, %s2971_s15 }
 0x86f   : > { %v718_v60 = vpop.permute.xlu1 %717 }
 0x870   : > { %v719_v61 = vsel %vm621_vm1, %v718_v60, %v712_v57 }
 0x871   : > { %721 = vrot.lane.b32.xlu2 %v719_v61, %s2974_s29  ;;  %v816_v61 = vld [vmem:[#allocation2 + $0xc] sm:$0x1] }
 0x8cb   : > { %v722_v62 = vpop.permute.xlu2 %721 }
 0x8cc   : > { %v724_v63 = vsel %vm628_vm6, -1e+09, %v722_v62 }
 0x8cd   : > { %v725_v0 = vmax.f32 %v712_v57, %v724_v63 }
 0x8cf   : > { %v727_v2 = vadd.f32 %v726_v1, %v725_v0 }
 0x8d1   : > { %728 = vst.msk [vmem:[#allocation2 + $0x6] sm:$0x1] %vm637_vm9, %v727_v2  ;;  %729 = vrot.lane.b32.xlu1 %v727_v2, %s2971_s15 }
 0x943   : > { %v730_v3 = vpop.permute.xlu1 %729 }
 0x944   : > { %v731_v4 = vsel %vm621_vm1, %v730_v3, %v727_v2 }
 0x945   : > { %732 = vrot.lane.b32.xlu2 %v731_v4, %s2971_s15 }
 0x99f   : > { %v733_v5 = vpop.permute.xlu2 %732 }
 0x9a0   : > { %v734_v6 = vsel %vm621_vm1, %v733_v5, %v727_v2 }
 0x9a1   : > { %736 = vrot.lane.b32.xlu1 %v734_v6, %s2974_s29  ;;  %v831_v6 = vld [vmem:[#allocation2 + $0xd] sm:$0x1] }
 0xa13   : > { %v737_v7 = vpop.permute.xlu1 %736 }
 0xa14   : > { %v739_v8 = vsel %vm628_vm6, -1e+09, %v737_v7 }
 0xa15   : > { %v740_v9 = vmax.f32 %v727_v2, %v739_v8 }
 0xa17   : > { %v742_v11 = vadd.f32 %v741_v10, %v740_v9 }
 0xa19   : > { %743 = vst.msk [vmem:[#allocation2 + $0x7] sm:$0x1] %vm637_vm9, %v742_v11  ;;  %744 = vrot.lane.b32.xlu2 %v742_v11, %s2971_s15 }
 0xa73   : > { %v745_v12 = vpop.permute.xlu2 %744 }
 0xa74   : > { %v746_v13 = vsel %vm621_vm1, %v745_v12, %v742_v11 }
 0xa75   : > { %747 = vrot.lane.b32.xlu1 %v746_v13, %s2971_s15 }
 0xae7   : > { %v748_v14 = vpop.permute.xlu1 %747 }
 0xae8   : > { %v749_v15 = vsel %vm621_vm1, %v748_v14, %v742_v11 }
 0xae9   : > { %751 = vrot.lane.b32.xlu2 %v749_v15, %s2974_s29  ;;  %v846_v15 = vld [vmem:[#allocation2 + $0xe] sm:$0x1] }
 0xb43   : > { %v752_v17 = vpop.permute.xlu2 %751 }
 0xb44   : > { %v754_v18 = vsel %vm628_vm6, -1e+09, %v752_v17 }
 0xb45   : > { %v755_v19 = vmax.f32 %v742_v11, %v754_v18 }
 0xb47   : > { %v757_v23 = vadd.f32 %v756_v22, %v755_v19 }
 0xb49   : > { %758 = vst.msk [vmem:[#allocation2 + $0x8] sm:$0x1] %vm637_vm9, %v757_v23  ;;  %759 = vrot.lane.b32.xlu1 %v757_v23, %s2971_s15 }
 0xbbb   : > { %v760_v25 = vpop.permute.xlu1 %759 }
 0xbbc   : > { %v761_v26 = vsel %vm621_vm1, %v760_v25, %v757_v23 }
 0xbbd   : > { %762 = vrot.lane.b32.xlu2 %v761_v26, %s2971_s15 }
 0xc17   : > { %v763_v27 = vpop.permute.xlu2 %762 }
 0xc18   : > { %v764_v28 = vsel %vm621_vm1, %v763_v27, %v757_v23 }
 0xc19   : > { %766 = vrot.lane.b32.xlu1 %v764_v28, %s2974_s29  ;;  %v861_v28 = vld [vmem:[#allocation2 + $0xf] sm:$0x1] }
 0xc8b   : > { %v767_v29 = vpop.permute.xlu1 %766 }
 0xc8c   : > { %v769_v30 = vsel %vm628_vm6, -1e+09, %v767_v29 }
 0xc8d   : > { %v770_v31 = vmax.f32 %v757_v23, %v769_v30 }
 0xc8f   : > { %v772_v33 = vadd.f32 %v771_v32, %v770_v31 }
 0xc91   : > { %773 = vst.msk [vmem:[#allocation2 + $0x9] sm:$0x1] %vm637_vm9, %v772_v33  ;;  %774 = vrot.lane.b32.xlu2 %v772_v33, %s2971_s15 }
 0xceb   : > { %v775_v34 = vpop.permute.xlu2 %774 }
 0xcec   : > { %v776_v35 = vsel %vm621_vm1, %v775_v34, %v772_v33 }
 0xced   : > { %777 = vrot.lane.b32.xlu1 %v776_v35, %s2971_s15 }
 0xd5f   : > { %v778_v36 = vpop.permute.xlu1 %777 }
 0xd60   : > { %v779_v38 = vsel %vm621_vm1, %v778_v36, %v772_v33 }
 0xd61   : > { %781 = vrot.lane.b32.xlu2 %v779_v38, %s2974_s29  ;;  %v876_v38 = vld [vmem:[#allocation2 + $0x10] sm:$0x1] }
 0xdbb   : > { %v782_v39 = vpop.permute.xlu2 %781 }
 0xdbc   : > { %v784_v41 = vsel %vm628_vm6, -1e+09, %v782_v39 }
 0xdbd   : > { %v785_v42 = vmax.f32 %v772_v33, %v784_v41 }
 0xdbf   : > { %v787_v44 = vadd.f32 %v786_v43, %v785_v42 }
 0xdc1   : > { %788 = vst.msk [vmem:[#allocation2 + $0xa] sm:$0x1] %vm637_vm9, %v787_v44  ;;  %789 = vrot.lane.b32.xlu1 %v787_v44, %s2971_s15 }
 0xe33   : > { %v790_v45 = vpop.permute.xlu1 %789 }
 0xe34   : > { %v791_v46 = vsel %vm621_vm1, %v790_v45, %v787_v44 }
 0xe35   : > { %792 = vrot.lane.b32.xlu2 %v791_v46, %s2971_s15 }
 0xe8f   : > { %v793_v47 = vpop.permute.xlu2 %792 }
 0xe90   : > { %v794_v48 = vsel %vm621_vm1, %v793_v47, %v787_v44 }
 0xe91   : > { %796 = vrot.lane.b32.xlu1 %v794_v48, %s2974_s29  ;;  %v891_v48 = vld [vmem:[#allocation2 + $0x11] sm:$0x1] }
 0xf03   : > { %v797_v49 = vpop.permute.xlu1 %796 }
 0xf04   : > { %v799_v50 = vsel %vm628_vm6, -1e+09, %v797_v49 }
 0xf05   : > { %v800_v51 = vmax.f32 %v787_v44, %v799_v50 }
 0xf07   : > { %v802_v53 = vadd.f32 %v801_v52, %v800_v51 }
 0xf09   : > { %803 = vst.msk [vmem:[#allocation2 + $0xb] sm:$0x1] %vm637_vm9, %v802_v53  ;;  %804 = vrot.lane.b32.xlu2 %v802_v53, %s2971_s15 }
 0xf63   : > { %v805_v54 = vpop.permute.xlu2 %804 }
 0xf64   : > { %v806_v55 = vsel %vm621_vm1, %v805_v54, %v802_v53 }
 0xf65   : > { %807 = vrot.lane.b32.xlu1 %v806_v55, %s2971_s15 }
 0xfd7   : > { %v808_v56 = vpop.permute.xlu1 %807 }
 0xfd8   : > { %v809_v57 = vsel %vm621_vm1, %v808_v56, %v802_v53 }
 0xfd9   : > { %811 = vrot.lane.b32.xlu2 %v809_v57, %s2974_s29  ;;  %v906_v57 = vld [vmem:[#allocation2 + $0x12] sm:$0x1] }
0x1033   : > { %v812_v58 = vpop.permute.xlu2 %811 }
0x1034   : > { %v814_v59 = vsel %vm628_vm6, -1e+09, %v812_v58 }
0x1035   : > { %v815_v60 = vmax.f32 %v802_v53, %v814_v59 }
0x1037   : > { %v817_v62 = vadd.f32 %v816_v61, %v815_v60 }
0x1039   : > { %818 = vst.msk [vmem:[#allocation2 + $0xc] sm:$0x1] %vm637_vm9, %v817_v62  ;;  %819 = vrot.lane.b32.xlu1 %v817_v62, %s2971_s15 }
0x10ab   : > { %v820_v63 = vpop.permute.xlu1 %819 }
0x10ac   : > { %v821_v0 = vsel %vm621_vm1, %v820_v63, %v817_v62 }
0x10ad   : > { %822 = vrot.lane.b32.xlu2 %v821_v0, %s2971_s15 }
0x1107   : > { %v823_v1 = vpop.permute.xlu2 %822 }
0x1108   : > { %v824_v2 = vsel %vm621_vm1, %v823_v1, %v817_v62 }
0x1109   : > { %826 = vrot.lane.b32.xlu1 %v824_v2, %s2974_s29  ;;  %v921_v2 = vld [vmem:[#allocation2 + $0x13] sm:$0x1] }
0x117b   : > { %v827_v3 = vpop.permute.xlu1 %826 }
0x117c   : > { %v829_v4 = vsel %vm628_vm6, -1e+09, %v827_v3 }
0x117d   : > { %v830_v5 = vmax.f32 %v817_v62, %v829_v4 }
0x117f   : > { %v832_v7 = vadd.f32 %v831_v6, %v830_v5 }
0x1181   : > { %833 = vst.msk [vmem:[#allocation2 + $0xd] sm:$0x1] %vm637_vm9, %v832_v7  ;;  %834 = vrot.lane.b32.xlu2 %v832_v7, %s2971_s15 }
0x11db   : > { %v835_v8 = vpop.permute.xlu2 %834 }
0x11dc   : > { %v836_v9 = vsel %vm621_vm1, %v835_v8, %v832_v7 }
0x11dd   : > { %837 = vrot.lane.b32.xlu1 %v836_v9, %s2971_s15 }
0x124f   : > { %v838_v10 = vpop.permute.xlu1 %837 }
0x1250   : > { %v839_v11 = vsel %vm621_vm1, %v838_v10, %v832_v7 }
0x1251   : > { %841 = vrot.lane.b32.xlu2 %v839_v11, %s2974_s29  ;;  %v936_v11 = vld [vmem:[#allocation2 + $0x14] sm:$0x1] }
0x12ab   : > { %v842_v12 = vpop.permute.xlu2 %841 }
0x12ac   : > { %v844_v13 = vsel %vm628_vm6, -1e+09, %v842_v12 }
0x12ad   : > { %v845_v14 = vmax.f32 %v832_v7, %v844_v13 }
0x12af   : > { %v847_v17 = vadd.f32 %v846_v15, %v845_v14 }
0x12b1   : > { %848 = vst.msk [vmem:[#allocation2 + $0xe] sm:$0x1] %vm637_vm9, %v847_v17  ;;  %849 = vrot.lane.b32.xlu0 %v847_v17, %s2971_s15 }
0x1323   : > { %v850_v18 = vpop.permute.xlu0 %849 }
0x1324   : > { %v851_v19 = vsel %vm621_vm1, %v850_v18, %v847_v17 }
0x1325   : > { %852 = vrot.lane.b32.xlu1 %v851_v19, %s2971_s15 }
0x1397   : > { %v853_v22 = vpop.permute.xlu1 %852 }
0x1398   : > { %v854_v23 = vsel %vm621_vm1, %v853_v22, %v847_v17 }
0x1399   : > { %856 = vrot.lane.b32.xlu2 %v854_v23, %s2974_s29  ;;  %v951_v23 = vld [vmem:[#allocation2 + $0x15] sm:$0x1] }
0x13f3   : > { %v857_v25 = vpop.permute.xlu2 %856 }
0x13f4   : > { %v859_v26 = vsel %vm628_vm6, -1e+09, %v857_v25 }
0x13f5   : > { %v860_v27 = vmax.f32 %v847_v17, %v859_v26 }
0x13f7   : > { %v862_v29 = vadd.f32 %v861_v28, %v860_v27 }
0x13f9   : > { %863 = vst.msk [vmem:[#allocation2 + $0xf] sm:$0x1] %vm637_vm9, %v862_v29  ;;  %864 = vrot.lane.b32.xlu0 %v862_v29, %s2971_s15 }
0x146b   : > { %v865_v30 = vpop.permute.xlu0 %864 }
0x146c   : > { %v866_v31 = vsel %vm621_vm1, %v865_v30, %v862_v29 }
0x146d   : > { %867 = vrot.lane.b32.xlu1 %v866_v31, %s2971_s15 }
0x14df   : > { %v868_v32 = vpop.permute.xlu1 %867 }
0x14e0   : > { %v869_v33 = vsel %vm621_vm1, %v868_v32, %v862_v29 }
0x14e1   : > { %871 = vrot.lane.b32.xlu2 %v869_v33, %s2974_s29  ;;  %v966_v33 = vld [vmem:[#allocation2 + $0x16] sm:$0x1] }
0x153b   : > { %v872_v34 = vpop.permute.xlu2 %871 }
0x153c   : > { %v874_v35 = vsel %vm628_vm6, -1e+09, %v872_v34 }
0x153d   : > { %v875_v36 = vmax.f32 %v862_v29, %v874_v35 }
0x153f   : > { %v877_v39 = vadd.f32 %v876_v38, %v875_v36 }
0x1541   : > { %878 = vst.msk [vmem:[#allocation2 + $0x10] sm:$0x1] %vm637_vm9, %v877_v39  ;;  %879 = vrot.lane.b32.xlu0 %v877_v39, %s2971_s15 }
0x15b3   : > { %v880_v41 = vpop.permute.xlu0 %879 }
0x15b4   : > { %v881_v42 = vsel %vm621_vm1, %v880_v41, %v877_v39 }
0x15b5   : > { %882 = vrot.lane.b32.xlu1 %v881_v42, %s2971_s15 }
0x1627   : > { %v883_v43 = vpop.permute.xlu1 %882 }
0x1628   : > { %v884_v44 = vsel %vm621_vm1, %v883_v43, %v877_v39 }
0x1629   : > { %886 = vrot.lane.b32.xlu2 %v884_v44, %s2974_s29  ;;  %v981_v44 = vld [vmem:[#allocation2 + $0x17] sm:$0x1] }
0x1683   : > { %v887_v45 = vpop.permute.xlu2 %886 }
0x1684   : > { %v889_v46 = vsel %vm628_vm6, -1e+09, %v887_v45 }
0x1685   : > { %v890_v47 = vmax.f32 %v877_v39, %v889_v46 }
0x1687   : > { %v892_v49 = vadd.f32 %v891_v48, %v890_v47 }
0x1689   : > { %893 = vst.msk [vmem:[#allocation2 + $0x11] sm:$0x1] %vm637_vm9, %v892_v49  ;;  %894 = vrot.lane.b32.xlu0 %v892_v49, %s2971_s15 }
0x16fb   : > { %v895_v50 = vpop.permute.xlu0 %894 }
0x16fc   : > { %v896_v51 = vsel %vm621_vm1, %v895_v50, %v892_v49 }
0x16fd   : > { %897 = vrot.lane.b32.xlu1 %v896_v51, %s2971_s15 }
0x176f   : > { %v898_v52 = vpop.permute.xlu1 %897 }
0x1770   : > { %v899_v53 = vsel %vm621_vm1, %v898_v52, %v892_v49 }
0x1771   : > { %901 = vrot.lane.b32.xlu2 %v899_v53, %s2974_s29  ;;  %v996_v53 = vld [vmem:[#allocation2 + $0x18] sm:$0x1] }
0x17cb   : > { %v902_v54 = vpop.permute.xlu2 %901 }
0x17cc   : > { %v904_v55 = vsel %vm628_vm6, -1e+09, %v902_v54 }
0x17cd   : > { %v905_v56 = vmax.f32 %v892_v49, %v904_v55 }
0x17cf   : > { %v907_v58 = vadd.f32 %v906_v57, %v905_v56 }
0x17d1   : > { %908 = vst.msk [vmem:[#allocation2 + $0x12] sm:$0x1] %vm637_vm9, %v907_v58  ;;  %909 = vrot.lane.b32.xlu0 %v907_v58, %s2971_s15 }
0x1843   : > { %v910_v59 = vpop.permute.xlu0 %909 }
0x1844   : > { %v911_v60 = vsel %vm621_vm1, %v910_v59, %v907_v58 }
0x1845   : > { %912 = vrot.lane.b32.xlu1 %v911_v60, %s2971_s15 }
0x18b7   : > { %v913_v61 = vpop.permute.xlu1 %912 }
0x18b8   : > { %v914_v62 = vsel %vm621_vm1, %v913_v61, %v907_v58 }
0x18b9   : > { %916 = vrot.lane.b32.xlu2 %v914_v62, %s2974_s29  ;;  %v1011_v62 = vld [vmem:[#allocation2 + $0x19] sm:$0x1] }
0x1913   : > { %v917_v63 = vpop.permute.xlu2 %916 }
0x1914   : > { %v919_v0 = vsel %vm628_vm6, -1e+09, %v917_v63 }
0x1915   : > { %v920_v1 = vmax.f32 %v907_v58, %v919_v0 }
0x1917   : > { %v922_v3 = vadd.f32 %v921_v2, %v920_v1 }
0x1919   : > { %923 = vst.msk [vmem:[#allocation2 + $0x13] sm:$0x1] %vm637_vm9, %v922_v3  ;;  %924 = vrot.lane.b32.xlu0 %v922_v3, %s2971_s15 }
0x198b   : > { %v925_v4 = vpop.permute.xlu0 %924 }
0x198c   : > { %v926_v5 = vsel %vm621_vm1, %v925_v4, %v922_v3 }
0x198d   : > { %927 = vrot.lane.b32.xlu1 %v926_v5, %s2971_s15 }
0x19ff   : > { %v928_v6 = vpop.permute.xlu1 %927 }
0x1a00   : > { %v929_v7 = vsel %vm621_vm1, %v928_v6, %v922_v3 }
0x1a01   : > { %931 = vrot.lane.b32.xlu2 %v929_v7, %s2974_s29  ;;  %v1026_v7 = vld [vmem:[#allocation2 + $0x1a] sm:$0x1] }
0x1a5b   : > { %v932_v8 = vpop.permute.xlu2 %931 }
0x1a5c   : > { %v934_v9 = vsel %vm628_vm6, -1e+09, %v932_v8 }
0x1a5d   : > { %v935_v10 = vmax.f32 %v922_v3, %v934_v9 }
0x1a5f   : > { %v937_v12 = vadd.f32 %v936_v11, %v935_v10 }
0x1a61   : > { %938 = vst.msk [vmem:[#allocation2 + $0x14] sm:$0x1] %vm637_vm9, %v937_v12  ;;  %939 = vrot.lane.b32.xlu0 %v937_v12, %s2971_s15 }
0x1ad3   : > { %v940_v13 = vpop.permute.xlu0 %939 }
0x1ad4   : > { %v941_v14 = vsel %vm621_vm1, %v940_v13, %v937_v12 }
0x1ad5   : > { %942 = vrot.lane.b32.xlu1 %v941_v14, %s2971_s15 }
0x1b47   : > { %v943_v15 = vpop.permute.xlu1 %942 }
0x1b48   : > { %v944_v17 = vsel %vm621_vm1, %v943_v15, %v937_v12 }
0x1b49   : > { %946 = vrot.lane.b32.xlu2 %v944_v17, %s2974_s29  ;;  %v1041_v17 = vld [vmem:[#allocation2 + $0x1b] sm:$0x1] }
0x1ba3   : > { %v947_v18 = vpop.permute.xlu2 %946 }
0x1ba4   : > { %v949_v19 = vsel %vm628_vm6, -1e+09, %v947_v18 }
0x1ba5   : > { %v950_v22 = vmax.f32 %v937_v12, %v949_v19 }
0x1ba7   : > { %v952_v25 = vadd.f32 %v951_v23, %v950_v22 }
0x1ba9   : > { %953 = vst.msk [vmem:[#allocation2 + $0x15] sm:$0x1] %vm637_vm9, %v952_v25  ;;  %954 = vrot.lane.b32.xlu0 %v952_v25, %s2971_s15 }
0x1c1b   : > { %v955_v26 = vpop.permute.xlu0 %954 }
0x1c1c   : > { %v956_v27 = vsel %vm621_vm1, %v955_v26, %v952_v25 }
0x1c1d   : > { %957 = vrot.lane.b32.xlu1 %v956_v27, %s2971_s15 }
0x1c8f   : > { %v958_v28 = vpop.permute.xlu1 %957 }
0x1c90   : > { %v959_v29 = vsel %vm621_vm1, %v958_v28, %v952_v25 }
0x1c91   : > { %961 = vrot.lane.b32.xlu2 %v959_v29, %s2974_s29  ;;  %v1056_v29 = vld [vmem:[#allocation2 + $0x1c] sm:$0x1] }
0x1ceb   : > { %v962_v30 = vpop.permute.xlu2 %961 }
0x1cec   : > { %v964_v31 = vsel %vm628_vm6, -1e+09, %v962_v30 }
0x1ced   : > { %v965_v32 = vmax.f32 %v952_v25, %v964_v31 }
0x1cef   : > { %v967_v34 = vadd.f32 %v966_v33, %v965_v32 }
0x1cf1   : > { %968 = vst.msk [vmem:[#allocation2 + $0x16] sm:$0x1] %vm637_vm9, %v967_v34  ;;  %969 = vrot.lane.b32.xlu0 %v967_v34, %s2971_s15 }
0x1d63   : > { %v970_v35 = vpop.permute.xlu0 %969 }
0x1d64   : > { %v971_v36 = vsel %vm621_vm1, %v970_v35, %v967_v34 }
0x1d65   : > { %972 = vrot.lane.b32.xlu1 %v971_v36, %s2971_s15 }
0x1dd7   : > { %v973_v38 = vpop.permute.xlu1 %972 }
0x1dd8   : > { %v974_v39 = vsel %vm621_vm1, %v973_v38, %v967_v34 }
0x1dd9   : > { %976 = vrot.lane.b32.xlu2 %v974_v39, %s2974_s29  ;;  %v1071_v39 = vld [vmem:[#allocation2 + $0x1d] sm:$0x1] }
0x1e33   : > { %v977_v41 = vpop.permute.xlu2 %976 }
0x1e34   : > { %v979_v42 = vsel %vm628_vm6, -1e+09, %v977_v41 }
0x1e35   : > { %v980_v43 = vmax.f32 %v967_v34, %v979_v42 }
0x1e37   : > { %v982_v45 = vadd.f32 %v981_v44, %v980_v43 }
0x1e39   : > { %983 = vst.msk [vmem:[#allocation2 + $0x17] sm:$0x1] %vm637_vm9, %v982_v45  ;;  %984 = vrot.lane.b32.xlu0 %v982_v45, %s2971_s15 }
0x1eab   : > { %v985_v46 = vpop.permute.xlu0 %984 }
0x1eac   : > { %v986_v47 = vsel %vm621_vm1, %v985_v46, %v982_v45 }
0x1ead   : > { %987 = vrot.lane.b32.xlu1 %v986_v47, %s2971_s15 }
0x1f1f   : > { %v988_v48 = vpop.permute.xlu1 %987 }
0x1f20   : > { %v989_v49 = vsel %vm621_vm1, %v988_v48, %v982_v45 }
0x1f21   : > { %991 = vrot.lane.b32.xlu2 %v989_v49, %s2974_s29  ;;  %v1086_v49 = vld [vmem:[#allocation2 + $0x1e] sm:$0x1] }
0x1f7b   : > { %v992_v50 = vpop.permute.xlu2 %991 }
0x1f7c   : > { %v994_v51 = vsel %vm628_vm6, -1e+09, %v992_v50 }
0x1f7d   : > { %v995_v52 = vmax.f32 %v982_v45, %v994_v51 }
0x1f7f   : > { %v997_v54 = vadd.f32 %v996_v53, %v995_v52 }
0x1f81   : > { %998 = vst.msk [vmem:[#allocation2 + $0x18] sm:$0x1] %vm637_vm9, %v997_v54  ;;  %999 = vrot.lane.b32.xlu0 %v997_v54, %s2971_s15 }
0x1ff3   : > { %v1000_v55 = vpop.permute.xlu0 %999 }
0x1ff4   : > { %v1001_v56 = vsel %vm621_vm1, %v1000_v55, %v997_v54 }
0x1ff5   : > { %1002 = vrot.lane.b32.xlu1 %v1001_v56, %s2971_s15 }
0x2067   : > { %v1003_v57 = vpop.permute.xlu1 %1002 }
0x2068   : > { %v1004_v58 = vsel %vm621_vm1, %v1003_v57, %v997_v54 }
0x2069   : > { %1006 = vrot.lane.b32.xlu2 %v1004_v58, %s2974_s29 }
0x20c3   : > { %v1007_v59 = vpop.permute.xlu2 %1006 }
0x20c4   : > { %v1009_v60 = vsel %vm628_vm6, -1e+09, %v1007_v59 }
0x20c5   : > { %v1010_v61 = vmax.f32 %v997_v54, %v1009_v60  ;;  %v1106_v60 = vstv %s3415_s1 }
0x20c6   : > { %vm1107_vm14 = vcmp.eq.s32.totalorder %v3093_v16, %v1106_v60 }
0x20c7   : > { %v1012_v63 = vadd.f32 %v1011_v62, %v1010_v61  ;;  %v1109_v61 = vstv %s1108_s0 }
0x20c8   : > { %vm1110_vm15 = vcmp.eq.s32.totalorder %v1109_v61, 1 }
0x20c9   : > { %1013 = vst.msk [vmem:[#allocation2 + $0x19] sm:$0x1] %vm637_vm9, %v1012_v63  ;;  %1014 = vrot.lane.b32.xlu0 %v1012_v63, %s2971_s15  ;;  %vm1111_vm2 = vmand %vm1107_vm14, %vm1110_vm15 }
0x20ca   : > { %v2735_v62 = vsel %vm1111_vm2, 1.0, %v2973_v20 }
0x20cb   : > { %1114 = vst.msk [vmem:[#allocation3 + $0x1f] sm:$0x1] %vm637_vm9, %v2735_v62 }
0x213b   : > { %v1015_v0 = vpop.permute.xlu0 %1014 }
0x213c   : > { %v1016_v1 = vsel %vm621_vm1, %v1015_v0, %v1012_v63 }
0x213d   : > { %1017 = vrot.lane.b32.xlu1 %v1016_v1, %s2971_s15 }
0x21af   : > { %v1018_v2 = vpop.permute.xlu1 %1017 }
0x21b0   : > { %v1019_v3 = vsel %vm621_vm1, %v1018_v2, %v1012_v63 }
0x21b1   : > { %1021 = vrot.lane.b32.xlu2 %v1019_v3, %s2974_s29 }
0x220b   : > { %v1022_v4 = vpop.permute.xlu2 %1021 }
0x220c   : > { %v1024_v5 = vsel %vm628_vm6, -1e+09, %v1022_v4 }
0x220d   : > { %v1025_v6 = vmax.f32 %v1012_v63, %v1024_v5 }
0x220f   : > { %v1027_v8 = vadd.f32 %v1026_v7, %v1025_v6 }
0x2211   : > { %1028 = vst.msk [vmem:[#allocation2 + $0x1a] sm:$0x1] %vm637_vm9, %v1027_v8  ;;  %1029 = vrot.lane.b32.xlu0 %v1027_v8, %s2971_s15 }
0x2283   : > { %v1030_v9 = vpop.permute.xlu0 %1029 }
0x2284   : > { %v1031_v10 = vsel %vm621_vm1, %v1030_v9, %v1027_v8 }
0x2285   : > { %1032 = vrot.lane.b32.xlu1 %v1031_v10, %s2971_s15 }
0x22f7   : > { %v1033_v11 = vpop.permute.xlu1 %1032 }
0x22f8   : > { %v1034_v12 = vsel %vm621_vm1, %v1033_v11, %v1027_v8 }
0x22f9   : > { %1036 = vrot.lane.b32.xlu2 %v1034_v12, %s2974_s29 }
0x2353   : > { %v1037_v13 = vpop.permute.xlu2 %1036 }
0x2354   : > { %v1039_v14 = vsel %vm628_vm6, -1e+09, %v1037_v13 }
0x2355   : > { %v1040_v15 = vmax.f32 %v1027_v8, %v1039_v14 }
0x2357   : > { %v1042_v18 = vadd.f32 %v1041_v17, %v1040_v15 }
0x2359   : > { %1043 = vst.msk [vmem:[#allocation2 + $0x1b] sm:$0x1] %vm637_vm9, %v1042_v18  ;;  %1044 = vrot.lane.b32.xlu0 %v1042_v18, %s2971_s15 }
0x2360   : > { %v3432_v9 = vld [vmem:[#allocation2 + $0x1b] sm:$0x1] }
0x23cb   : > { %v1045_v19 = vpop.permute.xlu0 %1044 }
0x23cc   : > { %v1046_v22 = vsel %vm621_vm1, %v1045_v19, %v1042_v18  ;;  %v1153_v19 = vstv %s1152_s16 }
0x23cd   : > { %1047 = vrot.lane.b32.xlu1 %v1046_v22, %s2971_s15  ;;  %vm1154_vm7 = vcmp.eq.s32.totalorder %v1153_v19, 1 }
0x243f   : > { %v1048_v23 = vpop.permute.xlu1 %1047 }
0x2440   : > { %v1049_v25 = vsel %vm621_vm1, %v1048_v23, %v1042_v18 }
0x2441   : > { %1051 = vrot.lane.b32.xlu2 %v1049_v25, %s2974_s29 }
0x249b   : > { %v1052_v26 = vpop.permute.xlu2 %1051 }
0x249c   : > { %v1054_v27 = vsel %vm628_vm6, -1e+09, %v1052_v26 }
0x249d   : > { %v1055_v28 = vmax.f32 %v1042_v18, %v1054_v27 }
0x249f   : > { %v1057_v30 = vadd.f32 %v1056_v29, %v1055_v28 }
0x24a1   : > { %1058 = vst.msk [vmem:[#allocation2 + $0x1c] sm:$0x1] %vm637_vm9, %v1057_v30  ;;  %1059 = vrot.lane.b32.xlu0 %v1057_v30, %s2971_s15 }
0x24a8   : > { %v3407_v59 = vld [vmem:[#allocation2 + $0x1c] sm:$0x1] }
0x2513   : > { %v1060_v31 = vpop.permute.xlu0 %1059 }
0x2514   : > { %v1061_v32 = vsel %vm621_vm1, %v1060_v31, %v1057_v30  ;;  %v3457_v31 = vld [vmem:[#allocation2 + $0x1a] sm:$0x1] }
0x2515   : > { %1062 = vrot.lane.b32.xlu1 %v1061_v32, %s2971_s15 }
0x2587   : > { %v1063_v33 = vpop.permute.xlu1 %1062 }
0x2588   : > { %v1064_v34 = vsel %vm621_vm1, %v1063_v33, %v1057_v30 }
0x2589   : > { %1066 = vrot.lane.b32.xlu2 %v1064_v34, %s2974_s29 }
0x25e3   : > { %v1067_v35 = vpop.permute.xlu2 %1066 }
0x25e4   : > { %v1069_v36 = vsel %vm628_vm6, -1e+09, %v1067_v35 }
0x25e5   : > { %v1070_v38 = vmax.f32 %v1057_v30, %v1069_v36 }
0x25e7   : > { %v1072_v41 = vadd.f32 %v1071_v39, %v1070_v38 }
0x25e9   : > { %1073 = vst.msk [vmem:[#allocation2 + $0x1d] sm:$0x1] %vm637_vm9, %v1072_v41  ;;  %1074 = vrot.lane.b32.xlu0 %v1072_v41, %s2971_s15 }
0x25f0   : > { %v3396_v52 = vld [vmem:[#allocation2 + $0x1d] sm:$0x1] }
0x265b   : > { %v1075_v42 = vpop.permute.xlu0 %1074 }
0x265c   : > { %v1076_v43 = vsel %vm621_vm1, %v1075_v42, %v1072_v41 }
0x265d   : > { %1077 = vrot.lane.b32.xlu1 %v1076_v43, %s2971_s15 }
0x26cf   : > { %v1078_v44 = vpop.permute.xlu1 %1077 }
0x26d0   : > { %v1079_v45 = vsel %vm621_vm1, %v1078_v44, %v1072_v41 }
0x26d1   : > { %1081 = vrot.lane.b32.xlu2 %v1079_v45, %s2974_s29  ;;  %v3467_v45 = vld [vmem:[#allocation2 + $0x19] sm:$0x1] }
0x272b   : > { %v1082_v46 = vpop.permute.xlu2 %1081 }
0x272c   : > { %v1084_v47 = vsel %vm628_vm6, -1e+09, %v1082_v46  ;;  %v1197_v46 = vstv %s1196_s19 }
0x272d   : > { %v1085_v48 = vmax.f32 %v1072_v41, %v1084_v47  ;;  %vm1198_vm12 = vcmp.eq.s32.totalorder %v1197_v46, 1 }
0x272f   : > { %v3391_v50 = vadd.f32 %v1086_v49, %v1085_v48 }
0x2731   : > { %1088 = vst.msk [vmem:[#allocation2 + $0x1e] sm:$0x1] %vm637_vm9, %v3391_v50 }
0x2738   : > { %v1115_v51 = vld [vmem:[#allocation2 + $0x1e] sm:$0x1] }
0x2739   : > { %1116 = vrot.lane.b32.xlu0 %v1115_v51, %s2971_s15 }
0x2741   : > { %1160 = vrot.lane.b32.xlu0 %v3396_v52, %s2971_s15 }
0x27ab   : > { %v1117_v53 = vpop.permute.xlu0 %1116 }
0x27ac   : > { %v1118_v54 = vsel %vm621_vm1, %v1117_v53, %v1115_v51 }
0x27ad   : > { %1119 = vrot.lane.b32.xlu1 %v1118_v54, %s2971_s15 }
0x27b3   : > { %v1161_v57 = vpop.permute.xlu0 %1160 }
0x27b4   : > { %v1162_v58 = vsel %vm621_vm1, %v1161_v57, %v3396_v52 }
0x281f   : > { %v1120_v55 = vpop.permute.xlu1 %1119 }
0x2820   : > { %v1121_v56 = vsel %vm621_vm1, %v1120_v55, %v1115_v51 }
0x2821   : > { %1123 = vrot.lane.b32.xlu2 %v1121_v56, %s2974_s29 }
0x2829   : > { %1163 = vrot.lane.b32.xlu2 %v1162_v58, %s2971_s15 }
0x2831   : > { %1204 = vrot.lane.b32.xlu2 %v3407_v59, %s2971_s15 }
0x287b   : > { %v1124_v63 = vpop.permute.xlu2 %1123 }
0x287c   : > { %vm1126_vm4 = vcmp.lt.f32.partialorder %v1115_v51, %v1124_v63 }
0x287d   : > { %v1127_v0 = vsel %vm1126_vm4, 1.0, %v2973_v20 }
0x287e   : > { %v1128_v1 = vsel %vm1107_vm14, %v1127_v0, 0.0 }
0x287f   : > { %v1129_v2 = vsel %vm637_vm9, %v1128_v1, 0.0 }
0x2880   : > { %1130 = vadd.xlane.f32.xlu1 %v1129_v2 }
0x2883   : > { %v1164_v3 = vpop.permute.xlu2 %1163 }
0x2884   : > { %v1165_v4 = vsel %vm621_vm1, %v1164_v3, %v3396_v52 }
0x2885   : > { %1167 = vrot.lane.b32.xlu0 %v1165_v4, %s2974_s29 }
0x288b   : > { %v1205_v5 = vpop.permute.xlu2 %1204 }
0x288c   : > { %v1206_v6 = vsel %vm621_vm1, %v1205_v5, %v3407_v59 }
0x288d   : > { %1207 = vrot.lane.b32.xlu2 %v1206_v6, %s2971_s15 }
0x28e7   : > { %v1208_v7 = vpop.permute.xlu2 %1207 }
0x28e8   : > { %v1209_v8 = vsel %vm621_vm1, %v1208_v7, %v3407_v59 }
0x28e9   : > { %1211 = vrot.lane.b32.xlu2 %v1209_v8, %s2974_s29 }
0x28f1   : > { %1248 = vrot.lane.b32.xlu2 %v3432_v9, %s2971_s15 }
0x28f3   : > { %v1131_v10 = vpop.xlane.xlu1 %1130 }
0x28f4   : > { %v1132_v11 = vrot.slane %v1131_v10, 4 }
0x28f6   : > { %v1133_v12 = vadd.f32 %v1132_v11, %v1131_v10 }
0x28f7   : > { %v1168_v18 = vpop.permute.xlu0 %1167 }
0x28f8   : > { %v1134_v13 = vrot.slane %v1133_v12, 2  ;;  %vm1170_vm5 = vcmp.lt.f32.partialorder %v3396_v52, %v1168_v18 }
0x28f9   : > { %v1171_v23 = vsel %vm1170_vm5, 1.0, %v2973_v20 }
0x28fa   : > { %v1135_v14 = vadd.f32 %v1134_v13, %v1133_v12 }
0x28fc   : > { %v1136_v15 = vrot.slane %v1135_v14, 1 }
0x28fe   : > { %v1137_v17 = vadd.f32 %v1136_v15, %v1135_v14 }
0x2900   : > { %2840 = vpush %v1137_v17 }
0x2931   : > { %s2841_s9 = spop %2840 }
0x2932   : > { %p1139_p7 = scmp.gt.f32.partialorder %s2841_s9, 0.5 }
0x2934   : > { %p1142_p9 = por %p1141_p5, %p1139_p7 }
0x2936   : > { %p1143_p10 = pnand %p1142_p9, %p1140_p8 }
0x2938   : > { %p1144_p11 = pneg %p1143_p10 }
0x293a   : > { %p1145_p12 = pnand %p1144_p11, %p1105_p4 }
0x293c   : > { %s4344_s1 = smov (!%p1145_p12, %s3415_s1), %s2736_s17 }
0x293d   : > { %v1150_v22 = vstv %s4344_s1  ;;  %p1185_p1 = scmp.eq.s32.totalorder %s4344_s1, 30  ;;  %p1184_p2 = scmp.ne.s32.totalorder %s4344_s1, 0 }
0x293e   : > { %vm1151_vm8 = vcmp.eq.s32.totalorder %v3093_v16, %v1150_v22  ;;  %s2739_s20 = sadd.s32 4294967295, %s4344_s1 }
0x293f   : > { %vm1155_vm10 = vmand %vm1151_vm8, %vm1154_vm7  ;;  %v1172_v25 = vsel %vm1151_vm8, %v1171_v23, 0.0 }
0x2940   : > { %v2738_v26 = vsel %vm1155_vm10, 1.0, %v2973_v20  ;;  %v1173_v27 = vsel %vm637_vm9, %v1172_v25, 0.0 }
0x2941   : > { %1158 = vst.msk [vmem:[#allocation3 + $0x1e] sm:$0x1] %vm637_vm9, %v2738_v26  ;;  %1174 = vadd.xlane.f32.xlu0 %v1173_v27 }
0x2943   : > { %v1212_v28 = vpop.permute.xlu2 %1211 }
0x2944   : > { %vm1214_vm11 = vcmp.lt.f32.partialorder %v3407_v59, %v1212_v28 }
0x2945   : > { %v1215_v48 = vsel %vm1214_vm11, 1.0, %v2973_v20 }
0x294b   : > { %v1249_v29 = vpop.permute.xlu2 %1248 }
0x294c   : > { %v1250_v30 = vsel %vm621_vm1, %v1249_v29, %v3432_v9 }
0x294d   : > { %1251 = vrot.lane.b32.xlu1 %v1250_v30, %s2971_s15 }
0x2955   : > { %1292 = vrot.lane.b32.xlu1 %v3457_v31, %s2971_s15 }
0x29b4   : > { %v1175_v32 = vpop.xlane.xlu0 %1174 }
0x29b5   : > { %v1176_v33 = vrot.slane %v1175_v32, 4 }
0x29b7   : > { %v1177_v34 = vadd.f32 %v1176_v33, %v1175_v32 }
0x29b9   : > { %v1178_v35 = vrot.slane %v1177_v34, 2 }
0x29bb   : > { %v1179_v36 = vadd.f32 %v1178_v35, %v1177_v34 }
0x29bd   : > { %v1180_v38 = vrot.slane %v1179_v36, 1 }
0x29bf   : > { %v1252_v39 = vpop.permute.xlu1 %1251  ;;  %v1181_v42 = vadd.f32 %v1180_v38, %v1179_v36 }
0x29c0   : > { %v1253_v41 = vsel %vm621_vm1, %v1252_v39, %v3432_v9 }
0x29c1   : > { %1255 = vrot.lane.b32.xlu0 %v1253_v41, %s2974_s29  ;;  %2842 = vpush %v1181_v42  ;;  %v3544_v41 = vld [vmem:[#allocation2 + $0x17] sm:$0x1] }
0x29c7   : > { %v1293_v43 = vpop.permute.xlu1 %1292 }
0x29c8   : > { %v1294_v44 = vsel %vm621_vm1, %v1293_v43, %v3457_v31 }
0x29c9   : > { %1295 = vrot.lane.b32.xlu0 %v1294_v44, %s2971_s15 }
0x29d1   : > { %1336 = vrot.lane.b32.xlu0 %v3467_v45, %s2971_s15 }
0x29f2   : > { %s2843_s18 = spop %2842 }
0x29f3   : > { %p1183_p0 = scmp.gt.f32.partialorder %s2843_s18, 0.5 }
0x29f5   : > { %p1186_p3 = por %p1185_p1, %p1183_p0 }
0x29f7   : > { %p1187_p4 = pnand %p1186_p3, %p1184_p2 }
0x29f9   : > { %p1188_p5 = pneg %p1187_p4 }
0x29fb   : > { %p1189_p7 = pnand %p1188_p5, %p1149_p6  ;;  %p1237_p6 = scmp.gt.s32.totalorder %s3121_s30, 28 }
0x29fd   : > { %s4346_s1 = smov (!%p1189_p7, %s4344_s1), %s2739_s20 }
0x29fe   : > { %v1194_v47 = vstv %s4346_s1  ;;  %p1229_p9 = scmp.eq.s32.totalorder %s4346_s1, 29  ;;  %p1228_p10 = scmp.ne.s32.totalorder %s4346_s1, 0 }
0x29ff   : > { %vm1195_vm13 = vcmp.eq.s32.totalorder %v3093_v16, %v1194_v47  ;;  %s1240_s23 = scalar_select %p1237_p6, 1, 0 }
0x2a00   : > { %vm1199_vm14 = vmand %vm1195_vm13, %vm1198_vm12  ;;  %v1216_v49 = vsel %vm1195_vm13, %v1215_v48, 0.0  ;;  %s2742_s24 = sadd.s32 4294967295, %s4346_s1 }
0x2a01   : > { %v2741_v51 = vsel %vm1199_vm14, 1.0, %v2973_v20  ;;  %v1217_v52 = vsel %vm637_vm9, %v1216_v49, 0.0  ;;  %v1241_v4 = vstv %s1240_s23 }
0x2a02   : > { %1202 = vst.msk [vmem:[#allocation3 + $0x1d] sm:$0x1] %vm637_vm9, %v2741_v51  ;;  %1218 = vadd.xlane.f32.xlu2 %v1217_v52  ;;  %vm1242_vm2 = vcmp.eq.s32.totalorder %v1241_v4, 1 }
0x2a33   : > { %v1256_v53 = vpop.permute.xlu0 %1255 }
0x2a34   : > { %vm1258_vm15 = vcmp.lt.f32.partialorder %v3432_v9, %v1256_v53  ;;  %v3516_v9 = vld [vmem:[#allocation2 + $0x18] sm:$0x1]  ;;  %v3569_v53 = vld [vmem:[#allocation2 + $0x16] sm:$0x1] }
0x2a35   : > { %v1259_v6 = vsel %vm1258_vm15, 1.0, %v2973_v20 }
0x2a3b   : > { %v1296_v54 = vpop.permute.xlu0 %1295 }
0x2a3c   : > { %v1297_v55 = vsel %vm621_vm1, %v1296_v54, %v3457_v31 }
0x2a3d   : > { %1299 = vrot.lane.b32.xlu2 %v1297_v55, %s2974_s29 }
0x2a43   : > { %v1337_v56 = vpop.permute.xlu0 %1336 }
0x2a44   : > { %v1338_v57 = vsel %vm621_vm1, %v1337_v56, %v3467_v45 }
0x2a45   : > { %1339 = vrot.lane.b32.xlu2 %v1338_v57, %s2971_s15 }
0x2a75   : > { %v1219_v58 = vpop.xlane.xlu2 %1218 }
0x2a76   : > { %v1220_v59 = vrot.slane %v1219_v58, 4 }
0x2a78   : > { %v1221_v60 = vadd.f32 %v1220_v59, %v1219_v58 }
0x2a7a   : > { %v1222_v61 = vrot.slane %v1221_v60, 2 }
0x2a7c   : > { %v1223_v62 = vadd.f32 %v1222_v61, %v1221_v60 }
0x2a7e   : > { %v1224_v63 = vrot.slane %v1223_v62, 1 }
0x2a80   : > { %v1225_v0 = vadd.f32 %v1224_v63, %v1223_v62 }
0x2a82   : > { %2844 = vpush %v1225_v0 }
0x2a97   : > { %v1300_v1 = vpop.permute.xlu2 %1299 }
0x2a98   : > { %vm1302_vm7 = vcmp.lt.f32.partialorder %v3457_v31, %v1300_v1 }
0x2a99   : > { %v1303_v23 = vsel %vm1302_vm7, 1.0, %v2973_v20 }
0x2a9f   : > { %v1340_v2 = vpop.permute.xlu2 %1339 }
0x2aa0   : > { %v1341_v3 = vsel %vm621_vm1, %v1340_v2, %v3467_v45 }
0x2aa1   : > { %1343 = vrot.lane.b32.xlu2 %v1341_v3, %s2974_s29 }
0x2ab3   : > { %s2845_s21 = spop %2844 }
0x2ab4   : > { %p1227_p8 = scmp.gt.f32.partialorder %s2845_s21, 0.5 }
0x2ab6   : > { %p1230_p11 = por %p1229_p9, %p1227_p8 }
0x2ab8   : > { %p1231_p12 = pnand %p1230_p11, %p1228_p10 }
0x2aba   : > { %p1232_p0 = pneg %p1231_p12 }
0x2abc   : > { %p1233_p1 = pnand %p1232_p0, %p1193_p13  ;;  %p1281_p13 = scmp.gt.s32.totalorder %s3121_s30, 27 }
0x2abe   : > { %s4348_s1 = smov (!%p1233_p1, %s4346_s1), %s2742_s24 }
0x2abf   : > { %v1238_v5 = vstv %s4348_s1  ;;  %p1273_p3 = scmp.eq.s32.totalorder %s4348_s1, 28  ;;  %p1272_p4 = scmp.ne.s32.totalorder %s4348_s1, 0 }
0x2ac0   : > { %vm1239_vm4 = vcmp.eq.s32.totalorder %v3093_v16, %v1238_v5  ;;  %s1284_s27 = scalar_select %p1281_p13, 1, 0 }
0x2ac1   : > { %vm1243_vm5 = vmand %vm1239_vm4, %vm1242_vm2  ;;  %v1260_v7 = vsel %vm1239_vm4, %v1259_v6, 0.0  ;;  %s2745_s28 = sadd.s32 4294967295, %s4348_s1 }
0x2ac2   : > { %v2744_v8 = vsel %vm1243_vm5, 1.0, %v2973_v20  ;;  %v1261_v10 = vsel %vm637_vm9, %v1260_v7, 0.0  ;;  %v1285_v19 = vstv %s1284_s27  ;;  %v3597_v7 = vld [vmem:[#allocation2 + $0x15] sm:$0x1] }
0x2ac3   : > { %1246 = vst.msk [vmem:[#allocation3 + $0x1c] sm:$0x1] %vm637_vm9, %v2744_v8  ;;  %1262 = vadd.xlane.f32.xlu1 %v1261_v10  ;;  %vm1286_vm8 = vcmp.eq.s32.totalorder %v1285_v19, 1 }
0x2adc   : > { %1380 = vrot.lane.b32.xlu1 %v3516_v9, %s2971_s15 }
0x2afb   : > { %v1344_v42 = vpop.permute.xlu2 %1343 }
0x2afc   : > { %vm1346_vm12 = vcmp.lt.f32.partialorder %v3467_v45, %v1344_v42  ;;  %v3629_v42 = vld [vmem:[#allocation2 + $0x14] sm:$0x1] }
0x2afd   : > { %v1347_v46 = vsel %vm1346_vm12, 1.0, %v2973_v20 }
0x2b36   : > { %v1263_v11 = vpop.xlane.xlu1 %1262 }
0x2b37   : > { %v1264_v12 = vrot.slane %v1263_v11, 4 }
0x2b39   : > { %v1265_v13 = vadd.f32 %v1264_v12, %v1263_v11 }
0x2b3b   : > { %v1266_v14 = vrot.slane %v1265_v13, 2 }
0x2b3d   : > { %v1267_v15 = vadd.f32 %v1266_v14, %v1265_v13 }
0x2b3f   : > { %v1268_v17 = vrot.slane %v1267_v15, 1 }
0x2b41   : > { %v1269_v18 = vadd.f32 %v1268_v17, %v1267_v15 }
0x2b43   : > { %2846 = vpush %v1269_v18 }
0x2b4e   : > { %v1381_v28 = vpop.permute.xlu1 %1380 }
0x2b4f   : > { %v1382_v29 = vsel %vm621_vm1, %v1381_v28, %v3516_v9 }
0x2b74   : > { %s2847_s26 = spop %2846 }
0x2b75   : > { %p1271_p2 = scmp.gt.f32.partialorder %s2847_s26, 0.5 }
0x2b77   : > { %p1274_p5 = por %p1273_p3, %p1271_p2 }
0x2b79   : > { %p1275_p7 = pnand %p1274_p5, %p1272_p4 }
0x2b7b   : > { %p1276_p8 = pneg %p1275_p7 }
0x2b7d   : > { %p1277_p9 = pnand %p1276_p8, %p1237_p6  ;;  %p1325_p6 = scmp.gt.s32.totalorder %s3121_s30, 26 }
0x2b7f   : > { %s4350_s1 = smov (!%p1277_p9, %s4348_s1), %s2745_s28 }
0x2b80   : > { %v1282_v22 = vstv %s4350_s1  ;;  %p1317_p11 = scmp.eq.s32.totalorder %s4350_s1, 27  ;;  %p1316_p12 = scmp.ne.s32.totalorder %s4350_s1, 0 }
0x2b81   : > { %vm1283_vm10 = vcmp.eq.s32.totalorder %v3093_v16, %v1282_v22  ;;  %s1328_s9 = scalar_select %p1325_p6, 1, 0 }
0x2b82   : > { %vm1287_vm11 = vmand %vm1283_vm10, %vm1286_vm8  ;;  %v1304_v25 = vsel %vm1283_vm10, %v1303_v23, 0.0  ;;  %s2748_s16 = sadd.s32 4294967295, %s4350_s1 }
0x2b83   : > { %v2747_v26 = vsel %vm1287_vm11, 1.0, %v2973_v20  ;;  %v1305_v27 = vsel %vm637_vm9, %v1304_v25, 0.0  ;;  %v1329_v43 = vstv %s1328_s9 }
0x2b84   : > { %1290 = vst.msk [vmem:[#allocation3 + $0x1b] sm:$0x1] %vm637_vm9, %v2747_v26  ;;  %1306 = vadd.xlane.f32.xlu0 %v1305_v27  ;;  %vm1330_vm13 = vcmp.eq.s32.totalorder %v1329_v43, 1 }
0x2b98   : > { %1383 = vrot.lane.b32.xlu0 %v1382_v29, %s2971_s15 }
0x2bf7   : > { %v1307_v30 = vpop.xlane.xlu0 %1306 }
0x2bf8   : > { %v1308_v31 = vrot.slane %v1307_v30, 4 }
0x2bfa   : > { %v1309_v32 = vadd.f32 %v1308_v31, %v1307_v30 }
0x2bfc   : > { %v1310_v33 = vrot.slane %v1309_v32, 2 }
0x2bfe   : > { %v1311_v34 = vadd.f32 %v1310_v33, %v1309_v32 }
0x2c00   : > { %v1312_v35 = vrot.slane %v1311_v34, 1 }
0x2c02   : > { %v1313_v36 = vadd.f32 %v1312_v35, %v1311_v34 }
0x2c04   : > { %2848 = vpush %v1313_v36 }
0x2c0a   : > { %v1384_v38 = vpop.permute.xlu0 %1383 }
0x2c0b   : > { %v1385_v39 = vsel %vm621_vm1, %v1384_v38, %v3516_v9 }
0x2c0c   : > { %1387 = vrot.lane.b32.xlu1 %v1385_v39, %s2974_s29 }
0x2c14   : > { %1424 = vrot.lane.b32.xlu1 %v3544_v41, %s2971_s15 }
0x2c35   : > { %s2849_s0 = spop %2848 }
0x2c36   : > { %p1315_p10 = scmp.gt.f32.partialorder %s2849_s0, 0.5 }
0x2c38   : > { %p1318_p0 = por %p1317_p11, %p1315_p10 }
0x2c3a   : > { %p1319_p1 = pnand %p1318_p0, %p1316_p12 }
0x2c3c   : > { %p1320_p2 = pneg %p1319_p1 }
0x2c3e   : > { %p1321_p3 = pnand %p1320_p2, %p1281_p13  ;;  %p1369_p13 = scmp.gt.s32.totalorder %s3121_s30, 25 }
0x2c40   : > { %s4352_s1 = smov (!%p1321_p3, %s4350_s1), %s2748_s16 }
0x2c41   : > { %v1326_v44 = vstv %s4352_s1  ;;  %p1361_p5 = scmp.eq.s32.totalorder %s4352_s1, 26  ;;  %p1360_p7 = scmp.ne.s32.totalorder %s4352_s1, 0 }
0x2c42   : > { %vm1327_vm14 = vcmp.eq.s32.totalorder %v3093_v16, %v1326_v44  ;;  %s1372_s18 = scalar_select %p1369_p13, 1, 0 }
0x2c43   : > { %v1348_v47 = vsel %vm1327_vm14, %v1347_v46, 0.0  ;;  %vm1331_vm15 = vmand %vm1327_vm14, %vm1330_vm13  ;;  %s2751_s19 = sadd.s32 4294967295, %s4352_s1 }
0x2c44   : > { %v1349_v48 = vsel %vm637_vm9, %v1348_v47, 0.0  ;;  %v2750_v49 = vsel %vm1331_vm15, 1.0, %v2973_v20  ;;  %v1373_v63 = vstv %s1372_s18 }
0x2c45   : > { %1350 = vadd.xlane.f32.xlu2 %v1349_v48  ;;  %1334 = vst.msk [vmem:[#allocation3 + $0x1a] sm:$0x1] %vm637_vm9, %v2750_v49  ;;  %vm1374_vm4 = vcmp.eq.s32.totalorder %v1373_v63, 1 }
0x2c7e   : > { %v1388_v45 = vpop.permute.xlu1 %1387 }
0x2c7f   : > { %vm1390_vm2 = vcmp.lt.f32.partialorder %v3516_v9, %v1388_v45 }
0x2c80   : > { %v1391_v3 = vsel %vm1390_vm2, 1.0, %v2973_v20 }
0x2c86   : > { %v1425_v51 = vpop.permute.xlu1 %1424 }
0x2c87   : > { %v1426_v52 = vsel %vm621_vm1, %v1425_v51, %v3544_v41 }
0x2c88   : > { %1427 = vrot.lane.b32.xlu1 %v1426_v52, %s2971_s15 }
0x2c90   : > { %1468 = vrot.lane.b32.xlu1 %v3569_v53, %s2971_s15 }
0x2cb8   : > { %v1351_v54 = vpop.xlane.xlu2 %1350 }
0x2cb9   : > { %v1352_v55 = vrot.slane %v1351_v54, 4 }
0x2cbb   : > { %v1353_v56 = vadd.f32 %v1352_v55, %v1351_v54  ;;  %v3654_v54 = vld [vmem:[#allocation2 + $0x13] sm:$0x1] }
0x2cbd   : > { %v1354_v57 = vrot.slane %v1353_v56, 2 }
0x2cbf   : > { %v1355_v58 = vadd.f32 %v1354_v57, %v1353_v56 }
0x2cc1   : > { %v1356_v59 = vrot.slane %v1355_v58, 1 }
0x2cc3   : > { %v1357_v60 = vadd.f32 %v1356_v59, %v1355_v58 }
0x2cc5   : > { %2850 = vpush %v1357_v60 }
0x2cf6   : > { %s2851_s17 = spop %2850 }
0x2cf7   : > { %p1359_p4 = scmp.gt.f32.partialorder %s2851_s17, 0.5 }
0x2cf9   : > { %p1362_p8 = por %p1361_p5, %p1359_p4 }
0x2cfa   : > { %v1428_v61 = vpop.permute.xlu1 %1427 }
0x2cfb   : > { %v1429_v62 = vsel %vm621_vm1, %v1428_v61, %v3544_v41  ;;  %p1363_p9 = pnand %p1362_p8, %p1360_p7 }
0x2cfc   : > { %1431 = vrot.lane.b32.xlu2 %v1429_v62, %s2974_s29 }
0x2cfd   : > { %p1364_p10 = pneg %p1363_p9 }
0x2cff   : > { %p1365_p11 = pnand %p1364_p10, %p1325_p6  ;;  %p1413_p6 = scmp.gt.s32.totalorder %s3121_s30, 24 }
0x2d01   : > { %s4354_s1 = smov (!%p1365_p11, %s4352_s1), %s2751_s19 }
0x2d02   : > { %v1469_v0 = vpop.permute.xlu1 %1468  ;;  %v1370_v2 = vstv %s4354_s1  ;;  %p1405_p0 = scmp.eq.s32.totalorder %s4354_s1, 25  ;;  %p1404_p1 = scmp.ne.s32.totalorder %s4354_s1, 0 }
0x2d03   : > { %v1470_v1 = vsel %vm621_vm1, %v1469_v0, %v3569_v53  ;;  %vm1371_vm5 = vcmp.eq.s32.totalorder %v3093_v16, %v1370_v2  ;;  %s1416_s21 = scalar_select %p1413_p6, 1, 0 }
0x2d04   : > { %1471 = vrot.lane.b32.xlu2 %v1470_v1, %s2971_s15  ;;  %vm1375_vm7 = vmand %vm1371_vm5, %vm1374_vm4  ;;  %v1392_v4 = vsel %vm1371_vm5, %v1391_v3, 0.0  ;;  %s2754_s23 = sadd.s32 4294967295, %s4354_s1 }
0x2d05   : > { %v2753_v5 = vsel %vm1375_vm7, 1.0, %v2973_v20  ;;  %v1393_v6 = vsel %vm637_vm9, %v1392_v4, 0.0  ;;  %v1417_v19 = vstv %s1416_s21 }
0x2d06   : > { %1378 = vst.msk [vmem:[#allocation3 + $0x19] sm:$0x1] %vm637_vm9, %v2753_v5  ;;  %1394 = vadd.xlane.f32.xlu0 %v1393_v6  ;;  %vm1418_vm10 = vcmp.eq.s32.totalorder %v1417_v19, 1 }
0x2d1a   : > { %1512 = vrot.lane.b32.xlu0 %v3597_v7, %s2971_s15 }
0x2d56   : > { %v1432_v8 = vpop.permute.xlu2 %1431 }
0x2d57   : > { %vm1434_vm8 = vcmp.lt.f32.partialorder %v3544_v41, %v1432_v8 }
0x2d58   : > { %v1435_v23 = vsel %vm1434_vm8, 1.0, %v2973_v20 }
0x2d5e   : > { %v1472_v10 = vpop.permute.xlu2 %1471 }
0x2d5f   : > { %v1473_v9 = vsel %vm621_vm1, %v1472_v10, %v3569_v53 }
0x2d60   : > { %1475 = vrot.lane.b32.xlu2 %v1473_v9, %s2974_s29 }
0x2d79   : > { %v1395_v11 = vpop.xlane.xlu0 %1394 }
0x2d7a   : > { %v1396_v12 = vrot.slane %v1395_v11, 4 }
0x2d7c   : > { %v1397_v13 = vadd.f32 %v1396_v12, %v1395_v11 }
0x2d7e   : > { %v1398_v14 = vrot.slane %v1397_v13, 2 }
0x2d80   : > { %v1399_v15 = vadd.f32 %v1398_v14, %v1397_v13 }
0x2d82   : > { %v1400_v17 = vrot.slane %v1399_v15, 1 }
0x2d84   : > { %v1401_v18 = vadd.f32 %v1400_v17, %v1399_v15 }
0x2d86   : > { %2852 = vpush %v1401_v18 }
0x2d8c   : > { %v1513_v29 = vpop.permute.xlu0 %1512 }
0x2d8d   : > { %v1514_v30 = vsel %vm621_vm1, %v1513_v29, %v3597_v7 }
0x2db7   : > { %s2853_s20 = spop %2852 }
0x2db8   : > { %p1403_p12 = scmp.gt.f32.partialorder %s2853_s20, 0.5 }
0x2dba   : > { %p1406_p2 = por %p1405_p0, %p1403_p12  ;;  %v1476_v43 = vpop.permute.xlu2 %1475 }
0x2dbb   : > { %vm1478_vm13 = vcmp.lt.f32.partialorder %v3569_v53, %v1476_v43 }
0x2dbc   : > { %p1407_p3 = pnand %p1406_p2, %p1404_p1  ;;  %v1479_v47 = vsel %vm1478_vm13, 1.0, %v2973_v20 }
0x2dbe   : > { %p1408_p4 = pneg %p1407_p3 }
0x2dc0   : > { %p1409_p5 = pnand %p1408_p4, %p1369_p13  ;;  %p1457_p13 = scmp.gt.s32.totalorder %s3121_s30, 23 }
0x2dc2   : > { %s4356_s1 = smov (!%p1409_p5, %s4354_s1), %s2754_s23 }
0x2dc3   : > { %v1414_v22 = vstv %s4356_s1  ;;  %p1449_p8 = scmp.eq.s32.totalorder %s4356_s1, 24  ;;  %p1448_p9 = scmp.ne.s32.totalorder %s4356_s1, 0 }
0x2dc4   : > { %vm1415_vm11 = vcmp.eq.s32.totalorder %v3093_v16, %v1414_v22  ;;  %s1460_s26 = scalar_select %p1457_p13, 1, 0 }
0x2dc5   : > { %vm1419_vm12 = vmand %vm1415_vm11, %vm1418_vm10  ;;  %v1436_v25 = vsel %vm1415_vm11, %v1435_v23, 0.0  ;;  %s2757_s27 = sadd.s32 4294967295, %s4356_s1 }
0x2dc6   : > { %v2756_v26 = vsel %vm1419_vm12, 1.0, %v2973_v20  ;;  %v1437_v27 = vsel %vm637_vm9, %v1436_v25, 0.0  ;;  %v1461_v44 = vstv %s1460_s26  ;;  %v3692_v25 = vld [vmem:[#allocation2 + $0x11] sm:$0x1] }
0x2dc7   : > { %1422 = vst.msk [vmem:[#allocation3 + $0x18] sm:$0x1] %vm637_vm9, %v2756_v26  ;;  %1438 = vadd.xlane.f32.xlu1 %v1437_v27  ;;  %vm1462_vm14 = vcmp.eq.s32.totalorder %v1461_v44, 1 }
0x2dce   : > { %v2482_v28 = vld [vmem:[#allocation3 + $0x18] sm:$0xff] }
0x2dcf   : > { %2829 = vmatpush.xpose.msk.msra.mxu3 %vm506_vm3, %v2482_v28 }
0x2de0   : > { %1515 = vrot.lane.b32.xlu1 %v1514_v30, %s2971_s15 }
0x2e3a   : > { %v1439_v31 = vpop.xlane.xlu1 %1438 }
0x2e3b   : > { %v1440_v32 = vrot.slane %v1439_v31, 4 }
0x2e3d   : > { %v1441_v33 = vadd.f32 %v1440_v32, %v1439_v31 }
0x2e3f   : > { %v1442_v34 = vrot.slane %v1441_v33, 2 }
0x2e41   : > { %v1443_v35 = vadd.f32 %v1442_v34, %v1441_v33 }
0x2e43   : > { %v1444_v36 = vrot.slane %v1443_v35, 1 }
0x2e45   : > { %v1445_v38 = vadd.f32 %v1444_v36, %v1443_v35  ;;  %v3720_v36 = vld [vmem:[#allocation2 + $0x10] sm:$0x1] }
0x2e47   : > { %2854 = vpush %v1445_v38 }
0x2e52   : > { %v1516_v39 = vpop.permute.xlu1 %1515 }
0x2e53   : > { %v1517_v41 = vsel %vm621_vm1, %v1516_v39, %v3597_v7 }
0x2e54   : > { %1519 = vrot.lane.b32.xlu0 %v1517_v41, %s2974_s29 }
0x2e5c   : > { %1556 = vrot.lane.b32.xlu0 %v3629_v42, %s2971_s15 }
0x2e78   : > { %s2855_s24 = spop %2854 }
0x2e79   : > { %p1447_p7 = scmp.gt.f32.partialorder %s2855_s24, 0.5 }
0x2e7b   : > { %p1450_p10 = por %p1449_p8, %p1447_p7 }
0x2e7d   : > { %p1451_p11 = pnand %p1450_p10, %p1448_p9 }
0x2e7f   : > { %p1452_p12 = pneg %p1451_p11 }
0x2e81   : > { %p1453_p0 = pnand %p1452_p12, %p1413_p6  ;;  %p1501_p6 = scmp.gt.s32.totalorder %s3121_s30, 22 }
0x2e83   : > { %s4358_s1 = smov (!%p1453_p0, %s4356_s1), %s2757_s27 }
0x2e84   : > { %v1458_v46 = vstv %s4358_s1  ;;  %p1493_p2 = scmp.eq.s32.totalorder %s4358_s1, 23  ;;  %p1492_p3 = scmp.ne.s32.totalorder %s4358_s1, 0 }
0x2e85   : > { %vm1459_vm15 = vcmp.eq.s32.totalorder %v3093_v16, %v1458_v46  ;;  %s1504_s0 = scalar_select %p1501_p6, 1, 0 }
0x2e86   : > { %v1480_v48 = vsel %vm1459_vm15, %v1479_v47, 0.0  ;;  %vm1463_vm2 = vmand %vm1459_vm15, %vm1462_vm14  ;;  %s2760_s9 = sadd.s32 4294967295, %s4358_s1 }
0x2e87   : > { %v1481_v49 = vsel %vm637_vm9, %v1480_v48, 0.0  ;;  %v2759_v45 = vsel %vm1463_vm2, 1.0, %v2973_v20  ;;  %v1505_v0 = vstv %s1504_s0 }
0x2e88   : > { %1482 = vadd.xlane.f32.xlu2 %v1481_v49  ;;  %1466 = vst.msk [vmem:[#allocation3 + $0x17] sm:$0x1] %vm637_vm9, %v2759_v45  ;;  %vm1506_vm5 = vcmp.eq.s32.totalorder %v1505_v0, 1 }
0x2ec6   : > { %v1520_v51 = vpop.permute.xlu0 %1519 }
0x2ec7   : > { %vm1522_vm4 = vcmp.lt.f32.partialorder %v3597_v7, %v1520_v51  ;;  %v3682_v7 = vld [vmem:[#allocation2 + $0x12] sm:$0x1] }
0x2ec8   : > { %v1523_v2 = vsel %vm1522_vm4, 1.0, %v2973_v20 }
0x2ece   : > { %v1557_v52 = vpop.permute.xlu0 %1556 }
0x2ecf   : > { %v1558_v53 = vsel %vm621_vm1, %v1557_v52, %v3629_v42 }
0x2ed0   : > { %1559 = vrot.lane.b32.xlu1 %v1558_v53, %s2971_s15 }
0x2ed8   : > { %1600 = vrot.lane.b32.xlu1 %v3654_v54, %s2971_s15 }
0x2efb   : > { %v1483_v55 = vpop.xlane.xlu2 %1482 }
0x2efc   : > { %v1484_v56 = vrot.slane %v1483_v55, 4 }
0x2efe   : > { %v1485_v57 = vadd.f32 %v1484_v56, %v1483_v55 }
0x2f00   : > { %v1486_v58 = vrot.slane %v1485_v57, 2 }
0x2f02   : > { %v1487_v59 = vadd.f32 %v1486_v58, %v1485_v57 }
0x2f04   : > { %v1488_v60 = vrot.slane %v1487_v59, 1 }
0x2f06   : > { %v1489_v61 = vadd.f32 %v1488_v60, %v1487_v59  ;;  %v3748_v59 = vld [vmem:[#allocation2 + $0xf] sm:$0x1] }
0x2f08   : > { %2856 = vpush %v1489_v61 }
0x2f39   : > { %s2857_s28 = spop %2856 }
0x2f3a   : > { %p1491_p1 = scmp.gt.f32.partialorder %s2857_s28, 0.5 }
0x2f3c   : > { %p1494_p4 = por %p1493_p2, %p1491_p1 }
0x2f3e   : > { %p1495_p5 = pnand %p1494_p4, %p1492_p3 }
0x2f40   : > { %p1496_p7 = pneg %p1495_p5 }
0x2f42   : > { %v1560_v62 = vpop.permute.xlu1 %1559  ;;  %p1497_p8 = pnand %p1496_p7, %p1457_p13  ;;  %p1545_p13 = scmp.gt.s32.totalorder %s3121_s30, 21 }
0x2f43   : > { %v1561_v63 = vsel %vm621_vm1, %v1560_v62, %v3629_v42 }
0x2f44   : > { %1563 = vrot.lane.b32.xlu2 %v1561_v63, %s2974_s29  ;;  %s4360_s1 = smov (!%p1497_p8, %s4358_s1), %s2760_s9 }
0x2f45   : > { %v1502_v1 = vstv %s4360_s1  ;;  %p1537_p10 = scmp.eq.s32.totalorder %s4360_s1, 22  ;;  %p1536_p11 = scmp.ne.s32.totalorder %s4360_s1, 0 }
0x2f46   : > { %vm1503_vm7 = vcmp.eq.s32.totalorder %v3093_v16, %v1502_v1  ;;  %s1548_s17 = scalar_select %p1545_p13, 1, 0 }
0x2f47   : > { %vm1507_vm8 = vmand %vm1503_vm7, %vm1506_vm5  ;;  %v1524_v3 = vsel %vm1503_vm7, %v1523_v2, 0.0  ;;  %s2763_s18 = sadd.s32 4294967295, %s4360_s1 }
0x2f48   : > { %v2762_v5 = vsel %vm1507_vm8, 1.0, %v2973_v20  ;;  %v1525_v6 = vsel %vm637_vm9, %v1524_v3, 0.0  ;;  %v1549_v26 = vstv %s1548_s17 }
0x2f49   : > { %1510 = vst.msk [vmem:[#allocation3 + $0x16] sm:$0x1] %vm637_vm9, %v2762_v5  ;;  %1526 = vadd.xlane.f32.xlu0 %v1525_v6  ;;  %vm1550_vm11 = vcmp.eq.s32.totalorder %v1549_v26, 1 }
0x2f4a   : > { %v1601_v4 = vpop.permute.xlu1 %1600 }
0x2f4b   : > { %v1602_v8 = vsel %vm621_vm1, %v1601_v4, %v3654_v54 }
0x2f4c   : > { %1603 = vrot.lane.b32.xlu2 %v1602_v8, %s2971_s15 }
0x2f5d   : > { %1644 = vrot.lane.b32.xlu0 %v3682_v7, %s2971_s15 }
0x2f9e   : > { %v1564_v10 = vpop.permute.xlu2 %1563 }
0x2f9f   : > { %vm1566_vm10 = vcmp.lt.f32.partialorder %v3629_v42, %v1564_v10 }
0x2fa0   : > { %v1567_v28 = vsel %vm1566_vm10, 1.0, %v2973_v20 }
0x2fa6   : > { %v1604_v9 = vpop.permute.xlu2 %1603 }
0x2fa7   : > { %v1605_v11 = vsel %vm621_vm1, %v1604_v9, %v3654_v54 }
0x2fa8   : > { %1607 = vrot.lane.b32.xlu2 %v1605_v11, %s2974_s29 }
0x2fbc   : > { %v1527_v12 = vpop.xlane.xlu0 %1526 }
0x2fbd   : > { %v1528_v13 = vrot.slane %v1527_v12, 4 }
0x2fbf   : > { %v1529_v14 = vadd.f32 %v1528_v13, %v1527_v12 }
0x2fc1   : > { %v1530_v15 = vrot.slane %v1529_v14, 2 }
0x2fc3   : > { %v1531_v17 = vadd.f32 %v1530_v15, %v1529_v14 }
0x2fc5   : > { %v1532_v18 = vrot.slane %v1531_v17, 1 }
0x2fc7   : > { %v1533_v19 = vadd.f32 %v1532_v18, %v1531_v17 }
0x2fc9   : > { %2858 = vpush %v1533_v19 }
0x2fcf   : > { %v1645_v22 = vpop.permute.xlu0 %1644 }
0x2fd0   : > { %v1646_v23 = vsel %vm621_vm1, %v1645_v22, %v3682_v7 }
0x2fd1   : > { %1647 = vrot.lane.b32.xlu0 %v1646_v23, %s2971_s15 }
0x2fd9   : > { %1688 = vrot.lane.b32.xlu0 %v3692_v25, %s2971_s15 }
0x2ffa   : > { %s2859_s16 = spop %2858 }
0x2ffb   : > { %p1535_p9 = scmp.gt.f32.partialorder %s2859_s16, 0.5 }
0x2ffd   : > { %p1538_p12 = por %p1537_p10, %p1535_p9 }
0x2fff   : > { %p1539_p0 = pnand %p1538_p12, %p1536_p11 }
0x3001   : > { %p1540_p1 = pneg %p1539_p0 }
0x3002   : > { %v1608_v47 = vpop.permute.xlu2 %1607 }
0x3003   : > { %p1541_p2 = pnand %p1540_p1, %p1501_p6  ;;  %p1589_p6 = scmp.gt.s32.totalorder %s3121_s30, 20  ;;  %vm1610_vm14 = vcmp.lt.f32.partialorder %v3654_v54, %v1608_v47 }
0x3004   : > { %v1611_v45 = vsel %vm1610_vm14, 1.0, %v2973_v20 }
0x3005   : > { %s4362_s1 = smov (!%p1541_p2, %s4360_s1), %s2763_s18 }
0x3006   : > { %v1546_v27 = vstv %s4362_s1  ;;  %p1581_p4 = scmp.eq.s32.totalorder %s4362_s1, 21  ;;  %p1580_p5 = scmp.ne.s32.totalorder %s4362_s1, 0 }
0x3007   : > { %vm1547_vm12 = vcmp.eq.s32.totalorder %v3093_v16, %v1546_v27  ;;  %s1592_s20 = scalar_select %p1589_p6, 1, 0 }
0x3008   : > { %vm1551_vm13 = vmand %vm1547_vm12, %vm1550_vm11  ;;  %v1568_v29 = vsel %vm1547_vm12, %v1567_v28, 0.0  ;;  %s2766_s21 = sadd.s32 4294967295, %s4362_s1 }
0x3009   : > { %v2765_v30 = vsel %vm1551_vm13, 1.0, %v2973_v20  ;;  %v1569_v31 = vsel %vm637_vm9, %v1568_v29, 0.0  ;;  %v1593_v48 = vstv %s1592_s20 }
0x300a   : > { %1554 = vst.msk [vmem:[#allocation3 + $0x15] sm:$0x1] %vm637_vm9, %v2765_v30  ;;  %1570 = vadd.xlane.f32.xlu1 %v1569_v31  ;;  %vm1594_vm15 = vcmp.eq.s32.totalorder %v1593_v48, 1 }
0x3043   : > { %v1648_v32 = vpop.permute.xlu0 %1647 }
0x3044   : > { %v1649_v33 = vsel %vm621_vm1, %v1648_v32, %v3682_v7 }
0x3045   : > { %1651 = vrot.lane.b32.xlu1 %v1649_v33, %s2974_s29 }
0x304b   : > { %v1689_v34 = vpop.permute.xlu0 %1688 }
0x304c   : > { %v1690_v35 = vsel %vm621_vm1, %v1689_v34, %v3692_v25 }
0x304d   : > { %1691 = vrot.lane.b32.xlu1 %v1690_v35, %s2971_s15 }
0x3055   : > { %1732 = vrot.lane.b32.xlu1 %v3720_v36, %s2971_s15 }
0x307d   : > { %v1571_v38 = vpop.xlane.xlu1 %1570 }
0x307e   : > { %v1572_v39 = vrot.slane %v1571_v38, 4 }
0x3080   : > { %v1573_v41 = vadd.f32 %v1572_v39, %v1571_v38 }
0x3082   : > { %v1574_v42 = vrot.slane %v1573_v41, 2 }
0x3084   : > { %v1575_v43 = vadd.f32 %v1574_v42, %v1573_v41 }
0x3086   : > { %v1576_v44 = vrot.slane %v1575_v43, 1 }
0x3088   : > { %v1577_v46 = vadd.f32 %v1576_v44, %v1575_v43 }
0x308a   : > { %2860 = vpush %v1577_v46 }
0x30b7   : > { %v1652_v55 = vpop.permute.xlu1 %1651 }
0x30b8   : > { %vm1654_vm5 = vcmp.lt.f32.partialorder %v3682_v7, %v1652_v55 }
0x30b9   : > { %v1655_v5 = vsel %vm1654_vm5, 1.0, %v2973_v20 }
0x30bb   : > { %s2861_s19 = spop %2860 }
0x30bc   : > { %p1579_p3 = scmp.gt.f32.partialorder %s2861_s19, 0.5 }
0x30be   : > { %p1582_p7 = por %p1581_p4, %p1579_p3 }
0x30bf   : > { %v1692_v54 = vpop.permute.xlu1 %1691 }
0x30c0   : > { %p1583_p8 = pnand %p1582_p7, %p1580_p5  ;;  %v1693_v56 = vsel %vm621_vm1, %v1692_v54, %v3692_v25 }
0x30c2   : > { %p1584_p9 = pneg %p1583_p8 }
0x30c4   : > { %p1585_p10 = pnand %p1584_p9, %p1545_p13  ;;  %p1633_p13 = scmp.gt.s32.totalorder %s3121_s30, 19 }
0x30c6   : > { %s4364_s1 = smov (!%p1585_p10, %s4362_s1), %s2766_s21 }
0x30c7   : > { %v1590_v49 = vstv %s4364_s1  ;;  %v1733_v57 = vpop.permute.xlu1 %1732  ;;  %p1625_p12 = scmp.eq.s32.totalorder %s4364_s1, 20  ;;  %p1624_p0 = scmp.ne.s32.totalorder %s4364_s1, 0 }
0x30c8   : > { %vm1591_vm2 = vcmp.eq.s32.totalorder %v3093_v16, %v1590_v49  ;;  %v1734_v58 = vsel %vm621_vm1, %v1733_v57, %v3720_v36  ;;  %s1636_s24 = scalar_select %p1633_p13, 1, 0 }
0x30c9   : > { %v1612_v51 = vsel %vm1591_vm2, %v1611_v45, 0.0  ;;  %vm1595_vm4 = vmand %vm1591_vm2, %vm1594_vm15  ;;  %s2769_s26 = sadd.s32 4294967295, %s4364_s1 }
0x30ca   : > { %v1613_v52 = vsel %vm637_vm9, %v1612_v51, 0.0  ;;  %v2768_v53 = vsel %vm1595_vm4, 1.0, %v2973_v20  ;;  %v1637_v3 = vstv %s1636_s24 }
0x30cb   : > { %1614 = vadd.xlane.f32.xlu2 %v1613_v52  ;;  %1598 = vst.msk [vmem:[#allocation3 + $0x14] sm:$0x1] %vm637_vm9, %v2768_v53  ;;  %vm1638_vm7 = vcmp.eq.s32.totalorder %v1637_v3, 1 }
0x30e3   : > { %1695 = vrot.lane.b32.xlu2 %v1693_v56, %s2974_s29 }
0x30eb   : > { %1735 = vrot.lane.b32.xlu2 %v1734_v58, %s2971_s15 }
0x30f3   : > { %1776 = vrot.lane.b32.xlu2 %v3748_v59, %s2971_s15 }
0x313e   : > { %v1615_v60 = vpop.xlane.xlu2 %1614 }
0x313f   : > { %v1616_v61 = vrot.slane %v1615_v60, 4 }
0x3141   : > { %v1617_v62 = vadd.f32 %v1616_v61, %v1615_v60 }
0x3143   : > { %v1618_v63 = vrot.slane %v1617_v62, 2 }
0x3145   : > { %v1619_v0 = vadd.f32 %v1618_v63, %v1617_v62  ;;  %v3825_v63 = vld [vmem:[#allocation2 + $0xd] sm:$0x1] }
0x3146   : > { %v1696_v9 = vpop.permute.xlu2 %1695 }
0x3147   : > { %v1620_v1 = vrot.slane %v1619_v0, 1  ;;  %vm1698_vm11 = vcmp.lt.f32.partialorder %v3692_v25, %v1696_v9  ;;  %v3797_v25 = vld [vmem:[#allocation2 + $0xe] sm:$0x1] }
0x3148   : > { %v1699_v31 = vsel %vm1698_vm11, 1.0, %v2973_v20 }
0x3149   : > { %v1621_v2 = vadd.f32 %v1620_v1, %v1619_v0 }
0x314b   : > { %2862 = vpush %v1621_v2 }
0x314e   : > { %v1736_v7 = vpop.permute.xlu2 %1735 }
0x314f   : > { %v1737_v11 = vsel %vm621_vm1, %v1736_v7, %v3720_v36  ;;  %v3851_v7 = vld [vmem:[#allocation2 + $0xc] sm:$0x1] }
0x3156   : > { %v1777_v12 = vpop.permute.xlu2 %1776 }
0x3157   : > { %v1778_v13 = vsel %vm621_vm1, %v1777_v12, %v3748_v59 }
0x317c   : > { %s2863_s23 = spop %2862 }
0x317d   : > { %p1623_p11 = scmp.gt.f32.partialorder %s2863_s23, 0.5 }
0x317f   : > { %p1626_p1 = por %p1625_p12, %p1623_p11 }
0x3181   : > { %p1627_p2 = pnand %p1626_p1, %p1624_p0 }
0x3183   : > { %p1628_p3 = pneg %p1627_p2 }
0x3185   : > { %p1629_p4 = pnand %p1628_p3, %p1589_p6  ;;  %p1677_p6 = scmp.gt.s32.totalorder %s3121_s30, 18 }
0x3187   : > { %s4366_s1 = smov (!%p1629_p4, %s4364_s1), %s2769_s26 }
0x3188   : > { %v1634_v4 = vstv %s4366_s1  ;;  %p1669_p7 = scmp.eq.s32.totalorder %s4366_s1, 19  ;;  %p1668_p8 = scmp.ne.s32.totalorder %s4366_s1, 0 }
0x3189   : > { %vm1635_vm8 = vcmp.eq.s32.totalorder %v3093_v16, %v1634_v4  ;;  %s1680_s28 = scalar_select %p1677_p6, 1, 0 }
0x318a   : > { %vm1639_vm10 = vmand %vm1635_vm8, %vm1638_vm7  ;;  %v1656_v6 = vsel %vm1635_vm8, %v1655_v5, 0.0  ;;  %s2772_s0 = sadd.s32 4294967295, %s4366_s1 }
0x318b   : > { %v2771_v8 = vsel %vm1639_vm10, 1.0, %v2973_v20  ;;  %v1657_v10 = vsel %vm637_vm9, %v1656_v6, 0.0  ;;  %v1681_v29 = vstv %s1680_s28 }
0x318c   : > { %1642 = vst.msk [vmem:[#allocation3 + $0x13] sm:$0x1] %vm637_vm9, %v2771_v8  ;;  %1658 = vadd.xlane.f32.xlu0 %v1657_v10  ;;  %vm1682_vm12 = vcmp.eq.s32.totalorder %v1681_v29, 1 }
0x31a0   : > { %1739 = vrot.lane.b32.xlu0 %v1737_v11, %s2974_s29 }
0x31a8   : > { %1779 = vrot.lane.b32.xlu0 %v1778_v13, %s2971_s15 }
0x31ff   : > { %v1659_v14 = vpop.xlane.xlu0 %1658 }
0x3200   : > { %v1660_v15 = vrot.slane %v1659_v14, 4 }
0x3202   : > { %v1661_v17 = vadd.f32 %v1660_v15, %v1659_v14 }
0x3204   : > { %v1662_v18 = vrot.slane %v1661_v17, 2 }
0x3206   : > { %v1663_v19 = vadd.f32 %v1662_v18, %v1661_v17 }
0x3208   : > { %v1664_v22 = vrot.slane %v1663_v19, 1 }
0x320a   : > { %v1665_v23 = vadd.f32 %v1664_v22, %v1663_v19 }
0x320c   : > { %2864 = vpush %v1665_v23 }
0x3212   : > { %v1740_v26 = vpop.permute.xlu0 %1739 }
0x3213   : > { %vm1742_vm15 = vcmp.lt.f32.partialorder %v3720_v36, %v1740_v26 }
0x3214   : > { %v1743_v48 = vsel %vm1742_vm15, 1.0, %v2973_v20 }
0x321a   : > { %v1780_v27 = vpop.permute.xlu0 %1779 }
0x321b   : > { %v1781_v28 = vsel %vm621_vm1, %v1780_v27, %v3748_v59 }
0x321c   : > { %1783 = vrot.lane.b32.xlu0 %v1781_v28, %s2974_s29 }
0x323d   : > { %s2865_s27 = spop %2864 }
0x323e   : > { %p1667_p5 = scmp.gt.f32.partialorder %s2865_s27, 0.5 }
0x3240   : > { %p1670_p9 = por %p1669_p7, %p1667_p5 }
0x3242   : > { %p1671_p10 = pnand %p1670_p9, %p1668_p8 }
0x3244   : > { %p1672_p11 = pneg %p1671_p10 }
0x3246   : > { %p1673_p12 = pnand %p1672_p11, %p1633_p13  ;;  %p1721_p13 = scmp.gt.s32.totalorder %s3121_s30, 17 }
0x3248   : > { %s4368_s1 = smov (!%p1673_p12, %s4366_s1), %s2772_s0 }
0x3249   : > { %v1678_v30 = vstv %s4368_s1  ;;  %p1713_p1 = scmp.eq.s32.totalorder %s4368_s1, 18  ;;  %p1712_p2 = scmp.ne.s32.totalorder %s4368_s1, 0 }
0x324a   : > { %vm1679_vm13 = vcmp.eq.s32.totalorder %v3093_v16, %v1678_v30  ;;  %s1724_s16 = scalar_select %p1721_p13, 1, 0 }
0x324b   : > { %vm1683_vm14 = vmand %vm1679_vm13, %vm1682_vm12  ;;  %v1700_v32 = vsel %vm1679_vm13, %v1699_v31, 0.0  ;;  %s2775_s17 = sadd.s32 4294967295, %s4368_s1 }
0x324c   : > { %v2774_v33 = vsel %vm1683_vm14, 1.0, %v2973_v20  ;;  %v1701_v34 = vsel %vm637_vm9, %v1700_v32, 0.0  ;;  %v1725_v46 = vstv %s1724_s16 }
0x324d   : > { %1686 = vst.msk [vmem:[#allocation3 + $0x12] sm:$0x1] %vm637_vm9, %v2774_v33  ;;  %1702 = vadd.xlane.f32.xlu1 %v1701_v34  ;;  %vm1726_vm2 = vcmp.eq.s32.totalorder %v1725_v46, 1  ;;  %v3879_v33 = vld [vmem:[#allocation2 + $0xb] sm:$0x1] }
0x3266   : > { %1820 = vrot.lane.b32.xlu1 %v3797_v25, %s2971_s15 }
0x328e   : > { %v1784_v0 = vpop.permute.xlu0 %1783 }
0x328f   : > { %vm1786_vm7 = vcmp.lt.f32.partialorder %v3748_v59, %v1784_v0  ;;  %v3910_v0 = vld [vmem:[#allocation2 + $0xa] sm:$0x1] }
0x3290   : > { %v1787_v3 = vsel %vm1786_vm7, 1.0, %v2973_v20 }
0x32c0   : > { %v1703_v35 = vpop.xlane.xlu1 %1702 }
0x32c1   : > { %v1704_v38 = vrot.slane %v1703_v35, 4 }
0x32c3   : > { %v1705_v39 = vadd.f32 %v1704_v38, %v1703_v35 }
0x32c5   : > { %v1706_v41 = vrot.slane %v1705_v39, 2 }
0x32c7   : > { %v1707_v42 = vadd.f32 %v1706_v41, %v1705_v39 }
0x32c9   : > { %v1708_v43 = vrot.slane %v1707_v42, 1 }
0x32cb   : > { %v1709_v44 = vadd.f32 %v1708_v43, %v1707_v42 }
0x32cd   : > { %2866 = vpush %v1709_v44 }
0x32d8   : > { %v1821_v52 = vpop.permute.xlu1 %1820 }
0x32d9   : > { %v1822_v36 = vsel %vm621_vm1, %v1821_v52, %v3797_v25 }
0x32fe   : > { %s2867_s9 = spop %2866 }
0x32ff   : > { %p1711_p0 = scmp.gt.f32.partialorder %s2867_s9, 0.5 }
0x3301   : > { %p1714_p3 = por %p1713_p1, %p1711_p0 }
0x3303   : > { %p1715_p4 = pnand %p1714_p3, %p1712_p2 }
0x3305   : > { %p1716_p5 = pneg %p1715_p4 }
0x3307   : > { %p1717_p7 = pnand %p1716_p5, %p1677_p6  ;;  %p1765_p6 = scmp.gt.s32.totalorder %s3121_s30, 16 }
0x3309   : > { %s4370_s1 = smov (!%p1717_p7, %s4368_s1), %s2775_s17 }
0x330a   : > { %v1722_v47 = vstv %s4370_s1  ;;  %p1757_p9 = scmp.eq.s32.totalorder %s4370_s1, 17  ;;  %p1756_p10 = scmp.ne.s32.totalorder %s4370_s1, 0 }
0x330b   : > { %vm1723_vm4 = vcmp.eq.s32.totalorder %v3093_v16, %v1722_v47  ;;  %s1768_s19 = scalar_select %p1765_p6, 1, 0 }
0x330c   : > { %vm1727_vm5 = vmand %vm1723_vm4, %vm1726_vm2  ;;  %v1744_v49 = vsel %vm1723_vm4, %v1743_v48, 0.0  ;;  %s2778_s20 = sadd.s32 4294967295, %s4370_s1 }
0x330d   : > { %v2777_v45 = vsel %vm1727_vm5, 1.0, %v2973_v20  ;;  %v1745_v51 = vsel %vm637_vm9, %v1744_v49, 0.0  ;;  %v1769_v1 = vstv %s1768_s19 }
0x330e   : > { %1730 = vst.msk [vmem:[#allocation3 + $0x11] sm:$0x1] %vm637_vm9, %v2777_v45  ;;  %1746 = vadd.xlane.f32.xlu2 %v1745_v51  ;;  %vm1770_vm8 = vcmp.eq.s32.totalorder %v1769_v1, 1 }
0x3326   : > { %1823 = vrot.lane.b32.xlu2 %v1822_v36, %s2971_s15 }
0x3381   : > { %v1747_v53 = vpop.xlane.xlu2 %1746 }
0x3382   : > { %v1748_v55 = vrot.slane %v1747_v53, 4 }
0x3384   : > { %v1749_v54 = vadd.f32 %v1748_v55, %v1747_v53 }
0x3386   : > { %v1750_v56 = vrot.slane %v1749_v54, 2 }
0x3388   : > { %v1751_v57 = vadd.f32 %v1750_v56, %v1749_v54 }
0x3389   : > { %v1824_v58 = vpop.permute.xlu2 %1823 }
0x338a   : > { %v1825_v60 = vsel %vm621_vm1, %v1824_v58, %v3797_v25  ;;  %v1752_v61 = vrot.slane %v1751_v57, 1 }
0x338b   : > { %1827 = vrot.lane.b32.xlu1 %v1825_v60, %s2974_s29 }
0x338c   : > { %v1753_v62 = vadd.f32 %v1752_v61, %v1751_v57 }
0x338e   : > { %2868 = vpush %v1753_v62 }
0x3393   : > { %1864 = vrot.lane.b32.xlu1 %v3825_v63, %s2971_s15 }
0x33bf   : > { %s2869_s18 = spop %2868 }
0x33c0   : > { %p1755_p8 = scmp.gt.f32.partialorder %s2869_s18, 0.5 }
0x33c2   : > { %p1758_p11 = por %p1757_p9, %p1755_p8 }
0x33c4   : > { %p1759_p12 = pnand %p1758_p11, %p1756_p10 }
0x33c6   : > { %p1760_p0 = pneg %p1759_p12 }
0x33c8   : > { %p1761_p1 = pnand %p1760_p0, %p1721_p13  ;;  %p1809_p13 = scmp.gt.s32.totalorder %s3121_s30, 15 }
0x33ca   : > { %s4372_s1 = smov (!%p1761_p1, %s4370_s1), %s2778_s20 }
0x33cb   : > { %v1766_v2 = vstv %s4372_s1  ;;  %p1801_p3 = scmp.eq.s32.totalorder %s4372_s1, 16  ;;  %p1800_p4 = scmp.ne.s32.totalorder %s4372_s1, 0 }
0x33cc   : > { %vm1767_vm10 = vcmp.eq.s32.totalorder %v3093_v16, %v1766_v2  ;;  %s1812_s23 = scalar_select %p1809_p13, 1, 0 }
0x33cd   : > { %v1788_v4 = vsel %vm1767_vm10, %v1787_v3, 0.0  ;;  %vm1771_vm11 = vmand %vm1767_vm10, %vm1770_vm8  ;;  %s2781_s24 = sadd.s32 4294967295, %s4372_s1 }
0x33ce   : > { %v1789_v5 = vsel %vm637_vm9, %v1788_v4, 0.0  ;;  %v2780_v6 = vsel %vm1771_vm11, 1.0, %v2973_v20  ;;  %v1813_v27 = vstv %s1812_s23 }
0x33cf   : > { %1790 = vadd.xlane.f32.xlu0 %v1789_v5  ;;  %1774 = vst.msk [vmem:[#allocation3 + $0x10] sm:$0x1] %vm637_vm9, %v2780_v6  ;;  %vm1814_vm13 = vcmp.eq.s32.totalorder %v1813_v27, 1 }
0x33d6   : > { %v2481_v8 = vld [vmem:[#allocation3 + $0x10] sm:$0xff] }
0x33d7   : > { %2830 = vmatpush.xpose.msk.msra.mxu3 %vm506_vm3, %v2481_v8 }
0x33fd   : > { %v1828_v59 = vpop.permute.xlu1 %1827 }
0x33fe   : > { %vm1830_vm12 = vcmp.lt.f32.partialorder %v3797_v25, %v1828_v59 }
0x33ff   : > { %v1831_v29 = vsel %vm1830_vm12, 1.0, %v2973_v20 }
0x3405   : > { %v1865_v10 = vpop.permute.xlu1 %1864 }
0x3406   : > { %v1866_v9 = vsel %vm621_vm1, %v1865_v10, %v3825_v63 }
0x3407   : > { %1867 = vrot.lane.b32.xlu2 %v1866_v9, %s2971_s15 }
0x340f   : > { %1908 = vrot.lane.b32.xlu2 %v3851_v7, %s2971_s15 }
0x3442   : > { %v1791_v11 = vpop.xlane.xlu0 %1790 }
0x3443   : > { %v1792_v12 = vrot.slane %v1791_v11, 4 }
0x3445   : > { %v1793_v13 = vadd.f32 %v1792_v12, %v1791_v11 }
0x3447   : > { %v1794_v14 = vrot.slane %v1793_v13, 2 }
0x3449   : > { %v1795_v15 = vadd.f32 %v1794_v14, %v1793_v13 }
0x344b   : > { %v1796_v17 = vrot.slane %v1795_v15, 1 }
0x344d   : > { %v1797_v18 = vadd.f32 %v1796_v17, %v1795_v15 }
0x344f   : > { %2870 = vpush %v1797_v18 }
0x3461   : > { %v1868_v19 = vpop.permute.xlu2 %1867 }
0x3462   : > { %v1869_v22 = vsel %vm621_vm1, %v1868_v19, %v3825_v63 }
0x3463   : > { %1871 = vrot.lane.b32.xlu0 %v1869_v22, %s2974_s29  ;;  %v3940_v22 = vld [vmem:[#allocation2 + $0x9] sm:$0x1] }
0x3469   : > { %v1909_v23 = vpop.permute.xlu2 %1908 }
0x346a   : > { %v1910_v26 = vsel %vm621_vm1, %v1909_v23, %v3851_v7 }
0x346b   : > { %1911 = vrot.lane.b32.xlu0 %v1910_v26, %s2971_s15 }
0x3480   : > { %s2871_s21 = spop %2870 }
0x3481   : > { %p1799_p2 = scmp.gt.f32.partialorder %s2871_s21, 0.5 }
0x3483   : > { %p1802_p5 = por %p1801_p3, %p1799_p2 }
0x3485   : > { %p1803_p7 = pnand %p1802_p5, %p1800_p4 }
0x3487   : > { %p1804_p8 = pneg %p1803_p7 }
0x3489   : > { %p1805_p9 = pnand %p1804_p8, %p1765_p6  ;;  %p1853_p6 = scmp.gt.s32.totalorder %s3121_s30, 14 }
0x348b   : > { %s4374_s1 = smov (!%p1805_p9, %s4372_s1), %s2781_s24 }
0x348c   : > { %v1810_v28 = vstv %s4374_s1  ;;  %p1845_p11 = scmp.eq.s32.totalorder %s4374_s1, 15  ;;  %p1844_p12 = scmp.ne.s32.totalorder %s4374_s1, 0 }
0x348d   : > { %vm1811_vm14 = vcmp.eq.s32.totalorder %v3093_v16, %v1810_v28  ;;  %s1856_s27 = scalar_select %p1853_p6, 1, 0 }
0x348e   : > { %vm1815_vm15 = vmand %vm1811_vm14, %vm1814_vm13  ;;  %v1832_v30 = vsel %vm1811_vm14, %v1831_v29, 0.0  ;;  %s2784_s28 = sadd.s32 4294967295, %s4374_s1 }
0x348f   : > { %v2783_v31 = vsel %vm1815_vm15, 1.0, %v2973_v20  ;;  %v1833_v32 = vsel %vm637_vm9, %v1832_v30, 0.0  ;;  %v1857_v47 = vstv %s1856_s27 }
0x3490   : > { %1818 = vst.msk [vmem:[#allocation3 + $0xf] sm:$0x1] %vm637_vm9, %v2783_v31  ;;  %1834 = vadd.xlane.f32.xlu1 %v1833_v32  ;;  %vm1858_vm4 = vcmp.eq.s32.totalorder %v1857_v47, 1 }
0x34a9   : > { %1952 = vrot.lane.b32.xlu1 %v3879_v33, %s2971_s15 }
0x34d5   : > { %v1872_v34 = vpop.permute.xlu0 %1871 }
0x34d6   : > { %vm1874_vm2 = vcmp.lt.f32.partialorder %v3825_v63, %v1872_v34 }
0x34d7   : > { %v1875_v49 = vsel %vm1874_vm2, 1.0, %v2973_v20 }
0x34dd   : > { %v1912_v25 = vpop.permute.xlu0 %1911 }
0x34de   : > { %v1913_v35 = vsel %vm621_vm1, %v1912_v25, %v3851_v7 }
0x34df   : > { %1915 = vrot.lane.b32.xlu0 %v1913_v35, %s2974_s29 }
0x3503   : > { %v1835_v38 = vpop.xlane.xlu1 %1834 }
0x3504   : > { %v1836_v39 = vrot.slane %v1835_v38, 4 }
0x3506   : > { %v1837_v41 = vadd.f32 %v1836_v39, %v1835_v38 }
0x3508   : > { %v1838_v42 = vrot.slane %v1837_v41, 2 }
0x350a   : > { %v1839_v43 = vadd.f32 %v1838_v42, %v1837_v41 }
0x350c   : > { %v1840_v44 = vrot.slane %v1839_v43, 1 }
0x350e   : > { %v1841_v46 = vadd.f32 %v1840_v44, %v1839_v43 }
0x3510   : > { %2872 = vpush %v1841_v46 }
0x351b   : > { %v1953_v36 = vpop.permute.xlu1 %1952 }
0x351c   : > { %v1954_v53 = vsel %vm621_vm1, %v1953_v36, %v3879_v33 }
0x3541   : > { %s2873_s26 = spop %2872 }
0x3542   : > { %p1843_p10 = scmp.gt.f32.partialorder %s2873_s26, 0.5 }
0x3544   : > { %p1846_p0 = por %p1845_p11, %p1843_p10 }
0x3546   : > { %p1847_p1 = pnand %p1846_p0, %p1844_p12 }
0x3548   : > { %p1848_p2 = pneg %p1847_p1 }
0x354a   : > { %p1849_p3 = pnand %p1848_p2, %p1809_p13  ;;  %p1897_p13 = scmp.gt.s32.totalorder %s3121_s30, 13 }
0x354c   : > { %s4376_s1 = smov (!%p1849_p3, %s4374_s1), %s2784_s28 }
0x354d   : > { %v1854_v48 = vstv %s4376_s1  ;;  %p1889_p5 = scmp.eq.s32.totalorder %s4376_s1, 14  ;;  %p1888_p7 = scmp.ne.s32.totalorder %s4376_s1, 0 }
0x354e   : > { %vm1855_vm5 = vcmp.eq.s32.totalorder %v3093_v16, %v1854_v48  ;;  %s1900_s9 = scalar_select %p1897_p13, 1, 0 }
0x354f   : > { %vm1859_vm7 = vmand %vm1855_vm5, %vm1858_vm4  ;;  %v1876_v45 = vsel %vm1855_vm5, %v1875_v49, 0.0  ;;  %s2787_s16 = sadd.s32 4294967295, %s4376_s1 }
0x3550   : > { %v2786_v51 = vsel %vm1859_vm7, 1.0, %v2973_v20  ;;  %v1877_v52 = vsel %vm637_vm9, %v1876_v45, 0.0  ;;  %v1901_v2 = vstv %s1900_s9 }
0x3551   : > { %1862 = vst.msk [vmem:[#allocation3 + $0xe] sm:$0x1] %vm637_vm9, %v2786_v51  ;;  %1878 = vadd.xlane.f32.xlu2 %v1877_v52  ;;  %v1916_v1 = vpop.permute.xlu0 %1915  ;;  %vm1902_vm10 = vcmp.eq.s32.totalorder %v1901_v2, 1  ;;  %v3984_v52 = vld [vmem:[#allocation2 + $0x8] sm:$0x1] }
0x3552   : > { %vm1918_vm8 = vcmp.lt.f32.partialorder %v3851_v7, %v1916_v1 }
0x3553   : > { %v1919_v4 = vsel %vm1918_vm8, 1.0, %v2973_v20 }
0x3569   : > { %1955 = vrot.lane.b32.xlu2 %v1954_v53, %s2971_s15 }
0x35c4   : > { %v1879_v55 = vpop.xlane.xlu2 %1878 }
0x35c5   : > { %v1880_v54 = vrot.slane %v1879_v55, 4 }
0x35c7   : > { %v1881_v56 = vadd.f32 %v1880_v54, %v1879_v55 }
0x35c9   : > { %v1882_v57 = vrot.slane %v1881_v56, 2 }
0x35cb   : > { %v1883_v58 = vadd.f32 %v1882_v57, %v1881_v56 }
0x35cc   : > { %v1956_v60 = vpop.permute.xlu2 %1955 }
0x35cd   : > { %v1957_v61 = vsel %vm621_vm1, %v1956_v60, %v3879_v33  ;;  %v1884_v62 = vrot.slane %v1883_v58, 1 }
0x35ce   : > { %1959 = vrot.lane.b32.xlu1 %v1957_v61, %s2974_s29 }
0x35cf   : > { %v1885_v63 = vadd.f32 %v1884_v62, %v1883_v58 }
0x35d1   : > { %2874 = vpush %v1885_v63  ;;  %v3991_v63 = vld [vmem:[#allocation2 + $0x7] sm:$0x1] }
0x35d6   : > { %1996 = vrot.lane.b32.xlu1 %v3910_v0, %s2971_s15 }
0x3602   : > { %s2875_s0 = spop %2874 }
0x3603   : > { %p1887_p4 = scmp.gt.f32.partialorder %s2875_s0, 0.5 }
0x3605   : > { %p1890_p8 = por %p1889_p5, %p1887_p4 }
0x3607   : > { %p1891_p9 = pnand %p1890_p8, %p1888_p7 }
0x3609   : > { %p1892_p10 = pneg %p1891_p9 }
0x360b   : > { %p1893_p11 = pnand %p1892_p10, %p1853_p6  ;;  %p1941_p6 = scmp.gt.s32.totalorder %s3121_s30, 12 }
0x360d   : > { %s4378_s1 = smov (!%p1893_p11, %s4376_s1), %s2787_s16 }
0x360e   : > { %v1898_v3 = vstv %s4378_s1  ;;  %p1933_p0 = scmp.eq.s32.totalorder %s4378_s1, 13  ;;  %p1932_p1 = scmp.ne.s32.totalorder %s4378_s1, 0 }
0x360f   : > { %vm1899_vm11 = vcmp.eq.s32.totalorder %v3093_v16, %v1898_v3  ;;  %s1944_s18 = scalar_select %p1941_p6, 1, 0 }
0x3610   : > { %v1920_v5 = vsel %vm1899_vm11, %v1919_v4, 0.0  ;;  %vm1903_vm12 = vmand %vm1899_vm11, %vm1902_vm10  ;;  %s2790_s19 = sadd.s32 4294967295, %s4378_s1 }
0x3611   : > { %v1921_v6 = vsel %vm637_vm9, %v1920_v5, 0.0  ;;  %v2789_v8 = vsel %vm1903_vm12, 1.0, %v2973_v20  ;;  %v1945_v23 = vstv %s1944_s18 }
0x3612   : > { %1922 = vadd.xlane.f32.xlu0 %v1921_v6  ;;  %1906 = vst.msk [vmem:[#allocation3 + $0xd] sm:$0x1] %vm637_vm9, %v2789_v8  ;;  %vm1946_vm14 = vcmp.eq.s32.totalorder %v1945_v23, 1 }
0x3640   : > { %v1960_v59 = vpop.permute.xlu1 %1959 }
0x3641   : > { %vm1962_vm13 = vcmp.lt.f32.partialorder %v3879_v33, %v1960_v59 }
0x3642   : > { %v1963_v27 = vsel %vm1962_vm13, 1.0, %v2973_v20 }
0x3648   : > { %v1997_v10 = vpop.permute.xlu1 %1996 }
0x3649   : > { %v1998_v9 = vsel %vm621_vm1, %v1997_v10, %v3910_v0 }
0x364a   : > { %1999 = vrot.lane.b32.xlu0 %v1998_v9, %s2971_s15  ;;  %v4019_v9 = vld [vmem:[#allocation2 + $0x6] sm:$0x1] }
0x3685   : > { %v1923_v7 = vpop.xlane.xlu0 %1922 }
0x3686   : > { %v1924_v11 = vrot.slane %v1923_v7, 4 }
0x3688   : > { %v1925_v12 = vadd.f32 %v1924_v11, %v1923_v7 }
0x368a   : > { %v1926_v13 = vrot.slane %v1925_v12, 2 }
0x368c   : > { %v1927_v14 = vadd.f32 %v1926_v13, %v1925_v12 }
0x368e   : > { %v1928_v15 = vrot.slane %v1927_v14, 1 }
0x3690   : > { %v1929_v17 = vadd.f32 %v1928_v15, %v1927_v14 }
0x3692   : > { %2876 = vpush %v1929_v17 }
0x36bc   : > { %v2000_v18 = vpop.permute.xlu0 %1999 }
0x36bd   : > { %v2001_v19 = vsel %vm621_vm1, %v2000_v18, %v3910_v0 }
0x36be   : > { %2003 = vrot.lane.b32.xlu2 %v2001_v19, %s2974_s29 }
0x36c3   : > { %s2877_s17 = spop %2876 }
0x36c4   : > { %p1931_p12 = scmp.gt.f32.partialorder %s2877_s17, 0.5 }
0x36c6   : > { %2040 = vrot.lane.b32.xlu2 %v3940_v22, %s2971_s15  ;;  %p1934_p2 = por %p1933_p0, %p1931_p12 }
0x36c8   : > { %p1935_p3 = pnand %p1934_p2, %p1932_p1 }
0x36ca   : > { %p1936_p4 = pneg %p1935_p3 }
0x36cc   : > { %p1937_p5 = pnand %p1936_p4, %p1897_p13  ;;  %p1985_p13 = scmp.gt.s32.totalorder %s3121_s30, 11 }
0x36ce   : > { %s4380_s1 = smov (!%p1937_p5, %s4378_s1), %s2790_s19 }
0x36cf   : > { %v1942_v26 = vstv %s4380_s1  ;;  %p1977_p8 = scmp.eq.s32.totalorder %s4380_s1, 12  ;;  %p1976_p9 = scmp.ne.s32.totalorder %s4380_s1, 0 }
0x36d0   : > { %vm1943_vm15 = vcmp.eq.s32.totalorder %v3093_v16, %v1942_v26  ;;  %s1988_s21 = scalar_select %p1985_p13, 1, 0 }
0x36d1   : > { %vm1947_vm2 = vmand %vm1943_vm15, %vm1946_vm14  ;;  %v1964_v28 = vsel %vm1943_vm15, %v1963_v27, 0.0  ;;  %s2793_s23 = sadd.s32 4294967295, %s4380_s1 }
0x36d2   : > { %v2792_v29 = vsel %vm1947_vm2, 1.0, %v2973_v20  ;;  %v1965_v30 = vsel %vm637_vm9, %v1964_v28, 0.0  ;;  %v1989_v43 = vstv %s1988_s21 }
0x36d3   : > { %1950 = vst.msk [vmem:[#allocation3 + $0xc] sm:$0x1] %vm637_vm9, %v2792_v29  ;;  %1966 = vadd.xlane.f32.xlu1 %v1965_v30  ;;  %vm1990_vm5 = vcmp.eq.s32.totalorder %v1989_v43, 1 }
0x3718   : > { %v2004_v31 = vpop.permute.xlu2 %2003 }
0x3719   : > { %vm2006_vm4 = vcmp.lt.f32.partialorder %v3910_v0, %v2004_v31 }
0x371a   : > { %v2007_v46 = vsel %vm2006_vm4, 1.0, %v2973_v20 }
0x3720   : > { %v2041_v32 = vpop.permute.xlu2 %2040 }
0x3721   : > { %v2042_v33 = vsel %vm621_vm1, %v2041_v32, %v3940_v22 }
0x3722   : > { %2043 = vrot.lane.b32.xlu0 %v2042_v33, %s2971_s15  ;;  %v4047_v33 = vld [vmem:[#allocation2 + $0x5] sm:$0x1] }
0x3746   : > { %v1967_v34 = vpop.xlane.xlu1 %1966 }
0x3747   : > { %v1968_v25 = vrot.slane %v1967_v34, 4 }
0x3749   : > { %v1969_v35 = vadd.f32 %v1968_v25, %v1967_v34 }
0x374b   : > { %v1970_v38 = vrot.slane %v1969_v35, 2 }
0x374d   : > { %v1971_v39 = vadd.f32 %v1970_v38, %v1969_v35 }
0x374f   : > { %v1972_v41 = vrot.slane %v1971_v39, 1 }
0x3751   : > { %v1973_v42 = vadd.f32 %v1972_v41, %v1971_v39 }
0x3753   : > { %2878 = vpush %v1973_v42 }
0x3784   : > { %s2879_s20 = spop %2878 }
0x3785   : > { %p1975_p7 = scmp.gt.f32.partialorder %s2879_s20, 0.5 }
0x3787   : > { %p1978_p10 = por %p1977_p8, %p1975_p7 }
0x3789   : > { %p1979_p11 = pnand %p1978_p10, %p1976_p9 }
0x378b   : > { %p1980_p12 = pneg %p1979_p11 }
0x378d   : > { %p1981_p0 = pnand %p1980_p12, %p1941_p6  ;;  %p2029_p6 = scmp.gt.s32.totalorder %s3121_s30, 10 }
0x378f   : > { %s4382_s1 = smov (!%p1981_p0, %s4380_s1), %s2793_s23 }
0x3790   : > { %v1986_v44 = vstv %s4382_s1  ;;  %p2021_p2 = scmp.eq.s32.totalorder %s4382_s1, 11  ;;  %p2020_p3 = scmp.ne.s32.totalorder %s4382_s1, 0 }
0x3791   : > { %vm1987_vm7 = vcmp.eq.s32.totalorder %v3093_v16, %v1986_v44  ;;  %s2032_s26 = scalar_select %p2029_p6, 1, 0 }
0x3792   : > { %vm1991_vm8 = vmand %vm1987_vm7, %vm1990_vm5  ;;  %v2008_v49 = vsel %vm1987_vm7, %v2007_v46, 0.0  ;;  %s2796_s27 = sadd.s32 4294967295, %s4382_s1 }
0x3793   : > { %v2795_v45 = vsel %vm1991_vm8, 1.0, %v2973_v20  ;;  %v2009_v51 = vsel %vm637_vm9, %v2008_v49, 0.0  ;;  %v2033_v0 = vstv %s2032_s26 }
0x3794   : > { %v2044_v47 = vpop.permute.xlu0 %2043  ;;  %1994 = vst.msk [vmem:[#allocation3 + $0xb] sm:$0x1] %vm637_vm9, %v2795_v45  ;;  %2010 = vadd.xlane.f32.xlu2 %v2009_v51  ;;  %vm2034_vm11 = vcmp.eq.s32.totalorder %v2033_v0, 1 }
0x3795   : > { %v2045_v48 = vsel %vm621_vm1, %v2044_v47, %v3940_v22 }
0x3796   : > { %2047 = vrot.lane.b32.xlu0 %v2045_v48, %s2974_s29 }
0x379e   : > { %2084 = vrot.lane.b32.xlu0 %v3984_v52, %s2971_s15 }
0x3807   : > { %v2011_v53 = vpop.xlane.xlu2 %2010 }
0x3808   : > { %v2048_v36 = vpop.permute.xlu0 %2047  ;;  %v2012_v55 = vrot.slane %v2011_v53, 4 }
0x3809   : > { %vm2050_vm10 = vcmp.lt.f32.partialorder %v3940_v22, %v2048_v36 }
0x380a   : > { %v2013_v54 = vadd.f32 %v2012_v55, %v2011_v53  ;;  %v2051_v2 = vsel %vm2050_vm10, 1.0, %v2973_v20 }
0x380c   : > { %v2014_v56 = vrot.slane %v2013_v54, 2 }
0x380e   : > { %v2015_v60 = vadd.f32 %v2014_v56, %v2013_v54  ;;  %v4079_v54 = vld [vmem:[#allocation2 + $0x4] sm:$0x1] }
0x3810   : > { %v2085_v57 = vpop.permute.xlu0 %2084  ;;  %v2016_v61 = vrot.slane %v2015_v60, 1 }
0x3811   : > { %v2086_v58 = vsel %vm621_vm1, %v2085_v57, %v3984_v52 }
0x3812   : > { %2087 = vrot.lane.b32.xlu0 %v2086_v58, %s2971_s15  ;;  %v2017_v62 = vadd.f32 %v2016_v61, %v2015_v60 }
0x3814   : > { %2880 = vpush %v2017_v62 }
0x381a   : > { %2128 = vrot.lane.b32.xlu0 %v3991_v63, %s2971_s15 }
0x3845   : > { %s2881_s24 = spop %2880 }
0x3846   : > { %p2019_p1 = scmp.gt.f32.partialorder %s2881_s24, 0.5 }
0x3848   : > { %p2022_p4 = por %p2021_p2, %p2019_p1 }
0x384a   : > { %p2023_p5 = pnand %p2022_p4, %p2020_p3 }
0x384c   : > { %p2024_p7 = pneg %p2023_p5 }
0x384e   : > { %p2025_p8 = pnand %p2024_p7, %p1985_p13  ;;  %p2073_p13 = scmp.gt.s32.totalorder %s3121_s30, 9 }
0x3850   : > { %s4384_s1 = smov (!%p2025_p8, %s4382_s1), %s2796_s27 }
0x3851   : > { %v2030_v1 = vstv %s4384_s1  ;;  %p2065_p10 = scmp.eq.s32.totalorder %s4384_s1, 10  ;;  %p2064_p11 = scmp.ne.s32.totalorder %s4384_s1, 0 }
0x3852   : > { %vm2031_vm12 = vcmp.eq.s32.totalorder %v3093_v16, %v2030_v1  ;;  %s2076_s0 = scalar_select %p2073_p13, 1, 0 }
0x3853   : > { %v2052_v3 = vsel %vm2031_vm12, %v2051_v2, 0.0  ;;  %vm2035_vm13 = vmand %vm2031_vm12, %vm2034_vm11  ;;  %s2799_s9 = sadd.s32 4294967295, %s4384_s1 }
0x3854   : > { %v2053_v4 = vsel %vm637_vm9, %v2052_v3, 0.0  ;;  %v2798_v5 = vsel %vm2035_vm13, 1.0, %v2973_v20  ;;  %v2077_v26 = vstv %s2076_s0 }
0x3855   : > { %2054 = vadd.xlane.f32.xlu1 %v2053_v4  ;;  %2038 = vst.msk [vmem:[#allocation3 + $0xa] sm:$0x1] %vm637_vm9, %v2798_v5  ;;  %vm2078_vm15 = vcmp.eq.s32.totalorder %v2077_v26, 1 }
0x3884   : > { %v2088_v6 = vpop.permute.xlu0 %2087 }
0x3885   : > { %v2089_v8 = vsel %vm621_vm1, %v2088_v6, %v3984_v52 }
0x3886   : > { %2091 = vrot.lane.b32.xlu1 %v2089_v8, %s2974_s29 }
0x388c   : > { %v2129_v59 = vpop.permute.xlu0 %2128 }
0x388d   : > { %v2130_v10 = vsel %vm621_vm1, %v2129_v59, %v3991_v63 }
0x388e   : > { %2131 = vrot.lane.b32.xlu0 %v2130_v10, %s2971_s15 }
0x3896   : > { %2172 = vrot.lane.b32.xlu0 %v4019_v9, %s2971_s15 }
0x38c8   : > { %v2055_v7 = vpop.xlane.xlu1 %2054 }
0x38c9   : > { %v2056_v11 = vrot.slane %v2055_v7, 4 }
0x38cb   : > { %v2057_v12 = vadd.f32 %v2056_v11, %v2055_v7 }
0x38cd   : > { %v2058_v13 = vrot.slane %v2057_v12, 2 }
0x38cf   : > { %v2059_v14 = vadd.f32 %v2058_v13, %v2057_v12 }
0x38d1   : > { %v2060_v15 = vrot.slane %v2059_v14, 1 }
0x38d3   : > { %v2061_v17 = vadd.f32 %v2060_v15, %v2059_v14 }
0x38d5   : > { %2882 = vpush %v2061_v17 }
0x38f8   : > { %v2092_v23 = vpop.permute.xlu1 %2091 }
0x38f9   : > { %vm2094_vm14 = vcmp.lt.f32.partialorder %v3984_v52, %v2092_v23 }
0x38fa   : > { %v2095_v28 = vsel %vm2094_vm14, 1.0, %v2973_v20 }
0x3900   : > { %v2132_v18 = vpop.permute.xlu0 %2131 }
0x3901   : > { %v2133_v32 = vsel %vm621_vm1, %v2132_v18, %v3991_v63 }
0x3906   : > { %s2883_s28 = spop %2882 }
0x3907   : > { %p2063_p9 = scmp.gt.f32.partialorder %s2883_s28, 0.5 }
0x3908   : > { %v2173_v19 = vpop.permute.xlu0 %2172 }
0x3909   : > { %v2174_v22 = vsel %vm621_vm1, %v2173_v19, %v4019_v9  ;;  %p2066_p12 = por %p2065_p10, %p2063_p9 }
0x390a   : > { %2175 = vrot.lane.b32.xlu0 %v2174_v22, %s2971_s15  ;;  %v4110_v22 = vld [vmem:[#allocation2 + $0x3] sm:$0x1] }
0x390b   : > { %p2067_p0 = pnand %p2066_p12, %p2064_p11 }
0x390d   : > { %p2068_p1 = pneg %p2067_p0 }
0x390f   : > { %p2069_p2 = pnand %p2068_p1, %p2029_p6  ;;  %p2117_p6 = scmp.gt.s32.totalorder %s3121_s30, 8 }
0x3911   : > { %s4386_s1 = smov (!%p2069_p2, %s4384_s1), %s2799_s9 }
0x3912   : > { %v2074_v27 = vstv %s4386_s1  ;;  %p2109_p4 = scmp.eq.s32.totalorder %s4386_s1, 9  ;;  %p2108_p5 = scmp.ne.s32.totalorder %s4386_s1, 0 }
0x3913   : > { %vm2075_vm2 = vcmp.eq.s32.totalorder %v3093_v16, %v2074_v27  ;;  %s2120_s17 = scalar_select %p2117_p6, 1, 0 }
0x3914   : > { %vm2079_vm4 = vmand %vm2075_vm2, %vm2078_vm15  ;;  %v2096_v29 = vsel %vm2075_vm2, %v2095_v28, 0.0  ;;  %s2802_s18 = sadd.s32 4294967295, %s4386_s1 }
0x3915   : > { %v2801_v30 = vsel %vm2079_vm4, 1.0, %v2973_v20  ;;  %v2097_v31 = vsel %vm637_vm9, %v2096_v29, 0.0  ;;  %v2121_v49 = vstv %s2120_s17 }
0x3916   : > { %2082 = vst.msk [vmem:[#allocation3 + $0x9] sm:$0x1] %vm637_vm9, %v2801_v30  ;;  %2098 = vadd.xlane.f32.xlu2 %v2097_v31  ;;  %vm2122_vm7 = vcmp.eq.s32.totalorder %v2121_v49, 1 }
0x392e   : > { %2135 = vrot.lane.b32.xlu2 %v2133_v32, %s2974_s29 }
0x3936   : > { %2216 = vrot.lane.b32.xlu2 %v4047_v33, %s2971_s15 }
0x397c   : > { %v2176_v34 = vpop.permute.xlu0 %2175 }
0x397d   : > { %v2177_v25 = vsel %vm621_vm1, %v2176_v34, %v4019_v9 }
0x397e   : > { %2179 = vrot.lane.b32.xlu0 %v2177_v25, %s2974_s29  ;;  %v4135_v25 = vld [vmem:[#allocation2 + $0x2] sm:$0x1] }
0x3989   : > { %v2099_v35 = vpop.xlane.xlu2 %2098 }
0x398a   : > { %v2100_v38 = vrot.slane %v2099_v35, 4 }
0x398c   : > { %v2101_v39 = vadd.f32 %v2100_v38, %v2099_v35 }
0x398e   : > { %v2102_v41 = vrot.slane %v2101_v39, 2 }
0x3990   : > { %v2103_v42 = vadd.f32 %v2102_v41, %v2101_v39 }
0x3991   : > { %v2136_v43 = vpop.permute.xlu2 %2135 }
0x3992   : > { %v2104_v44 = vrot.slane %v2103_v42, 1  ;;  %vm2138_vm5 = vcmp.lt.f32.partialorder %v3991_v63, %v2136_v43 }
0x3993   : > { %v2139_v51 = vsel %vm2138_vm5, 1.0, %v2973_v20 }
0x3994   : > { %v2105_v46 = vadd.f32 %v2104_v44, %v2103_v42 }
0x3996   : > { %2884 = vpush %v2105_v46 }
0x3999   : > { %v2217_v47 = vpop.permute.xlu2 %2216 }
0x399a   : > { %v2218_v48 = vsel %vm621_vm1, %v2217_v47, %v4047_v33 }
0x399b   : > { %2219 = vrot.lane.b32.xlu2 %v2218_v48, %s2971_s15 }
0x39c7   : > { %s2885_s16 = spop %2884 }
0x39c8   : > { %p2107_p3 = scmp.gt.f32.partialorder %s2885_s16, 0.5 }
0x39ca   : > { %p2110_p7 = por %p2109_p4, %p2107_p3 }
0x39cc   : > { %p2111_p8 = pnand %p2110_p7, %p2108_p5 }
0x39ce   : > { %p2112_p9 = pneg %p2111_p8 }
0x39d0   : > { %p2113_p10 = pnand %p2112_p9, %p2073_p13  ;;  %p2161_p13 = scmp.gt.s32.totalorder %s3121_s30, 7 }
0x39d2   : > { %s4388_s1 = smov (!%p2113_p10, %s4386_s1), %s2802_s18 }
0x39d3   : > { %v2118_v45 = vstv %s4388_s1  ;;  %p2153_p12 = scmp.eq.s32.totalorder %s4388_s1, 8  ;;  %p2152_p0 = scmp.ne.s32.totalorder %s4388_s1, 0 }
0x39d4   : > { %vm2119_vm8 = vcmp.eq.s32.totalorder %v3093_v16, %v2118_v45  ;;  %s2164_s20 = scalar_select %p2161_p13, 1, 0 }
0x39d5   : > { %vm2123_vm10 = vmand %vm2119_vm8, %vm2122_vm7  ;;  %v2140_v52 = vsel %vm2119_vm8, %v2139_v51, 0.0  ;;  %s2805_s21 = sadd.s32 4294967295, %s4388_s1 }
0x39d6   : > { %v2804_v36 = vsel %vm2123_vm10, 1.0, %v2973_v20  ;;  %v2141_v53 = vsel %vm637_vm9, %v2140_v52, 0.0  ;;  %v2165_v3 = vstv %s2164_s20  ;;  %s417_s20 = scalar_lea.vmem %s4332_s5, %s3064_s14 }
0x39d7   : > { %2126 = vst.msk [vmem:[#allocation3 + $0x8] sm:$0x1] %vm637_vm9, %v2804_v36  ;;  %2142 = vadd.xlane.f32.xlu1 %v2141_v53  ;;  %vm2166_vm12 = vcmp.eq.s32.totalorder %v2165_v3, 1 }
0x39de   : > { %v4075_v55 = vld [vmem:[#allocation3 + $0x8] sm:$0xff] }
0x39df   : > { %2831 = vmatpush.xpose.msk.msra.mxu3 %vm506_vm3, %v4075_v55 }
0x39f0   : > { %2260 = vrot.lane.b32.xlu1 %v4079_v54, %s2971_s15  ;;  %v2180_v2 = vpop.permute.xlu0 %2179 }
0x39f1   : > { %vm2182_vm11 = vcmp.lt.f32.partialorder %v4019_v9, %v2180_v2 }
0x39f2   : > { %v2183_v5 = vsel %vm2182_vm11, 1.0, %v2973_v20 }
0x39f5   : > { %v2220_v56 = vpop.permute.xlu2 %2219 }
0x39f6   : > { %v2221_v57 = vsel %vm621_vm1, %v2220_v56, %v4047_v33 }
0x39f7   : > { %2223 = vrot.lane.b32.xlu2 %v2221_v57, %s2974_s29 }
0x3a4a   : > { %v2143_v58 = vpop.xlane.xlu1 %2142 }
0x3a4b   : > { %v2144_v60 = vrot.slane %v2143_v58, 4 }
0x3a4d   : > { %v2145_v61 = vadd.f32 %v2144_v60, %v2143_v58  ;;  %v4166_v60 = vld [vmem:[#allocation2 + $0x1] sm:$0x1] }
0x3a4f   : > { %v2146_v62 = vrot.slane %v2145_v61, 2 }
0x3a51   : > { %v2147_v63 = vadd.f32 %v2146_v62, %v2145_v61  ;;  %v2224_v23 = vpop.permute.xlu2 %2223 }
0x3a52   : > { %vm2226_vm15 = vcmp.lt.f32.partialorder %v4047_v33, %v2224_v23  ;;  %v2927_v23 = vld [vmem:[%s417_s20] ss:$0 sm:$0xff] }
0x3a53   : > { %v2148_v0 = vrot.slane %v2147_v63, 1  ;;  %v2227_v28 = vsel %vm2226_vm15, 1.0, %v2973_v20 }
0x3a55   : > { %v2149_v1 = vadd.f32 %v2148_v0, %v2147_v63 }
0x3a57   : > { %2886 = vpush %v2149_v1 }
0x3a62   : > { %v2261_v10 = vpop.permute.xlu1 %2260 }
0x3a63   : > { %v2262_v9 = vsel %vm621_vm1, %v2261_v10, %v4079_v54 }
0x3a88   : > { %s2887_s19 = spop %2886 }
0x3a89   : > { %p2151_p11 = scmp.gt.f32.partialorder %s2887_s19, 0.5 }
0x3a8b   : > { %p2154_p1 = por %p2153_p12, %p2151_p11 }
0x3a8d   : > { %p2155_p2 = pnand %p2154_p1, %p2152_p0 }
0x3a8f   : > { %p2156_p3 = pneg %p2155_p2 }
0x3a91   : > { %p2157_p4 = pnand %p2156_p3, %p2117_p6  ;;  %p2205_p6 = scmp.gt.s32.totalorder %s3121_s30, 6 }
0x3a93   : > { %s4390_s1 = smov (!%p2157_p4, %s4388_s1), %s2805_s21 }
0x3a94   : > { %v2162_v4 = vstv %s4390_s1  ;;  %p2197_p7 = scmp.eq.s32.totalorder %s4390_s1, 7  ;;  %p2196_p8 = scmp.ne.s32.totalorder %s4390_s1, 0 }
0x3a95   : > { %vm2163_vm13 = vcmp.eq.s32.totalorder %v3093_v16, %v2162_v4  ;;  %s2208_s24 = scalar_select %p2205_p6, 1, 0 }
0x3a96   : > { %vm2167_vm14 = vmand %vm2163_vm13, %vm2166_vm12  ;;  %v2184_v6 = vsel %vm2163_vm13, %v2183_v5, 0.0  ;;  %s2808_s26 = sadd.s32 4294967295, %s4390_s1 }
0x3a97   : > { %v2807_v8 = vsel %vm2167_vm14, 1.0, %v2973_v20  ;;  %v2185_v59 = vsel %vm637_vm9, %v2184_v6, 0.0  ;;  %v2209_v26 = vstv %s2208_s24 }
0x3a98   : > { %2170 = vst.msk [vmem:[#allocation3 + $0x7] sm:$0x1] %vm637_vm9, %v2807_v8  ;;  %2186 = vadd.xlane.f32.xlu0 %v2185_v59  ;;  %vm2210_vm2 = vcmp.eq.s32.totalorder %v2209_v26, 1 }
0x3aac   : > { %2263 = vrot.lane.b32.xlu0 %v2262_v9, %s2971_s15 }
0x3b0b   : > { %v2187_v7 = vpop.xlane.xlu0 %2186 }
0x3b0c   : > { %v2188_v11 = vrot.slane %v2187_v7, 4 }
0x3b0e   : > { %v2189_v12 = vadd.f32 %v2188_v11, %v2187_v7 }
0x3b10   : > { %v2190_v13 = vrot.slane %v2189_v12, 2 }
0x3b12   : > { %v2191_v14 = vadd.f32 %v2190_v13, %v2189_v12  ;;  %v4193_v12 = vld [vmem:[#allocation2] sm:$0x1] }
0x3b14   : > { %v2192_v15 = vrot.slane %v2191_v14, 1 }
0x3b16   : > { %v2193_v17 = vadd.f32 %v2192_v15, %v2191_v14  ;;  %v429_v14 = vld [vmem:[%s417_s20] sm:$0x1] }
0x3b17   : > { %v2562_v15 = vmul.f32 0.9999, %v429_v14 }
0x3b18   : > { %2888 = vpush %v2193_v17 }
0x3b1e   : > { %v2264_v18 = vpop.permute.xlu0 %2263 }
0x3b1f   : > { %v2265_v19 = vsel %vm621_vm1, %v2264_v18, %v4079_v54 }
0x3b20   : > { %2267 = vrot.lane.b32.xlu1 %v2265_v19, %s2974_s29  ;;  %v2563_v19 = vsub.f32 1.0, %v2562_v15 }
0x3b28   : > { %2304 = vrot.lane.b32.xlu1 %v4110_v22, %s2971_s15 }
0x3b49   : > { %s2889_s23 = spop %2888 }
0x3b4a   : > { %p2195_p5 = scmp.gt.f32.partialorder %s2889_s23, 0.5 }
0x3b4c   : > { %p2198_p9 = por %p2197_p7, %p2195_p5 }
0x3b4e   : > { %p2199_p10 = pnand %p2198_p9, %p2196_p8 }
0x3b50   : > { %p2200_p11 = pneg %p2199_p10 }
0x3b52   : > { %p2201_p12 = pnand %p2200_p11, %p2161_p13  ;;  %p2249_p13 = scmp.gt.s32.totalorder %s3121_s30, 5 }
0x3b54   : > { %s4392_s1 = smov (!%p2201_p12, %s4390_s1), %s2808_s26 }
0x3b55   : > { %v2206_v27 = vstv %s4392_s1  ;;  %p2241_p1 = scmp.eq.s32.totalorder %s4392_s1, 6  ;;  %p2240_p2 = scmp.ne.s32.totalorder %s4392_s1, 0 }
0x3b56   : > { %vm2207_vm4 = vcmp.eq.s32.totalorder %v3093_v16, %v2206_v27  ;;  %s2252_s28 = scalar_select %p2249_p13, 1, 0  ;;  %v473_v27 = vld [vmem:[#allocation7] sm:$0x1] }
0x3b57   : > { %vm2211_vm5 = vmand %vm2207_vm4, %vm2210_vm2  ;;  %v2228_v29 = vsel %vm2207_vm4, %v2227_v28, 0.0  ;;  %s2811_s0 = sadd.s32 4294967295, %s4392_s1 }
0x3b58   : > { %v2810_v30 = vsel %vm2211_vm5, 1.0, %v2973_v20  ;;  %v2229_v31 = vsel %vm637_vm9, %v2228_v29, 0.0  ;;  %v2253_v48 = vstv %s2252_s28 }
0x3b59   : > { %2214 = vst.msk [vmem:[#allocation3 + $0x6] sm:$0x1] %vm637_vm9, %v2810_v30  ;;  %2230 = vadd.xlane.f32.xlu2 %v2229_v31  ;;  %vm2254_vm8 = vcmp.eq.s32.totalorder %v2253_v48, 1 }
0x3b92   : > { %v2268_v32 = vpop.permute.xlu1 %2267 }
0x3b93   : > { %vm2270_vm7 = vcmp.lt.f32.partialorder %v4079_v54, %v2268_v32 }
0x3b94   : > { %v2271_v52 = vsel %vm2270_vm7, 1.0, %v2973_v20 }
0x3b9a   : > { %v2305_v33 = vpop.permute.xlu1 %2304 }
0x3b9b   : > { %v2306_v34 = vsel %vm621_vm1, %v2305_v33, %v4110_v22 }
0x3b9c   : > { %2307 = vrot.lane.b32.xlu1 %v2306_v34, %s2971_s15 }
0x3ba4   : > { %2348 = vrot.lane.b32.xlu1 %v4135_v25, %s2971_s15 }
0x3bcc   : > { %v2231_v35 = vpop.xlane.xlu2 %2230 }
0x3bcd   : > { %v2232_v38 = vrot.slane %v2231_v35, 4 }
0x3bcf   : > { %v2233_v39 = vadd.f32 %v2232_v38, %v2231_v35 }
0x3bd1   : > { %v2234_v41 = vrot.slane %v2233_v39, 2 }
0x3bd3   : > { %v2235_v42 = vadd.f32 %v2234_v41, %v2233_v39 }
0x3bd5   : > { %v2236_v43 = vrot.slane %v2235_v42, 1 }
0x3bd7   : > { %v2237_v44 = vadd.f32 %v2236_v43, %v2235_v42 }
0x3bd9   : > { %2890 = vpush %v2237_v44 }
0x3c0a   : > { %s2891_s27 = spop %2890 }
0x3c0b   : > { %p2239_p0 = scmp.gt.f32.partialorder %s2891_s27, 0.5 }
0x3c0d   : > { %p2242_p3 = por %p2241_p1, %p2239_p0 }
0x3c0e   : > { %v2308_v46 = vpop.permute.xlu1 %2307 }
0x3c0f   : > { %v2309_v47 = vsel %vm621_vm1, %v2308_v46, %v4110_v22  ;;  %p2243_p4 = pnand %p2242_p3, %p2240_p2 }
0x3c10   : > { %2311 = vrot.lane.b32.xlu2 %v2309_v47, %s2974_s29 }
0x3c11   : > { %p2244_p5 = pneg %p2243_p4 }
0x3c13   : > { %p2245_p7 = pnand %p2244_p5, %p2205_p6  ;;  %p2293_p6 = scmp.gt.s32.totalorder %s3121_s30, 4 }
0x3c15   : > { %s4394_s1 = smov (!%p2245_p7, %s4392_s1), %s2811_s0 }
0x3c16   : > { %v2349_v49 = vpop.permute.xlu1 %2348  ;;  %v2250_v51 = vstv %s4394_s1  ;;  %p2285_p9 = scmp.eq.s32.totalorder %s4394_s1, 5  ;;  %p2284_p10 = scmp.ne.s32.totalorder %s4394_s1, 0 }
0x3c17   : > { %v2350_v45 = vsel %vm621_vm1, %v2349_v49, %v4135_v25  ;;  %vm2251_vm10 = vcmp.eq.s32.totalorder %v3093_v16, %v2250_v51  ;;  %s2296_s16 = scalar_select %p2293_p6, 1, 0 }
0x3c18   : > { %2351 = vrot.lane.b32.xlu2 %v2350_v45, %s2971_s15  ;;  %vm2255_vm11 = vmand %vm2251_vm10, %vm2254_vm8  ;;  %v2272_v36 = vsel %vm2251_vm10, %v2271_v52, 0.0  ;;  %s2814_s17 = sadd.s32 4294967295, %s4394_s1 }
0x3c19   : > { %v2813_v53 = vsel %vm2255_vm11, 1.0, %v2973_v20  ;;  %v2273_v54 = vsel %vm637_vm9, %v2272_v36, 0.0  ;;  %v2297_v6 = vstv %s2296_s16 }
0x3c1a   : > { %2258 = vst.msk [vmem:[#allocation3 + $0x5] sm:$0x1] %vm637_vm9, %v2813_v53  ;;  %2274 = vadd.xlane.f32.xlu0 %v2273_v54  ;;  %vm2298_vm13 = vcmp.eq.s32.totalorder %v2297_v6, 1 }
0x3c6a   : > { %v2312_v56 = vpop.permute.xlu2 %2311 }
0x3c6b   : > { %vm2314_vm12 = vcmp.lt.f32.partialorder %v4110_v22, %v2312_v56  ;;  %v2565_v22 = vperm.slane %v2563_v19, 0 }
0x3c6c   : > { %v2315_v10 = vsel %vm2314_vm12, 1.0, %v2973_v20 }
0x3c72   : > { %v2352_v57 = vpop.permute.xlu2 %2351 }
0x3c73   : > { %v2353_v58 = vsel %vm621_vm1, %v2352_v57, %v4135_v25 }
0x3c74   : > { %2355 = vrot.lane.b32.xlu2 %v2353_v58, %s2974_s29 }
0x3c7c   : > { %2392 = vrot.lane.b32.xlu2 %v4166_v60, %s2971_s15 }
0x3c8d   : > { %v2275_v61 = vpop.xlane.xlu0 %2274 }
0x3c8e   : > { %v2276_v62 = vrot.slane %v2275_v61, 4 }
0x3c90   : > { %v2277_v63 = vadd.f32 %v2276_v62, %v2275_v61 }
0x3c92   : > { %v2278_v0 = vrot.slane %v2277_v63, 2 }
0x3c94   : > { %v2279_v1 = vadd.f32 %v2278_v0, %v2277_v63 }
0x3c96   : > { %v2280_v2 = vrot.slane %v2279_v1, 1 }
0x3c98   : > { %v2281_v3 = vadd.f32 %v2280_v2, %v2279_v1 }
0x3c9a   : > { %2892 = vpush %v2281_v3 }
0x3ccb   : > { %s2893_s9 = spop %2892 }
0x3ccc   : > { %p2283_p8 = scmp.gt.f32.partialorder %s2893_s9, 0.5 }
0x3cce   : > { %v4172_v4 = vpop.permute.xlu2 %2355  ;;  %p2286_p11 = por %p2285_p9, %p2283_p8 }
0x3ccf   : > { %vm2358_vm2 = vcmp.lt.f32.partialorder %v4135_v25, %v4172_v4 }
0x3cd0   : > { %p2287_p12 = pnand %p2286_p11, %p2284_p10  ;;  %v2359_v38 = vsel %vm2358_vm2, 1.0, %v2973_v20 }
0x3cd2   : > { %p2288_p0 = pneg %p2287_p12 }
0x3cd4   : > { %p2289_p1 = pnand %p2288_p0, %p2249_p13  ;;  %p2337_p13 = scmp.gt.s32.totalorder %s3121_s30, 3 }
0x3cd6   : > { %v2393_v5 = vpop.permute.xlu2 %2392  ;;  %s4396_s1 = smov (!%p2289_p1, %s4394_s1), %s2814_s17 }
0x3cd7   : > { %v2394_v8 = vsel %vm621_vm1, %v2393_v5, %v4166_v60  ;;  %v2294_v59 = vstv %s4396_s1  ;;  %p2329_p3 = scmp.eq.s32.totalorder %s4396_s1, 4  ;;  %p2328_p4 = scmp.ne.s32.totalorder %s4396_s1, 0 }
0x3cd8   : > { %2395 = vrot.lane.b32.xlu2 %v2394_v8, %s2971_s15  ;;  %vm2295_vm14 = vcmp.eq.s32.totalorder %v3093_v16, %v2294_v59  ;;  %s2340_s23 = scalar_select %p2337_p13, 1, 0 }
0x3cd9   : > { %vm2299_vm15 = vmand %vm2295_vm14, %vm2298_vm13  ;;  %v2316_v9 = vsel %vm2295_vm14, %v2315_v10, 0.0  ;;  %s2817_s24 = sadd.s32 4294967295, %s4396_s1 }
0x3cda   : > { %v2816_v7 = vsel %vm2299_vm15, 1.0, %v2973_v20  ;;  %v2317_v11 = vsel %vm637_vm9, %v2316_v9, 0.0  ;;  %v2341_v34 = vstv %s2340_s23  ;;  %s414_s23 = scalar_lea.vmem %s4331_s4, %s2720_s22 }
0x3cdb   : > { %2302 = vst.msk [vmem:[#allocation3 + $0x4] sm:$0x1] %vm637_vm9, %v2816_v7  ;;  %2318 = vadd.xlane.f32.xlu1 %v2317_v11  ;;  %vm2342_vm4 = vcmp.eq.s32.totalorder %v2341_v34, 1  ;;  %v2931_v34 = vld [vmem:[#allocation3 + $0x18] sm:$0xff] }
0x3ce0   : > { %2436 = vrot.lane.b32.xlu2 %v4193_v12, %s2971_s15 }
0x3d32   : > { %v2396_v13 = vpop.permute.xlu2 %2395 }
0x3d33   : > { %v2397_v25 = vsel %vm621_vm1, %v2396_v13, %v4166_v60 }
0x3d3a   : > { %v2437_v17 = vpop.permute.xlu2 %2436 }
0x3d3b   : > { %v2438_v18 = vsel %vm621_vm1, %v2437_v17, %v4193_v12 }
0x3d3c   : > { %2439 = vrot.lane.b32.xlu2 %v2438_v18, %s2971_s15  ;;  %v2582_v18 = vld [vmem:[%s4337_s11] sm:$0xff] }
0x3d44   : > { %2567 = vperm.xlu2 %2925, %v2565_v22  }
0x3d4c   : > { %2574 = vperm.xlu2 %2925, %v2927_v23  }
0x3d4e   : > { %v2319_v26 = vpop.xlane.xlu1 %2318 }
0x3d4f   : > { %v2320_v28 = vrot.slane %v2319_v26, 4 }
0x3d51   : > { %v2321_v29 = vadd.f32 %v2320_v28, %v2319_v26  ;;  %v2484_v28 = vsel %vm506_vm3, %v4075_v55, 0.0 }
0x3d53   : > { %v2322_v30 = vrot.slane %v2321_v29, 2 }
0x3d54   : > { %476 = vperm.xlu2 %2925, %v473_v27  }
0x3d55   : > { %v2323_v31 = vadd.f32 %v2322_v30, %v2321_v29 }
0x3d57   : > { %v2324_v32 = vrot.slane %v2323_v31, 1 }
0x3d59   : > { %v2325_v33 = vadd.f32 %v2324_v32, %v2323_v31  ;;  %v2930_v31 = vld [vmem:[#allocation3 + $0x10] sm:$0xff] }
0x3d5a   : > { %v2486_v32 = vsel %vm506_vm3, %v2930_v31, 0.0 }
0x3d5b   : > { %2894 = vpush %v2325_v33 }
0x3d5c   : > { %1089 = vrot.lane.b32.xlu2 %v3391_v50, %s2971_s15 }
0x3d8c   : > { %s2895_s21 = spop %2894 }
0x3d8d   : > { %p2327_p2 = scmp.gt.f32.partialorder %s2895_s21, 0.5 }
0x3d8f   : > { %p2330_p5 = por %p2329_p3, %p2327_p2 }
0x3d91   : > { %p2331_p7 = pnand %p2330_p5, %p2328_p4 }
0x3d93   : > { %p2332_p8 = pneg %p2331_p7 }
0x3d95   : > { %p2333_p9 = pnand %p2332_p8, %p2293_p6  ;;  %p2381_p6 = scmp.gt.s32.totalorder %s3121_s30, 2 }
0x3d96   : > { %v2440_v58 = vpop.permute.xlu2 %2439 }
0x3d97   : > { %s4398_s1 = smov (!%p2333_p9, %s4396_s1), %s2817_s24 }
0x3d98   : > { %v2338_v35 = vstv %s4398_s1  ;;  %p2373_p11 = scmp.eq.s32.totalorder %s4398_s1, 3  ;;  %p2372_p12 = scmp.ne.s32.totalorder %s4398_s1, 0 }
0x3d99   : > { %vm2339_vm5 = vcmp.eq.s32.totalorder %v3093_v16, %v2338_v35  ;;  %s2384_s27 = scalar_select %p2381_p6, 1, 0  ;;  %v2488_v35 = vsel %vm506_vm3, %v2931_v34, 0.0 }
0x3d9a   : > { %v2360_v39 = vsel %vm2339_vm5, %v2359_v38, 0.0  ;;  %vm2343_vm7 = vmand %vm2339_vm5, %vm2342_vm4  ;;  %s2820_s28 = sadd.s32 4294967295, %s4398_s1 }
0x3d9b   : > { %v2361_v41 = vsel %vm637_vm9, %v2360_v39, 0.0  ;;  %v2819_v42 = vsel %vm2343_vm7, 1.0, %v2973_v20  ;;  %v2385_v52 = vstv %s2384_s27 }
0x3d9c   : > { %2362 = vadd.xlane.f32.xlu0 %v2361_v41  ;;  %2346 = vst.msk [vmem:[#allocation3 + $0x3] sm:$0x1] %vm637_vm9, %v2819_v42  ;;  %vm2386_vm10 = vcmp.eq.s32.totalorder %v2385_v52, 1 }
0x3d9e   : > { %v2568_v26 = vpop.permute.xlu2 %2567 }
0x3da6   : > { %v2575_v41 = vpop.permute.xlu2 %2574 }
0x3db0   : > { %2399 = vrot.lane.b32.xlu0 %v2397_v25, %s2974_s29 }
0x3e0f   : > { %v2363_v43 = vpop.xlane.xlu0 %2362 }
0x3e10   : > { %v2364_v44 = vrot.slane %v2363_v43, 4 }
0x3e12   : > { %v2365_v46 = vadd.f32 %v2364_v44, %v2363_v43 }
0x3e14   : > { %v2366_v47 = vrot.slane %v2365_v46, 2 }
0x3e16   : > { %v2367_v48 = vadd.f32 %v2366_v47, %v2365_v46  ;;  %v477_v46 = vpop.permute.xlu2 %476 }
0x3e18   : > { %v2368_v49 = vrot.slane %v2367_v48, 1 }
0x3e1a   : > { %v2369_v45 = vadd.f32 %v2368_v49, %v2367_v48  ;;  %v479_v48 = vperm.slane %v477_v46, 0 }
0x3e1c   : > { %2896 = vpush %v2369_v45  ;;  %v501_v49 = vadd.f32 %v3123_v37, %v479_v48 }
0x3e22   : > { %v2400_v51 = vpop.permute.xlu0 %2399 }
0x3e23   : > { %vm2402_vm8 = vcmp.lt.f32.partialorder %v4166_v60, %v2400_v51  ;;  %v2441_v60 = vsel %vm621_vm1, %v2440_v58, %v4193_v12  ;;  %v503_v51 = vmul.f32 %v3104_v21, %v501_v49  ;;  %v2932_v58 = vld [vmem:[%s3081_s25] sm:$0xff] }
0x3e24   : > { %v2403_v53 = vsel %vm2402_vm8, 1.0, %v2973_v20  ;;  %v2577_v37 = vmul.f32 %v2932_v58, %v2575_v41  ;;  %vm437_vm8 = vcmp.lt.s32.totalorder %v3093_v16, %v3126_v40  ;;  %v1090_v40 = vpop.permute.xlu2 %1089 }
0x3e25   : > { %v1091_v31 = vsel %vm621_vm1, %v1090_v40, %v3391_v50 }
0x3e4d   : > { %s2897_s26 = spop %2896 }
0x3e4e   : > { %p2371_p10 = scmp.gt.f32.partialorder %s2897_s26, 0.5 }
0x3e50   : > { %p2374_p0 = por %p2373_p11, %p2371_p10 }
0x3e52   : > { %p2375_p1 = pnand %p2374_p0, %p2372_p12 }
0x3e54   : > { %p2376_p2 = pneg %p2375_p1 }
0x3e56   : > { %p2377_p3 = pnand %p2376_p2, %p2337_p13  ;;  %p2425_p13 = scmp.gt.s32.totalorder %s3121_s30, 1 }
0x3e58   : > { %s4400_s1 = smov (!%p2377_p3, %s4398_s1), %s2820_s28 }
0x3e59   : > { %v2382_v36 = vstv %s4400_s1  ;;  %p2417_p5 = scmp.eq.s32.totalorder %s4400_s1, 2  ;;  %p2416_p7 = scmp.ne.s32.totalorder %s4400_s1, 0 }
0x3e5a   : > { %vm2383_vm11 = vcmp.eq.s32.totalorder %v3093_v16, %v2382_v36  ;;  %s2428_s9 = scalar_select %p2425_p13, 1, 0 }
0x3e5b   : > { %vm2387_vm12 = vmand %vm2383_vm11, %vm2386_vm10  ;;  %v2404_v54 = vsel %vm2383_vm11, %v2403_v53, 0.0  ;;  %s2823_s16 = sadd.s32 4294967295, %s4400_s1 }
0x3e5c   : > { %v2822_v56 = vsel %vm2387_vm12, 1.0, %v2973_v20  ;;  %v2405_v57 = vsel %vm637_vm9, %v2404_v54, 0.0  ;;  %v2429_v5 = vstv %s2428_s9 }
0x3e5d   : > { %2390 = vst.msk [vmem:[#allocation3 + $0x2] sm:$0x1] %vm637_vm9, %v2822_v56  ;;  %2406 = vadd.xlane.f32.xlu1 %v2405_v57  ;;  %vm2430_vm14 = vcmp.eq.s32.totalorder %v2429_v5, 1  ;;  %v428_v56 = vld [vmem:[%s414_s23] sm:$0xff] }
0x3e5e   : > { %v2570_v57 = vmul.f32 %v2568_v26, %v428_v56 }
0x3e76   : > { %2443 = vrot.lane.b32.xlu1 %v2441_v60, %s2974_s29  ;;  %v2578_v60 = vadd.f32 %v2577_v37, %v2570_v57 }
0x3e7e   : > { %2585 = vperm.xlu1 %2926, %v2582_v18  }
0x3ed0   : > { %v2407_v61 = vpop.xlane.xlu1 %2406 }
0x3ed1   : > { %v2408_v62 = vrot.slane %v2407_v61, 4 }
0x3ed3   : > { %v2409_v63 = vadd.f32 %v2408_v62, %v2407_v61 }
0x3ed5   : > { %v2410_v0 = vrot.slane %v2409_v63, 2 }
0x3ed7   : > { %v2411_v1 = vadd.f32 %v2410_v0, %v2409_v63 }
0x3ed9   : > { %v2412_v2 = vrot.slane %v2411_v1, 1 }
0x3edb   : > { %v2413_v3 = vadd.f32 %v2412_v2, %v2411_v1  ;;  %v2723_v1 = vsel %vm437_vm8, 1.0, %v2973_v20 }
0x3edd   : > { %2898 = vpush %v2413_v3 }
0x3ee8   : > { %v2444_v4 = vpop.permute.xlu1 %2443 }
0x3ee9   : > { %vm2446_vm13 = vcmp.lt.f32.partialorder %v4193_v12, %v2444_v4 }
0x3eea   : > { %v2447_v8 = vsel %vm2446_vm13, 1.0, %v2973_v20 }
0x3ef0   : > { %v2586_v3 = vpop.permute.xlu1 %2585 }
0x3f0e   : > { %s2899_s0 = spop %2898 }
0x3f0f   : > { %p2415_p4 = scmp.gt.f32.partialorder %s2899_s0, 0.5  ;;  %s420_s0 = scalar_lea.vmem %s4338_s12, %s3064_s14 }
0x3f11   : > { %p2418_p8 = por %p2417_p5, %p2415_p4 }
0x3f13   : > { %p2419_p9 = pnand %p2418_p8, %p2416_p7 }
0x3f15   : > { %p2420_p10 = pneg %p2419_p9 }
0x3f17   : > { %p2421_p11 = pnand %p2420_p10, %p2381_p6  ;;  %p2469_p6 = scmp.gt.s32.totalorder %s3121_s30, 0 }
0x3f19   : > { %s4402_s1 = smov (!%p2421_p11, %s4400_s1), %s2823_s16 }
0x3f1a   : > { %v2426_v6 = vstv %s4402_s1  ;;  %p2461_p0 = scmp.eq.s32.totalorder %s4402_s1, 1  ;;  %p2460_p1 = scmp.ne.s32.totalorder %s4402_s1, 0 }
0x3f1b   : > { %vm2427_vm15 = vcmp.eq.s32.totalorder %v3093_v16, %v2426_v6  ;;  %s2472_s20 = scalar_select %p2469_p6, 1, 0 }
0x3f1c   : > { %vm2431_vm2 = vmand %vm2427_vm15, %vm2430_vm14  ;;  %v2448_v59 = vsel %vm2427_vm15, %v2447_v8, 0.0  ;;  %s2826_s21 = sadd.s32 4294967295, %s4402_s1 }
0x3f1d   : > { %v2825_v10 = vsel %vm2431_vm2, 1.0, %v2973_v20  ;;  %v2449_v9 = vsel %vm637_vm9, %v2448_v59, 0.0  ;;  %v2473_v19 = vstv %s2472_s20 }
0x3f1e   : > { %2434 = vst.msk [vmem:[#allocation3 + $0x1] sm:$0x1] %vm637_vm9, %v2825_v10  ;;  %2450 = vadd.xlane.f32.xlu0 %v2449_v9  ;;  %vm2474_vm4 = vcmp.eq.s32.totalorder %v2473_v19, 1 }
0x3f91   : > { %v2451_v7 = vpop.xlane.xlu0 %2450 }
0x3f92   : > { %v2452_v11 = vrot.slane %v2451_v7, 4 }
0x3f94   : > { %v2453_v12 = vadd.f32 %v2452_v11, %v2451_v7 }
0x3f96   : > { %v2454_v13 = vrot.slane %v2453_v12, 2 }
0x3f98   : > { %v2455_v14 = vadd.f32 %v2454_v13, %v2453_v12  ;;  %v2579_v12 = vmul.f32 0.9999, %v428_v56 }
0x3f9a   : > { %v2456_v15 = vrot.slane %v2455_v14, 1 }
0x3f9c   : > { %v2457_v17 = vadd.f32 %v2456_v15, %v2455_v14  ;;  %v2580_v15 = vsub.f32 %v2932_v58, %v2579_v12 }
0x3f9e   : > { %2900 = vpush %v2457_v17 }
0x3fcf   : > { %s2901_s19 = spop %2900 }
0x3fd0   : > { %p2459_p12 = scmp.gt.f32.partialorder %s2901_s19, 0.5 }
0x3fd2   : > { %p2462_p2 = por %p2461_p0, %p2459_p12 }
0x3fd4   : > { %p2463_p3 = pnand %p2462_p2, %p2460_p1 }
0x3fd6   : > { %p2464_p4 = pneg %p2463_p3 }
0x3fd8   : > { %p2465_p5 = pnand %p2464_p4, %p2425_p13 }
0x3fda   : > { %s4404_s1 = smov (!%p2465_p5, %s4402_s1), %s2826_s21 }
0x3fdb   : > { %v2470_v22 = vstv %s4404_s1 }
0x3fdc   : > { %vm2471_vm5 = vcmp.eq.s32.totalorder %v3093_v16, %v2470_v22 }
0x3fdd   : > { %vm2475_vm7 = vmand %vm2471_vm5, %vm2474_vm4 }
0x3fde   : > { %v2828_v23 = vsel %vm2475_vm7, 1.0, %v2973_v20 }
0x3fdf   : > { %2478 = vst.msk [vmem:[#allocation3] sm:$0x1] %vm637_vm9, %v2828_v23 }
0x3fe6   : > { %v2479_v27 = vld [vmem:[#allocation3] sm:$0xff] }
0x3fe7   : > { %v2483_v29 = vsel %vm506_vm3, %v2479_v27, 0.0  ;;  %2832 = vmatpush.xpose.msk.msra.mxu3 %vm506_vm3, %v2479_v27 }
0x3fe8   : > { %v2485_v30 = vadd.f32 %v2484_v28, %v2483_v29 }
0x3fea   : > { %v2487_v33 = vadd.f32 %v2486_v32, %v2485_v30  ;;  %2833 = vmatmul.msk.f32.vlgmr.msra.gmra.mxu3 %vm506_vm3, %v3107_v24 }
0x3fec   : > { %v2489_v38 = vadd.f32 %v2488_v35, %v2487_v33 }
0x3fee   : > { %v2490_v39 = vrot.slane %v2489_v38, 4 }
0x3ff0   : > { %v2491_v42 = vadd.f32 %v2490_v39, %v2489_v38 }
0x3ff2   : > { %v2492_v55 = vrot.slane %v2491_v42, 2 }
0x3ff4   : > { %v2493_v25 = vadd.f32 %v2492_v55, %v2491_v42 }
0x3ff6   : > { %v2494_v43 = vrot.slane %v2493_v25, 1 }
0x3ff8   : > { %v2495_v44 = vadd.f32 %v2494_v43, %v2493_v25 }
0x3ffa   : > { %v2496_v47 = vadd.f32 1e-08, %v2495_v44 }
0x3ffc   : > { %2928 = vlog2.f32 %v2496_v47 }
0x4002   : > { %v2929_v24 = vpop.eup %2928 }
0x4003   : > { %v2498_v45 = vmul.f32 0.6931472, %v2929_v24 }
0x4005   : > { %v2499_v52 = vmul.f32 %v3104_v21, %v2498_v45  ;;  %v2581_v21 = vld [vmem:[%s4336_s10] sm:$0xff] }
0x4007   : > { %v2500_v36 = vsub.f32 %v503_v51, %v2499_v52  ;;  %v1101_v51 = vld [vmem:[#allocation2 + $0x1f] sm:$0x1] }
0x4009   : > { %v2501_v53 = vmul.f32 %v2500_v36, %v2500_v36 }
0x400b   : > { %v2502_v54 = vsel %vm637_vm9, %v2501_v53, 0.0 }
0x400c   : > { %2503 = vadd.xlane.f32.xlu1 %v2502_v54 }
0x406d   : > { %v2544_v61 = vpop.f32.mrf.mxu3 }
0x406e   : > { %v2547_v62 = vsub.f32 %v2932_v58, %v2544_v61  ;;  %2605 = vmatpush.msrb.mxu0 %v2544_v61 }
0x4070   : > { %v2548_v63 = vmul.f32 %v2547_v62, %v2547_v62  ;;  %2606 = vmatpush.msrb.mxu0 %v2578_v60 }
0x4071   : > { %2834 = vmatmul.msk.f32.vlgmr.msrb.gmra.mxu0 %vm506_vm3, %v2581_v21  ;;  %vm2624_vm3 = vcmp.eq.s32.totalorder %v3093_v16, 1 }
0x4072   : > { %v2549_v0 = vadd.f32 1.837877, %v2548_v63 }
0x4074   : > { %v2550_v2 = vmul.f32 0.5, %v2549_v0 }
0x4076   : > { %v2551_v4 = vmul.f32 %v2723_v1, %v2550_v2 }
0x4078   : > { %v2552_v5 = vsel %vm447_vm0, %v2551_v4, 0.0 }
0x4079   : > { %2553 = vadd.xlane.f32.xlu2 %v2552_v5 }
0x407f   : > { %v2504_v6 = vpop.xlane.xlu1 %2503 }
0x4080   : > { %v2505_v8 = vrot.slane %v2504_v6, 4 }
0x4082   : > { %v2506_v59 = vadd.f32 %v2505_v8, %v2504_v6 }
0x4084   : > { %v2507_v10 = vrot.slane %v2506_v59, 2 }
0x4086   : > { %v2508_v9 = vadd.f32 %v2507_v10, %v2506_v59 }
0x4088   : > { %v2509_v7 = vrot.slane %v2508_v9, 1 }
0x408a   : > { %v2510_v11 = vadd.f32 %v2509_v7, %v2508_v9 }
0x408c   : > { %2902 = vpush %v2510_v11 }
0x40bd   : > { %s2903_s22 = spop %2902 }
0x40be   : > { %v2630_v46 = vstv %s2903_s22 }
0x40ec   : > { %v2554_v13 = vpop.xlane.xlu2 %2553 }
0x40ed   : > { %v2555_v14 = vrot.slane %v2554_v13, 4 }
0x40ee   : > { %v2608_v20 = vpop.f32.mrf.mxu0 }
0x40ef   : > { %v2556_v17 = vadd.f32 %v2555_v14, %v2554_v13  ;;  %v2609_v18 = vadd.f32 %v2608_v20, %v2586_v3 }
0x40f1   : > { %v2557_v19 = vrot.slane %v2556_v17, 2  ;;  %v2611_v22 = vsub.f32 %v2609_v18, %v2580_v15 }
0x40f3   : > { %v2558_v23 = vadd.f32 %v2557_v19, %v2556_v17  ;;  %v2612_v26 = vmul.f32 %v2611_v22, %v2611_v22 }
0x40f5   : > { %v2613_v27 = vmul.f32 %v2723_v1, %v2612_v26  ;;  %v2559_v28 = vrot.slane %v2558_v23, 1 }
0x40f7   : > { %v2614_v29 = vsel %vm447_vm0, %v2613_v27, 0.0  ;;  %v2560_v30 = vadd.f32 %v2559_v28, %v2558_v23  ;;  %vm2625_vm0 = vcmp.eq.s32.totalorder %v3093_v16, 2 }
0x40f8   : > { %2615 = vadd.xlane.f32.xlu0 %v2614_v29 }
0x40f9   : > { %2904 = vpush %v2560_v30 }
0x410c   : > { %1092 = vrot.lane.b32.xlu0 %v1091_v31, %s2971_s15 }
0x412a   : > { %s2905_s25 = spop %2904 }
0x412b   : > { %v2628_v43 = vstv %s2905_s25 }
0x416b   : > { %v2616_v32 = vpop.xlane.xlu0 %2615 }
0x416c   : > { %v2617_v33 = vrot.slane %v2616_v32, 4 }
0x416e   : > { %v2618_v34 = vadd.f32 %v2617_v33, %v2616_v32 }
0x4170   : > { %v2619_v35 = vrot.slane %v2618_v34, 2 }
0x4172   : > { %v2620_v38 = vadd.f32 %v2619_v35, %v2618_v34 }
0x4174   : > { %v2621_v39 = vrot.slane %v2620_v38, 1 }
0x4176   : > { %v2622_v41 = vadd.f32 %v2621_v39, %v2620_v38 }
0x4178   : > { %2906 = vpush %v2622_v41 }
0x417e   : > { %v1093_v42 = vpop.permute.xlu0 %1092 }
0x417f   : > { %v1094_v55 = vsel %vm621_vm1, %v1093_v42, %v3391_v50 }
0x4180   : > { %1096 = vrot.lane.b32.xlu0 %v1094_v55, %s2974_s29 }
0x41a9   : > { %s2907_s15 = spop %2906 }
0x41aa   : > { %v2626_v25 = vstv %s2907_s15 }
0x41ab   : > { %v2627_v44 = vsel %vm2625_vm0, %v2626_v25, 0.0 }
0x41ac   : > { %v2629_v47 = vsel %vm2624_vm3, %v2628_v43, %v2627_v44 }
0x41ad   : > { %v2631_v48 = vsel %vm628_vm6, %v2630_v46, %v2629_v47 }
0x41ae   : > { %2632 = vst [vmem:[%s420_s0] sm:$0x1] %v2631_v48 }
0x41f2   : > { %v1097_v49 = vpop.permute.xlu0 %1096 }
0x41f3   : > { %v1099_v24 = vsel %vm628_vm6, -1e+09, %v1097_v49 }
0x41f4   : > { %v1100_v45 = vmax.f32 %v3391_v50, %v1099_v24 }
0x41f6   : > { %v1102_v52 = vadd.f32 %v1101_v51, %v1100_v45 }
0x41f8   : > { %1103 = vst.msk [vmem:[#allocation2 + $0x1f] sm:$0x1] %vm637_vm9, %v1102_v52 }
0x41f9 PF: > { %s37_s13 = sadd.s32 1, %s2965_s13  }
0x41fa   : > { %p34_p13 = scmp.ge.s32.totalorder %s37_s13, 4  }
0x41fc   :  { %36 = sbr.rel (!%p34_p13) target bundleno = 8 (0x8), region = 99 }

</bundles_post_ra>
